<compile_context>
chip_gen: v7x
topology: tpu7x:2x2x1
jax: 0.10.0
libtpu: 0.0.40
codegen_flags: <defaults>
</compile_context>

<pallas_src>
import math
from functools import partial

import jax
import jax.numpy as jnp
from jax.experimental import pallas as pl
from jax.experimental.pallas import tpu as pltpu

# Leave headroom against v7x's 64 MiB physical VMEM (v5e/v6e have 128 MiB).
_VMEM_LIMIT = 48 * 1024 * 1024


def _tile(n, pref):
    """Pick a tile size: preferred if it divides n, else the full extent."""
    return pref if n % pref == 0 else n


# --------------------------------------------------------------------------
# Kernel 1: fused RMSNorm + projection  (y = rmsnorm(x) * g @ W^T)
# --------------------------------------------------------------------------
def _rmsnorm_matmul_kernel(x_ref, g_ref, w_ref, o_ref, xn_ref, *, eps):
    # x_ref: (tm, D), g_ref: (1, D), w_ref: (D, tn), o_ref: (tm, tn)
    # xn_ref: (tm, D) f32 scratch holding the normalized tile (computed once
    # per row-tile, reused across all output-column tiles).
    @pl.when(pl.program_id(1) == 0)
    def _():
        x = x_ref[...].astype(jnp.float32)
        ms = jnp.mean(x * x, axis=-1, keepdims=True)
        xn_ref[...] = x * jax.lax.rsqrt(ms + eps) * g_ref[...].astype(jnp.float32)

    o_ref[...] = jnp.dot(
        xn_ref[...], w_ref[...].astype(jnp.float32),
        preferred_element_type=jnp.float32,
    ).astype(o_ref.dtype)


def rmsnorm_matmul(x, g, w_t, *, eps, tm, tn):
    M, D = x.shape
    _, N = w_t.shape
    grid = (M // tm, N // tn)
    return pl.pallas_call(
        partial(_rmsnorm_matmul_kernel, eps=eps),
        out_shape=jax.ShapeDtypeStruct((M, N), x.dtype),
        grid_spec=pltpu.PrefetchScalarGridSpec(
            num_scalar_prefetch=0,
            grid=grid,
            in_specs=[
                pl.BlockSpec((tm, D), lambda i, j: (i, 0)),
                pl.BlockSpec((1, D), lambda i, j: (0, 0)),
                pl.BlockSpec((D, tn), lambda i, j: (0, j)),
            ],
            out_specs=pl.BlockSpec((tm, tn), lambda i, j: (i, j)),
            scratch_shapes=[pltpu.VMEM((tm, D), jnp.float32)],
        ),
        compiler_params=pltpu.CompilerParams(
            dimension_semantics=("parallel", "arbitrary"),
            vmem_limit_bytes=_VMEM_LIMIT,
        ),
    )(x, g, w_t)


# --------------------------------------------------------------------------
# Kernel 2: flash attention (online softmax, causal mask in-kernel)
# --------------------------------------------------------------------------
def _flash_attn_kernel(q_ref, k_ref, v_ref, o_ref, m_ref, l_ref, acc_ref,
                       *, scale, tq, tk):
    qi = pl.program_id(1)
    ki = pl.program_id(2)

    @pl.when(ki == 0)
    def _():
        m_ref[...] = jnp.full_like(m_ref, -jnp.inf)
        l_ref[...] = jnp.zeros_like(l_ref)
        acc_ref[...] = jnp.zeros_like(acc_ref)

    q = q_ref[0].astype(jnp.float32)          # (tq, hd)
    k = k_ref[0].astype(jnp.float32)          # (tk, hd)
    s = jax.lax.dot_general(
        q, k, (((1,), (1,)), ((), ())),
        preferred_element_type=jnp.float32,
    ) * scale                                  # (tq, tk)

    # Causal mask (equivalent to the standard additive -inf mask at start_pos=0).
    q_idx = qi * tq + jax.lax.broadcasted_iota(jnp.int32, (tq, tk), 0)
    k_idx = ki * tk + jax.lax.broadcasted_iota(jnp.int32, (tq, tk), 1)
    s = jnp.where(q_idx >= k_idx, s, -1e30)

    m_prev = m_ref[...]
    m_new = jnp.maximum(m_prev, s.max(axis=-1, keepdims=True))
    alpha = jnp.exp(m_prev - m_new)
    p = jnp.exp(s - m_new)
    l_ref[...] = alpha * l_ref[...] + p.sum(axis=-1, keepdims=True)
    acc_ref[...] = alpha * acc_ref[...] + jnp.dot(
        p, v_ref[0].astype(jnp.float32), preferred_element_type=jnp.float32)
    m_ref[...] = m_new

    @pl.when(ki == pl.num_programs(2) - 1)
    def _():
        inv_l = pl.reciprocal(l_ref[...], approx=True)
        o_ref[0] = (acc_ref[...] * inv_l).astype(o_ref.dtype)


def flash_attention(q, k, v, *, tq, tk):
    BH, S, hd = q.shape
    scale = 1.0 / math.sqrt(hd)
    grid = (BH, S // tq, S // tk)
    return pl.pallas_call(
        partial(_flash_attn_kernel, scale=scale, tq=tq, tk=tk),
        out_shape=jax.ShapeDtypeStruct((BH, S, hd), q.dtype),
        grid_spec=pltpu.PrefetchScalarGridSpec(
            num_scalar_prefetch=0,
            grid=grid,
            in_specs=[
                pl.BlockSpec((1, tq, hd), lambda b, qi, ki: (b, qi, 0)),
                pl.BlockSpec((1, tk, hd), lambda b, qi, ki: (b, ki, 0)),
                pl.BlockSpec((1, tk, hd), lambda b, qi, ki: (b, ki, 0)),
            ],
            out_specs=pl.BlockSpec((1, tq, hd), lambda b, qi, ki: (b, qi, 0)),
            scratch_shapes=[
                pltpu.VMEM((tq, 1), jnp.float32),   # running max m
                pltpu.VMEM((tq, 1), jnp.float32),   # running denom l
                pltpu.VMEM((tq, hd), jnp.float32),  # output accumulator
            ],
        ),
        compiler_params=pltpu.CompilerParams(
            dimension_semantics=("parallel", "parallel", "arbitrary"),
            vmem_limit_bytes=_VMEM_LIMIT,
        ),
    )(q, k, v)


# --------------------------------------------------------------------------
# Kernel 3: out-projection + residual add  (y = resid + a @ W^T)
# --------------------------------------------------------------------------
def _matmul_residual_kernel(a_ref, w_ref, r_ref, o_ref):
    acc = jnp.dot(
        a_ref[...].astype(jnp.float32), w_ref[...].astype(jnp.float32),
        preferred_element_type=jnp.float32,
    )
    o_ref[...] = (acc + r_ref[...].astype(jnp.float32)).astype(o_ref.dtype)


def matmul_residual(a, w_t, resid, *, tm, tn):
    # TODO(synk): tile the K (contraction) dim as well for very large head counts.
    M, K = a.shape
    _, N = w_t.shape
    grid = (M // tm, N // tn)
    return pl.pallas_call(
        _matmul_residual_kernel,
        out_shape=jax.ShapeDtypeStruct((M, N), resid.dtype),
        grid_spec=pltpu.PrefetchScalarGridSpec(
            num_scalar_prefetch=0,
            grid=grid,
            in_specs=[
                pl.BlockSpec((tm, K), lambda i, j: (i, 0)),
                pl.BlockSpec((K, tn), lambda i, j: (0, j)),
                pl.BlockSpec((tm, tn), lambda i, j: (i, j)),
            ],
            out_specs=pl.BlockSpec((tm, tn), lambda i, j: (i, j)),
        ),
        compiler_params=pltpu.CompilerParams(
            dimension_semantics=("parallel", "parallel"),
            vmem_limit_bytes=_VMEM_LIMIT,
        ),
    )(a, w_t, resid)


# --------------------------------------------------------------------------
# Kernel 4: fused RMSNorm + SwiGLU FFN + residual
#   out = h + (silu(rmsnorm(h) @ W1^T) * (rmsnorm(h) @ W3^T)) @ W2^T
# --------------------------------------------------------------------------
def _ffn_swiglu_kernel(h_ref, g_ref, w1_ref, w3_ref, w2_ref, o_ref,
                       xn_ref, acc_ref, *, eps):
    k = pl.program_id(1)

    @pl.when(k == 0)
    def _():
        x = h_ref[...].astype(jnp.float32)
        ms = jnp.mean(x * x, axis=-1, keepdims=True)
        xn_ref[...] = x * jax.lax.rsqrt(ms + eps) * g_ref[...].astype(jnp.float32)
        acc_ref[...] = jnp.zeros_like(acc_ref)

    xn = xn_ref[...]
    h1 = jnp.dot(xn, w1_ref[...].astype(jnp.float32),
                 preferred_element_type=jnp.float32)
    h3 = jnp.dot(xn, w3_ref[...].astype(jnp.float32),
                 preferred_element_type=jnp.float32)
    hidden = (h1 / (1.0 + jnp.exp(-h1))) * h3          # silu(h1) * h3, f32
    acc_ref[...] += jnp.dot(hidden, w2_ref[...].astype(jnp.float32),
                            preferred_element_type=jnp.float32)

    @pl.when(k == pl.num_programs(1) - 1)
    def _():
        o_ref[...] = (acc_ref[...] + h_ref[...].astype(jnp.float32)).astype(o_ref.dtype)


def ffn_swiglu(h, g, w1_t, w3_t, w2_t, *, eps, tm, thd):
    M, D = h.shape
    _, Hd = w1_t.shape
    grid = (M // tm, Hd // thd)
    return pl.pallas_call(
        partial(_ffn_swiglu_kernel, eps=eps),
        out_shape=jax.ShapeDtypeStruct((M, D), h.dtype),
        grid_spec=pltpu.PrefetchScalarGridSpec(
            num_scalar_prefetch=0,
            grid=grid,
            in_specs=[
                pl.BlockSpec((tm, D), lambda i, k: (i, 0)),
                pl.BlockSpec((1, D), lambda i, k: (0, 0)),
                pl.BlockSpec((D, thd), lambda i, k: (0, k)),
                pl.BlockSpec((D, thd), lambda i, k: (0, k)),
                pl.BlockSpec((thd, D), lambda i, k: (k, 0)),
            ],
            out_specs=pl.BlockSpec((tm, D), lambda i, k: (i, 0)),
            scratch_shapes=[
                pltpu.VMEM((tm, D), jnp.float32),   # normalized x tile
                pltpu.VMEM((tm, D), jnp.float32),   # f32 accumulator
            ],
        ),
        compiler_params=pltpu.CompilerParams(
            dimension_semantics=("parallel", "arbitrary"),
            vmem_limit_bytes=_VMEM_LIMIT,
        ),
    )(h, g, w1_t, w3_t, w2_t)


# --------------------------------------------------------------------------
# RoPE (interleaved complex pairs, same convention as torch view_as_complex)
# --------------------------------------------------------------------------
def apply_rope(x, cos, sin):
    # TODO(synk): fold the RoPE rotation into the QKV-projection kernel
    # epilogue (pltpu.roll-style pair swap) to avoid this HBM round-trip.
    # x: (B, S, H, hd); cos/sin: (S, hd//2)
    B, S, H, hd = x.shape
    x2 = x.astype(jnp.float32).reshape(B, S, H, hd // 2, 2)
    xr, xi = x2[..., 0], x2[..., 1]
    c = cos[None, :, None, :]
    s = sin[None, :, None, :]
    out_r = xr * c - xi * s
    out_i = xr * s + xi * c
    return jnp.stack([out_r, out_i], axis=-1).reshape(B, S, H, hd).astype(x.dtype)


# --------------------------------------------------------------------------
# Full TransformerBlock forward (prefill, start_pos=0, causal mask)
# --------------------------------------------------------------------------
def transformer_block_forward(x, params, cos, sin, *, n_heads, n_kv_heads, eps):
    B, S, D = x.shape
    assert D % n_heads == 0 and n_heads % n_kv_heads == 0
    hd = D // n_heads
    n_rep = n_heads // n_kv_heads
    dq = n_heads * hd
    dkv = n_kv_heads * hd
    M = B * S

    # Collapse (batch, seq) so the projection/FFN GEMMs have a large M dim.
    x2 = x.reshape(M, D)

    # Pre-transpose weights once (torch layout is (out_features, in_features)).
    wqkv_t = jnp.concatenate([params["wq"], params["wk"], params["wv"]], axis=0).T
    wo_t = params["wo"].T
    w1_t = params["w1"].T
    w2_t = params["w2"].T
    w3_t = params["w3"].T

    tm = _tile(M, 128)
    Nqkv = dq + 2 * dkv

    # --- fused RMSNorm + QKV projection ---
    qkv = rmsnorm_matmul(
        x2, params["attn_norm"].reshape(1, D), wqkv_t,
        eps=eps, tm=tm, tn=_tile(Nqkv, 256))

    q = qkv[:, :dq].reshape(B, S, n_heads, hd)
    k = qkv[:, dq:dq + dkv].reshape(B, S, n_kv_heads, hd)
    v = qkv[:, dq + dkv:].reshape(B, S, n_kv_heads, hd)

    # RoPE on q/k (cheap elementwise, done in the wrapper).
    q = apply_rope(q, cos, sin)
    k = apply_rope(k, cos, sin)

    # GQA: repeat kv heads (repeat_interleave along head dim).
    # TODO(synk): express the head->kv_head mapping in the flash kernel's
    # BlockSpec index_map instead of materializing the repeat.
    if n_rep > 1:
        k = jnp.repeat(k, n_rep, axis=2)
        v = jnp.repeat(v, n_rep, axis=2)

    qf = q.transpose(0, 2, 1, 3).reshape(B * n_heads, S, hd)
    kf = k.transpose(0, 2, 1, 3).reshape(B * n_heads, S, hd)
    vf = v.transpose(0, 2, 1, 3).reshape(B * n_heads, S, hd)

    # --- flash attention (causal) ---
    attn = flash_attention(qf, kf, vf, tq=_tile(S, 128), tk=_tile(S, 128))
    attn = attn.reshape(B, n_heads, S, hd).transpose(0, 2, 1, 3).reshape(M, dq)

    # --- output projection + residual ---
    h = matmul_residual(attn, wo_t, x2, tm=tm, tn=_tile(D, 256))

    # --- fused RMSNorm + SwiGLU FFN + residual ---
    Hd = w1_t.shape[1]
    out = ffn_swiglu(h, params["ffn_norm"].reshape(1, D), w1_t, w3_t, w2_t,
                     eps=eps, tm=tm, thd=_tile(Hd, 256))
    return out.reshape(B, S, D)


# --------------------------------------------------------------------------
# Pure-JAX reference (mirrors the PyTorch module, start_pos=0, causal mask)
# --------------------------------------------------------------------------
def _rmsnorm_ref(x, w, eps):
    x32 = x.astype(jnp.float32)
    out = x32 * jax.lax.rsqrt(jnp.mean(x32 * x32, -1, keepdims=True) + eps)
    return out.astype(x.dtype) * w


def transformer_block_ref(x, params, cos, sin, *, n_heads, n_kv_heads, eps):
    B, S, D = x.shape
    hd = D // n_heads
    n_rep = n_heads // n_kv_heads

    xn = _rmsnorm_ref(x, params["attn_norm"], eps)
    q = (xn @ params["wq"].T).reshape(B, S, n_heads, hd)
    k = (xn @ params["wk"].T).reshape(B, S, n_kv_heads, hd)
    v = (xn @ params["wv"].T).reshape(B, S, n_kv_heads, hd)
    q = apply_rope(q, cos, sin)
    k = apply_rope(k, cos, sin)
    if n_rep > 1:
        k = jnp.repeat(k, n_rep, axis=2)
        v = jnp.repeat(v, n_rep, axis=2)
    q = q.transpose(0, 2, 1, 3)
    k = k.transpose(0, 2, 1, 3)
    v = v.transpose(0, 2, 1, 3)
    scores = jnp.einsum("bhqd,bhkd->bhqk", q, k) / math.sqrt(hd)
    causal = jnp.where(jnp.arange(S)[:, None] >= jnp.arange(S)[None, :], 0.0, -jnp.inf)
    scores = scores + causal[None, None]
    probs = jax.nn.softmax(scores.astype(jnp.float32), axis=-1).astype(q.dtype)
    attn = jnp.einsum("bhqk,bhkd->bhqd", probs, v)
    attn = attn.transpose(0, 2, 1, 3).reshape(B, S, D)
    h = x + attn @ params["wo"].T

    hn = _rmsnorm_ref(h, params["ffn_norm"], eps)
    h1 = hn @ params["w1"].T
    h3 = hn @ params["w3"].T
    return h + (jax.nn.silu(h1) * h3) @ params["w2"].T


# --------------------------------------------------------------------------
if __name__ == "__main__":
    B, S = 2, 256
    n_heads, n_kv_heads = 4, 2
    hd = 64
    D = n_heads * hd                      # 256
    multiple_of = 256
    Hd = int(2 * (4 * D) / 3)
    Hd = multiple_of * ((Hd + multiple_of - 1) // multiple_of)   # 768
    eps = 1e-5
    dtype = jnp.float32

    key = jax.random.PRNGKey(0)
    ks = jax.random.split(key, 12)

    def init_w(k, out_f, in_f):
        return (jax.random.normal(k, (out_f, in_f), dtype) / math.sqrt(in_f)).astype(dtype)

    dq, dkv = n_heads * hd, n_kv_heads * hd
    params = {
        "attn_norm": 1.0 + 0.1 * jax.random.normal(ks[1], (D,), dtype),
        "ffn_norm": 1.0 + 0.1 * jax.random.normal(ks[2], (D,), dtype),
        "wq": init_w(ks[3], dq, D),
        "wk": init_w(ks[4], dkv, D),
        "wv": init_w(ks[5], dkv, D),
        "wo": init_w(ks[6], D, dq),
        "w1": init_w(ks[7], Hd, D),
        "w2": init_w(ks[8], D, Hd),
        "w3": init_w(ks[9], Hd, D),
    }
    x = jax.random.normal(ks[0], (B, S, D), dtype)

    # freqs_cis (cos/sin split), same recipe as llama precompute_freqs_cis.
    theta = 10000.0
    freqs = 1.0 / (theta ** (jnp.arange(0, hd, 2, dtype=jnp.float32) / hd))
    angles = jnp.outer(jnp.arange(S, dtype=jnp.float32), freqs)   # (S, hd/2)
    cos, sin = jnp.cos(angles), jnp.sin(angles)

    fwd = jax.jit(lambda x_, p_, c_, s_: transformer_block_forward(
        x_, p_, c_, s_, n_heads=n_heads, n_kv_heads=n_kv_heads, eps=eps))

    out = fwd(x, params, cos, sin)
    out = jax.block_until_ready(out)

    ref = transformer_block_ref(x, params, cos, sin,
                                n_heads=n_heads, n_kv_heads=n_kv_heads, eps=eps)
    err = float(jnp.max(jnp.abs(out - ref)))
    assert err < 5e-2, f"max abs error too large: {err}"

    print("KERNEL_OK")
</pallas_src>

<mosaic_0001>
module attributes {stable_mosaic.version = 11 : i64} {
  func.func @_rmsnorm_matmul_kernel(%arg0: i32, %arg1: i32, %arg2: memref<128x256xf32, #tpu.memory_space<vmem>>, %arg3: memref<1x256xf32, #tpu.memory_space<vmem>>, %arg4: memref<256x256xf32, #tpu.memory_space<vmem>>, %arg5: memref<128x256xf32, #tpu.memory_space<vmem>>, %arg6: memref<128x256xf32, #tpu.memory_space<vmem>>) attributes {dimension_semantics = [#tpu.dimension_semantics<parallel>, #tpu.dimension_semantics<arbitrary>], iteration_bounds = array<i64: 4, 2>, scalar_prefetch = 0 : i64, scratch_operands = 1 : i64, tpu.core_type = #tpu.core_type<tc>, window_params = [{transform_indices = @transform_0, window_bounds = array<i64: 128, 256>}, {pipeline_mode = #tpu.pipeline_mode<synchronous>, transform_indices = @transform_1, window_bounds = array<i64: 1, 256>}, {transform_indices = @transform_2, window_bounds = array<i64: 256, 256>}, {transform_indices = @transform_3, window_bounds = array<i64: 128, 256>}]} {
    %c0_i32 = arith.constant 0 : i32
    %0 = arith.cmpi eq, %arg1, %c0_i32 : i32
    %1 = arith.extui %0 : i1 to i32
    %c0_i32_0 = arith.constant 0 : i32
    %2 = arith.cmpi ne, %1, %c0_i32_0 : i32
    scf.if %2 {
      %c0_6 = arith.constant 0 : index
      %c0_7 = arith.constant 0 : index
      %7 = vector.load %arg2[%c0_6, %c0_7] : memref<128x256xf32, #tpu.memory_space<vmem>>, vector<128x256xf32>
      %8 = arith.mulf %7, %7 : vector<128x256xf32>
      %cst_8 = arith.constant dense<0.000000e+00> : vector<128xf32>
      %9 = vector.multi_reduction <add>, %8, %cst_8 [1] : vector<128x256xf32> to vector<128xf32>
      %10 = vector.shape_cast %9 : vector<128xf32> to vector<128x1xf32>
      %cst_9 = arith.constant 2.560000e+02 : f32
      %11 = vector.broadcast %cst_9 : f32 to vector<128x1xf32>
      %12 = arith.divf %10, %11 : vector<128x1xf32>
      %cst_10 = arith.constant 9.99999974E-6 : f32
      %13 = vector.broadcast %cst_10 : f32 to vector<128x1xf32>
      %14 = arith.addf %12, %13 : vector<128x1xf32>
      %15 = math.rsqrt %14 : vector<128x1xf32>
      %16 = vector.broadcast %15 : vector<128x1xf32> to vector<128x256xf32>
      %17 = arith.mulf %7, %16 : vector<128x256xf32>
      %c0_11 = arith.constant 0 : index
      %c0_12 = arith.constant 0 : index
      %18 = vector.load %arg3[%c0_11, %c0_12] : memref<1x256xf32, #tpu.memory_space<vmem>>, vector<1x256xf32>
      %19 = vector.broadcast %18 : vector<1x256xf32> to vector<128x256xf32>
      %20 = arith.mulf %17, %19 : vector<128x256xf32>
      %c0_13 = arith.constant 0 : index
      %c0_14 = arith.constant 0 : index
      %21 = vector.load %arg6[%c0_13, %c0_14] : memref<128x256xf32, #tpu.memory_space<vmem>>, vector<128x256xf32>
      tpu.vector_store %arg6[%c0_13, %c0_14], %20 {strides = array<i32>} : memref<128x256xf32, #tpu.memory_space<vmem>>, vector<128x256xf32>,
    } else {
    }
    %c0 = arith.constant 0 : index
    %c0_1 = arith.constant 0 : index
    %3 = vector.load %arg6[%c0, %c0_1] : memref<128x256xf32, #tpu.memory_space<vmem>>, vector<128x256xf32>
    %c0_2 = arith.constant 0 : index
    %c0_3 = arith.constant 0 : index
    %4 = vector.load %arg4[%c0_2, %c0_3] : memref<256x256xf32, #tpu.memory_space<vmem>>, vector<256x256xf32>
    %cst = arith.constant dense<0.000000e+00> : vector<128x256xf32>
    %5 = tpu.matmul %3, %4, %cst {dimension_numbers = #tpu.dot_dimension_numbers<[1], [0], [0], [1], [0, 0, 1, 1], [], []>} : vector<128x256xf32>, vector<256x256xf32>, vector<128x256xf32> -> vector<128x256xf32>
    %c0_4 = arith.constant 0 : index
    %c0_5 = arith.constant 0 : index
    %6 = vector.load %arg5[%c0_4, %c0_5] : memref<128x256xf32, #tpu.memory_space<vmem>>, vector<128x256xf32>
    tpu.vector_store %arg5[%c0_4, %c0_5], %5 {strides = array<i32>} : memref<128x256xf32, #tpu.memory_space<vmem>>, vector<128x256xf32>,
    return
  }
  func.func @transform_0(%arg0: i32, %arg1: i32) -> (i32, i32) {
    %c0_i32 = arith.constant 0 : i32
    %c0_i32_0 = arith.constant 0 : i32
    return %arg0, %c0_i32 : i32, i32
  }
  func.func @transform_1(%arg0: i32, %arg1: i32) -> (i32, i32) {
    %c0_i32 = arith.constant 0 : i32
    %c0_i32_0 = arith.constant 0 : i32
    %c0_i32_1 = arith.constant 0 : i32
    return %c0_i32, %c0_i32_0 : i32, i32
  }
  func.func @transform_2(%arg0: i32, %arg1: i32) -> (i32, i32) {
    %c0_i32 = arith.constant 0 : i32
    %c0_i32_0 = arith.constant 0 : i32
    return %c0_i32, %arg1 : i32, i32
  }
  func.func @transform_3(%arg0: i32, %arg1: i32) -> (i32, i32) {
    %c0_i32 = arith.constant 0 : i32
    return %arg0, %arg1 : i32, i32
  }
}

module attributes {stable_mosaic.version = 11 : i64} {
  func.func @_flash_attn_kernel(%arg0: i32, %arg1: i32, %arg2: i32, %arg3: memref<1x128x64xf32, #tpu.memory_space<vmem>>, %arg4: memref<1x128x64xf32, #tpu.memory_space<vmem>>, %arg5: memref<1x128x64xf32, #tpu.memory_space<vmem>>, %arg6: memref<1x128x64xf32, #tpu.memory_space<vmem>>, %arg7: memref<128x1xf32, #tpu.memory_space<vmem>>, %arg8: memref<128x1xf32, #tpu.memory_space<vmem>>, %arg9: memref<128x64xf32, #tpu.memory_space<vmem>>) attributes {dimension_semantics = [#tpu.dimension_semantics<parallel>, #tpu.dimension_semantics<parallel>, #tpu.dimension_semantics<arbitrary>], iteration_bounds = array<i64: 8, 2, 2>, scalar_prefetch = 0 : i64, scratch_operands = 3 : i64, tpu.core_type = #tpu.core_type<tc>, window_params = [{transform_indices = @transform_0, window_bounds = array<i64: 1, 128, 64>}, {transform_indices = @transform_1, window_bounds = array<i64: 1, 128, 64>}, {transform_indices = @transform_2, window_bounds = array<i64: 1, 128, 64>}, {transform_indices = @transform_3, window_bounds = array<i64: 1, 128, 64>}]} {
    %c0_i32 = arith.constant 0 : i32
    %0 = arith.cmpi eq, %arg2, %c0_i32 : i32
    %1 = arith.extui %0 : i1 to i32
    %c0_i32_0 = arith.constant 0 : i32
    %2 = arith.cmpi ne, %1, %c0_i32_0 : i32
    scf.if %2 {
      %cst_28 = arith.constant 0xFF800000 : f32
      %48 = vector.broadcast %cst_28 : f32 to vector<128x1xf32>
      %c0_29 = arith.constant 0 : index
      %c0_30 = arith.constant 0 : index
      %49 = vector.load %arg7[%c0_29, %c0_30] : memref<128x1xf32, #tpu.memory_space<vmem>>, vector<128x1xf32>
      tpu.vector_store %arg7[%c0_29, %c0_30], %48 {strides = array<i32>} : memref<128x1xf32, #tpu.memory_space<vmem>>, vector<128x1xf32>,
      %cst_31 = arith.constant 0.000000e+00 : f32
      %50 = vector.broadcast %cst_31 : f32 to vector<128x1xf32>
      %c0_32 = arith.constant 0 : index
      %c0_33 = arith.constant 0 : index
      %51 = vector.load %arg8[%c0_32, %c0_33] : memref<128x1xf32, #tpu.memory_space<vmem>>, vector<128x1xf32>
      tpu.vector_store %arg8[%c0_32, %c0_33], %50 {strides = array<i32>} : memref<128x1xf32, #tpu.memory_space<vmem>>, vector<128x1xf32>,
      %cst_34 = arith.constant 0.000000e+00 : f32
      %52 = vector.broadcast %cst_34 : f32 to vector<128x64xf32>
      %c0_35 = arith.constant 0 : index
      %c0_36 = arith.constant 0 : index
      %53 = vector.load %arg9[%c0_35, %c0_36] : memref<128x64xf32, #tpu.memory_space<vmem>>, vector<128x64xf32>
      tpu.vector_store %arg9[%c0_35, %c0_36], %52 {strides = array<i32>} : memref<128x64xf32, #tpu.memory_space<vmem>>, vector<128x64xf32>,
    } else {
    }
    %c0 = arith.constant 0 : index
    %c0_1 = arith.constant 0 : index
    %c0_2 = arith.constant 0 : index
    %3 = vector.load %arg3[%c0, %c0_1, %c0_2] : memref<1x128x64xf32, #tpu.memory_space<vmem>>, vector<1x128x64xf32>
    %4 = vector.shape_cast %3 : vector<1x128x64xf32> to vector<128x64xf32>
    %c0_3 = arith.constant 0 : index
    %c0_4 = arith.constant 0 : index
    %c0_5 = arith.constant 0 : index
    %5 = vector.load %arg4[%c0_3, %c0_4, %c0_5] : memref<1x128x64xf32, #tpu.memory_space<vmem>>, vector<1x128x64xf32>
    %6 = vector.shape_cast %5 : vector<1x128x64xf32> to vector<128x64xf32>
    %cst = arith.constant dense<0.000000e+00> : vector<128x128xf32>
    %7 = tpu.matmul %4, %6, %cst {dimension_numbers = #tpu.dot_dimension_numbers<[1], [1], [0], [0], [0, 0, 1, 0], [], []>} : vector<128x64xf32>, vector<128x64xf32>, vector<128x128xf32> -> vector<128x128xf32>
    %cst_6 = arith.constant 1.250000e-01 : f32
    %8 = vector.broadcast %cst_6 : f32 to vector<128x128xf32>
    %9 = arith.mulf %7, %8 : vector<128x128xf32>
    %c128_i32 = arith.constant 128 : i32
    %10 = arith.muli %arg1, %c128_i32 : i32
    %11 = tpu.iota {dimensions = array<i32: 0>} : vector<128x128xi32>
    %12 = vector.broadcast %10 : i32 to vector<128x128xi32>
    %13 = arith.addi %12, %11 : vector<128x128xi32>
    %c128_i32_7 = arith.constant 128 : i32
    %14 = arith.muli %arg2, %c128_i32_7 : i32
    %15 = tpu.iota {dimensions = array<i32: 1>} : vector<128x128xi32>
    %16 = vector.broadcast %14 : i32 to vector<128x128xi32>
    %17 = arith.addi %16, %15 : vector<128x128xi32>
    %18 = arith.cmpi sge, %13, %17 : vector<128x128xi32>
    %cst_8 = arith.constant -1.000000e+30 : f32
    %19 = vector.broadcast %cst_8 : f32 to vector<128x128xf32>
    %20 = arith.select %18, %9, %19 : vector<128x128xi1>, vector<128x128xf32>
    %c0_9 = arith.constant 0 : index
    %c0_10 = arith.constant 0 : index
    %21 = vector.load %arg7[%c0_9, %c0_10] : memref<128x1xf32, #tpu.memory_space<vmem>>, vector<128x1xf32>
    %cst_11 = arith.constant dense<0xFF800000> : vector<128xf32>
    %22 = vector.multi_reduction <maximumf>, %20, %cst_11 [1] : vector<128x128xf32> to vector<128xf32>
    %23 = vector.shape_cast %22 : vector<128xf32> to vector<128x1xf32>
    %24 = arith.maximumf %21, %23 : vector<128x1xf32>
    %25 = arith.subf %21, %24 : vector<128x1xf32>
    %26 = math.exp %25 : vector<128x1xf32>
    %27 = vector.broadcast %24 : vector<128x1xf32> to vector<128x128xf32>
    %28 = arith.subf %20, %27 : vector<128x128xf32>
    %29 = math.exp %28 : vector<128x128xf32>
    %c0_12 = arith.constant 0 : index
    %c0_13 = arith.constant 0 : index
    %30 = vector.load %arg8[%c0_12, %c0_13] : memref<128x1xf32, #tpu.memory_space<vmem>>, vector<128x1xf32>
    %31 = arith.mulf %26, %30 : vector<128x1xf32>
    %cst_14 = arith.constant dense<0.000000e+00> : vector<128xf32>
    %32 = vector.multi_reduction <add>, %29, %cst_14 [1] : vector<128x128xf32> to vector<128xf32>
    %33 = vector.shape_cast %32 : vector<128xf32> to vector<128x1xf32>
    %34 = arith.addf %31, %33 : vector<128x1xf32>
    %c0_15 = arith.constant 0 : index
    %c0_16 = arith.constant 0 : index
    %35 = vector.load %arg8[%c0_15, %c0_16] : memref<128x1xf32, #tpu.memory_space<vmem>>, vector<128x1xf32>
    tpu.vector_store %arg8[%c0_15, %c0_16], %34 {strides = array<i32>} : memref<128x1xf32, #tpu.memory_space<vmem>>, vector<128x1xf32>,
    %c0_17 = arith.constant 0 : index
    %c0_18 = arith.constant 0 : index
    %36 = vector.load %arg9[%c0_17, %c0_18] : memref<128x64xf32, #tpu.memory_space<vmem>>, vector<128x64xf32>
    %37 = vector.broadcast %26 : vector<128x1xf32> to vector<128x64xf32>
    %38 = arith.mulf %37, %36 : vector<128x64xf32>
    %c0_19 = arith.constant 0 : index
    %c0_20 = arith.constant 0 : index
    %c0_21 = arith.constant 0 : index
    %39 = vector.load %arg5[%c0_19, %c0_20, %c0_21] : memref<1x128x64xf32, #tpu.memory_space<vmem>>, vector<1x128x64xf32>
    %40 = vector.shape_cast %39 : vector<1x128x64xf32> to vector<128x64xf32>
    %cst_22 = arith.constant dense<0.000000e+00> : vector<128x64xf32>
    %41 = tpu.matmul %29, %40, %cst_22 {dimension_numbers = #tpu.dot_dimension_numbers<[1], [0], [0], [1], [0, 0, 1, 1], [], []>} : vector<128x128xf32>, vector<128x64xf32>, vector<128x64xf32> -> vector<128x64xf32>
    %42 = arith.addf %38, %41 : vector<128x64xf32>
    %c0_23 = arith.constant 0 : index
    %c0_24 = arith.constant 0 : index
    %43 = vector.load %arg9[%c0_23, %c0_24] : memref<128x64xf32, #tpu.memory_space<vmem>>, vector<128x64xf32>
    tpu.vector_store %arg9[%c0_23, %c0_24], %42 {strides = array<i32>} : memref<128x64xf32, #tpu.memory_space<vmem>>, vector<128x64xf32>,
    %c0_25 = arith.constant 0 : index
    %c0_26 = arith.constant 0 : index
    %44 = vector.load %arg7[%c0_25, %c0_26] : memref<128x1xf32, #tpu.memory_space<vmem>>, vector<128x1xf32>
    tpu.vector_store %arg7[%c0_25, %c0_26], %24 {strides = array<i32>} : memref<128x1xf32, #tpu.memory_space<vmem>>, vector<128x1xf32>,
    %c1_i32 = arith.constant 1 : i32
    %45 = arith.cmpi eq, %arg2, %c1_i32 : i32
    %46 = arith.extui %45 : i1 to i32
    %c0_i32_27 = arith.constant 0 : i32
    %47 = arith.cmpi ne, %46, %c0_i32_27 : i32
    scf.if %47 {
      %c0_28 = arith.constant 0 : index
      %c0_29 = arith.constant 0 : index
      %48 = vector.load %arg8[%c0_28, %c0_29] : memref<128x1xf32, #tpu.memory_space<vmem>>, vector<128x1xf32>
      %49 = tpu.reciprocal %48 {approx = true} : vector<128x1xf32> -> vector<128x1xf32>
      %c0_30 = arith.constant 0 : index
      %c0_31 = arith.constant 0 : index
      %50 = vector.load %arg9[%c0_30, %c0_31] : memref<128x64xf32, #tpu.memory_space<vmem>>, vector<128x64xf32>
      %51 = vector.broadcast %49 : vector<128x1xf32> to vector<128x64xf32>
      %52 = arith.mulf %50, %51 : vector<128x64xf32>
      %c0_32 = arith.constant 0 : index
      %c0_33 = arith.constant 0 : index
      %c0_34 = arith.constant 0 : index
      %53 = vector.load %arg6[%c0_32, %c0_33, %c0_34] : memref<1x128x64xf32, #tpu.memory_space<vmem>>, vector<1x128x64xf32>
      %54 = vector.shape_cast %53 : vector<1x128x64xf32> to vector<128x64xf32>
      %55 = vector.shape_cast %52 : vector<128x64xf32> to vector<1x128x64xf32>
      tpu.vector_store %arg6[%c0_32, %c0_33, %c0_34], %55 {strides = array<i32>} : memref<1x128x64xf32, #tpu.memory_space<vmem>>, vector<1x128x64xf32>,
    } else {
    }
    return
  }
  func.func @transform_0(%arg0: i32, %arg1: i32, %arg2: i32) -> (i32, i32, i32) {
    %c0_i32 = arith.constant 0 : i32
    %c0_i32_0 = arith.constant 0 : i32
    return %arg0, %arg1, %c0_i32 : i32, i32, i32
  }
  func.func @transform_1(%arg0: i32, %arg1: i32, %arg2: i32) -> (i32, i32, i32) {
    %c0_i32 = arith.constant 0 : i32
    %c0_i32_0 = arith.constant 0 : i32
    return %arg0, %arg2, %c0_i32 : i32, i32, i32
  }
  func.func @transform_2(%arg0: i32, %arg1: i32, %arg2: i32) -> (i32, i32, i32) {
    %c0_i32 = arith.constant 0 : i32
    %c0_i32_0 = arith.constant 0 : i32
    return %arg0, %arg2, %c0_i32 : i32, i32, i32
  }
  func.func @transform_3(%arg0: i32, %arg1: i32, %arg2: i32) -> (i32, i32, i32) {
    %c0_i32 = arith.constant 0 : i32
    %c0_i32_0 = arith.constant 0 : i32
    return %arg0, %arg1, %c0_i32 : i32, i32, i32
  }
}

module attributes {stable_mosaic.version = 11 : i64} {
  func.func @_matmul_residual_kernel(%arg0: i32, %arg1: i32, %arg2: memref<128x256xf32, #tpu.memory_space<vmem>>, %arg3: memref<256x256xf32, #tpu.memory_space<vmem>>, %arg4: memref<128x256xf32, #tpu.memory_space<vmem>>, %arg5: memref<128x256xf32, #tpu.memory_space<vmem>>) attributes {dimension_semantics = [#tpu.dimension_semantics<parallel>, #tpu.dimension_semantics<parallel>], iteration_bounds = array<i64: 4, 1>, scalar_prefetch = 0 : i64, scratch_operands = 0 : i64, tpu.core_type = #tpu.core_type<tc>, window_params = [{transform_indices = @transform_0, window_bounds = array<i64: 128, 256>}, {transform_indices = @transform_1, window_bounds = array<i64: 256, 256>}, {transform_indices = @transform_2, window_bounds = array<i64: 128, 256>}, {transform_indices = @transform_3, window_bounds = array<i64: 128, 256>}]} {
    %c0 = arith.constant 0 : index
    %c0_0 = arith.constant 0 : index
    %0 = vector.load %arg2[%c0, %c0_0] : memref<128x256xf32, #tpu.memory_space<vmem>>, vector<128x256xf32>
    %c0_1 = arith.constant 0 : index
    %c0_2 = arith.constant 0 : index
    %1 = vector.load %arg3[%c0_1, %c0_2] : memref<256x256xf32, #tpu.memory_space<vmem>>, vector<256x256xf32>
    %cst = arith.constant dense<0.000000e+00> : vector<128x256xf32>
    %2 = tpu.matmul %0, %1, %cst {dimension_numbers = #tpu.dot_dimension_numbers<[1], [0], [0], [1], [0, 0, 1, 1], [], []>} : vector<128x256xf32>, vector<256x256xf32>, vector<128x256xf32> -> vector<128x256xf32>
    %c0_3 = arith.constant 0 : index
    %c0_4 = arith.constant 0 : index
    %3 = vector.load %arg4[%c0_3, %c0_4] : memref<128x256xf32, #tpu.memory_space<vmem>>, vector<128x256xf32>
    %4 = arith.addf %2, %3 : vector<128x256xf32>
    %c0_5 = arith.constant 0 : index
    %c0_6 = arith.constant 0 : index
    %5 = vector.load %arg5[%c0_5, %c0_6] : memref<128x256xf32, #tpu.memory_space<vmem>>, vector<128x256xf32>
    tpu.vector_store %arg5[%c0_5, %c0_6], %4 {strides = array<i32>} : memref<128x256xf32, #tpu.memory_space<vmem>>, vector<128x256xf32>,
    return
  }
  func.func @transform_0(%arg0: i32, %arg1: i32) -> (i32, i32) {
    %c0_i32 = arith.constant 0 : i32
    %c0_i32_0 = arith.constant 0 : i32
    return %arg0, %c0_i32 : i32, i32
  }
  func.func @transform_1(%arg0: i32, %arg1: i32) -> (i32, i32) {
    %c0_i32 = arith.constant 0 : i32
    %c0_i32_0 = arith.constant 0 : i32
    return %c0_i32, %arg1 : i32, i32
  }
  func.func @transform_2(%arg0: i32, %arg1: i32) -> (i32, i32) {
    %c0_i32 = arith.constant 0 : i32
    return %arg0, %arg1 : i32, i32
  }
  func.func @transform_3(%arg0: i32, %arg1: i32) -> (i32, i32) {
    %c0_i32 = arith.constant 0 : i32
    return %arg0, %arg1 : i32, i32
  }
}

module attributes {stable_mosaic.version = 11 : i64} {
  func.func @_ffn_swiglu_kernel(%arg0: i32, %arg1: i32, %arg2: memref<128x256xf32, #tpu.memory_space<vmem>>, %arg3: memref<1x256xf32, #tpu.memory_space<vmem>>, %arg4: memref<256x256xf32, #tpu.memory_space<vmem>>, %arg5: memref<256x256xf32, #tpu.memory_space<vmem>>, %arg6: memref<256x256xf32, #tpu.memory_space<vmem>>, %arg7: memref<128x256xf32, #tpu.memory_space<vmem>>, %arg8: memref<128x256xf32, #tpu.memory_space<vmem>>, %arg9: memref<128x256xf32, #tpu.memory_space<vmem>>) attributes {dimension_semantics = [#tpu.dimension_semantics<parallel>, #tpu.dimension_semantics<arbitrary>], iteration_bounds = array<i64: 4, 3>, scalar_prefetch = 0 : i64, scratch_operands = 2 : i64, tpu.core_type = #tpu.core_type<tc>, window_params = [{transform_indices = @transform_0, window_bounds = array<i64: 128, 256>}, {pipeline_mode = #tpu.pipeline_mode<synchronous>, transform_indices = @transform_1, window_bounds = array<i64: 1, 256>}, {transform_indices = @transform_2, window_bounds = array<i64: 256, 256>}, {transform_indices = @transform_3, window_bounds = array<i64: 256, 256>}, {transform_indices = @transform_4, window_bounds = array<i64: 256, 256>}, {transform_indices = @transform_5, window_bounds = array<i64: 128, 256>}]} {
    %c0_i32 = arith.constant 0 : i32
    %0 = arith.cmpi eq, %arg1, %c0_i32 : i32
    %1 = arith.extui %0 : i1 to i32
    %c0_i32_0 = arith.constant 0 : i32
    %2 = arith.cmpi ne, %1, %c0_i32_0 : i32
    scf.if %2 {
      %c0_17 = arith.constant 0 : index
      %c0_18 = arith.constant 0 : index
      %23 = vector.load %arg2[%c0_17, %c0_18] : memref<128x256xf32, #tpu.memory_space<vmem>>, vector<128x256xf32>
      %24 = arith.mulf %23, %23 : vector<128x256xf32>
      %cst_19 = arith.constant dense<0.000000e+00> : vector<128xf32>
      %25 = vector.multi_reduction <add>, %24, %cst_19 [1] : vector<128x256xf32> to vector<128xf32>
      %26 = vector.shape_cast %25 : vector<128xf32> to vector<128x1xf32>
      %cst_20 = arith.constant 2.560000e+02 : f32
      %27 = vector.broadcast %cst_20 : f32 to vector<128x1xf32>
      %28 = arith.divf %26, %27 : vector<128x1xf32>
      %cst_21 = arith.constant 9.99999974E-6 : f32
      %29 = vector.broadcast %cst_21 : f32 to vector<128x1xf32>
      %30 = arith.addf %28, %29 : vector<128x1xf32>
      %31 = math.rsqrt %30 : vector<128x1xf32>
      %32 = vector.broadcast %31 : vector<128x1xf32> to vector<128x256xf32>
      %33 = arith.mulf %23, %32 : vector<128x256xf32>
      %c0_22 = arith.constant 0 : index
      %c0_23 = arith.constant 0 : index
      %34 = vector.load %arg3[%c0_22, %c0_23] : memref<1x256xf32, #tpu.memory_space<vmem>>, vector<1x256xf32>
      %35 = vector.broadcast %34 : vector<1x256xf32> to vector<128x256xf32>
      %36 = arith.mulf %33, %35 : vector<128x256xf32>
      %c0_24 = arith.constant 0 : index
      %c0_25 = arith.constant 0 : index
      %37 = vector.load %arg8[%c0_24, %c0_25] : memref<128x256xf32, #tpu.memory_space<vmem>>, vector<128x256xf32>
      tpu.vector_store %arg8[%c0_24, %c0_25], %36 {strides = array<i32>} : memref<128x256xf32, #tpu.memory_space<vmem>>, vector<128x256xf32>,
      %cst_26 = arith.constant 0.000000e+00 : f32
      %38 = vector.broadcast %cst_26 : f32 to vector<128x256xf32>
      %c0_27 = arith.constant 0 : index
      %c0_28 = arith.constant 0 : index
      %39 = vector.load %arg9[%c0_27, %c0_28] : memref<128x256xf32, #tpu.memory_space<vmem>>, vector<128x256xf32>
      tpu.vector_store %arg9[%c0_27, %c0_28], %38 {strides = array<i32>} : memref<128x256xf32, #tpu.memory_space<vmem>>, vector<128x256xf32>,
    } else {
    }
    %c0 = arith.constant 0 : index
    %c0_1 = arith.constant 0 : index
    %3 = vector.load %arg8[%c0, %c0_1] : memref<128x256xf32, #tpu.memory_space<vmem>>, vector<128x256xf32>
    %c0_2 = arith.constant 0 : index
    %c0_3 = arith.constant 0 : index
    %4 = vector.load %arg4[%c0_2, %c0_3] : memref<256x256xf32, #tpu.memory_space<vmem>>, vector<256x256xf32>
    %cst = arith.constant dense<0.000000e+00> : vector<128x256xf32>
    %5 = tpu.matmul %3, %4, %cst {dimension_numbers = #tpu.dot_dimension_numbers<[1], [0], [0], [1], [0, 0, 1, 1], [], []>} : vector<128x256xf32>, vector<256x256xf32>, vector<128x256xf32> -> vector<128x256xf32>
    %c0_4 = arith.constant 0 : index
    %c0_5 = arith.constant 0 : index
    %6 = vector.load %arg5[%c0_4, %c0_5] : memref<256x256xf32, #tpu.memory_space<vmem>>, vector<256x256xf32>
    %cst_6 = arith.constant dense<0.000000e+00> : vector<128x256xf32>
    %7 = tpu.matmul %3, %6, %cst_6 {dimension_numbers = #tpu.dot_dimension_numbers<[1], [0], [0], [1], [0, 0, 1, 1], [], []>} : vector<128x256xf32>, vector<256x256xf32>, vector<128x256xf32> -> vector<128x256xf32>
    %cst_7 = arith.constant 0.000000e+00 : f32
    %8 = vector.broadcast %cst_7 : f32 to vector<128x256xf32>
    %9 = arith.subf %8, %5 : vector<128x256xf32>
    %10 = math.exp %9 : vector<128x256xf32>
    %cst_8 = arith.constant 1.000000e+00 : f32
    %11 = vector.broadcast %cst_8 : f32 to vector<128x256xf32>
    %12 = arith.addf %11, %10 : vector<128x256xf32>
    %13 = arith.divf %5, %12 : vector<128x256xf32>
    %14 = arith.mulf %13, %7 : vector<128x256xf32>
    %c0_9 = arith.constant 0 : index
    %c0_10 = arith.constant 0 : index
    %15 = vector.load %arg9[%c0_9, %c0_10] : memref<128x256xf32, #tpu.memory_space<vmem>>, vector<128x256xf32>
    %c0_11 = arith.constant 0 : index
    %c0_12 = arith.constant 0 : index
    %16 = vector.load %arg6[%c0_11, %c0_12] : memref<256x256xf32, #tpu.memory_space<vmem>>, vector<256x256xf32>
    %cst_13 = arith.constant dense<0.000000e+00> : vector<128x256xf32>
    %17 = tpu.matmul %14, %16, %cst_13 {dimension_numbers = #tpu.dot_dimension_numbers<[1], [0], [0], [1], [0, 0, 1, 1], [], []>} : vector<128x256xf32>, vector<256x256xf32>, vector<128x256xf32> -> vector<128x256xf32>
    %18 = arith.addf %15, %17 : vector<128x256xf32>
    %c0_14 = arith.constant 0 : index
    %c0_15 = arith.constant 0 : index
    %19 = vector.load %arg9[%c0_14, %c0_15] : memref<128x256xf32, #tpu.memory_space<vmem>>, vector<128x256xf32>
    tpu.vector_store %arg9[%c0_14, %c0_15], %18 {strides = array<i32>} : memref<128x256xf32, #tpu.memory_space<vmem>>, vector<128x256xf32>,
    %c2_i32 = arith.constant 2 : i32
    %20 = arith.cmpi eq, %arg1, %c2_i32 : i32
    %21 = arith.extui %20 : i1 to i32
    %c0_i32_16 = arith.constant 0 : i32
    %22 = arith.cmpi ne, %21, %c0_i32_16 : i32
    scf.if %22 {
      %c0_17 = arith.constant 0 : index
      %c0_18 = arith.constant 0 : index
      %23 = vector.load %arg9[%c0_17, %c0_18] : memref<128x256xf32, #tpu.memory_space<vmem>>, vector<128x256xf32>
      %c0_19 = arith.constant 0 : index
      %c0_20 = arith.constant 0 : index
      %24 = vector.load %arg2[%c0_19, %c0_20] : memref<128x256xf32, #tpu.memory_space<vmem>>, vector<128x256xf32>
      %25 = arith.addf %23, %24 : vector<128x256xf32>
      %c0_21 = arith.constant 0 : index
      %c0_22 = arith.constant 0 : index
      %26 = vector.load %arg7[%c0_21, %c0_22] : memref<128x256xf32, #tpu.memory_space<vmem>>, vector<128x256xf32>
      tpu.vector_store %arg7[%c0_21, %c0_22], %25 {strides = array<i32>} : memref<128x256xf32, #tpu.memory_space<vmem>>, vector<128x256xf32>,
    } else {
    }
    return
  }
  func.func @transform_0(%arg0: i32, %arg1: i32) -> (i32, i32) {
    %c0_i32 = arith.constant 0 : i32
    %c0_i32_0 = arith.constant 0 : i32
    return %arg0, %c0_i32 : i32, i32
  }
  func.func @transform_1(%arg0: i32, %arg1: i32) -> (i32, i32) {
    %c0_i32 = arith.constant 0 : i32
    %c0_i32_0 = arith.constant 0 : i32
    %c0_i32_1 = arith.constant 0 : i32
    return %c0_i32, %c0_i32_0 : i32, i32
  }
  func.func @transform_2(%arg0: i32, %arg1: i32) -> (i32, i32) {
    %c0_i32 = arith.constant 0 : i32
    %c0_i32_0 = arith.constant 0 : i32
    return %c0_i32, %arg1 : i32, i32
  }
  func.func @transform_3(%arg0: i32, %arg1: i32) -> (i32, i32) {
    %c0_i32 = arith.constant 0 : i32
    %c0_i32_0 = arith.constant 0 : i32
    return %c0_i32, %arg1 : i32, i32
  }
  func.func @transform_4(%arg0: i32, %arg1: i32) -> (i32, i32) {
    %c0_i32 = arith.constant 0 : i32
    %c0_i32_0 = arith.constant 0 : i32
    return %arg1, %c0_i32 : i32, i32
  }
  func.func @transform_5(%arg0: i32, %arg1: i32) -> (i32, i32) {
    %c0_i32 = arith.constant 0 : i32
    %c0_i32_0 = arith.constant 0 : i32
    return %arg0, %c0_i32 : i32, i32
  }
}

</mosaic_0001>

<bundles_post_ra>
// kernel: _lambda_.4
= control target key start
LH: loop header
LB: loop body
LE: loop exit
PB: predicated region body
PF: predicated region fallthrough
CT: control target
= control target key end

     0   :  { %s1406_s12 = smov 0   ;;  %s1408_s13 = smov 0   ;;  %s2060_s0 = inlined_call_operand.vmem [shape: f32[512,256], index: 0, kind: input, shape index: {}]   ;;  %s2061_s1 = inlined_call_operand.vmem [shape: f32[1,256], index: 1, kind: input, shape index: {}]   ;;  %s2062_s2 = inlined_call_operand.vmem [shape: f32[256,512], index: 2, kind: input, shape index: {}]   ;;  %s2063_s3 = inlined_call_operand.vmem [shape: f32[512,512], index: 3, kind: output, shape index: {}]  }
   0x1   :  { %s1410_s14 = smov 0   ;;  %s1412_s15 = smov 0  }
   0x2   :  { %s1414_s16 = smov 0   ;;  %s1416_s17 = smov 0  }
   0x3   :  { %s1418_s18 = smov 0   ;;  %s1420_s19 = smov 0  }
   0x4   :  { %s1422_s20 = smov 0  }
   0x5 LB: > { %s1090_s21 = sadd.s32 4294967295, %s1384_s20   ;;  %s22_s22 = sadd.s32 1, %s1376_s18  ;;  %s1384_s20 = sphi %s1422_s20, %s13_s20   ;;  %s1380_s19 = sphi %s1420_s19, %s2072_s19   ;;  %s1376_s18 = sphi %s1418_s18, %s2071_s18   ;;  %s1372_s17 = sphi %s1416_s17, %s2070_s17   ;;  %s1368_s16 = sphi %s1414_s16, %s2069_s16   ;;  %s1364_s15 = sphi %s1412_s15, %s2068_s15   ;;  %s1360_s14 = sphi %s1410_s14, %s2067_s14   ;;  %s1356_s13 = sphi %s1408_s13, %s2066_s13   ;;  %s1352_s12 = sphi %s1406_s12, %s2065_s12  }
   0x6   : > { %p23_p0 = scmp.ge.s32.totalorder %s22_s22, 2  ;;  %s25_s23 = sadd.s32 1, %s1380_s19 }
   0x7   : > { %s79_s24 = sadd.s32 1, %s1364_s15  ;;  %p86_p1 = scmp.ne.s32.totalorder %s1364_s15, %s1360_s14 }
   0x8   : > { %s2074_s22 = smov (%p23_p0, %s22_s22), 0  ;;  %s2076_s23 = smov (!%p23_p0, %s25_s23), %s1380_s19 }
   0x9   : > { %s76_s25 = ssub.s32 %s1376_s18, %s2074_s22  ;;  %p87_p2 = scmp.eq.s32.totalorder %s1384_s20, 0 }
   0xa   : > { %p27_p3 = scmp.ge.s32.totalorder %s2076_s23, 4  ;;  %p77_p4 = scmp.eq.s32.totalorder %s76_s25, 0 }
   0xb   : > { %p88_p5 = por %p87_p2, %p86_p1  ;;  %s107_s26 = sadd.s32 1, %s1356_s13 }
   0xc   : > { %s2078_s23 = smov (%p27_p3, %s2076_s23), 0  ;;  %p117_p6 = scmp.ne.s32.totalorder %s1356_s13, %s1352_s12 }
   0xd   : > { %s1467_s27 = scalar_select %p77_p4, %s1364_s15, %s79_s24  }
   0xe   : > { %s102_s28 = ssub.s32 %s1380_s19, %s2078_s23  ;;  %p118_p7 = scmp.eq.s32.totalorder %s1090_s21, 7 }
   0xf   : > { %s104_s29 = sor.u32 %s102_s28, %s76_s25  ;;  %p1093_p10 = scmp.ge.s32.totalorder %s1384_s20, 8 }
  0x10   : > { %p105_p8 = scmp.eq.s32.totalorder %s104_s29, 0  ;;  %p1473_p9 = por %p118_p7, %p117_p6 }
  0x11   : > { %143 = sbr.rel (%p1093_p10) target bundleno = 60 (0x3c), region = 20 }
  0x12   : > { %s1478_s4 = scalar_select %p105_p8, %s1356_s13, %s107_s26  }
  0x18   : > { %156 = sbr.rel (!%p88_p5) target bundleno = 60 (0x3c), region = 28  ;;  %s158_s5 = sand.u32 (%p88_p5), 1, %s1364_s15  }
  0x19   : > { %s1111_s6 = sshll.u32 (%p88_p5), %s1376_s18, 4  ;;  %s1094_s7 = sshll.u32 (%p88_p5), %s158_s5, 9 }
  0x1a   : > { %s1486_s10 = scalar_lea.vmem (%p88_p5), %s2062_s2, %s1111_s6  ;;  %s1491_s11 = scalar_lea.vmem (%p88_p5), [#allocation3], %s1094_s7 }
  0x1b   : > { %v176_v0 = vld [vmem:[%s1486_s10] sm:$0xff] (%p88_p5)  ;;  %v178_v1 = vld [vmem:[%s1486_s10 + $0x8] sm:$0xff] (%p88_p5) }
  0x1c   : > { %v180_v2 = vld [vmem:[%s1486_s10 + $0x20] sm:$0xff] (%p88_p5)  ;;  %177 = vst [vmem:[%s1491_s11] sm:$0xff] (%p88_p5), %v176_v0  ;;  %179 = vst [vmem:[%s1491_s11 + $0x8] sm:$0xff] (%p88_p5), %v178_v1  ;;  %v182_v3 = vld [vmem:[%s1486_s10 + $0x28] sm:$0xff] (%p88_p5) }
  0x1d   : > { %181 = vst [vmem:[%s1491_s11 + $0x10] sm:$0xff] (%p88_p5), %v180_v2  ;;  %v184_v4 = vld [vmem:[%s1486_s10 + $0x40] sm:$0xff] (%p88_p5)  ;;  %v186_v5 = vld [vmem:[%s1486_s10 + $0x48] sm:$0xff] (%p88_p5)  ;;  %183 = vst [vmem:[%s1491_s11 + $0x18] sm:$0xff] (%p88_p5), %v182_v3 }
  0x1e   : > { %185 = vst [vmem:[%s1491_s11 + $0x20] sm:$0xff] (%p88_p5), %v184_v4  ;;  %187 = vst [vmem:[%s1491_s11 + $0x28] sm:$0xff] (%p88_p5), %v186_v5  ;;  %v188_v6 = vld [vmem:[%s1486_s10 + $0x60] sm:$0xff] (%p88_p5)  ;;  %v190_v7 = vld [vmem:[%s1486_s10 + $0x68] sm:$0xff] (%p88_p5) }
  0x1f   : > { %v192_v8 = vld [vmem:[%s1486_s10 + $0x80] sm:$0xff]  ;;  %189 = vst [vmem:[%s1491_s11 + $0x30] sm:$0xff] %v188_v6  ;;  %191 = vst [vmem:[%s1491_s11 + $0x38] sm:$0xff] %v190_v7  ;;  %v194_v9 = vld [vmem:[%s1486_s10 + $0x88] sm:$0xff] }
  0x20   : > { %193 = vst [vmem:[%s1491_s11 + $0x40] sm:$0xff] %v192_v8  ;;  %v196_v10 = vld [vmem:[%s1486_s10 + $0xa0] sm:$0xff]  ;;  %v198_v11 = vld [vmem:[%s1486_s10 + $0xa8] sm:$0xff]  ;;  %195 = vst [vmem:[%s1491_s11 + $0x48] sm:$0xff] %v194_v9 }
  0x21   : > { %197 = vst [vmem:[%s1491_s11 + $0x50] sm:$0xff] %v196_v10  ;;  %199 = vst [vmem:[%s1491_s11 + $0x58] sm:$0xff] %v198_v11  ;;  %v200_v12 = vld [vmem:[%s1486_s10 + $0xc0] sm:$0xff]  ;;  %v202_v13 = vld [vmem:[%s1486_s10 + $0xc8] sm:$0xff] }
  0x22   : > { %v204_v14 = vld [vmem:[%s1486_s10 + $0xe0] sm:$0xff]  ;;  %201 = vst [vmem:[%s1491_s11 + $0x60] sm:$0xff] %v200_v12  ;;  %203 = vst [vmem:[%s1491_s11 + $0x68] sm:$0xff] %v202_v13  ;;  %v206_v15 = vld [vmem:[%s1486_s10 + $0xe8] sm:$0xff] }
  0x23   : > { %205 = vst [vmem:[%s1491_s11 + $0x70] sm:$0xff] %v204_v14  ;;  %v208_v16 = vld [vmem:[%s1486_s10 + $0x100] sm:$0xff]  ;;  %v210_v17 = vld [vmem:[%s1486_s10 + $0x108] sm:$0xff]  ;;  %207 = vst [vmem:[%s1491_s11 + $0x78] sm:$0xff] %v206_v15 }
  0x24   : > { %209 = vst [vmem:[%s1491_s11 + $0x80] sm:$0xff] %v208_v16  ;;  %211 = vst [vmem:[%s1491_s11 + $0x88] sm:$0xff] %v210_v17  ;;  %v212_v18 = vld [vmem:[%s1486_s10 + $0x120] sm:$0xff]  ;;  %v214_v19 = vld [vmem:[%s1486_s10 + $0x128] sm:$0xff] }
  0x25   : > { %v216_v20 = vld [vmem:[%s1486_s10 + $0x140] sm:$0xff]  ;;  %213 = vst [vmem:[%s1491_s11 + $0x90] sm:$0xff] %v212_v18  ;;  %215 = vst [vmem:[%s1491_s11 + $0x98] sm:$0xff] %v214_v19  ;;  %v218_v21 = vld [vmem:[%s1486_s10 + $0x148] sm:$0xff] }
  0x26   : > { %217 = vst [vmem:[%s1491_s11 + $0xa0] sm:$0xff] %v216_v20  ;;  %v220_v22 = vld [vmem:[%s1486_s10 + $0x160] sm:$0xff]  ;;  %v222_v23 = vld [vmem:[%s1486_s10 + $0x168] sm:$0xff]  ;;  %219 = vst [vmem:[%s1491_s11 + $0xa8] sm:$0xff] %v218_v21 }
  0x27   : > { %221 = vst [vmem:[%s1491_s11 + $0xb0] sm:$0xff] %v220_v22  ;;  %223 = vst [vmem:[%s1491_s11 + $0xb8] sm:$0xff] %v222_v23  ;;  %v224_v24 = vld [vmem:[%s1486_s10 + $0x180] sm:$0xff]  ;;  %v226_v25 = vld [vmem:[%s1486_s10 + $0x188] sm:$0xff] }
  0x28   : > { %v228_v26 = vld [vmem:[%s1486_s10 + $0x1a0] sm:$0xff]  ;;  %225 = vst [vmem:[%s1491_s11 + $0xc0] sm:$0xff] %v224_v24  ;;  %227 = vst [vmem:[%s1491_s11 + $0xc8] sm:$0xff] %v226_v25  ;;  %v230_v27 = vld [vmem:[%s1486_s10 + $0x1a8] sm:$0xff] }
  0x29   : > { %229 = vst [vmem:[%s1491_s11 + $0xd0] sm:$0xff] %v228_v26  ;;  %v232_v28 = vld [vmem:[%s1486_s10 + $0x1c0] sm:$0xff]  ;;  %v234_v29 = vld [vmem:[%s1486_s10 + $0x1c8] sm:$0xff]  ;;  %231 = vst [vmem:[%s1491_s11 + $0xd8] sm:$0xff] %v230_v27 }
  0x2a   : > { %233 = vst [vmem:[%s1491_s11 + $0xe0] sm:$0xff] %v232_v28  ;;  %235 = vst [vmem:[%s1491_s11 + $0xe8] sm:$0xff] %v234_v29  ;;  %v236_v30 = vld [vmem:[%s1486_s10 + $0x1e0] sm:$0xff]  ;;  %v238_v31 = vld [vmem:[%s1486_s10 + $0x1e8] sm:$0xff] }
  0x2b   : > { %v240_v32 = vld [vmem:[%s1486_s10 + $0x200] sm:$0xff]  ;;  %237 = vst [vmem:[%s1491_s11 + $0xf0] sm:$0xff] %v236_v30  ;;  %239 = vst [vmem:[%s1491_s11 + $0xf8] sm:$0xff] %v238_v31  ;;  %v242_v33 = vld [vmem:[%s1486_s10 + $0x208] sm:$0xff] }
  0x2c   : > { %241 = vst [vmem:[%s1491_s11 + $0x100] sm:$0xff] %v240_v32  ;;  %v244_v34 = vld [vmem:[%s1486_s10 + $0x220] sm:$0xff]  ;;  %v246_v35 = vld [vmem:[%s1486_s10 + $0x228] sm:$0xff]  ;;  %243 = vst [vmem:[%s1491_s11 + $0x108] sm:$0xff] %v242_v33 }
  0x2d   : > { %245 = vst [vmem:[%s1491_s11 + $0x110] sm:$0xff] %v244_v34  ;;  %247 = vst [vmem:[%s1491_s11 + $0x118] sm:$0xff] %v246_v35  ;;  %v248_v36 = vld [vmem:[%s1486_s10 + $0x240] sm:$0xff]  ;;  %v250_v37 = vld [vmem:[%s1486_s10 + $0x248] sm:$0xff] }
  0x2e   : > { %v252_v38 = vld [vmem:[%s1486_s10 + $0x260] sm:$0xff]  ;;  %249 = vst [vmem:[%s1491_s11 + $0x120] sm:$0xff] %v248_v36  ;;  %251 = vst [vmem:[%s1491_s11 + $0x128] sm:$0xff] %v250_v37  ;;  %v254_v39 = vld [vmem:[%s1486_s10 + $0x268] sm:$0xff] }
  0x2f   : > { %253 = vst [vmem:[%s1491_s11 + $0x130] sm:$0xff] %v252_v38  ;;  %v256_v40 = vld [vmem:[%s1486_s10 + $0x280] sm:$0xff]  ;;  %v258_v41 = vld [vmem:[%s1486_s10 + $0x288] sm:$0xff]  ;;  %255 = vst [vmem:[%s1491_s11 + $0x138] sm:$0xff] %v254_v39 }
  0x30   : > { %257 = vst [vmem:[%s1491_s11 + $0x140] sm:$0xff] %v256_v40  ;;  %259 = vst [vmem:[%s1491_s11 + $0x148] sm:$0xff] %v258_v41  ;;  %v260_v42 = vld [vmem:[%s1486_s10 + $0x2a0] sm:$0xff]  ;;  %v262_v43 = vld [vmem:[%s1486_s10 + $0x2a8] sm:$0xff] }
  0x31   : > { %v264_v44 = vld [vmem:[%s1486_s10 + $0x2c0] sm:$0xff]  ;;  %261 = vst [vmem:[%s1491_s11 + $0x150] sm:$0xff] %v260_v42  ;;  %263 = vst [vmem:[%s1491_s11 + $0x158] sm:$0xff] %v262_v43  ;;  %v266_v45 = vld [vmem:[%s1486_s10 + $0x2c8] sm:$0xff] }
  0x32   : > { %265 = vst [vmem:[%s1491_s11 + $0x160] sm:$0xff] %v264_v44  ;;  %v268_v46 = vld [vmem:[%s1486_s10 + $0x2e0] sm:$0xff]  ;;  %v270_v47 = vld [vmem:[%s1486_s10 + $0x2e8] sm:$0xff]  ;;  %267 = vst [vmem:[%s1491_s11 + $0x168] sm:$0xff] %v266_v45 }
  0x33   : > { %269 = vst [vmem:[%s1491_s11 + $0x170] sm:$0xff] %v268_v46  ;;  %271 = vst [vmem:[%s1491_s11 + $0x178] sm:$0xff] %v270_v47  ;;  %v272_v48 = vld [vmem:[%s1486_s10 + $0x300] sm:$0xff]  ;;  %v274_v49 = vld [vmem:[%s1486_s10 + $0x308] sm:$0xff] }
  0x34   : > { %v276_v50 = vld [vmem:[%s1486_s10 + $0x320] sm:$0xff]  ;;  %273 = vst [vmem:[%s1491_s11 + $0x180] sm:$0xff] %v272_v48  ;;  %275 = vst [vmem:[%s1491_s11 + $0x188] sm:$0xff] %v274_v49  ;;  %v278_v51 = vld [vmem:[%s1486_s10 + $0x328] sm:$0xff] }
  0x35   : > { %277 = vst [vmem:[%s1491_s11 + $0x190] sm:$0xff] %v276_v50  ;;  %v280_v52 = vld [vmem:[%s1486_s10 + $0x340] sm:$0xff]  ;;  %v282_v53 = vld [vmem:[%s1486_s10 + $0x348] sm:$0xff]  ;;  %279 = vst [vmem:[%s1491_s11 + $0x198] sm:$0xff] %v278_v51 }
  0x36   : > { %281 = vst [vmem:[%s1491_s11 + $0x1a0] sm:$0xff] %v280_v52  ;;  %283 = vst [vmem:[%s1491_s11 + $0x1a8] sm:$0xff] %v282_v53  ;;  %v284_v54 = vld [vmem:[%s1486_s10 + $0x360] sm:$0xff]  ;;  %v286_v55 = vld [vmem:[%s1486_s10 + $0x368] sm:$0xff] }
  0x37   : > { %v288_v56 = vld [vmem:[%s1486_s10 + $0x380] sm:$0xff]  ;;  %285 = vst [vmem:[%s1491_s11 + $0x1b0] sm:$0xff] %v284_v54  ;;  %287 = vst [vmem:[%s1491_s11 + $0x1b8] sm:$0xff] %v286_v55  ;;  %v290_v57 = vld [vmem:[%s1486_s10 + $0x388] sm:$0xff] }
  0x38   : > { %289 = vst [vmem:[%s1491_s11 + $0x1c0] sm:$0xff] %v288_v56  ;;  %v292_v58 = vld [vmem:[%s1486_s10 + $0x3a0] sm:$0xff]  ;;  %v294_v59 = vld [vmem:[%s1486_s10 + $0x3a8] sm:$0xff]  ;;  %291 = vst [vmem:[%s1491_s11 + $0x1c8] sm:$0xff] %v290_v57 }
  0x39   : > { %293 = vst [vmem:[%s1491_s11 + $0x1d0] sm:$0xff] %v292_v58  ;;  %295 = vst [vmem:[%s1491_s11 + $0x1d8] sm:$0xff] %v294_v59  ;;  %v296_v60 = vld [vmem:[%s1486_s10 + $0x3c0] sm:$0xff]  ;;  %v298_v61 = vld [vmem:[%s1486_s10 + $0x3c8] sm:$0xff] }
  0x3a   : > { %v300_v62 = vld [vmem:[%s1486_s10 + $0x3e0] sm:$0xff]  ;;  %297 = vst [vmem:[%s1491_s11 + $0x1e0] sm:$0xff] %v296_v60  ;;  %299 = vst [vmem:[%s1491_s11 + $0x1e8] sm:$0xff] %v298_v61  ;;  %v302_v63 = vld [vmem:[%s1486_s10 + $0x3e8] sm:$0xff] }
  0x3b   : > { %301 = vst [vmem:[%s1491_s11 + $0x1f0] sm:$0xff] %v300_v62  ;;  %303 = vst [vmem:[%s1491_s11 + $0x1f8] sm:$0xff] %v302_v63 }
  0x3c PF: > { %p1097_p11 = scmp.ge.s32.totalorder %s1384_s20, 1  ;;  %p308_p12 = scmp.lt.s32.totalorder %s1384_s20, 9 }
  0x3e   : > { %p309_p13 = pnand %p1097_p11, %p308_p12 }
  0x3f   : > { %s315_s21 = sand.u32 (!%p309_p13), 1, %s1360_s14   ;;  %s340_s24 = sand.u32 (!%p309_p13), 1, %s1352_s12  }
  0x40   : > { %312 = sbr.rel (%p309_p13) target bundleno = 588 (0x24c), region = 51  ;;  %s1098_s25 = sshll.u32 (!%p309_p13), %s315_s21, 9 }
  0x41   : > { %s1099_s26 = sshll.u32 (!%p309_p13), %s340_s24, 8  ;;  %s1100_s28 = sshll.u32 (!%p309_p13), %s1372_s17, 4 }
  0x42   : > { %p344_p0 = scmp.lt.s32.totalorder (!%p309_p13), %s1100_s28, 63  ;;  %s1628_s8 = scalar_lea.vmem (!%p309_p13), [#allocation3], %s1098_s25 }
  0x43   : > { %s1630_s9 = scalar_lea.vmem (!%p309_p13), [#allocation4], %s1099_s26  ;;  %p1103_p1 = scmp.ne.s32.totalorder (!%p309_p13), %s1368_s16, 0 }
  0x47   : > { %s2080_s28 = smov (!%p344_p0, %s1100_s28), 63  ;;  %356 = sbr.rel (%p1103_p1) target bundleno = 270 (0x10e), region = 59 }
  0x48   : > { %s1112_s29 = sshll.u32 %s2080_s28, 4 }
  0x49   : > { %s1626_s7 = scalar_lea.vmem %s2060_s0, %s1112_s29 }
  0x4a   : > { %v1634_v0 = vld [vmem:[%s1626_s7 + $0x20] sm:$0xff] (!%p1103_p1)  ;;  %v1637_v1 = vld [vmem:[%s1626_s7 + $0x28] sm:$0xff] (!%p1103_p1)  ;;  %v1652_v7 = vld [vmem:[%s1626_s7 + $0x30] sm:$0xff] (!%p1103_p1) }
  0x4b   : > { %v1640_v2 = vld [vmem:[%s1626_s7] sm:$0xff] (!%p1103_p1)  ;;  %v393_v3 = vmul.f32 (!%p1103_p1), %v1634_v0, %v1634_v0  ;;  %v394_v4 = vmul.f32 (!%p1103_p1), %v1637_v1, %v1637_v1  ;;  %v1647_v5 = vld [vmem:[%s1626_s7 + $0x8] sm:$0xff] (!%p1103_p1)  ;;  %v1655_v8 = vld [vmem:[%s1626_s7 + $0x38] sm:$0xff] (!%p1103_p1)  ;;  %v395_v10 = vmul.f32 (!%p1103_p1), %v1652_v7, %v1652_v7 }
  0x4c   : > { %v389_v6 = vmul.f32 (!%p1103_p1), %v1640_v2, %v1640_v2  ;;  %v390_v9 = vmul.f32 (!%p1103_p1), %v1647_v5, %v1647_v5  ;;  %v396_v11 = vmul.f32 (!%p1103_p1), %v1655_v8, %v1655_v8  ;;  %v1664_v12 = vld [vmem:[%s1626_s7 + $0x10] sm:$0xff] (!%p1103_p1)  ;;  %v1667_v13 = vld [vmem:[%s1626_s7 + $0x18] sm:$0xff] (!%p1103_p1)  ;;  %v1680_v19 = vld [vmem:[%s1626_s7 + $0x40] sm:$0xff] (!%p1103_p1) }
  0x4d   : > { %v1670_v14 = vld [vmem:[%s1626_s7 + $0x50] sm:$0xff] (!%p1103_p1)  ;;  %v427_v15 = vadd.f32 (!%p1103_p1), %v394_v4, %v393_v3  ;;  %v391_v16 = vmul.f32 (!%p1103_p1), %v1664_v12, %v1664_v12  ;;  %v392_v17 = vmul.f32 (!%p1103_p1), %v1667_v13, %v1667_v13  ;;  %v1677_v18 = vld [vmem:[%s1626_s7 + $0x58] sm:$0xff] (!%p1103_p1)  ;;  %v1683_v20 = vld [vmem:[%s1626_s7 + $0x48] sm:$0xff] (!%p1103_p1)  ;;  %v397_v26 = vmul.f32 (!%p1103_p1), %v1680_v19, %v1680_v19 }
  0x4e   : > { %v421_v21 = vadd.f32 %v390_v9, %v389_v6  ;;  %v430_v22 = vadd.f32 %v396_v11, %v395_v10  ;;  %v399_v23 = vmul.f32 %v1670_v14, %v1670_v14  ;;  %v400_v24 = vmul.f32 %v1677_v18, %v1677_v18  ;;  %v1694_v28 = vld [vmem:[%s1626_s7 + $0x70] sm:$0xff]  ;;  %v1697_v29 = vld [vmem:[%s1626_s7 + $0x78] sm:$0xff]  ;;  %v1700_v30 = vld [vmem:[%s1626_s7 + $0x60] sm:$0xff] }
  0x4f   : > { %428 = vadd.xlane.f32.xlu1 %v427_v15  ;;  %v424_v25 = vadd.f32 %v392_v17, %v391_v16  ;;  %v398_v27 = vmul.f32 %v1683_v20, %v1683_v20  ;;  %v1703_v31 = vld [vmem:[%s1626_s7 + $0x68] sm:$0xff]  ;;  %v403_v33 = vmul.f32 %v1694_v28, %v1694_v28  ;;  %v404_v34 = vmul.f32 %v1697_v29, %v1697_v29  ;;  %v1714_v38 = vld [vmem:[%s1626_s7 + $0x90] sm:$0xff]  ;;  %v1717_v39 = vld [vmem:[%s1626_s7 + $0x98] sm:$0xff] }
  0x50   : > { %422 = vadd.xlane.f32.xlu0 %v421_v21  ;;  %v436_v32 = vadd.f32 %v400_v24, %v399_v23  ;;  %v401_v36 = vmul.f32 %v1700_v30, %v1700_v30  ;;  %v402_v37 = vmul.f32 %v1703_v31, %v1703_v31  ;;  %v1720_v40 = vld [vmem:[%s1626_s7 + $0x80] sm:$0xff]  ;;  %v1723_v41 = vld [vmem:[%s1626_s7 + $0x88] sm:$0xff]  ;;  %v407_v43 = vmul.f32 %v1714_v38, %v1714_v38  ;;  %v1734_v48 = vld [vmem:[%s1626_s7 + $0xb0] sm:$0xff] }
  0x51   : > { %v433_v35 = vadd.f32 %v398_v27, %v397_v26  ;;  %v442_v42 = vadd.f32 %v404_v34, %v403_v33  ;;  %v408_v44 = vmul.f32 %v1717_v39, %v1717_v39  ;;  %v405_v46 = vmul.f32 %v1720_v40, %v1720_v40  ;;  %v1737_v49 = vld [vmem:[%s1626_s7 + $0xb8] sm:$0xff]  ;;  %v1740_v50 = vld [vmem:[%s1626_s7 + $0xa0] sm:$0xff]  ;;  %v1743_v51 = vld [vmem:[%s1626_s7 + $0xa8] sm:$0xff] }
  0x52   : > { %v439_v45 = vadd.f32 %v402_v37, %v401_v36  ;;  %v406_v47 = vmul.f32 %v1723_v41, %v1723_v41  ;;  %v411_v53 = vmul.f32 %v1734_v48, %v1734_v48  ;;  %v412_v54 = vmul.f32 %v1737_v49, %v1737_v49  ;;  %v1754_v58 = vld [vmem:[%s1626_s7 + $0xd0] sm:$0xff]  ;;  %v1757_v59 = vld [vmem:[%s1626_s7 + $0xd8] sm:$0xff]  ;;  %v1760_v60 = vld [vmem:[%s1626_s7 + $0xc0] sm:$0xff] }
  0x53   : > { %431 = vadd.xlane.f32.xlu1 %v430_v22  ;;  %v448_v52 = vadd.f32 %v408_v44, %v407_v43  ;;  %v409_v56 = vmul.f32 %v1740_v50, %v1740_v50  ;;  %v410_v57 = vmul.f32 %v1743_v51, %v1743_v51  ;;  %v1763_v61 = vld [vmem:[%s1626_s7 + $0xc8] sm:$0xff]  ;;  %v415_v63 = vmul.f32 %v1754_v58, %v1754_v58  ;;  %v1774_v10 = vld [vmem:[%s1626_s7 + $0xf0] sm:$0xff]  ;;  %v1777_v11 = vld [vmem:[%s1626_s7 + $0xf8] sm:$0xff] }
  0x54   : > { %425 = vadd.xlane.f32.xlu0 %v424_v25  ;;  %v445_v55 = vadd.f32 %v406_v47, %v405_v46  ;;  %v454_v62 = vadd.f32 %v412_v54, %v411_v53  ;;  %v416_v3 = vmul.f32 %v1757_v59, %v1757_v59  ;;  %v413_v6 = vmul.f32 %v1760_v60, %v1760_v60  ;;  %v1780_v15 = vld [vmem:[%s1626_s7 + $0xe0] sm:$0xff]  ;;  %v1783_v16 = vld [vmem:[%s1626_s7 + $0xe8] sm:$0xff] }
  0x55   : > { %v451_v4 = vadd.f32 %v410_v57, %v409_v56  ;;  %v414_v9 = vmul.f32 %v1763_v61, %v1763_v61  ;;  %v419_v21 = vmul.f32 %v1774_v10, %v1774_v10  ;;  %v420_v22 = vmul.f32 %v1777_v11, %v1777_v11 }
  0x56   : > { %v460_v17 = vadd.f32 %v416_v3, %v415_v63  ;;  %v417_v24 = vmul.f32 %v1780_v15, %v1780_v15  ;;  %v418_v25 = vmul.f32 %v1783_v16, %v1783_v16  ;;  %v550_v3 = vld [vmem:[%s2061_s1] sm:$0x3] }
  0x57   : > { %437 = vadd.xlane.f32.xlu1 %v436_v32  ;;  %v457_v23 = vadd.f32 %v414_v9, %v413_v6  ;;  %v466_v26 = vadd.f32 %v420_v22, %v419_v21 }
  0x58   : > { %434 = vadd.xlane.f32.xlu0 %v433_v35  ;;  %v463_v27 = vadd.f32 %v418_v25, %v417_v24  ;;  %v552_v35 = vlaneseq }
  0x5a   : > { %v553_v46 = vshrl.u32 %v552_v35, 7 }
  0x5b   : > { %443 = vadd.xlane.f32.xlu1 %v442_v42 }
  0x5c   : > { %440 = vadd.xlane.f32.xlu0 %v439_v45  ;;  %v554_v57 = vsub.s32 0, %v553_v46 }
  0x5e   : > { %v1796_v22 = vrot.slane %v550_v3, %v554_v57 }
  0x5f   : > { %449 = vadd.xlane.f32.xlu1 %v448_v52 }
  0x60   : > { %446 = vadd.xlane.f32.xlu0 %v445_v55 }
  0x63   : > { %455 = vadd.xlane.f32.xlu1 %v454_v62  ;;  %v558_v62 = vsub.s32 1, %v553_v46 }
  0x64   : > { %452 = vadd.xlane.f32.xlu0 %v451_v4 }
  0x67   : > { %461 = vadd.xlane.f32.xlu1 %v460_v17 }
  0x68   : > { %458 = vadd.xlane.f32.xlu0 %v457_v23  ;;  %v1798_v23 = vrot.slane %v550_v3, %v558_v62 }
  0x6b   : > { %467 = vadd.xlane.f32.xlu1 %v466_v26 }
  0x6c   : > { %464 = vadd.xlane.f32.xlu0 %v463_v27 }
  0xdc   : > { %v429_v32 = vpop.xlane.xlu1 %428 }
  0xdd   : > { %v472_v33 = vmul.f32 0.00390625, %v429_v32  ;;  %v423_v34 = vpop.xlane.xlu0 %422 }
  0xde   : > { %v470_v36 = vmul.f32 0.00390625, %v423_v34 }
  0xdf   : > { %v488_v37 = vadd.f32 1e-05, %v472_v33 }
  0xe0   : > { %v486_v42 = vadd.f32 1e-05, %v470_v36  ;;  %v432_v43 = vpop.xlane.xlu1 %431 }
  0xe1   : > { %1282 = vrsqrt.f32 %v488_v37  ;;  %v473_v44 = vmul.f32 0.00390625, %v432_v43  ;;  %v426_v45 = vpop.xlane.xlu0 %425 }
  0xe2   : > { %1284 = vrsqrt.f32 %v486_v42  ;;  %v471_v47 = vmul.f32 0.00390625, %v426_v45 }
  0xe3   : > { %v489_v52 = vadd.f32 1e-05, %v473_v44 }
  0xe4   : > { %v487_v53 = vadd.f32 1e-05, %v471_v47  ;;  %v438_v54 = vpop.xlane.xlu1 %437 }
  0xe5   : > { %1286 = vrsqrt.f32 %v489_v52  ;;  %v475_v55 = vmul.f32 0.00390625, %v438_v54  ;;  %v435_v56 = vpop.xlane.xlu0 %434 }
  0xe6   : > { %1288 = vrsqrt.f32 %v487_v53  ;;  %v474_v63 = vmul.f32 0.00390625, %v435_v56 }
  0xe7   : > { %v491_v4 = vadd.f32 1e-05, %v475_v55 }
  0xe8   : > { %v490_v6 = vadd.f32 1e-05, %v474_v63  ;;  %v444_v9 = vpop.xlane.xlu1 %443 }
  0xe9   : > { %1290 = vrsqrt.f32 %v491_v4  ;;  %v477_v17 = vmul.f32 0.00390625, %v444_v9  ;;  %v441_v21 = vpop.xlane.xlu0 %440 }
  0xea   : > { %1292 = vrsqrt.f32 %v490_v6  ;;  %v476_v24 = vmul.f32 0.00390625, %v441_v21 }
  0xeb   : > { %v1283_v25 = vpop.eup %1282  ;;  %v493_v26 = vadd.f32 1e-05, %v477_v17 }
  0xec   : > { %v1285_v27 = vpop.eup %1284  ;;  %v522_v32 = vmul.f32 %v1283_v25, %v1634_v0  ;;  %v523_v33 = vmul.f32 %v1283_v25, %v1637_v1  ;;  %v492_v34 = vadd.f32 1e-05, %v476_v24  ;;  %v450_v35 = vpop.xlane.xlu1 %449 }
  0xed   : > { %v518_v36 = vmul.f32 %v1285_v27, %v1640_v2  ;;  %v519_v37 = vmul.f32 %v1285_v27, %v1647_v5  ;;  %1294 = vrsqrt.f32 %v493_v26  ;;  %v479_v42 = vmul.f32 0.00390625, %v450_v35  ;;  %v447_v43 = vpop.xlane.xlu0 %446 }
  0xee   : > { %v566_v44 = vmul.f32 %v1796_v22, %v522_v32  ;;  %v567_v45 = vmul.f32 %v1798_v23, %v523_v33  ;;  %1296 = vrsqrt.f32 %v492_v34  ;;  %v478_v46 = vmul.f32 0.00390625, %v447_v43 }
  0xef   : > { %v1287_v47 = vpop.eup %1286  ;;  %v562_v0 = vmul.f32 %v1796_v22, %v518_v36  ;;  %v563_v1 = vmul.f32 %v1798_v23, %v519_v37  ;;  %v495_v52 = vadd.f32 1e-05, %v479_v42 }
  0xf0   : > { %v1289_v53 = vpop.eup %1288  ;;  %598 = vst [vmem:[#allocation2 + $0x20] sm:$0xff] %v566_v44  ;;  %599 = vst [vmem:[#allocation2 + $0x28] sm:$0xff] %v567_v45  ;;  %v524_v2 = vmul.f32 %v1287_v47, %v1652_v7  ;;  %v525_v5 = vmul.f32 %v1287_v47, %v1655_v8  ;;  %v494_v54 = vadd.f32 1e-05, %v478_v46  ;;  %v456_v55 = vpop.xlane.xlu1 %455 }
  0xf1   : > { %594 = vst [vmem:[#allocation2] sm:$0xff] %v562_v0  ;;  %595 = vst [vmem:[#allocation2 + $0x8] sm:$0xff] %v563_v1  ;;  %v520_v56 = vmul.f32 %v1289_v53, %v1664_v12  ;;  %v521_v57 = vmul.f32 %v1289_v53, %v1667_v13  ;;  %1298 = vrsqrt.f32 %v495_v52  ;;  %v481_v62 = vmul.f32 0.00390625, %v456_v55  ;;  %v453_v63 = vpop.xlane.xlu0 %452 }
  0xf2   : > { %v568_v3 = vmul.f32 %v1796_v22, %v524_v2  ;;  %v569_v4 = vmul.f32 %v1798_v23, %v525_v5  ;;  %1300 = vrsqrt.f32 %v494_v54  ;;  %v480_v6 = vmul.f32 0.00390625, %v453_v63 }
  0xf3   : > { %v1291_v7 = vpop.eup %1290  ;;  %v564_v8 = vmul.f32 %v1796_v22, %v520_v56  ;;  %v565_v9 = vmul.f32 %v1798_v23, %v521_v57  ;;  %v497_v17 = vadd.f32 1e-05, %v481_v62 }
  0xf4   : > { %v1293_v21 = vpop.eup %1292  ;;  %600 = vst [vmem:[#allocation2 + $0x30] sm:$0xff] %v568_v3  ;;  %601 = vst [vmem:[#allocation2 + $0x38] sm:$0xff] %v569_v4  ;;  %v528_v12 = vmul.f32 %v1291_v7, %v1670_v14  ;;  %v529_v13 = vmul.f32 %v1291_v7, %v1677_v18  ;;  %v496_v24 = vadd.f32 1e-05, %v480_v6  ;;  %v462_v25 = vpop.xlane.xlu1 %461 }
  0xf5   : > { %596 = vst [vmem:[#allocation2 + $0x10] sm:$0xff] %v564_v8  ;;  %597 = vst [vmem:[#allocation2 + $0x18] sm:$0xff] %v565_v9  ;;  %v526_v26 = vmul.f32 %v1293_v21, %v1680_v19  ;;  %v527_v27 = vmul.f32 %v1293_v21, %v1683_v20  ;;  %1302 = vrsqrt.f32 %v497_v17  ;;  %v483_v32 = vmul.f32 0.00390625, %v462_v25  ;;  %v459_v33 = vpop.xlane.xlu0 %458 }
  0xf6   : > { %v572_v34 = vmul.f32 %v1796_v22, %v528_v12  ;;  %v573_v35 = vmul.f32 %v1798_v23, %v529_v13  ;;  %1304 = vrsqrt.f32 %v496_v24  ;;  %v482_v36 = vmul.f32 0.00390625, %v459_v33 }
  0xf7   : > { %v1295_v14 = vpop.eup %1294  ;;  %v570_v18 = vmul.f32 %v1796_v22, %v526_v26  ;;  %v571_v37 = vmul.f32 %v1798_v23, %v527_v27  ;;  %v499_v42 = vadd.f32 1e-05, %v483_v32 }
  0xf8   : > { %v1297_v43 = vpop.eup %1296  ;;  %604 = vst [vmem:[#allocation2 + $0x50] sm:$0xff] %v572_v34  ;;  %605 = vst [vmem:[#allocation2 + $0x58] sm:$0xff] %v573_v35  ;;  %v532_v19 = vmul.f32 %v1295_v14, %v1694_v28  ;;  %v533_v20 = vmul.f32 %v1295_v14, %v1697_v29  ;;  %v498_v44 = vadd.f32 1e-05, %v482_v36  ;;  %v468_v45 = vpop.xlane.xlu1 %467 }
  0xf9   : > { %602 = vst [vmem:[#allocation2 + $0x40] sm:$0xff] %v570_v18  ;;  %603 = vst [vmem:[#allocation2 + $0x48] sm:$0xff] %v571_v37  ;;  %v530_v46 = vmul.f32 %v1297_v43, %v1700_v30  ;;  %v531_v47 = vmul.f32 %v1297_v43, %v1703_v31  ;;  %1306 = vrsqrt.f32 %v499_v42  ;;  %v485_v0 = vmul.f32 0.00390625, %v468_v45  ;;  %v465_v1 = vpop.xlane.xlu0 %464 }
  0xfa   : > { %v576_v52 = vmul.f32 %v1796_v22, %v532_v19  ;;  %v577_v53 = vmul.f32 %v1798_v23, %v533_v20  ;;  %1308 = vrsqrt.f32 %v498_v44  ;;  %v484_v2 = vmul.f32 0.00390625, %v465_v1 }
  0xfb   : > { %v1299_v28 = vpop.eup %1298  ;;  %v574_v29 = vmul.f32 %v1796_v22, %v530_v46  ;;  %v575_v5 = vmul.f32 %v1798_v23, %v531_v47  ;;  %v501_v54 = vadd.f32 1e-05, %v485_v0 }
  0xfc   : > { %v1301_v55 = vpop.eup %1300  ;;  %608 = vst [vmem:[#allocation2 + $0x70] sm:$0xff] %v576_v52  ;;  %609 = vst [vmem:[#allocation2 + $0x78] sm:$0xff] %v577_v53  ;;  %v536_v30 = vmul.f32 %v1299_v28, %v1714_v38  ;;  %v537_v31 = vmul.f32 %v1299_v28, %v1717_v39  ;;  %v500_v56 = vadd.f32 1e-05, %v484_v2 }
  0xfd   : > { %606 = vst [vmem:[#allocation2 + $0x60] sm:$0xff] %v574_v29  ;;  %607 = vst [vmem:[#allocation2 + $0x68] sm:$0xff] %v575_v5  ;;  %v534_v57 = vmul.f32 %v1301_v55, %v1720_v40  ;;  %v535_v62 = vmul.f32 %v1301_v55, %v1723_v41  ;;  %1310 = vrsqrt.f32 %v501_v54 }
  0xfe   : > { %v580_v63 = vmul.f32 %v1796_v22, %v536_v30  ;;  %v581_v3 = vmul.f32 %v1798_v23, %v537_v31  ;;  %1312 = vrsqrt.f32 %v500_v56 }
  0xff   : > { %v1303_v4 = vpop.eup %1302  ;;  %v578_v6 = vmul.f32 %v1796_v22, %v534_v57  ;;  %v579_v38 = vmul.f32 %v1798_v23, %v535_v62 }
 0x100   : > { %v1305_v7 = vpop.eup %1304  ;;  %612 = vst [vmem:[#allocation2 + $0x90] sm:$0xff] %v580_v63  ;;  %613 = vst [vmem:[#allocation2 + $0x98] sm:$0xff] %v581_v3  ;;  %v540_v39 = vmul.f32 %v1303_v4, %v1734_v48  ;;  %v541_v40 = vmul.f32 %v1303_v4, %v1737_v49 }
 0x101   : > { %610 = vst [vmem:[#allocation2 + $0x80] sm:$0xff] %v578_v6  ;;  %611 = vst [vmem:[#allocation2 + $0x88] sm:$0xff] %v579_v38  ;;  %v538_v41 = vmul.f32 %v1305_v7, %v1740_v50  ;;  %v539_v8 = vmul.f32 %v1305_v7, %v1743_v51 }
 0x102   : > { %v584_v9 = vmul.f32 %v1796_v22, %v540_v39  ;;  %v585_v17 = vmul.f32 %v1798_v23, %v541_v40 }
 0x103   : > { %v1307_v21 = vpop.eup %1306  ;;  %v582_v12 = vmul.f32 %v1796_v22, %v538_v41  ;;  %v583_v13 = vmul.f32 %v1798_v23, %v539_v8 }
 0x104   : > { %v1309_v24 = vpop.eup %1308  ;;  %616 = vst [vmem:[#allocation2 + $0xb0] sm:$0xff] %v584_v9  ;;  %617 = vst [vmem:[#allocation2 + $0xb8] sm:$0xff] %v585_v17  ;;  %v544_v48 = vmul.f32 %v1307_v21, %v1754_v58  ;;  %v545_v49 = vmul.f32 %v1307_v21, %v1757_v59 }
 0x105   : > { %614 = vst [vmem:[#allocation2 + $0xa0] sm:$0xff] %v582_v12  ;;  %615 = vst [vmem:[#allocation2 + $0xa8] sm:$0xff] %v583_v13  ;;  %v542_v50 = vmul.f32 %v1309_v24, %v1760_v60  ;;  %v543_v51 = vmul.f32 %v1309_v24, %v1763_v61 }
 0x106   : > { %v588_v25 = vmul.f32 %v1796_v22, %v544_v48  ;;  %v589_v26 = vmul.f32 %v1798_v23, %v545_v49 }
 0x107   : > { %v1311_v27 = vpop.eup %1310  ;;  %v586_v32 = vmul.f32 %v1796_v22, %v542_v50  ;;  %v587_v33 = vmul.f32 %v1798_v23, %v543_v51 }
 0x108   : > { %v1313_v34 = vpop.eup %1312  ;;  %620 = vst [vmem:[#allocation2 + $0xd0] sm:$0xff] %v588_v25  ;;  %621 = vst [vmem:[#allocation2 + $0xd8] sm:$0xff] %v589_v26  ;;  %v548_v58 = vmul.f32 %v1311_v27, %v1774_v10  ;;  %v549_v59 = vmul.f32 %v1311_v27, %v1777_v11 }
 0x109   : > { %618 = vst [vmem:[#allocation2 + $0xc0] sm:$0xff] %v586_v32  ;;  %619 = vst [vmem:[#allocation2 + $0xc8] sm:$0xff] %v587_v33  ;;  %v546_v60 = vmul.f32 %v1313_v34, %v1780_v15  ;;  %v547_v61 = vmul.f32 %v1313_v34, %v1783_v16 }
 0x10a   : > { %v592_v35 = vmul.f32 %v1796_v22, %v548_v58  ;;  %v593_v36 = vmul.f32 %v1798_v23, %v549_v59 }
 0x10b   : > { %v590_v14 = vmul.f32 %v1796_v22, %v546_v60  ;;  %v591_v18 = vmul.f32 %v1798_v23, %v547_v61 }
 0x10c   : > { %624 = vst [vmem:[#allocation2 + $0xf0] sm:$0xff] %v592_v35  ;;  %625 = vst [vmem:[#allocation2 + $0xf8] sm:$0xff] %v593_v36 }
 0x10d   : > { %622 = vst [vmem:[#allocation2 + $0xe0] sm:$0xff] %v590_v14  ;;  %623 = vst [vmem:[#allocation2 + $0xe8] sm:$0xff] %v591_v18 }
 0x10e PF: > { %v659_v10 = vld [vmem:[%s1628_s8 + $0x8] sm:$0xff]  ;;  %v661_v11 = vld [vmem:[%s1628_s8 + $0x18] sm:$0xff]  ;;  %v658_v15 = vld [vmem:[%s1628_s8] sm:$0xff]  ;;  %s1106_s10 = sshll.u32 (%p1473_p9), %s1368_s16, 1  ;;  %s1113_s11 = sshll.u32 (%p1473_p9), %s1372_s17, 6 }
 0x10f   : > { %v1114_v16 = vpack.c.bf16 %v661_v11, %v659_v10  ;;  %v660_v22 = vld [vmem:[%s1628_s8 + $0x10] sm:$0xff]  ;;  %v663_v23 = vld [vmem:[%s1628_s8 + $0x28] sm:$0xff]  ;;  %v665_v37 = vld [vmem:[%s1628_s8 + $0x38] sm:$0xff]  ;;  %s925_s30 = sadd.s32 (%p1473_p9), %s1113_s11, %s1106_s10 }
 0x110   : > { %v1116_v42 = vpack.c.bf16 %v660_v22, %v658_v15  ;;  %v1118_v43 = vpack.c.bf16 %v665_v37, %v663_v23  ;;  %v662_v19 = vld [vmem:[%s1628_s8 + $0x20] sm:$0xff]  ;;  %v664_v20 = vld [vmem:[%s1628_s8 + $0x30] sm:$0xff]  ;;  %v667_v44 = vld [vmem:[%s1628_s8 + $0x48] sm:$0xff]  ;;  %s1108_s21 = sshll.u32 (%p1473_p9), %s925_s30, 3 }
 0x111   : > { %1115 = vmatprep.subr.bf16.mxu0 %v1114_v16  ;;  %1178 = vmatprep.subr.bf16.mxu1 %v1114_v16  ;;  %v669_v45 = vld [vmem:[%s1628_s8 + $0x58] sm:$0xff]  ;;  %v1120_v46 = vpack.c.bf16 %v664_v20, %v662_v19  ;;  %v666_v0 = vld [vmem:[%s1628_s8 + $0x40] sm:$0xff]  ;;  %v668_v1 = vld [vmem:[%s1628_s8 + $0x50] sm:$0xff]  ;;  %s1976_s26 = scalar_lea.vmem (%p1473_p9), %s2063_s3, %s1108_s21 }
 0x112   : > { %1117 = vmatpush1.bf16.msra.mxu0 %v1116_v42  ;;  %1194 = vmatpush1.bf16.msra.mxu1 %v1116_v42  ;;  %v1122_v47 = vpack.c.bf16 %v669_v45, %v667_v44  ;;  %v671_v52 = vld [vmem:[%s1628_s8 + $0x68] sm:$0xff]  ;;  %v673_v53 = vld [vmem:[%s1628_s8 + $0x78] sm:$0xff]  ;;  %v1124_v2 = vpack.c.bf16 %v668_v1, %v666_v0  ;;  %v670_v29 = vld [vmem:[%s1628_s8 + $0x60] sm:$0xff] }
 0x113   : > { %1119 = vmatprep.subr.bf16.mxu0 %v1118_v43  ;;  %1179 = vmatprep.subr.bf16.mxu1 %v1118_v43  ;;  %v1126_v28 = vpack.c.bf16 %v673_v53, %v671_v52  ;;  %v672_v5 = vld [vmem:[%s1628_s8 + $0x70] sm:$0xff]  ;;  %v675_v54 = vld [vmem:[%s1628_s8 + $0x88] sm:$0xff]  ;;  %v677_v55 = vld [vmem:[%s1628_s8 + $0x98] sm:$0xff] }
 0x114   : > { %v1128_v30 = vpack.c.bf16 %v672_v5, %v670_v29  ;;  %v1130_v31 = vpack.c.bf16 %v677_v55, %v675_v54  ;;  %v674_v56 = vld [vmem:[%s1628_s8 + $0x80] sm:$0xff]  ;;  %v676_v57 = vld [vmem:[%s1628_s8 + $0x90] sm:$0xff]  ;;  %v679_v62 = vld [vmem:[%s1628_s8 + $0xa8] sm:$0xff] }
 0x115   : > { %v681_v63 = vld [vmem:[%s1628_s8 + $0xb8] sm:$0xff]  ;;  %v1132_v3 = vpack.c.bf16 %v676_v57, %v674_v56  ;;  %v678_v6 = vld [vmem:[%s1628_s8 + $0xa0] sm:$0xff]  ;;  %v680_v38 = vld [vmem:[%s1628_s8 + $0xb0] sm:$0xff] }
 0x116   : > { %1121 = vmatpush1.bf16.msra.mxu0 %v1120_v46  ;;  %1195 = vmatpush1.bf16.msra.mxu1 %v1120_v46  ;;  %v1134_v4 = vpack.c.bf16 %v681_v63, %v679_v62  ;;  %v683_v7 = vld [vmem:[%s1628_s8 + $0xc8] sm:$0xff]  ;;  %v685_v39 = vld [vmem:[%s1628_s8 + $0xd8] sm:$0xff]  ;;  %v1136_v40 = vpack.c.bf16 %v680_v38, %v678_v6  ;;  %v682_v41 = vld [vmem:[%s1628_s8 + $0xc0] sm:$0xff] }
 0x117   : > { %1123 = vmatprep.subr.bf16.mxu0 %v1122_v47  ;;  %1180 = vmatprep.subr.bf16.mxu1 %v1122_v47  ;;  %v1138_v8 = vpack.c.bf16 %v685_v39, %v683_v7  ;;  %v684_v9 = vld [vmem:[%s1628_s8 + $0xd0] sm:$0xff]  ;;  %v627_v17 = vld [vmem:[#allocation2 + $0x8] sm:$0xff]  ;;  %v689_v13 = vld [vmem:[%s1628_s8 + $0xf8] sm:$0xff] }
 0x118   : > { %v643_v21 = vld [vmem:[#allocation2 + $0x88] sm:$0xff]  ;;  %786 = vmatprep.mubr.f32.mxu0 %v627_v17  ;;  %v1140_v24 = vpack.c.bf16 %v684_v9, %v682_v41  ;;  %v686_v49 = vld [vmem:[%s1628_s8 + $0xe0] sm:$0xff]  ;;  %v688_v50 = vld [vmem:[%s1628_s8 + $0xf0] sm:$0xff] }
 0x119   : > { %v687_v12 = vld [vmem:[%s1628_s8 + $0xe8] sm:$0xff]  ;;  %834 = vmatprep.mubr.f32.mxu1 %v643_v21  ;;  %v693_v25 = vld [vmem:[%s1628_s8 + $0x118] sm:$0xff]  ;;  %v1144_v26 = vpack.c.bf16 %v688_v50, %v686_v49  ;;  %v690_v32 = vld [vmem:[%s1628_s8 + $0x100] sm:$0xff] }
 0x11a   : > { %1125 = vmatpush1.bf16.msra.mxu0 %v1124_v2  ;;  %1196 = vmatpush1.bf16.msra.mxu1 %v1124_v2  ;;  %v1142_v48 = vpack.c.bf16 %v689_v13, %v687_v12  ;;  %v691_v51 = vld [vmem:[%s1628_s8 + $0x108] sm:$0xff]  ;;  %v692_v33 = vld [vmem:[%s1628_s8 + $0x110] sm:$0xff]  ;;  %v697_v58 = vld [vmem:[%s1628_s8 + $0x138] sm:$0xff] }
 0x11b   : > { %1127 = vmatprep.subr.bf16.mxu0 %v1126_v28  ;;  %1181 = vmatprep.subr.bf16.mxu1 %v1126_v28  ;;  %v1146_v27 = vpack.c.bf16 %v693_v25, %v691_v51  ;;  %v695_v34 = vld [vmem:[%s1628_s8 + $0x128] sm:$0xff]  ;;  %v1148_v59 = vpack.c.bf16 %v692_v33, %v690_v32  ;;  %v694_v61 = vld [vmem:[%s1628_s8 + $0x120] sm:$0xff]  ;;  %v696_v35 = vld [vmem:[%s1628_s8 + $0x130] sm:$0xff] }
 0x11c   : > { %v1150_v60 = vpack.c.bf16 %v697_v58, %v695_v34  ;;  %v699_v36 = vld [vmem:[%s1628_s8 + $0x148] sm:$0xff]  ;;  %v701_v14 = vld [vmem:[%s1628_s8 + $0x158] sm:$0xff]  ;;  %v1152_v18 = vpack.c.bf16 %v696_v35, %v694_v61  ;;  %v698_v11 = vld [vmem:[%s1628_s8 + $0x140] sm:$0xff] }
 0x11d   : > { %v1154_v10 = vpack.c.bf16 %v701_v14, %v699_v36  ;;  %v700_v15 = vld [vmem:[%s1628_s8 + $0x150] sm:$0xff]  ;;  %v703_v16 = vld [vmem:[%s1628_s8 + $0x168] sm:$0xff]  ;;  %v705_v22 = vld [vmem:[%s1628_s8 + $0x178] sm:$0xff] }
 0x11e   : > { %1129 = vmatpush1.bf16.msra.mxu0 %v1128_v30  ;;  %1197 = vmatpush1.bf16.msra.mxu1 %v1128_v30  ;;  %v1156_v23 = vpack.c.bf16 %v700_v15, %v698_v11  ;;  %v1158_v37 = vpack.c.bf16 %v705_v22, %v703_v16  ;;  %v702_v42 = vld [vmem:[%s1628_s8 + $0x160] sm:$0xff]  ;;  %v704_v43 = vld [vmem:[%s1628_s8 + $0x170] sm:$0xff]  ;;  %v707_v19 = vld [vmem:[%s1628_s8 + $0x188] sm:$0xff] }
 0x11f   : > { %1131 = vmatprep.subr.bf16.mxu0 %v1130_v31  ;;  %1182 = vmatprep.subr.bf16.mxu1 %v1130_v31  ;;  %v709_v20 = vld [vmem:[%s1628_s8 + $0x198] sm:$0xff]  ;;  %v1160_v44 = vpack.c.bf16 %v704_v43, %v702_v42  ;;  %v706_v46 = vld [vmem:[%s1628_s8 + $0x180] sm:$0xff]  ;;  %v708_v47 = vld [vmem:[%s1628_s8 + $0x190] sm:$0xff] }
 0x120   : > { %v1162_v45 = vpack.c.bf16 %v709_v20, %v707_v19  ;;  %v711_v0 = vld [vmem:[%s1628_s8 + $0x1a8] sm:$0xff]  ;;  %v713_v1 = vld [vmem:[%s1628_s8 + $0x1b8] sm:$0xff]  ;;  %v1164_v52 = vpack.c.bf16 %v708_v47, %v706_v46  ;;  %v710_v2 = vld [vmem:[%s1628_s8 + $0x1a0] sm:$0xff] }
 0x121   : > { %v1166_v53 = vpack.c.bf16 %v713_v1, %v711_v0  ;;  %v712_v28 = vld [vmem:[%s1628_s8 + $0x1b0] sm:$0xff]  ;;  %v715_v29 = vld [vmem:[%s1628_s8 + $0x1c8] sm:$0xff]  ;;  %v717_v5 = vld [vmem:[%s1628_s8 + $0x1d8] sm:$0xff] }
 0x122   : > { %1133 = vmatpush1.bf16.msra.mxu0 %v1132_v3  ;;  %1198 = vmatpush1.bf16.msra.mxu1 %v1132_v3  ;;  %v1168_v54 = vpack.c.bf16 %v712_v28, %v710_v2  ;;  %v1170_v55 = vpack.c.bf16 %v717_v5, %v715_v29  ;;  %v714_v30 = vld [vmem:[%s1628_s8 + $0x1c0] sm:$0xff]  ;;  %v716_v31 = vld [vmem:[%s1628_s8 + $0x1d0] sm:$0xff]  ;;  %v719_v56 = vld [vmem:[%s1628_s8 + $0x1e8] sm:$0xff] }
 0x123   : > { %1135 = vmatprep.subr.bf16.mxu0 %v1134_v4  ;;  %1183 = vmatprep.subr.bf16.mxu1 %v1134_v4  ;;  %v721_v57 = vld [vmem:[%s1628_s8 + $0x1f8] sm:$0xff]  ;;  %v1172_v62 = vpack.c.bf16 %v716_v31, %v714_v30  ;;  %v718_v3 = vld [vmem:[%s1628_s8 + $0x1e0] sm:$0xff]  ;;  %v720_v4 = vld [vmem:[%s1628_s8 + $0x1f0] sm:$0xff] }
 0x124   : > { %v1174_v63 = vpack.c.bf16 %v721_v57, %v719_v56  ;;  %v1176_v6 = vpack.c.bf16 %v720_v4, %v718_v3  ;;  %v626_v38 = vld [vmem:[#allocation2] sm:$0xff]  ;;  %v629_v39 = vld [vmem:[#allocation2 + $0x18] sm:$0xff]  ;;  %v628_v41 = vld [vmem:[#allocation2 + $0x10] sm:$0xff] }
 0x125   : > { %v642_v7 = vld [vmem:[#allocation2 + $0x80] sm:$0xff]  ;;  %v631_v9 = vld [vmem:[#allocation2 + $0x28] sm:$0xff]  ;;  %v633_v13 = vld [vmem:[#allocation2 + $0x38] sm:$0xff] }
 0x126   : > { %1137 = vmatpush1.bf16.msra.mxu0 %v1136_v40  ;;  %1199 = vmatpush1.bf16.msra.mxu1 %v1136_v40  ;;  %v645_v40 = vld [vmem:[#allocation2 + $0x98] sm:$0xff]  ;;  %v647_v17 = vld [vmem:[#allocation2 + $0xa8] sm:$0xff]  ;;  %v630_v21 = vld [vmem:[#allocation2 + $0x20] sm:$0xff] }
 0x127   : > { %1139 = vmatprep.subr.bf16.mxu0 %v1138_v8  ;;  %1184 = vmatprep.subr.bf16.mxu1 %v1138_v8  ;;  %v644_v8 = vld [vmem:[#allocation2 + $0x90] sm:$0xff]  ;;  %v646_v12 = vld [vmem:[#allocation2 + $0xa0] sm:$0xff]  ;;  %v635_v50 = vld [vmem:[#allocation2 + $0x48] sm:$0xff] }
 0x128   : > { %v648_v49 = vld [vmem:[#allocation2 + $0xb0] sm:$0xff]  ;;  %v651_v51 = vld [vmem:[#allocation2 + $0xc8] sm:$0xff]  ;;  %v634_v25 = vld [vmem:[#allocation2 + $0x40] sm:$0xff] }
 0x129   : > { %v653_v32 = vld [vmem:[#allocation2 + $0xd8] sm:$0xff]  ;;  %v636_v33 = vld [vmem:[#allocation2 + $0x50] sm:$0xff]  ;;  %v639_v58 = vld [vmem:[#allocation2 + $0x68] sm:$0xff] }
 0x12a   : > { %1141 = vmatpush1.bf16.msra.mxu0 %v1140_v24  ;;  %1200 = vmatpush1.bf16.msra.mxu1 %v1140_v24  ;;  %v649_v24 = vld [vmem:[#allocation2 + $0xb8] sm:$0xff]  ;;  %v652_v34 = vld [vmem:[#allocation2 + $0xd0] sm:$0xff]  ;;  %v654_v61 = vld [vmem:[#allocation2 + $0xe0] sm:$0xff] }
 0x12b   : > { %1143 = vmatprep.subr.bf16.mxu0 %v1142_v48  ;;  %1185 = vmatprep.subr.bf16.mxu1 %v1142_v48  ;;  %v632_v48 = vld [vmem:[#allocation2 + $0x30] sm:$0xff]  ;;  %v641_v35 = vld [vmem:[#allocation2 + $0x78] sm:$0xff] }
 0x12c   : > { %v657_v36 = vld [vmem:[#allocation2 + $0xf8] sm:$0xff]  ;;  %v640_v14 = vld [vmem:[#allocation2 + $0x70] sm:$0xff] }
 0x12e   : > { %1145 = vmatpush1.bf16.msra.mxu0 %v1144_v26  ;;  %1201 = vmatpush1.bf16.msra.mxu1 %v1144_v26  ;;  %v650_v26 = vld [vmem:[#allocation2 + $0xc0] sm:$0xff] }
 0x12f   : > { %1147 = vmatprep.subr.bf16.mxu0 %v1146_v27  ;;  %1186 = vmatprep.subr.bf16.mxu1 %v1146_v27  ;;  %v637_v27 = vld [vmem:[#allocation2 + $0x58] sm:$0xff] }
 0x132   : > { %1149 = vmatpush1.bf16.msra.mxu0 %v1148_v59  ;;  %1202 = vmatpush1.bf16.msra.mxu1 %v1148_v59  ;;  %v655_v59 = vld [vmem:[#allocation2 + $0xe8] sm:$0xff] }
 0x133   : > { %1151 = vmatprep.subr.bf16.mxu0 %v1150_v60  ;;  %1187 = vmatprep.subr.bf16.mxu1 %v1150_v60  ;;  %v638_v60 = vld [vmem:[#allocation2 + $0x60] sm:$0xff] }
 0x136   : > { %1153 = vmatpush1.bf16.msra.mxu0 %v1152_v18  ;;  %1203 = vmatpush1.bf16.msra.mxu1 %v1152_v18  ;;  %v656_v18 = vld [vmem:[#allocation2 + $0xf0] sm:$0xff] }
 0x137   : > { %1155 = vmatprep.subr.bf16.mxu0 %v1154_v10  ;;  %1188 = vmatprep.subr.bf16.mxu1 %v1154_v10 }
 0x13a   : > { %1157 = vmatpush1.bf16.msra.mxu0 %v1156_v23  ;;  %1204 = vmatpush1.bf16.msra.mxu1 %v1156_v23 }
 0x13b   : > { %1159 = vmatprep.subr.bf16.mxu0 %v1158_v37  ;;  %1189 = vmatprep.subr.bf16.mxu1 %v1158_v37 }
 0x13e   : > { %1161 = vmatpush1.bf16.msra.mxu0 %v1160_v44  ;;  %1205 = vmatpush1.bf16.msra.mxu1 %v1160_v44 }
 0x13f   : > { %1163 = vmatprep.subr.bf16.mxu0 %v1162_v45  ;;  %1190 = vmatprep.subr.bf16.mxu1 %v1162_v45 }
 0x142   : > { %1165 = vmatpush1.bf16.msra.mxu0 %v1164_v52  ;;  %1206 = vmatpush1.bf16.msra.mxu1 %v1164_v52 }
 0x143   : > { %1167 = vmatprep.subr.bf16.mxu0 %v1166_v53  ;;  %1191 = vmatprep.subr.bf16.mxu1 %v1166_v53 }
 0x146   : > { %1169 = vmatpush1.bf16.msra.mxu0 %v1168_v54  ;;  %1207 = vmatpush1.bf16.msra.mxu1 %v1168_v54 }
 0x147   : > { %1171 = vmatprep.subr.bf16.mxu0 %v1170_v55  ;;  %1192 = vmatprep.subr.bf16.mxu1 %v1170_v55 }
 0x14a   : > { %1173 = vmatpush1.bf16.msra.mxu0 %v1172_v62  ;;  %1208 = vmatpush1.bf16.msra.mxu1 %v1172_v62 }
 0x14b   : > { %1175 = vmatprep.subr.bf16.mxu0 %v1174_v63  ;;  %1193 = vmatprep.subr.bf16.mxu1 %v1174_v63 }
 0x14e   : > { %1177 = vmatpush1.bf16.msra.mxu0 %v1176_v6  ;;  %1209 = vmatpush1.bf16.msra.mxu1 %v1176_v6 }
 0x151   : > { %787 = vmatmul.mubr.f32.vlgmr.msra.gmra.mrb[0].mxu0 %v626_v38  ;;  %835 = vmatmul.mubr.f32.vlgmr.msra.gmra.mrb[0].mxu1 %v642_v7 }
 0x152   : > { %792 = vmatprep.mubr.f32.mxu0 %v629_v39  ;;  %840 = vmatprep.mubr.f32.mxu1 %v645_v40 }
 0x155   : > { %793 = vmatmul.mubr.f32.gmra.mrb[2].mxu0 %v628_v41  ;;  %841 = vmatmul.mubr.f32.gmra.mrb[2].mxu1 %v644_v8 }
 0x156   : > { %798 = vmatprep.mubr.f32.mxu0 %v631_v9  ;;  %846 = vmatprep.mubr.f32.mxu1 %v647_v17 }
 0x159   : > { %799 = vmatmul.mubr.f32.gmra.mrb[4].mxu0 %v630_v21  ;;  %847 = vmatmul.mubr.f32.gmra.mrb[4].mxu1 %v646_v12 }
 0x15a   : > { %804 = vmatprep.mubr.f32.mxu0 %v633_v13  ;;  %852 = vmatprep.mubr.f32.mxu1 %v649_v24 }
 0x15d   : > { %805 = vmatmul.mubr.f32.gmra.mrb[6].mxu0 %v632_v48  ;;  %853 = vmatmul.mubr.f32.gmra.mrb[6].mxu1 %v648_v49 }
 0x15e   : > { %810 = vmatprep.mubr.f32.mxu0 %v635_v50  ;;  %858 = vmatprep.mubr.f32.mxu1 %v651_v51 }
 0x161   : > { %811 = vmatmul.mubr.f32.gmra.mrb[8].mxu0 %v634_v25  ;;  %859 = vmatmul.mubr.f32.gmra.mrb[8].mxu1 %v650_v26 }
 0x162   : > { %816 = vmatprep.mubr.f32.mxu0 %v637_v27  ;;  %864 = vmatprep.mubr.f32.mxu1 %v653_v32 }
 0x165   : > { %817 = vmatmul.mubr.f32.gmra.mrb[10].mxu0 %v636_v33  ;;  %865 = vmatmul.mubr.f32.gmra.mrb[10].mxu1 %v652_v34 }
 0x166   : > { %822 = vmatprep.mubr.f32.mxu0 %v639_v58  ;;  %870 = vmatprep.mubr.f32.mxu1 %v655_v59 }
 0x169   : > { %823 = vmatmul.mubr.f32.gmra.mrb[12].mxu0 %v638_v60  ;;  %871 = vmatmul.mubr.f32.gmra.mrb[12].mxu1 %v654_v61 }
 0x16a   : > { %828 = vmatprep.mubr.f32.mxu0 %v641_v35  ;;  %876 = vmatprep.mubr.f32.mxu1 %v657_v36 }
 0x16d   : > { %829 = vmatmul.mubr.f32.gmra.mrb[14].mxu0 %v640_v14  ;;  %877 = vmatmul.mubr.f32.gmra.mrb[14].mxu1 %v656_v18 }
 0x224   : > { %v788_v10 = vpop.f32.mrb[0].mxu0  ;;  %v836_v11 = vpop.f32.mrb[0].mxu1 }
 0x225   : > { %883 = vst [vmem:[%s1630_s9] sm:$0xff] %v788_v10  ;;  %899 = vst [vmem:[%s1630_s9 + $0x80] sm:$0xff] %v836_v11  ;;  %v790_v15 = vpop.f32.mrb[1].mxu0  ;;  %v838_v16 = vpop.f32.mrb[1].mxu1 }
 0x226   : > { %884 = vst [vmem:[%s1630_s9 + $0x8] sm:$0xff] %v790_v15  ;;  %900 = vst [vmem:[%s1630_s9 + $0x88] sm:$0xff] %v838_v16 }
 0x228   : > { %v794_v22 = vpop.f32.mrb[2].mxu0  ;;  %v842_v23 = vpop.f32.mrb[2].mxu1 }
 0x229   : > { %885 = vst [vmem:[%s1630_s9 + $0x10] sm:$0xff] %v794_v22  ;;  %901 = vst [vmem:[%s1630_s9 + $0x90] sm:$0xff] %v842_v23  ;;  %v796_v37 = vpop.f32.mrb[3].mxu0  ;;  %v844_v42 = vpop.f32.mrb[3].mxu1 }
 0x22a   : > { %886 = vst [vmem:[%s1630_s9 + $0x18] sm:$0xff] %v796_v37  ;;  %902 = vst [vmem:[%s1630_s9 + $0x98] sm:$0xff] %v844_v42 }
 0x22c   : > { %v800_v43 = vpop.f32.mrb[4].mxu0  ;;  %v848_v19 = vpop.f32.mrb[4].mxu1  ;;  %v940_v4 = vld [vmem:[%s1630_s9] sm:$0xff] (%p1473_p9) }
 0x22d   : > { %887 = vst [vmem:[%s1630_s9 + $0x20] sm:$0xff] %v800_v43  ;;  %903 = vst [vmem:[%s1630_s9 + $0xa0] sm:$0xff] %v848_v19  ;;  %v802_v20 = vpop.f32.mrb[5].mxu0  ;;  %v850_v44 = vpop.f32.mrb[5].mxu1  ;;  %v942_v6 = vld [vmem:[%s1630_s9 + $0x8] sm:$0xff] (%p1473_p9)  ;;  %v972_v50 = vld [vmem:[%s1630_s9 + $0x80] sm:$0xff] (%p1473_p9) }
 0x22e   : > { %888 = vst [vmem:[%s1630_s9 + $0x28] sm:$0xff] %v802_v20  ;;  %904 = vst [vmem:[%s1630_s9 + $0xa8] sm:$0xff] %v850_v44  ;;  %v974_v51 = vld [vmem:[%s1630_s9 + $0x88] sm:$0xff] (%p1473_p9) }
 0x22f   : > { %941 = vst [vmem:[%s1976_s26] sm:$0xff] (%p1473_p9), %v940_v4  ;;  %943 = vst [vmem:[%s1976_s26 + $0x8] sm:$0xff] (%p1473_p9), %v942_v6 }
 0x230   : > { %v806_v45 = vpop.f32.mrb[6].mxu0  ;;  %v854_v46 = vpop.f32.mrb[6].mxu1  ;;  %v944_v38 = vld [vmem:[%s1630_s9 + $0x10] sm:$0xff] (%p1473_p9)  ;;  %973 = vst [vmem:[%s1976_s26 + $0x100] sm:$0xff] (%p1473_p9), %v972_v50  ;;  %975 = vst [vmem:[%s1976_s26 + $0x108] sm:$0xff] (%p1473_p9), %v974_v51 }
 0x231   : > { %889 = vst [vmem:[%s1630_s9 + $0x30] sm:$0xff] %v806_v45  ;;  %905 = vst [vmem:[%s1630_s9 + $0xb0] sm:$0xff] %v854_v46  ;;  %v808_v47 = vpop.f32.mrb[7].mxu0  ;;  %v856_v0 = vpop.f32.mrb[7].mxu1  ;;  %v946_v7 = vld [vmem:[%s1630_s9 + $0x18] sm:$0xff] (%p1473_p9)  ;;  %v976_v25 = vld [vmem:[%s1630_s9 + $0x90] sm:$0xff] (%p1473_p9) }
 0x232   : > { %890 = vst [vmem:[%s1630_s9 + $0x38] sm:$0xff] %v808_v47  ;;  %906 = vst [vmem:[%s1630_s9 + $0xb8] sm:$0xff] %v856_v0  ;;  %v978_v26 = vld [vmem:[%s1630_s9 + $0x98] sm:$0xff] (%p1473_p9) }
 0x233   : > { %945 = vst [vmem:[%s1976_s26 + $0x20] sm:$0xff] (%p1473_p9), %v944_v38  ;;  %947 = vst [vmem:[%s1976_s26 + $0x28] sm:$0xff] (%p1473_p9), %v946_v7 }
 0x234   : > { %v812_v1 = vpop.f32.mrb[8].mxu0  ;;  %v860_v52 = vpop.f32.mrb[8].mxu1  ;;  %v948_v39 = vld [vmem:[%s1630_s9 + $0x20] sm:$0xff] (%p1473_p9)  ;;  %977 = vst [vmem:[%s1976_s26 + $0x120] sm:$0xff] (%p1473_p9), %v976_v25  ;;  %979 = vst [vmem:[%s1976_s26 + $0x128] sm:$0xff] (%p1473_p9), %v978_v26 }
 0x235   : > { %891 = vst [vmem:[%s1630_s9 + $0x40] sm:$0xff] %v812_v1  ;;  %907 = vst [vmem:[%s1630_s9 + $0xc0] sm:$0xff] %v860_v52  ;;  %v814_v53 = vpop.f32.mrb[9].mxu0  ;;  %v862_v2 = vpop.f32.mrb[9].mxu1  ;;  %v950_v40 = vld [vmem:[%s1630_s9 + $0x28] sm:$0xff] (%p1473_p9)  ;;  %v980_v27 = vld [vmem:[%s1630_s9 + $0xa0] sm:$0xff] (%p1473_p9) }
 0x236   : > { %892 = vst [vmem:[%s1630_s9 + $0x48] sm:$0xff] %v814_v53  ;;  %908 = vst [vmem:[%s1630_s9 + $0xc8] sm:$0xff] %v862_v2  ;;  %v982_v32 = vld [vmem:[%s1630_s9 + $0xa8] sm:$0xff] (%p1473_p9) }
 0x237   : > { %949 = vst [vmem:[%s1976_s26 + $0x40] sm:$0xff] (%p1473_p9), %v948_v39  ;;  %951 = vst [vmem:[%s1976_s26 + $0x48] sm:$0xff] (%p1473_p9), %v950_v40 }
 0x238   : > { %v818_v28 = vpop.f32.mrb[10].mxu0  ;;  %v866_v29 = vpop.f32.mrb[10].mxu1  ;;  %v952_v41 = vld [vmem:[%s1630_s9 + $0x30] sm:$0xff] (%p1473_p9)  ;;  %981 = vst [vmem:[%s1976_s26 + $0x140] sm:$0xff] (%p1473_p9), %v980_v27  ;;  %983 = vst [vmem:[%s1976_s26 + $0x148] sm:$0xff] (%p1473_p9), %v982_v32 }
 0x239   : > { %893 = vst [vmem:[%s1630_s9 + $0x50] sm:$0xff] %v818_v28  ;;  %909 = vst [vmem:[%s1630_s9 + $0xd0] sm:$0xff] %v866_v29  ;;  %v820_v5 = vpop.f32.mrb[11].mxu0  ;;  %v868_v54 = vpop.f32.mrb[11].mxu1  ;;  %v954_v8 = vld [vmem:[%s1630_s9 + $0x38] sm:$0xff] (%p1473_p9)  ;;  %v984_v33 = vld [vmem:[%s1630_s9 + $0xb0] sm:$0xff] (%p1473_p9) }
 0x23a   : > { %894 = vst [vmem:[%s1630_s9 + $0x58] sm:$0xff] %v820_v5  ;;  %910 = vst [vmem:[%s1630_s9 + $0xd8] sm:$0xff] %v868_v54  ;;  %v986_v34 = vld [vmem:[%s1630_s9 + $0xb8] sm:$0xff] (%p1473_p9) }
 0x23b   : > { %953 = vst [vmem:[%s1976_s26 + $0x60] sm:$0xff] (%p1473_p9), %v952_v41  ;;  %955 = vst [vmem:[%s1976_s26 + $0x68] sm:$0xff] (%p1473_p9), %v954_v8 }
 0x23c   : > { %v824_v55 = vpop.f32.mrb[12].mxu0  ;;  %v872_v30 = vpop.f32.mrb[12].mxu1  ;;  %921 = sbr.rel (!%p1473_p9) target bundleno = 588 (0x24c), region = 63  ;;  %v956_v9 = vld [vmem:[%s1630_s9 + $0x40] sm:$0xff] (%p1473_p9)  ;;  %985 = vst [vmem:[%s1976_s26 + $0x160] sm:$0xff] (%p1473_p9), %v984_v33  ;;  %987 = vst [vmem:[%s1976_s26 + $0x168] sm:$0xff] (%p1473_p9), %v986_v34 }
 0x23d   : > { %895 = vst [vmem:[%s1630_s9 + $0x60] sm:$0xff] %v824_v55  ;;  %911 = vst [vmem:[%s1630_s9 + $0xe0] sm:$0xff] %v872_v30  ;;  %v826_v31 = vpop.f32.mrb[13].mxu0  ;;  %v874_v56 = vpop.f32.mrb[13].mxu1  ;;  %v958_v17 = vld [vmem:[%s1630_s9 + $0x48] sm:$0xff] (%p1473_p9)  ;;  %v988_v58 = vld [vmem:[%s1630_s9 + $0xc0] sm:$0xff] (%p1473_p9) }
 0x23e   : > { %896 = vst [vmem:[%s1630_s9 + $0x68] sm:$0xff] %v826_v31  ;;  %912 = vst [vmem:[%s1630_s9 + $0xe8] sm:$0xff] %v874_v56  ;;  %v990_v59 = vld [vmem:[%s1630_s9 + $0xc8] sm:$0xff] (%p1473_p9) }
 0x23f   : > { %957 = vst [vmem:[%s1976_s26 + $0x80] sm:$0xff] (%p1473_p9), %v956_v9  ;;  %959 = vst [vmem:[%s1976_s26 + $0x88] sm:$0xff] (%p1473_p9), %v958_v17 }
 0x240   : > { %v830_v57 = vpop.f32.mrb[14].mxu0  ;;  %v878_v62 = vpop.f32.mrb[14].mxu1  ;;  %v960_v21 = vld [vmem:[%s1630_s9 + $0x50] sm:$0xff] (%p1473_p9)  ;;  %989 = vst [vmem:[%s1976_s26 + $0x180] sm:$0xff] (%p1473_p9), %v988_v58  ;;  %991 = vst [vmem:[%s1976_s26 + $0x188] sm:$0xff] (%p1473_p9), %v990_v59 }
 0x241   : > { %897 = vst [vmem:[%s1630_s9 + $0x70] sm:$0xff] %v830_v57  ;;  %913 = vst [vmem:[%s1630_s9 + $0xf0] sm:$0xff] %v878_v62  ;;  %v832_v63 = vpop.f32.mrb[15].mxu0  ;;  %v880_v3 = vpop.f32.mrb[15].mxu1  ;;  %v962_v12 = vld [vmem:[%s1630_s9 + $0x58] sm:$0xff] (%p1473_p9)  ;;  %v992_v60 = vld [vmem:[%s1630_s9 + $0xd0] sm:$0xff] (%p1473_p9) }
 0x242   : > { %898 = vst [vmem:[%s1630_s9 + $0x78] sm:$0xff] %v832_v63  ;;  %914 = vst [vmem:[%s1630_s9 + $0xf8] sm:$0xff] %v880_v3  ;;  %v994_v61 = vld [vmem:[%s1630_s9 + $0xd8] sm:$0xff] (%p1473_p9) }
 0x243   : > { %961 = vst [vmem:[%s1976_s26 + $0xa0] sm:$0xff] %v960_v21  ;;  %963 = vst [vmem:[%s1976_s26 + $0xa8] sm:$0xff] %v962_v12 }
 0x244   : > { %v964_v13 = vld [vmem:[%s1630_s9 + $0x60] sm:$0xff]  ;;  %993 = vst [vmem:[%s1976_s26 + $0x1a0] sm:$0xff] %v992_v60  ;;  %995 = vst [vmem:[%s1976_s26 + $0x1a8] sm:$0xff] %v994_v61 }
 0x245   : > { %v966_v24 = vld [vmem:[%s1630_s9 + $0x68] sm:$0xff]  ;;  %965 = vst [vmem:[%s1976_s26 + $0xc0] sm:$0xff] %v964_v13  ;;  %v996_v35 = vld [vmem:[%s1630_s9 + $0xe0] sm:$0xff] }
 0x246   : > { %967 = vst [vmem:[%s1976_s26 + $0xc8] sm:$0xff] %v966_v24  ;;  %v998_v36 = vld [vmem:[%s1630_s9 + $0xe8] sm:$0xff]  ;;  %997 = vst [vmem:[%s1976_s26 + $0x1c0] sm:$0xff] %v996_v35 }
 0x247   : > { %999 = vst [vmem:[%s1976_s26 + $0x1c8] sm:$0xff] %v998_v36 }
 0x248   : > { %v968_v48 = vld [vmem:[%s1630_s9 + $0x70] sm:$0xff] }
 0x249   : > { %969 = vst [vmem:[%s1976_s26 + $0xe0] sm:$0xff] %v968_v48  ;;  %v970_v49 = vld [vmem:[%s1630_s9 + $0x78] sm:$0xff]  ;;  %v1000_v14 = vld [vmem:[%s1630_s9 + $0xf0] sm:$0xff] }
 0x24a   : > { %971 = vst [vmem:[%s1976_s26 + $0xe8] sm:$0xff] %v970_v49  ;;  %v1002_v18 = vld [vmem:[%s1630_s9 + $0xf8] sm:$0xff]  ;;  %1001 = vst [vmem:[%s1976_s26 + $0x1e0] sm:$0xff] %v1000_v14 }
 0x24b   : > { %1003 = vst [vmem:[%s1976_s26 + $0x1e8] sm:$0xff] %v1002_v18 }
 0x24c PF: > { %s13_s20 = sadd.s32 1, %s1384_s20   ;;  %s2065_s12 = smov %s1356_s13 }
 0x24d   : > { %p10_p2 = scmp.ge.s32.totalorder %s13_s20, 10   ;;  %s2066_s13 = smov %s1478_s4 }
 0x24e   : > { %s2067_s14 = smov %s1364_s15  ;;  %s2068_s15 = smov %s1467_s27 }
 0x24f   : > { %s2069_s16 = smov %s1376_s18  ;;  %s2070_s17 = smov %s1380_s19 }
 0x250   : > { %s2071_s18 = smov %s2074_s22  ;;  %s2072_s19 = smov %s2078_s23 }
 0x251   :  { %12 = sbr.rel (!%p10_p2) target bundleno = 5 (0x5), region = 120 }

// kernel: _lambda_.5
= control target key start
LH: loop header
LB: loop body
LE: loop exit
PB: predicated region body
PF: predicated region fallthrough
CT: control target
= control target key end

     0   :  { %s2210_s12 = smov 0   ;;  %s2212_s13 = smov 0   ;;  %s2870_s0 = inlined_call_operand.vmem [shape: f32[8,256,64], index: 0, kind: input, shape index: {}]   ;;  %s2871_s1 = inlined_call_operand.vmem [shape: f32[8,256,64], index: 1, kind: input, shape index: {}]   ;;  %s2872_s2 = inlined_call_operand.vmem [shape: f32[8,256,64], index: 2, kind: input, shape index: {}]   ;;  %s2873_s3 = inlined_call_operand.vmem [shape: f32[8,256,64], index: 3, kind: output, shape index: {}]  }
   0x1   :  { %s2214_s14 = smov 0   ;;  %s2216_s15 = smov 0  }
   0x2   :  { %s2218_s16 = smov 0   ;;  %s2220_s17 = smov 0  }
   0x3   :  { %s2222_s18 = smov 0  }
   0x4 LB: > { %s25_s19 = sadd.s32 1, %s2172_s15  ;;  %s28_s20 = sadd.s32 1, %s2176_s16  ;;  %s2184_s18 = sphi %s2222_s18, %s13_s18   ;;  %s2180_s17 = sphi %s2220_s17, %s2881_s17   ;;  %s2176_s16 = sphi %s2218_s16, %s2880_s16   ;;  %s2172_s15 = sphi %s2216_s15, %s2879_s15   ;;  %s2168_s14 = sphi %s2214_s14, %s2878_s14   ;;  %s2164_s13 = sphi %s2212_s13, %s2877_s13   ;;  %s2160_s12 = sphi %s2210_s12, %s2876_s12  }
   0x5   : > { %p26_p0 = scmp.ge.s32.totalorder %s25_s19, 2  ;;  %p1663_p1 = scmp.ge.s32.totalorder %s2184_s18, 1 }
   0x6   : > { %p199_p2 = scmp.lt.s32.totalorder %s2184_s18, 33  ;;  %s32_s21 = sadd.s32 1, %s2180_s17 }
   0x7   : > { %s2883_s19 = smov (%p26_p0, %s25_s19), 0  ;;  %s2885_s20 = smov (!%p26_p0, %s28_s20), %s2176_s16 }
   0x8   : > { %p200_p3 = pnand %p1663_p1, %p199_p2  ;;  %p30_p4 = scmp.ge.s32.totalorder %s2885_s20, 2 }
   0x9   : > { %s1664_s22 = sshll.u32 (!%p200_p3), %s2164_s13, 4  ;;  %p250_p6 = scmp.lt.s32.totalorder (!%p200_p3), %s2168_s14, 7 }
   0xa   : > { %s2887_s20 = smov (%p30_p4, %s2885_s20), 0  ;;  %s2889_s21 = smov (!%p30_p4, %s32_s21), %s2180_s17 }
   0xb   : > { %p34_p5 = scmp.ge.s32.totalorder %s2889_s21, 8  ;;  %203 = sbr.rel (%p200_p3) target bundleno = 1002 (0x3ea), region = 32 }
   0xc   : > { %p252_p7 = scmp.lt.s32.totalorder (!%p200_p3), %s1664_s22, 31  ;;  %s1667_s23 = sshll.u32 (!%p200_p3), %s2160_s12, 4 }
   0xd   : > { %s2891_s21 = smov (%p34_p5, %s2889_s21), 0  ;;  %p262_p8 = scmp.lt.s32.totalorder (!%p200_p3), %s1667_s23, 31 }
   0xe   : > { %p1676_p9 = scmp.ne.s32.totalorder (!%p200_p3), %s2160_s12, 0 }
  0x12   : > { %s2893_s14 = smov (!%p250_p6, %s2168_s14), 7  ;;  %s2895_s22 = smov (!%p252_p7, %s1664_s22), 31 }
  0x13   : > { %s1665_s24 = sshll.u32 %s2893_s14, 5  ;;  %s2897_s23 = smov (!%p262_p8, %s1667_s23), 31  ;;  %vm293_vm0 = vcmask (!%p1676_p9), 7168   ;;  %vm326_vm1 = vcmask (!%p1676_p9), 523264   ;;  %v2186_v0 = vmov (!%p1676_p9), -inf   ;;  %v2187_v1 = vmov (!%p1676_p9), 0.0  }
  0x14   : > { %s255_s25 = sadd.s32 %s1665_s24, %s2895_s22  ;;  %s265_s6 = sadd.s32 %s1665_s24, %s2897_s23  ;;  %294 = vst.msk [vmem:[#allocation2] sm:$0xff] (!%p1676_p9), %vm293_vm0, %v2186_v0  ;;  %295 = vst.msk [vmem:[#allocation2 + $0x8] sm:$0xff] (!%p1676_p9), %vm293_vm0, %v2186_v0 }
  0x15   : > { %s1666_s26 = sshll.u32 %s255_s25, 3  ;;  %s1669_s7 = sshll.u32 %s265_s6, 3  ;;  %296 = vst.msk [vmem:[#allocation2 + $0x10] sm:$0xff] (!%p1676_p9), %vm293_vm0, %v2186_v0  ;;  %297 = vst.msk [vmem:[#allocation2 + $0x18] sm:$0xff] (!%p1676_p9), %vm293_vm0, %v2186_v0 }
  0x16   : > { %s2261_s29 = scalar_lea.vmem %s2870_s0, %s1666_s26  ;;  %s2266_s5 = scalar_lea.vmem %s2873_s3, %s1666_s26  ;;  %298 = vst.msk [vmem:[#allocation2 + $0x20] sm:$0xff] (!%p1676_p9), %vm293_vm0, %v2186_v0  ;;  %299 = vst.msk [vmem:[#allocation2 + $0x28] sm:$0xff] (!%p1676_p9), %vm293_vm0, %v2186_v0 }
  0x17   : > { %s2271_s10 = scalar_lea.vmem %s2871_s1, %s1669_s7  ;;  %s2276_s22 = scalar_lea.vmem %s2872_s2, %s1669_s7  ;;  %300 = vst.msk [vmem:[#allocation2 + $0x30] sm:$0xff] (!%p1676_p9), %vm293_vm0, %v2186_v0  ;;  %301 = vst.msk [vmem:[#allocation2 + $0x38] sm:$0xff] (!%p1676_p9), %vm293_vm0, %v2186_v0 }
  0x18   : > { %292 = sbr.rel (%p1676_p9) target bundleno = 44 (0x2c), region = 36  ;;  %302 = vst.msk [vmem:[#allocation2 + $0x40] sm:$0xff] (!%p1676_p9), %vm293_vm0, %v2186_v0  ;;  %303 = vst.msk [vmem:[#allocation2 + $0x48] sm:$0xff] (!%p1676_p9), %vm293_vm0, %v2186_v0 }
  0x19   : > { %304 = vst.msk [vmem:[#allocation2 + $0x50] sm:$0xff] (!%p1676_p9), %vm293_vm0, %v2186_v0  ;;  %305 = vst.msk [vmem:[#allocation2 + $0x58] sm:$0xff] (!%p1676_p9), %vm293_vm0, %v2186_v0 }
  0x1a   : > { %306 = vst.msk [vmem:[#allocation2 + $0x60] sm:$0xff] (!%p1676_p9), %vm293_vm0, %v2186_v0  ;;  %307 = vst.msk [vmem:[#allocation2 + $0x68] sm:$0xff] (!%p1676_p9), %vm293_vm0, %v2186_v0 }
  0x1b   : > { %308 = vst.msk [vmem:[#allocation2 + $0x70] sm:$0xff] (!%p1676_p9), %vm293_vm0, %v2186_v0  ;;  %309 = vst.msk [vmem:[#allocation2 + $0x78] sm:$0xff] (!%p1676_p9), %vm293_vm0, %v2186_v0 }
  0x1c   : > { %310 = vst.msk [vmem:[#allocation3] sm:$0xff] (!%p1676_p9), %vm293_vm0, %v2187_v1  ;;  %311 = vst.msk [vmem:[#allocation3 + $0x8] sm:$0xff] (!%p1676_p9), %vm293_vm0, %v2187_v1 }
  0x1d   : > { %312 = vst.msk [vmem:[#allocation3 + $0x10] sm:$0xff] (!%p1676_p9), %vm293_vm0, %v2187_v1  ;;  %313 = vst.msk [vmem:[#allocation3 + $0x18] sm:$0xff] (!%p1676_p9), %vm293_vm0, %v2187_v1 }
  0x1e   : > { %314 = vst.msk [vmem:[#allocation3 + $0x20] sm:$0xff] (!%p1676_p9), %vm293_vm0, %v2187_v1  ;;  %315 = vst.msk [vmem:[#allocation3 + $0x28] sm:$0xff] (!%p1676_p9), %vm293_vm0, %v2187_v1 }
  0x1f   : > { %316 = vst.msk [vmem:[#allocation3 + $0x30] sm:$0xff] %vm293_vm0, %v2187_v1  ;;  %317 = vst.msk [vmem:[#allocation3 + $0x38] sm:$0xff] %vm293_vm0, %v2187_v1 }
  0x20   : > { %318 = vst.msk [vmem:[#allocation3 + $0x40] sm:$0xff] %vm293_vm0, %v2187_v1  ;;  %319 = vst.msk [vmem:[#allocation3 + $0x48] sm:$0xff] %vm293_vm0, %v2187_v1 }
  0x21   : > { %320 = vst.msk [vmem:[#allocation3 + $0x50] sm:$0xff] %vm293_vm0, %v2187_v1  ;;  %321 = vst.msk [vmem:[#allocation3 + $0x58] sm:$0xff] %vm293_vm0, %v2187_v1 }
  0x22   : > { %322 = vst.msk [vmem:[#allocation3 + $0x60] sm:$0xff] %vm293_vm0, %v2187_v1  ;;  %323 = vst.msk [vmem:[#allocation3 + $0x68] sm:$0xff] %vm293_vm0, %v2187_v1 }
  0x23   : > { %324 = vst.msk [vmem:[#allocation3 + $0x70] sm:$0xff] %vm293_vm0, %v2187_v1  ;;  %325 = vst.msk [vmem:[#allocation3 + $0x78] sm:$0xff] %vm293_vm0, %v2187_v1 }
  0x24   : > { %327 = vst.msk [vmem:[#allocation4] sm:$0xff] %vm326_vm1, %v2187_v1  ;;  %328 = vst.msk [vmem:[#allocation4 + $0x8] sm:$0xff] %vm326_vm1, %v2187_v1 }
  0x25   : > { %329 = vst.msk [vmem:[#allocation4 + $0x10] sm:$0xff] %vm326_vm1, %v2187_v1  ;;  %330 = vst.msk [vmem:[#allocation4 + $0x18] sm:$0xff] %vm326_vm1, %v2187_v1 }
  0x26   : > { %331 = vst.msk [vmem:[#allocation4 + $0x20] sm:$0xff] %vm326_vm1, %v2187_v1  ;;  %332 = vst.msk [vmem:[#allocation4 + $0x28] sm:$0xff] %vm326_vm1, %v2187_v1 }
  0x27   : > { %333 = vst.msk [vmem:[#allocation4 + $0x30] sm:$0xff] %vm326_vm1, %v2187_v1  ;;  %334 = vst.msk [vmem:[#allocation4 + $0x38] sm:$0xff] %vm326_vm1, %v2187_v1 }
  0x28   : > { %335 = vst.msk [vmem:[#allocation4 + $0x40] sm:$0xff] %vm326_vm1, %v2187_v1  ;;  %336 = vst.msk [vmem:[#allocation4 + $0x48] sm:$0xff] %vm326_vm1, %v2187_v1 }
  0x29   : > { %337 = vst.msk [vmem:[#allocation4 + $0x50] sm:$0xff] %vm326_vm1, %v2187_v1  ;;  %338 = vst.msk [vmem:[#allocation4 + $0x58] sm:$0xff] %vm326_vm1, %v2187_v1 }
  0x2a   : > { %339 = vst.msk [vmem:[#allocation4 + $0x60] sm:$0xff] %vm326_vm1, %v2187_v1  ;;  %340 = vst.msk [vmem:[#allocation4 + $0x68] sm:$0xff] %vm326_vm1, %v2187_v1 }
  0x2b   : > { %341 = vst.msk [vmem:[#allocation4 + $0x70] sm:$0xff] %vm326_vm1, %v2187_v1  ;;  %342 = vst.msk [vmem:[#allocation4 + $0x78] sm:$0xff] %vm326_vm1, %v2187_v1 }
  0x2c PF: > { %v359_v2 = vld [vmem:[%s2271_s10] sm:$0xff]  ;;  %v360_v3 = vld [vmem:[%s2271_s10 + $0x8] sm:$0xff]  ;;  %vm375_vm2 = vcmask 523264   ;;  %v361_v4 = vld [vmem:[%s2271_s10 + $0x10] sm:$0xff]  ;;  %v634_v43 = vlaneseq  ;;  %s1709_s23 = sshll.u32 %s2164_s13, 7  ;;  %s1710_s24 = sshll.u32 %s2160_s12, 7 }
  0x2d   : > { %v1890_v5 = vpack.c.bf16 %v360_v3, %v359_v2  ;;  %vm2332_vm3 = vmpackc.low %vm375_vm2, %vm375_vm2  ;;  %v362_v7 = vld [vmem:[%s2271_s10 + $0x18] sm:$0xff]  ;;  %v343_v9 = vld [vmem:[%s2261_s29] sm:$0xff]  ;;  %v2417_v46 = vstv %s1709_s23  ;;  %v671_v47 = vstv %s1710_s24  ;;  %p1711_p10 = scmp.ne.s32.totalorder %s2160_s12, 1 }
  0x2e   : > { %v1896_v8 = vpack.c.bf16 %v362_v7, %v361_v4  ;;  %v363_v10 = vld [vmem:[%s2271_s10 + $0x20] sm:$0xff]  ;;  %v364_v11 = vld [vmem:[%s2271_s10 + $0x28] sm:$0xff]  ;;  %1810 = vmatprep.mubr.msk.f32.mxu0 %vm375_vm2, %v343_v9  ;;  %v365_v13 = vld [vmem:[%s2271_s10 + $0x30] sm:$0xff]  ;;  %v2415_v44 = vshrl.u32 %v634_v43, 7  ;;  %v670_v45 = vand.u32 127, %v634_v43 }
  0x2f   : > { %1892 = vmatprep.subr.msk.bf16.mxu0 %vm2332_vm3, %v1890_v5  ;;  %v1902_v12 = vpack.c.bf16 %v364_v11, %v363_v10  ;;  %v366_v14 = vld [vmem:[%s2271_s10 + $0x38] sm:$0xff]  ;;  %v367_v16 = vld [vmem:[%s2271_s10 + $0x40] sm:$0xff]  ;;  %v368_v17 = vld [vmem:[%s2271_s10 + $0x48] sm:$0xff] }
  0x30   : > { %1895 = vmatpush3.bf16.xpose.msk.msra.mxu0 %vm2332_vm3, %v1890_v5  ;;  %v1908_v15 = vpack.c.bf16 %v366_v14, %v365_v13  ;;  %v1914_v18 = vpack.c.bf16 %v368_v17, %v367_v16  ;;  %v369_v19 = vld [vmem:[%s2271_s10 + $0x50] sm:$0xff]  ;;  %v370_v20 = vld [vmem:[%s2271_s10 + $0x58] sm:$0xff]  ;;  %v371_v22 = vld [vmem:[%s2271_s10 + $0x60] sm:$0xff]  ;;  %v638_v48 = vadd.s32 24, %v2415_v44  ;;  %v652_v49 = vadd.s32 %v2417_v46, %v2415_v44 }
  0x31   : > { %1898 = vmatprep.subr.msk.bf16.mxu0 %vm2332_vm3, %v1896_v8  ;;  %v1920_v21 = vpack.c.bf16 %v370_v20, %v369_v19  ;;  %v372_v23 = vld [vmem:[%s2271_s10 + $0x68] sm:$0xff]  ;;  %v373_v25 = vld [vmem:[%s2271_s10 + $0x70] sm:$0xff]  ;;  %v374_v26 = vld [vmem:[%s2271_s10 + $0x78] sm:$0xff]  ;;  %v2422_v50 = vadd.s32 %v671_v47, %v670_v45  ;;  %v636_v51 = vadd.s32 8, %v2415_v44  ;;  %v637_v52 = vadd.s32 16, %v2415_v44 }
  0x32   : > { %v1926_v24 = vpack.c.bf16 %v372_v23, %v371_v22  ;;  %v1932_v27 = vpack.c.bf16 %v374_v26, %v373_v25  ;;  %v344_v28 = vld [vmem:[%s2261_s29 + $0x8] sm:$0xff]  ;;  %v345_v29 = vld [vmem:[%s2261_s29 + $0x10] sm:$0xff]  ;;  %v346_v30 = vld [vmem:[%s2261_s29 + $0x18] sm:$0xff]  ;;  %v655_v54 = vadd.s32 %v2417_v46, %v638_v48  ;;  %v639_v57 = vadd.s32 32, %v2415_v44 }
  0x33   : > { %v347_v31 = vld [vmem:[%s2261_s29 + $0x20] sm:$0xff]  ;;  %v348_v32 = vld [vmem:[%s2261_s29 + $0x28] sm:$0xff]  ;;  %v349_v33 = vld [vmem:[%s2261_s29 + $0x30] sm:$0xff]  ;;  %vm673_vm4 = vcmp.ge.s32.totalorder %v652_v49, %v2422_v50  ;;  %v653_v56 = vadd.s32 %v2417_v46, %v636_v51  ;;  %v654_v59 = vadd.s32 %v2417_v46, %v637_v52  ;;  %v640_v60 = vadd.s32 40, %v2415_v44 }
  0x34   : > { %v350_v34 = vld [vmem:[%s2261_s29 + $0x38] sm:$0xff]  ;;  %v351_v35 = vld [vmem:[%s2261_s29 + $0x40] sm:$0xff]  ;;  %v352_v36 = vld [vmem:[%s2261_s29 + $0x48] sm:$0xff]  ;;  %vm676_vm5 = vcmp.ge.s32.totalorder %v655_v54, %v2422_v50  ;;  %v656_v2 = vadd.s32 %v2417_v46, %v639_v57  ;;  %v641_v3 = vadd.s32 48, %v2415_v44  ;;  %v642_v6 = vadd.s32 56, %v2415_v44 }
  0x35   : > { %v353_v37 = vld [vmem:[%s2261_s29 + $0x50] sm:$0xff]  ;;  %v354_v38 = vld [vmem:[%s2261_s29 + $0x58] sm:$0xff]  ;;  %v355_v39 = vld [vmem:[%s2261_s29 + $0x60] sm:$0xff]  ;;  %vm674_vm6 = vcmp.ge.s32.totalorder %v653_v56, %v2422_v50  ;;  %vm675_vm7 = vcmp.ge.s32.totalorder %v654_v59, %v2422_v50  ;;  %v657_v5 = vadd.s32 %v2417_v46, %v640_v60  ;;  %v643_v10 = vadd.s32 64, %v2415_v44 }
  0x36   : > { %v356_v40 = vld [vmem:[%s2261_s29 + $0x68] sm:$0xff]  ;;  %v357_v41 = vld [vmem:[%s2261_s29 + $0x70] sm:$0xff]  ;;  %v358_v42 = vld [vmem:[%s2261_s29 + $0x78] sm:$0xff]  ;;  %vm677_vm8 = vcmp.ge.s32.totalorder %v656_v2, %v2422_v50  ;;  %v658_v14 = vadd.s32 %v2417_v46, %v641_v3  ;;  %v659_v16 = vadd.s32 %v2417_v46, %v642_v6  ;;  %v644_v17 = vadd.s32 72, %v2415_v44 }
  0x37   : > { %vm678_vm9 = vcmp.ge.s32.totalorder %v657_v5, %v2422_v50  ;;  %v660_v20 = vadd.s32 %v2417_v46, %v643_v10  ;;  %v650_v51 = vadd.s32 120, %v2415_v44  ;;  %v1154_v3 = vld [vmem:[%s2276_s22] sm:$0xff]  ;;  %v1156_v5 = vld [vmem:[%s2276_s22 + $0x10] sm:$0xff] }
  0x38   : > { %1901 = vmatpush3.bf16.xpose.msk.msra.mxu0 %vm2332_vm3, %v1896_v8  ;;  %vm679_vm10 = vcmp.ge.s32.totalorder %v658_v14, %v2422_v50  ;;  %vm680_vm11 = vcmp.ge.s32.totalorder %v659_v16, %v2422_v50  ;;  %v661_v26 = vadd.s32 %v2417_v46, %v644_v17  ;;  %v1160_v14 = vld [vmem:[%s2276_s22 + $0x30] sm:$0xff]  ;;  %v2525_v17 = vld [vmem:[#allocation2] sm:$0xff] }
  0x39   : > { %1904 = vmatprep.subr.msk.bf16.mxu0 %vm2332_vm3, %v1902_v12  ;;  %vm681_vm12 = vcmp.ge.s32.totalorder %v660_v20, %v2422_v50 }
  0x3a   : > { %vm682_vm13 = vcmp.ge.s32.totalorder %v661_v26, %v2422_v50  ;;  %v1163_v26 = vld [vmem:[%s2276_s22 + $0x48] sm:$0xff] }
  0x40   : > { %1907 = vmatpush3.bf16.xpose.msk.msra.mxu0 %vm2332_vm3, %v1902_v12 }
  0x41   : > { %1910 = vmatprep.subr.msk.bf16.mxu0 %vm2332_vm3, %v1908_v15 }
  0x48   : > { %1913 = vmatpush3.bf16.xpose.msk.msra.mxu0 %vm2332_vm3, %v1908_v15 }
  0x49   : > { %1916 = vmatprep.subr.msk.bf16.mxu0 %vm2332_vm3, %v1914_v18 }
  0x50   : > { %1919 = vmatpush3.bf16.xpose.msk.msra.mxu0 %vm2332_vm3, %v1914_v18 }
  0x51   : > { %1922 = vmatprep.subr.msk.bf16.mxu0 %vm2332_vm3, %v1920_v21 }
  0x58   : > { %1925 = vmatpush3.bf16.xpose.msk.msra.mxu0 %vm2332_vm3, %v1920_v21 }
  0x59   : > { %1928 = vmatprep.subr.msk.bf16.mxu0 %vm2332_vm3, %v1926_v24 }
  0x60   : > { %1931 = vmatpush3.bf16.xpose.msk.msra.mxu0 %vm2332_vm3, %v1926_v24  ;;  %v645_v24 = vadd.s32 80, %v2415_v44 }
  0x61   : > { %1934 = vmatprep.subr.msk.bf16.mxu0 %vm2332_vm3, %v1932_v27 }
  0x68   : > { %1937 = vmatpush3.bf16.xpose.msk.msra.mxu0 %vm2332_vm3, %v1932_v27  ;;  %v646_v27 = vadd.s32 88, %v2415_v44 }
  0x6f   : > { %1811 = vmatmul.mubr.msk.f32.vlgmr.msra.gmra.mrb[0].mxu0 %vm375_vm2, %v344_v28 }
  0x70   : > { %1813 = vmatprep.mubr.msk.f32.mxu0 %vm375_vm2, %v345_v29 }
  0x73   : > { %1814 = vmatmul.mubr.msk.f32.gmra.mrb[2].mxu0 %vm375_vm2, %v346_v30 }
  0x74   : > { %1816 = vmatprep.mubr.msk.f32.mxu0 %vm375_vm2, %v347_v31 }
  0x77   : > { %1817 = vmatmul.mubr.msk.f32.gmra.mrb[4].mxu0 %vm375_vm2, %v348_v32 }
  0x78   : > { %1819 = vmatprep.mubr.msk.f32.mxu0 %vm375_vm2, %v349_v33  ;;  %v662_v33 = vadd.s32 %v2417_v46, %v645_v24 }
  0x7a   : > { %vm683_vm14 = vcmp.ge.s32.totalorder %v662_v33, %v2422_v50  ;;  %v2545_v33 = vld [vmem:[#allocation2 + $0x10] sm:$0xff] }
  0x7b   : > { %1820 = vmatmul.mubr.msk.f32.gmra.mrb[6].mxu0 %vm375_vm2, %v350_v34  ;;  %v647_v34 = vadd.s32 96, %v2415_v44 }
  0x7c   : > { %1822 = vmatprep.mubr.msk.f32.mxu0 %vm375_vm2, %v351_v35 }
  0x7d   : > { %v664_v47 = vadd.s32 %v2417_v46, %v647_v34  ;;  %v2549_v34 = vld [vmem:[#allocation2 + $0x20] sm:$0xff] }
  0x7f   : > { %1823 = vmatmul.mubr.msk.f32.gmra.mrb[8].mxu0 %vm375_vm2, %v352_v36  ;;  %v663_v36 = vadd.s32 %v2417_v46, %v646_v27  ;;  %vm685_vm0 = vcmp.ge.s32.totalorder %v664_v47, %v2422_v50  ;;  %v2566_v47 = vld [vmem:[#allocation2 + $0x30] sm:$0xff] }
  0x80   : > { %1825 = vmatprep.mubr.msk.f32.mxu0 %vm375_vm2, %v353_v37  ;;  %v648_v37 = vadd.s32 104, %v2415_v44 }
  0x81   : > { %vm684_vm15 = vcmp.ge.s32.totalorder %v663_v36, %v2422_v50  ;;  %v1164_v36 = vld [vmem:[%s2276_s22 + $0x50] sm:$0xff] }
  0x82   : > { %v665_v49 = vadd.s32 %v2417_v46, %v648_v37  ;;  %v1165_v37 = vld [vmem:[%s2276_s22 + $0x58] sm:$0xff] }
  0x83   : > { %1826 = vmatmul.mubr.msk.f32.gmra.mrb[10].mxu0 %vm375_vm2, %v354_v38 }
  0x84   : > { %1828 = vmatprep.mubr.msk.f32.mxu0 %vm375_vm2, %v355_v39  ;;  %vm686_vm1 = vcmp.ge.s32.totalorder %v665_v49, %v2422_v50  ;;  %v1166_v49 = vld [vmem:[%s2276_s22 + $0x60] sm:$0xff] }
  0x87   : > { %1829 = vmatmul.mubr.msk.f32.gmra.mrb[12].mxu0 %vm375_vm2, %v356_v40  ;;  %v649_v40 = vadd.s32 112, %v2415_v44  ;;  %v667_v44 = vadd.s32 %v2417_v46, %v650_v51  ;;  %v1167_v51 = vld [vmem:[%s2276_s22 + $0x68] sm:$0xff] }
  0x88   : > { %1831 = vmatprep.mubr.msk.f32.mxu0 %vm375_vm2, %v357_v41  ;;  %v2188_v41 = vmov 0  }
  0x89   : > { %2030 = vset.pattern.permute.xlu0 %v2188_v41  ;;  %2031 = vset.pattern.permute.xlu1 %v2188_v41  ;;  %v666_v57 = vadd.s32 %v2417_v46, %v649_v40  ;;  %v1958_v41 = vpack.c.bf16 %v1165_v37, %v1164_v36 }
  0x8b   : > { %1832 = vmatmul.mubr.msk.f32.gmra.mrb[14].mxu0 %vm375_vm2, %v358_v42  ;;  %vm687_vm3 = vcmp.ge.s32.totalorder %v666_v57, %v2422_v50  ;;  %v2574_v57 = vld [vmem:[#allocation2 + $0x38] sm:$0xff] }
 0x142   : > { %v1812_v53 = vpop.f32.mrb[0].mxu0 }
 0x143   : > { %v538_v55 = vpop.f32.mrb[1].mxu0  ;;  %v618_v61 = vmul.f32 0.125, %v1812_v53 }
 0x144   : > { %v617_v58 = vmul.f32 0.125, %v538_v55 }
 0x145   : > { %v2445_v8 = vsel %vm674_vm6, %v618_v61, -1e+30 }
 0x146   : > { %v1815_v62 = vpop.f32.mrb[2].mxu0  ;;  %v2432_v63 = vsel %vm673_vm4, %v617_v58, -1e+30  ;;  %vm688_vm4 = vcmp.ge.s32.totalorder %v667_v44, %v2422_v50  ;;  %v1158_v50 = vld [vmem:[%s2276_s22 + $0x20] sm:$0xff] }
 0x147   : > { %v620_v0 = vmul.f32 0.125, %v1815_v62  ;;  %721 = vmax.xlane.f32.xlu0 %v2432_v63  ;;  %v548_v1 = vpop.f32.mrb[3].mxu0  ;;  %v2580_v44 = vld [vmem:[#allocation2 + $0x40] sm:$0xff] }
 0x148   : > { %v619_v4 = vmul.f32 0.125, %v548_v1 }
 0x149   : > { %v2442_v7 = vsel %vm676_vm5, %v620_v0, -1e+30  ;;  %vm1025_vm5 = vcmask 7168  }
 0x14a   : > { %727 = vmax.xlane.f32.xlu1 %v2442_v7  ;;  %v1818_v9 = vpop.f32.mrb[4].mxu0  ;;  %v2449_v11 = vsel %vm675_vm7, %v619_v4, -1e+30  ;;  %v1155_v4 = vld [vmem:[%s2276_s22 + $0x8] sm:$0xff] }
 0x14b   : > { %723 = vmax.xlane.f32.xlu0 %v2445_v8  ;;  %v622_v12 = vmul.f32 0.125, %v1818_v9  ;;  %v558_v13 = vpop.f32.mrb[5].mxu0  ;;  %v1938_v6 = vpack.c.bf16 %v1155_v4, %v1154_v3  ;;  %v1157_v9 = vld [vmem:[%s2276_s22 + $0x18] sm:$0xff] }
 0x14c   : > { %v621_v15 = vmul.f32 0.125, %v558_v13  ;;  %v1942_v10 = vpack.c.bf16 %v1157_v9, %v1156_v5  ;;  %v714_v5 = vld [vmem:[#allocation2 + $0x48] sm:$0xff]  ;;  %v2592_v9 = vld [vmem:[#allocation2 + $0x50] sm:$0xff] }
 0x14d   : > { %v2460_v21 = vsel %vm678_vm9, %v622_v12, -1e+30  ;;  %v1159_v12 = vld [vmem:[%s2276_s22 + $0x28] sm:$0xff]  ;;  %1939 = vmatprep.subr.bf16.mxu1 %v1938_v6 }
 0x14e   : > { %725 = vmax.xlane.f32.xlu1 %v2449_v11  ;;  %v1821_v18 = vpop.f32.mrb[6].mxu0  ;;  %v2457_v19 = vsel %vm677_vm8, %v621_v15, -1e+30  ;;  %1941 = vmatpush3.bf16.msra.mxu1 %v1938_v6  ;;  %v1946_v13 = vpack.c.bf16 %v1159_v12, %v1158_v50  ;;  %v1161_v15 = vld [vmem:[%s2276_s22 + $0x38] sm:$0xff] }
 0x14f   : > { %v624_v22 = vmul.f32 0.125, %v1821_v18  ;;  %v568_v23 = vpop.f32.mrb[7].mxu0  ;;  %729 = vmax.xlane.f32.xlu0 %v2457_v19  ;;  %1943 = vmatprep.subr.bf16.mxu1 %v1942_v10  ;;  %v1950_v16 = vpack.c.bf16 %v1161_v15, %v1160_v14  ;;  %v716_v14 = vld [vmem:[#allocation2 + $0x58] sm:$0xff] }
 0x150   : > { %v623_v25 = vmul.f32 0.125, %v568_v23  ;;  %v2532_v23 = vld [vmem:[#allocation2 + $0x8] sm:$0xff] }
 0x151   : > { %v2472_v30 = vsel %vm680_vm11, %v624_v22, -1e+30  ;;  %v2530_v22 = vld [vmem:[#allocation2 + $0x18] sm:$0xff] }
 0x152   : > { %731 = vmax.xlane.f32.xlu1 %v2460_v21  ;;  %v1824_v28 = vpop.f32.mrb[8].mxu0  ;;  %v2469_v29 = vsel %vm679_vm10, %v623_v25, -1e+30  ;;  %1945 = vmatpush3.bf16.msra.mxu1 %v1942_v10  ;;  %v1162_v25 = vld [vmem:[%s2276_s22 + $0x40] sm:$0xff] }
 0x153   : > { %v626_v31 = vmul.f32 0.125, %v1824_v28  ;;  %v578_v32 = vpop.f32.mrb[9].mxu0  ;;  %733 = vmax.xlane.f32.xlu0 %v2469_v29  ;;  %1947 = vmatprep.subr.bf16.mxu1 %v1946_v13 }
 0x154   : > { %v625_v35 = vmul.f32 0.125, %v578_v32 }
 0x155   : > { %v2484_v42 = vsel %vm682_vm13, %v626_v31, -1e+30  ;;  %v1954_v31 = vpack.c.bf16 %v1163_v26, %v1162_v25  ;;  %v718_v26 = vld [vmem:[#allocation2 + $0x68] sm:$0xff] }
 0x156   : > { %735 = vmax.xlane.f32.xlu1 %v2472_v30  ;;  %v1827_v38 = vpop.f32.mrb[10].mxu0  ;;  %v2481_v39 = vsel %vm681_vm12, %v625_v35, -1e+30  ;;  %1949 = vmatpush3.bf16.msra.mxu1 %v1946_v13 }
 0x157   : > { %v628_v43 = vmul.f32 0.125, %v1827_v38  ;;  %v588_v45 = vpop.f32.mrb[11].mxu0  ;;  %737 = vmax.xlane.f32.xlu0 %v2481_v39  ;;  %1951 = vmatprep.subr.bf16.mxu1 %v1950_v16 }
 0x158   : > { %v627_v48 = vmul.f32 0.125, %v588_v45 }
 0x159   : > { %v2495_v54 = vsel %vm684_vm15, %v628_v43, -1e+30  ;;  %v2559_v43 = vld [vmem:[#allocation2 + $0x28] sm:$0xff] }
 0x15a   : > { %739 = vmax.xlane.f32.xlu1 %v2484_v42  ;;  %v1830_v52 = vpop.f32.mrb[12].mxu0  ;;  %v2493_v53 = vsel %vm683_vm14, %v627_v48, -1e+30  ;;  %1953 = vmatpush3.bf16.msra.mxu1 %v1950_v16  ;;  %v2602_v16 = vld [vmem:[#allocation2 + $0x60] sm:$0xff] }
 0x15b   : > { %v630_v55 = vmul.f32 0.125, %v1830_v52  ;;  %v598_v56 = vpop.f32.mrb[13].mxu0  ;;  %741 = vmax.xlane.f32.xlu0 %v2493_v53  ;;  %1955 = vmatprep.subr.bf16.mxu1 %v1954_v31 }
 0x15c   : > { %v629_v58 = vmul.f32 0.125, %v598_v56  ;;  %v1962_v56 = vpack.c.bf16 %v1167_v51, %v1166_v49 }
 0x15d   : > { %v2505_v61 = vsel %vm686_vm1, %v630_v55, -1e+30 }
 0x15e   : > { %743 = vmax.xlane.f32.xlu1 %v2495_v54  ;;  %v1833_v59 = vpop.f32.mrb[14].mxu0  ;;  %v2503_v60 = vsel %vm685_vm0, %v629_v58, -1e+30  ;;  %1957 = vmatpush3.bf16.msra.mxu1 %v1954_v31  ;;  %v2613_v31 = vld [vmem:[#allocation2 + $0x70] sm:$0xff] }
 0x15f   : > { %v632_v62 = vmul.f32 0.125, %v1833_v59  ;;  %745 = vmax.xlane.f32.xlu0 %v2503_v60  ;;  %v608_v0 = vpop.f32.mrb[15].mxu0  ;;  %1959 = vmatprep.subr.bf16.mxu1 %v1958_v41 }
 0x160   : > { %v631_v46 = vmul.f32 0.125, %v608_v0  ;;  %v1169_v0 = vld [vmem:[%s2276_s22 + $0x78] sm:$0xff] }
 0x161   : > { %v2513_v2 = vsel %vm688_vm4, %v632_v62, -1e+30  ;;  %v1168_v62 = vld [vmem:[%s2276_s22 + $0x70] sm:$0xff] }
 0x162   : > { %747 = vmax.xlane.f32.xlu1 %v2505_v61  ;;  %v2511_v1 = vsel %vm687_vm3, %v631_v46, -1e+30  ;;  %1961 = vmatpush3.bf16.msra.mxu1 %v1958_v41  ;;  %v1966_v4 = vpack.c.bf16 %v1169_v0, %v1168_v62 }
 0x163   : > { %749 = vmax.xlane.f32.xlu0 %v2511_v1  ;;  %1963 = vmatprep.subr.bf16.mxu1 %v1962_v56 }
 0x166   : > { %751 = vmax.xlane.f32.xlu1 %v2513_v2  ;;  %1965 = vmatpush3.bf16.msra.mxu1 %v1962_v56 }
 0x167   : > { %1967 = vmatprep.subr.bf16.mxu1 %v1966_v4 }
 0x16a   : > { %1969 = vmatpush3.bf16.msra.mxu1 %v1966_v4 }
 0x1d4   : > { %v722_v18 = vpop.xlane.xlu0 %721 }
 0x1d5   : > { %v2528_v20 = vmax.f32 %v2525_v17, %v722_v18 }
 0x1d7   : > { %1347 = vst.msk [vmem:[#allocation2] sm:$0xff] %vm1025_vm5, %v2528_v20  ;;  %v728_v24 = vpop.xlane.xlu1 %727  ;;  %819 = vperm.xlu0 %2030, %v2528_v20   ;;  %v769_v10 = vsub.f32 %v2525_v17, %v2528_v20 }
 0x1d8   : > { %v2540_v27 = vmax.f32 %v2530_v22, %v728_v24  ;;  %v724_v28 = vpop.xlane.xlu0 %723 }
 0x1d9   : > { %v2543_v32 = vmax.f32 %v2532_v23, %v724_v28  ;;  %v785_v18 = vmul.f32 1.442695, %v769_v10 }
 0x1da   : > { %1350 = vst.msk [vmem:[#allocation2 + $0x18] sm:$0xff] %vm1025_vm5, %v2540_v27  ;;  %v772_v17 = vsub.f32 %v2530_v22, %v2540_v27 }
 0x1db   : > { %1348 = vst.msk [vmem:[#allocation2 + $0x8] sm:$0xff] %vm1025_vm5, %v2543_v32  ;;  %v726_v35 = vpop.xlane.xlu1 %725  ;;  %824 = vperm.xlu1 %2031, %v2543_v32   ;;  %2032 = vpow2.f32 %v785_v18 }
 0x1dc   : > { %v2557_v38 = vmax.f32 %v2545_v33, %v726_v35  ;;  %v730_v40 = vpop.xlane.xlu0 %729  ;;  %v791_v35 = vmul.f32 1.442695, %v772_v17 }
 0x1dd   : > { %v2562_v45 = vmax.f32 %v2549_v34, %v730_v40  ;;  %v2618_v40 = vld [vmem:[#allocation2 + $0x78] sm:$0xff] }
 0x1de   : > { %1349 = vst.msk [vmem:[#allocation2 + $0x10] sm:$0xff] %vm1025_vm5, %v2557_v38  ;;  %2034 = vpow2.f32 %v791_v35 }
 0x1df   : > { %v732_v48 = vpop.xlane.xlu1 %731  ;;  %834 = vperm.xlu1 %2031, %v2540_v27   ;;  %1351 = vst.msk [vmem:[#allocation2 + $0x20] sm:$0xff] %vm1025_vm5, %v2562_v45  ;;  %v773_v4 = vsub.f32 %v2549_v34, %v2562_v45 }
 0x1e0   : > { %v758_v52 = vmax.f32 %v2559_v43, %v732_v48  ;;  %v734_v55 = vpop.xlane.xlu0 %733 }
 0x1e1   : > { %v2577_v58 = vmax.f32 %v2566_v47, %v734_v55  ;;  %v793_v10 = vmul.f32 1.442695, %v773_v4 }
 0x1e2   : > { %1352 = vst.msk [vmem:[#allocation2 + $0x28] sm:$0xff] %vm1025_vm5, %v758_v52  ;;  %v774_v22 = vsub.f32 %v2559_v43, %v758_v52 }
 0x1e3   : > { %v736_v59 = vpop.xlane.xlu1 %735  ;;  %829 = vperm.xlu1 %2031, %v2557_v38   ;;  %1353 = vst.msk [vmem:[#allocation2 + $0x30] sm:$0xff] %vm1025_vm5, %v2577_v58 }
 0x1e4   : > { %v760_v46 = vmax.f32 %v2574_v57, %v736_v59  ;;  %v738_v3 = vpop.xlane.xlu0 %737  ;;  %v795_v48 = vmul.f32 1.442695, %v774_v22 }
 0x1e5   : > { %v2589_v6 = vmax.f32 %v2580_v44, %v738_v3 }
 0x1e6   : > { %1354 = vst.msk [vmem:[#allocation2 + $0x38] sm:$0xff] %vm1025_vm5, %v760_v46  ;;  %v776_v49 = vsub.f32 %v2574_v57, %v760_v46  ;;  %2036 = vpow2.f32 %v795_v48 }
 0x1e7   : > { %v740_v50 = vpop.xlane.xlu1 %739  ;;  %844 = vperm.xlu1 %2031, %v758_v52   ;;  %1355 = vst.msk [vmem:[#allocation2 + $0x40] sm:$0xff] %vm1025_vm5, %v2589_v6  ;;  %v770_v52 = vsub.f32 %v2532_v23, %v2543_v32  ;;  %v771_v23 = vsub.f32 %v2545_v33, %v2557_v38  ;;  %v2643_v32 = vpop.eup %2032 }
 0x1e8   : > { %v762_v12 = vmax.f32 %v714_v5, %v740_v50  ;;  %v742_v13 = vpop.xlane.xlu0 %741  ;;  %v799_v57 = vmul.f32 1.442695, %v776_v49  ;;  %v775_v50 = vsub.f32 %v2566_v47, %v2577_v58 }
 0x1e9   : > { %v2599_v15 = vmax.f32 %v2592_v9, %v742_v13  ;;  %v787_v62 = vmul.f32 1.442695, %v770_v52  ;;  %v789_v3 = vmul.f32 1.442695, %v771_v23  ;;  %v777_v13 = vsub.f32 %v2580_v44, %v2589_v6 }
 0x1ea   : > { %1356 = vst.msk [vmem:[#allocation2 + $0x48] sm:$0xff] %vm1025_vm5, %v762_v12  ;;  %864 = vperm.xlu0 %2030, %v762_v12   ;;  %v778_v59 = vsub.f32 %v714_v5, %v762_v12  ;;  %2038 = vpow2.f32 %v799_v57  ;;  %v2649_v5 = vpop.eup %2034 }
 0x1eb   : > { %v744_v20 = vpop.xlane.xlu1 %743  ;;  %839 = vperm.xlu1 %2031, %v2562_v45   ;;  %1357 = vst.msk [vmem:[#allocation2 + $0x50] sm:$0xff] %vm1025_vm5, %v2599_v15  ;;  %2040 = vpow2.f32 %v787_v62  ;;  %v797_v45 = vmul.f32 1.442695, %v775_v50  ;;  %v801_v47 = vmul.f32 1.442695, %v777_v13 }
 0x1ec   : > { %v764_v24 = vmax.f32 %v716_v14, %v744_v20  ;;  %v746_v25 = vpop.xlane.xlu0 %745  ;;  %v803_v0 = vmul.f32 1.442695, %v778_v59 }
 0x1ed   : > { %v2610_v28 = vmax.f32 %v2602_v16, %v746_v25 }
 0x1ee   : > { %1358 = vst.msk [vmem:[#allocation2 + $0x58] sm:$0xff] %vm1025_vm5, %v764_v24  ;;  %874 = vperm.xlu0 %2030, %v764_v24   ;;  %2042 = vpow2.f32 %v803_v0 }
 0x1ef   : > { %v748_v27 = vpop.xlane.xlu1 %747  ;;  %854 = vperm.xlu1 %2031, %v760_v46   ;;  %1359 = vst.msk [vmem:[#allocation2 + $0x60] sm:$0xff] %vm1025_vm5, %v2610_v28  ;;  %v780_v46 = vsub.f32 %v716_v14, %v764_v24  ;;  %2044 = vpow2.f32 %v789_v3 }
 0x1f0   : > { %v766_v36 = vmax.f32 %v718_v26, %v748_v27  ;;  %v750_v37 = vpop.xlane.xlu0 %749  ;;  %v2655_v12 = vpop.eup %2036 }
 0x1f1   : > { %v2621_v41 = vmax.f32 %v2613_v31, %v750_v37  ;;  %v807_v33 = vmul.f32 1.442695, %v780_v46 }
 0x1f2   : > { %1360 = vst.msk [vmem:[#allocation2 + $0x68] sm:$0xff] %vm1025_vm5, %v766_v36  ;;  %884 = vperm.xlu0 %2030, %v766_v36   ;;  %v782_v38 = vsub.f32 %v718_v26, %v766_v36 }
 0x1f3   : > { %849 = vperm.xlu1 %2031, %v2577_v58   ;;  %v752_v43 = vpop.xlane.xlu1 %751  ;;  %v783_v51 = vsub.f32 %v2613_v31, %v2621_v41  ;;  %1361 = vst.msk [vmem:[#allocation2 + $0x70] sm:$0xff] %vm1025_vm5, %v2621_v41  ;;  %2046 = vpow2.f32 %v807_v33  ;;  %v779_v58 = vsub.f32 %v2592_v9, %v2599_v15 }
 0x1f4   : > { %v2633_v55 = vmax.f32 %v2618_v40, %v752_v43  ;;  %v811_v34 = vmul.f32 1.442695, %v782_v38  ;;  %2048 = vpow2.f32 %v793_v10  ;;  %v2661_v14 = vpop.eup %2038 }
 0x1f5   : > { %v2663_v18 = vpop.eup %2040  ;;  %v805_v44 = vmul.f32 1.442695, %v779_v58 }
 0x1f6   : > { %v784_v56 = vsub.f32 %v2618_v40, %v2633_v55  ;;  %1362 = vst.msk [vmem:[#allocation2 + $0x78] sm:$0xff] %vm1025_vm5, %v2633_v55  ;;  %894 = vperm.xlu0 %2030, %v2633_v55   ;;  %2050 = vpow2.f32 %v811_v34 }
 0x1f7   : > { %859 = vperm.xlu1 %2031, %v2589_v6   ;;  %2052 = vpow2.f32 %v797_v45  ;;  %v781_v6 = vsub.f32 %v2602_v16, %v2610_v28 }
 0x1f8   : > { %v2669_v17 = vpop.eup %2042  ;;  %2054 = vpow2.f32 %v801_v47 }
 0x1f9   : > { %v2671_v20 = vpop.eup %2044  ;;  %2056 = vpow2.f32 %v805_v44  ;;  %v809_v9 = vmul.f32 1.442695, %v781_v6 }
 0x1fa   : > { %1060 = vperm.xlu0 %2030, %v2643_v32  }
 0x1fb   : > { %869 = vperm.xlu1 %2031, %v2599_v15   ;;  %2058 = vpow2.f32 %v809_v9 }
 0x1fd   : > { %v2677_v24 = vpop.eup %2046 }
 0x1fe   : > { %1075 = vperm.xlu0 %2030, %v2649_v5   ;;  %v2679_v25 = vpop.eup %2048 }
 0x1ff   : > { %879 = vperm.xlu1 %2031, %v2610_v28  }
 0x200   : > { %v2683_v15 = vpop.eup %2050 }
 0x201   : > { %v2685_v26 = vpop.eup %2052 }
 0x202   : > { %1085 = vperm.xlu0 %2030, %v2655_v12   ;;  %v2689_v16 = vpop.eup %2054 }
 0x203   : > { %889 = vperm.xlu1 %2031, %v2621_v41   ;;  %v2692_v28 = vpop.eup %2056 }
 0x205   : > { %v2695_v35 = vpop.eup %2058 }
 0x206   : > { %1095 = vperm.xlu0 %2030, %v2661_v14  }
 0x207   : > { %1065 = vperm.xlu1 %2031, %v2663_v18  }
 0x20a   : > { %1105 = vperm.xlu0 %2030, %v2669_v17  }
 0x20b   : > { %1070 = vperm.xlu1 %2031, %v2671_v20  }
 0x20e   : > { %1115 = vperm.xlu0 %2030, %v2677_v24  }
 0x20f   : > { %1080 = vperm.xlu1 %2031, %v2679_v25  }
 0x212   : > { %1125 = vperm.xlu0 %2030, %v2683_v15  }
 0x213   : > { %1090 = vperm.xlu1 %2031, %v2685_v26  }
 0x217   : > { %1100 = vperm.xlu1 %2031, %v2689_v16  }
 0x21b   : > { %1110 = vperm.xlu1 %2031, %v2692_v28  }
 0x21f   : > { %1120 = vperm.xlu1 %2031, %v2695_v35  }
 0x256   : > { %v820_v22 = vpop.permute.xlu0 %819 }
 0x257   : > { %v897_v27 = vsub.f32 %v2432_v63, %v820_v22 }
 0x259   : > { %v913_v36 = vmul.f32 1.442695, %v897_v27 }
 0x25a   : > { %v825_v37 = vpop.permute.xlu1 %824 }
 0x25b   : > { %2060 = vpow2.f32 %v913_v36  ;;  %v898_v48 = vsub.f32 %v2445_v8, %v825_v37 }
 0x25d   : > { %v915_v49 = vmul.f32 1.442695, %v898_v48 }
 0x25e   : > { %v835_v43 = vpop.permute.xlu1 %834 }
 0x25f   : > { %2062 = vpow2.f32 %v915_v49  ;;  %v900_v52 = vsub.f32 %v2442_v7, %v835_v43 }
 0x261   : > { %v919_v57 = vmul.f32 1.442695, %v900_v52 }
 0x262   : > { %v830_v59 = vpop.permute.xlu1 %829 }
 0x263   : > { %2064 = vpow2.f32 %v919_v57  ;;  %v899_v62 = vsub.f32 %v2449_v11, %v830_v59 }
 0x265   : > { %v2061_v23 = vpop.eup %2060  ;;  %v917_v0 = vmul.f32 1.442695, %v899_v62 }
 0x266   : > { %v845_v46 = vpop.permute.xlu1 %844  ;;  %977 = vadd.xlane.f32.xlu1 %v2061_v23  ;;  %1866 = vmatprep.mubr.f32.mxu1 %v2061_v23 }
 0x267   : > { %2066 = vpow2.f32 %v917_v0  ;;  %v902_v63 = vsub.f32 %v2460_v21, %v845_v46 }
 0x269   : > { %v2063_v3 = vpop.eup %2062  ;;  %v923_v8 = vmul.f32 1.442695, %v902_v63  ;;  %v865_v4 = vpop.permute.xlu0 %864 }
 0x26a   : > { %v840_v33 = vpop.permute.xlu1 %839  ;;  %979 = vadd.xlane.f32.xlu0 %v2063_v3  ;;  %1867 = vmatmul.mubr.f32.vlgmr.msra.gmra.mrb[0].mxu1 %v2063_v3  ;;  %v906_v45 = vsub.f32 %v2484_v42, %v865_v4 }
 0x26b   : > { %2068 = vpow2.f32 %v923_v8  ;;  %v901_v7 = vsub.f32 %v2457_v19, %v840_v33 }
 0x26c   : > { %v931_v19 = vmul.f32 1.442695, %v906_v45 }
 0x26d   : > { %v2065_v38 = vpop.eup %2064  ;;  %v921_v10 = vmul.f32 1.442695, %v901_v7  ;;  %v875_v11 = vpop.permute.xlu0 %874 }
 0x26e   : > { %v855_v50 = vpop.permute.xlu1 %854  ;;  %983 = vadd.xlane.f32.xlu1 %v2065_v38  ;;  %v908_v6 = vsub.f32 %v2495_v54, %v875_v11 }
 0x26f   : > { %2070 = vpow2.f32 %v921_v10  ;;  %v904_v34 = vsub.f32 %v2472_v30, %v855_v50  ;;  %v815_v10 = vmul.f32 1.442695, %v784_v56 }
 0x270   : > { %v935_v42 = vmul.f32 1.442695, %v908_v6 }
 0x271   : > { %v2067_v21 = vpop.eup %2066  ;;  %v927_v13 = vmul.f32 1.442695, %v904_v34  ;;  %v885_v58 = vpop.permute.xlu0 %884 }
 0x272   : > { %v850_v47 = vpop.permute.xlu1 %849  ;;  %981 = vadd.xlane.f32.xlu0 %v2067_v21  ;;  %1869 = vmatprep.mubr.f32.mxu1 %v2067_v21  ;;  %v910_v36 = vsub.f32 %v2505_v61, %v885_v58 }
 0x273   : > { %2072 = vpow2.f32 %v927_v13  ;;  %v903_v44 = vsub.f32 %v2469_v29, %v850_v47  ;;  %1870 = vmatmul.mubr.f32.gmra.mrb[2].mxu1 %v2065_v38  ;;  %v813_v38 = vmul.f32 1.442695, %v783_v51 }
 0x274   : > { %v939_v54 = vmul.f32 1.442695, %v910_v36 }
 0x275   : > { %v2069_v9 = vpop.eup %2068  ;;  %v925_v22 = vmul.f32 1.442695, %v903_v44  ;;  %v895_v48 = vpop.permute.xlu0 %894 }
 0x276   : > { %v860_v27 = vpop.permute.xlu1 %859  ;;  %987 = vadd.xlane.f32.xlu1 %v2069_v9  ;;  %v912_v52 = vsub.f32 %v2513_v2, %v895_v48 }
 0x277   : > { %2074 = vpow2.f32 %v925_v22  ;;  %v905_v30 = vsub.f32 %v2481_v39, %v860_v27  ;;  %v946_v27 = vld [vmem:[#allocation3 + $0x8] sm:$0xff] }
 0x278   : > { %2076 = vpow2.f32 %v931_v19  ;;  %v943_v62 = vmul.f32 1.442695, %v912_v52  ;;  %v945_v19 = vld [vmem:[#allocation3] sm:$0xff] }
 0x279   : > { %v2071_v37 = vpop.eup %2070  ;;  %v929_v49 = vmul.f32 1.442695, %v905_v30  ;;  %v2728_v31 = vpop.permute.xlu0 %1060  ;;  %v961_v6 = vmul.f32 %v2643_v32, %v945_v19  ;;  %v955_v19 = vld [vmem:[#allocation3 + $0x50] sm:$0xff] }
 0x27a   : > { %v870_v43 = vpop.permute.xlu1 %869  ;;  %985 = vadd.xlane.f32.xlu0 %v2071_v37  ;;  %1872 = vmatprep.mubr.f32.mxu1 %v2071_v37  ;;  %v948_v37 = vld [vmem:[#allocation3 + $0x18] sm:$0xff] }
 0x27b   : > { %2078 = vpow2.f32 %v929_v49  ;;  %v907_v29 = vsub.f32 %v2493_v53, %v870_v43  ;;  %1873 = vmatmul.mubr.f32.gmra.mrb[4].mxu1 %v2069_v9  ;;  %v964_v49 = vmul.f32 %v2649_v5, %v948_v37 }
 0x27c   : > { %2080 = vpow2.f32 %v935_v42  ;;  %v962_v42 = vmul.f32 %v2663_v18, %v946_v27  ;;  %v971_v27 = vmul.f32 %v2692_v28, %v955_v19  ;;  %v959_v28 = vld [vmem:[#allocation3 + $0x70] sm:$0xff] }
 0x27d   : > { %v2073_v57 = vpop.eup %2072  ;;  %v933_v39 = vmul.f32 1.442695, %v907_v29  ;;  %v2732_v51 = vpop.permute.xlu0 %1075  ;;  %v947_v29 = vld [vmem:[#allocation3 + $0x10] sm:$0xff] }
 0x27e   : > { %v880_v59 = vpop.permute.xlu1 %879  ;;  %991 = vadd.xlane.f32.xlu1 %v2073_v57  ;;  %v963_v32 = vmul.f32 %v2671_v20, %v947_v29 }
 0x27f   : > { %2082 = vpow2.f32 %v933_v39  ;;  %v909_v61 = vsub.f32 %v2503_v60, %v880_v59 }
 0x280   : > { %2084 = vpow2.f32 %v939_v54 }
 0x281   : > { %v2075_v23 = vpop.eup %2074  ;;  %v937_v0 = vmul.f32 1.442695, %v909_v61  ;;  %v2736_v40 = vpop.permute.xlu0 %1085  ;;  %v949_v61 = vld [vmem:[#allocation3 + $0x20] sm:$0xff] }
 0x282   : > { %v2077_v46 = vpop.eup %2076  ;;  %989 = vadd.xlane.f32.xlu0 %v2075_v23  ;;  %v890_v63 = vpop.permute.xlu1 %889  ;;  %1875 = vmatprep.mubr.f32.mxu1 %v2075_v23  ;;  %v965_v5 = vmul.f32 %v2679_v25, %v949_v61 }
 0x283   : > { %2086 = vpow2.f32 %v937_v0  ;;  %v911_v53 = vsub.f32 %v2511_v1, %v890_v63  ;;  %995 = vadd.xlane.f32.xlu1 %v2077_v46  ;;  %1876 = vmatmul.mubr.f32.gmra.mrb[6].mxu1 %v2073_v57  ;;  %v950_v57 = vld [vmem:[#allocation3 + $0x28] sm:$0xff]  ;;  %v952_v0 = vld [vmem:[#allocation3 + $0x38] sm:$0xff] }
 0x284   : > { %2088 = vpow2.f32 %v943_v62  ;;  %v966_v18 = vmul.f32 %v2655_v12, %v950_v57  ;;  %v968_v20 = vmul.f32 %v2661_v14, %v952_v0  ;;  %v1044_v0 = vld [vmem:[#allocation4 + $0x10] sm:$0xff] }
 0x285   : > { %v2079_v2 = vpop.eup %2078  ;;  %v941_v3 = vmul.f32 1.442695, %v911_v53  ;;  %v2740_v56 = vpop.permute.xlu0 %1095  ;;  %v951_v53 = vld [vmem:[#allocation3 + $0x30] sm:$0xff] }
 0x286   : > { %v2081_v8 = vpop.eup %2080  ;;  %993 = vadd.xlane.f32.xlu0 %v2079_v2  ;;  %1878 = vmatprep.mubr.f32.mxu1 %v2079_v2  ;;  %v2726_v34 = vpop.permute.xlu1 %1065  ;;  %v967_v12 = vmul.f32 %v2685_v26, %v951_v53 }
 0x287   : > { %2090 = vpow2.f32 %v941_v3  ;;  %999 = vadd.xlane.f32.xlu1 %v2081_v8  ;;  %1879 = vmatmul.mubr.f32.gmra.mrb[8].mxu1 %v2077_v46  ;;  %v954_v3 = vld [vmem:[#allocation3 + $0x48] sm:$0xff] }
 0x288   : > { %2092 = vpow2.f32 %v813_v38 }
 0x289   : > { %v2083_v60 = vpop.eup %2082  ;;  %2094 = vpow2.f32 %v815_v10  ;;  %v2744_v13 = vpop.permute.xlu0 %1105 }
 0x28a   : > { %v2085_v4 = vpop.eup %2084  ;;  %997 = vadd.xlane.f32.xlu0 %v2083_v60  ;;  %1881 = vmatprep.mubr.f32.mxu1 %v2083_v60  ;;  %v2730_v41 = vpop.permute.xlu1 %1070 }
 0x28b   : > { %1003 = vadd.xlane.f32.xlu1 %v2085_v4  ;;  %1882 = vmatmul.mubr.f32.gmra.mrb[10].mxu1 %v2081_v8  ;;  %v970_v8 = vmul.f32 %v2669_v17, %v954_v3  ;;  %v1046_v3 = vld [vmem:[#allocation4 + $0x20] sm:$0xff] }
 0x28d   : > { %v2087_v33 = vpop.eup %2086  ;;  %v2748_v58 = vpop.permute.xlu0 %1115 }
 0x28e   : > { %v2089_v7 = vpop.eup %2088  ;;  %1001 = vadd.xlane.f32.xlu0 %v2087_v33  ;;  %1884 = vmatprep.mubr.f32.mxu1 %v2087_v33  ;;  %v2734_v45 = vpop.permute.xlu1 %1080 }
 0x28f   : > { %1007 = vadd.xlane.f32.xlu1 %v2089_v7  ;;  %1885 = vmatmul.mubr.f32.gmra.mrb[12].mxu1 %v2085_v4  ;;  %v953_v4 = vld [vmem:[#allocation3 + $0x40] sm:$0xff] }
 0x290   : > { %v969_v14 = vmul.f32 %v2689_v16, %v953_v4  ;;  %v957_v16 = vld [vmem:[#allocation3 + $0x60] sm:$0xff] }
 0x291   : > { %v2091_v1 = vpop.eup %2090  ;;  %v2753_v9 = vpop.permute.xlu0 %1125 }
 0x292   : > { %1005 = vadd.xlane.f32.xlu0 %v2091_v1  ;;  %1887 = vmatprep.mubr.f32.mxu1 %v2091_v1  ;;  %v2720_v11 = vpop.eup %2092  ;;  %v2738_v55 = vpop.permute.xlu1 %1090 }
 0x293   : > { %1888 = vmatmul.mubr.f32.gmra.mrb[14].mxu1 %v2089_v7  ;;  %v2723_v50 = vpop.eup %2094  ;;  %v956_v7 = vld [vmem:[#allocation3 + $0x58] sm:$0xff] }
 0x294   : > { %v972_v38 = vmul.f32 %v2677_v24, %v956_v7 }
 0x296   : > { %v2742_v21 = vpop.permute.xlu1 %1100 }
 0x29a   : > { %v2746_v47 = vpop.permute.xlu1 %1110 }
 0x29e   : > { %v2750_v44 = vpop.permute.xlu1 %1120 }
 0x2a0   : > { %1130 = vperm.xlu1 %2031, %v2720_v11  }
 0x2a8   : > { %1135 = vperm.xlu0 %2030, %v2723_v50  }
 0x2f3   : > { %v978_v22 = vpop.xlane.xlu1 %977 }
 0x2f4   : > { %v1009_v30 = vadd.f32 %v978_v22, %v961_v6  ;;  %v958_v22 = vld [vmem:[#allocation3 + $0x68] sm:$0xff] }
 0x2f6   : > { %1026 = vst.msk [vmem:[#allocation3] sm:$0xff] %vm1025_vm5, %v1009_v30  ;;  %v974_v30 = vmul.f32 %v2683_v15, %v958_v22  ;;  %v975_v15 = vmul.f32 %v2720_v11, %v959_v28  ;;  %v1045_v11 = vld [vmem:[#allocation4 + $0x18] sm:$0xff] }
 0x2f7   : > { %v980_v36 = vpop.xlane.xlu0 %979 }
 0x2f8   : > { %v1010_v48 = vadd.f32 %v980_v36, %v962_v42 }
 0x2fa   : > { %1027 = vst.msk [vmem:[#allocation3 + $0x8] sm:$0xff] %vm1025_vm5, %v1010_v48  ;;  %v960_v48 = vld [vmem:[#allocation3 + $0x78] sm:$0xff] }
 0x2fb   : > { %v984_v43 = vpop.xlane.xlu1 %983 }
 0x2fc   : > { %v1012_v54 = vadd.f32 %v984_v43, %v964_v49  ;;  %v973_v49 = vmul.f32 %v2695_v35, %v957_v16  ;;  %v976_v43 = vmul.f32 %v2723_v50, %v960_v48  ;;  %v1043_v35 = vld [vmem:[#allocation4 + $0x8] sm:$0xff] }
 0x2fd   : > { %v1055_v16 = vld [vmem:[#allocation4 + $0x68] sm:$0xff] }
 0x2fe   : > { %1029 = vst.msk [vmem:[#allocation3 + $0x18] sm:$0xff] %vm1025_vm5, %v1012_v54 }
 0x2ff   : > { %v982_v52 = vpop.xlane.xlu0 %981 }
 0x300   : > { %v1011_v39 = vadd.f32 %v982_v52, %v963_v32 }
 0x302   : > { %1028 = vst.msk [vmem:[#allocation3 + $0x10] sm:$0xff] %vm1025_vm5, %v1011_v39 }
 0x303   : > { %v988_v59 = vpop.xlane.xlu1 %987 }
 0x304   : > { %v1014_v62 = vadd.f32 %v988_v59, %v966_v18  ;;  %v1042_v18 = vld [vmem:[#allocation4] sm:$0xff]  ;;  %v1139_v59 = vmul.f32 %v2726_v34, %v1043_v35 }
 0x305   : > { %v1138_v50 = vmul.f32 %v2728_v31, %v1042_v18  ;;  %v1047_v31 = vld [vmem:[#allocation4 + $0x28] sm:$0xff] }
 0x306   : > { %1031 = vst.msk [vmem:[#allocation3 + $0x28] sm:$0xff] %vm1025_vm5, %v1014_v62 }
 0x307   : > { %v986_v23 = vpop.xlane.xlu0 %985 }
 0x308   : > { %v1013_v46 = vadd.f32 %v986_v23, %v965_v5 }
 0x30a   : > { %1030 = vst.msk [vmem:[#allocation3 + $0x20] sm:$0xff] %vm1025_vm5, %v1013_v46  ;;  %v1141_v46 = vmul.f32 %v2732_v51, %v1045_v11 }
 0x30b   : > { %v992_v63 = vpop.xlane.xlu1 %991 }
 0x30c   : > { %v1016_v2 = vadd.f32 %v992_v63, %v968_v20  ;;  %v1140_v20 = vmul.f32 %v2730_v41, %v1044_v0  ;;  %v1049_v41 = vld [vmem:[#allocation4 + $0x38] sm:$0xff] }
 0x30d   : > { %v1145_v7 = vmul.f32 %v2740_v56, %v1049_v41 }
 0x30e   : > { %1033 = vst.msk [vmem:[#allocation3 + $0x38] sm:$0xff] %vm1025_vm5, %v1016_v2 }
 0x30f   : > { %v990_v60 = vpop.xlane.xlu0 %989 }
 0x310   : > { %v996_v25 = vpop.xlane.xlu1 %995  ;;  %v1015_v33 = vadd.f32 %v990_v60, %v967_v12  ;;  %v1143_v12 = vmul.f32 %v2736_v40, %v1047_v31 }
 0x311   : > { %v1018_v1 = vadd.f32 %v996_v25, %v970_v8  ;;  %v1142_v8 = vmul.f32 %v2734_v45, %v1046_v3  ;;  %v1371_v11 = vld [vmem:[#allocation3 + $0x20] sm:$0xff] (!%p1711_p10) }
 0x312   : > { %1032 = vst.msk [vmem:[#allocation3 + $0x30] sm:$0xff] %vm1025_vm5, %v1015_v33  ;;  %v1048_v33 = vld [vmem:[#allocation4 + $0x30] sm:$0xff] }
 0x313   : > { %1035 = vst.msk [vmem:[#allocation3 + $0x48] sm:$0xff] %vm1025_vm5, %v1018_v1  ;;  %v994_v10 = vpop.xlane.xlu0 %993  ;;  %v1051_v1 = vld [vmem:[#allocation4 + $0x48] sm:$0xff] }
 0x314   : > { %v1000_v6 = vpop.xlane.xlu1 %999  ;;  %v1017_v26 = vadd.f32 %v994_v10, %v969_v14  ;;  %v1144_v14 = vmul.f32 %v2738_v55, %v1048_v33  ;;  %v1050_v10 = vld [vmem:[#allocation4 + $0x40] sm:$0xff] }
 0x315   : > { %v1020_v17 = vadd.f32 %v1000_v6, %v972_v38  ;;  %v1147_v6 = vmul.f32 %v2744_v13, %v1051_v1  ;;  %v1146_v22 = vmul.f32 %v2742_v21, %v1050_v10  ;;  %v1374_v0 = vld [vmem:[#allocation3 + $0x38] sm:$0xff] (!%p1711_p10) }
 0x316   : > { %1034 = vst.msk [vmem:[#allocation3 + $0x40] sm:$0xff] %vm1025_vm5, %v1017_v26  ;;  %v1053_v26 = vld [vmem:[#allocation4 + $0x58] sm:$0xff] }
 0x317   : > { %1037 = vst.msk [vmem:[#allocation3 + $0x58] sm:$0xff] %vm1025_vm5, %v1020_v17  ;;  %v998_v42 = vpop.xlane.xlu0 %997  ;;  %v1149_v55 = vmul.f32 %v2748_v58, %v1053_v26 }
 0x318   : > { %v1004_v36 = vpop.xlane.xlu1 %1003  ;;  %v1019_v37 = vadd.f32 %v998_v42, %v971_v27  ;;  %v1052_v27 = vld [vmem:[#allocation4 + $0x50] sm:$0xff] }
 0x319   : > { %v1022_v24 = vadd.f32 %v1004_v36, %v974_v30  ;;  %v1148_v36 = vmul.f32 %v2746_v47, %v1052_v27 }
 0x31a   : > { %1036 = vst.msk [vmem:[#allocation3 + $0x50] sm:$0xff] %vm1025_vm5, %v1019_v37  ;;  %v1054_v37 = vld [vmem:[#allocation4 + $0x60] sm:$0xff] }
 0x31b   : > { %1039 = vst.msk [vmem:[#allocation3 + $0x68] sm:$0xff] %vm1025_vm5, %v1022_v24  ;;  %v1002_v29 = vpop.xlane.xlu0 %1001 }
 0x31c   : > { %v1008_v54 = vpop.xlane.xlu1 %1007  ;;  %v1021_v32 = vadd.f32 %v1002_v29, %v973_v49  ;;  %v1151_v49 = vmul.f32 %v2753_v9, %v1055_v16  ;;  %v1057_v29 = vld [vmem:[#allocation4 + $0x78] sm:$0xff] }
 0x31d   : > { %v1024_v52 = vadd.f32 %v1008_v54, %v976_v43  ;;  %v1150_v43 = vmul.f32 %v2750_v44, %v1054_v37  ;;  %v1056_v54 = vld [vmem:[#allocation4 + $0x70] sm:$0xff] }
 0x31e   : > { %1038 = vst.msk [vmem:[#allocation3 + $0x60] sm:$0xff] %vm1025_vm5, %v1021_v32  ;;  %v1378_v3 = vld [vmem:[#allocation3 + $0x58] sm:$0xff] (!%p1711_p10) }
 0x31f   : > { %1041 = vst.msk [vmem:[#allocation3 + $0x78] sm:$0xff] %vm1025_vm5, %v1024_v52  ;;  %v1006_v57 = vpop.xlane.xlu0 %1005 }
 0x320   : > { %v1023_v39 = vadd.f32 %v1006_v57, %v975_v15  ;;  %v1131_v47 = vpop.permute.xlu1 %1130 }
 0x322   : > { %1040 = vst.msk [vmem:[#allocation3 + $0x70] sm:$0xff] %vm1025_vm5, %v1023_v39  ;;  %v1152_v39 = vmul.f32 %v1131_v47, %v1056_v54 }
 0x326   : > { %v1382_v33 = vld [vmem:[#allocation3 + $0x78] sm:$0xff] (!%p1711_p10) }
 0x327   : > { %v1136_v58 = vpop.permute.xlu0 %1135 }
 0x328   : > { %v1153_v57 = vmul.f32 %v1136_v58, %v1057_v29 }
 0x329   : > { %v1381_v1 = vld [vmem:[#allocation3 + $0x70] sm:$0xff] (!%p1711_p10) }
 0x33d   : > { %v1868_v61 = vpop.f32.mrb[0].mxu1 }
 0x33e   : > { %v1316_v62 = vadd.f32 %v1868_v61, %v1139_v59  ;;  %v1236_v5 = vpop.f32.mrb[1].mxu1  ;;  %v1369_v59 = vld [vmem:[#allocation3 + $0x10] sm:$0xff] (!%p1711_p10)  ;;  %v1370_v61 = vld [vmem:[#allocation3 + $0x18] sm:$0xff] (!%p1711_p10) }
 0x33f   : > { %v1315_v23 = vadd.f32 %v1236_v5, %v1138_v50  ;;  %v1367_v50 = vld [vmem:[#allocation3] sm:$0xff] (!%p1711_p10)  ;;  %2098 = vrcp.f32 (!%p1711_p10), %v1369_v59  ;;  %v1368_v5 = vld [vmem:[#allocation3 + $0x8] sm:$0xff] (!%p1711_p10) }
 0x340   : > { %1332 = vst.msk [vmem:[#allocation4 + $0x8] sm:$0xff] %vm375_vm2, %v1316_v62  ;;  %v2189_v62 = vmov (!%p1711_p10), 0   ;;  %2100 = vrcp.f32 (!%p1711_p10), %v1367_v50 }
 0x341   : > { %1331 = vst.msk [vmem:[#allocation4] sm:$0xff] %vm375_vm2, %v1315_v23  ;;  %2097 = vset.pattern.permute.xlu1 (!%p1711_p10), %v2189_v62  ;;  %2096 = vset.pattern.permute.xlu0 (!%p1711_p10), %v2189_v62  ;;  %2102 = vrcp.f32 (!%p1711_p10), %v1370_v61  ;;  %v1372_v23 = vld [vmem:[#allocation3 + $0x28] sm:$0xff] (!%p1711_p10) }
 0x342   : > { %2104 = vrcp.f32 (!%p1711_p10), %v1368_v5 }
 0x343   : > { %2106 = vrcp.f32 (!%p1711_p10), %v1372_v23 }
 0x344   : > { %2108 = vrcp.f32 (!%p1711_p10), %v1371_v11 }
 0x345   : > { %2110 = vrcp.f32 (!%p1711_p10), %v1374_v0 }
 0x346   : > { %v1871_v63 = vpop.f32.mrb[2].mxu1 }
 0x347   : > { %v1318_v53 = vadd.f32 %v1871_v63, %v1141_v46  ;;  %v1246_v2 = vpop.f32.mrb[3].mxu1  ;;  %v1373_v46 = vld [vmem:[#allocation3 + $0x30] sm:$0xff] (!%p1711_p10) }
 0x348   : > { %v1317_v34 = vadd.f32 %v1246_v2, %v1140_v20  ;;  %2112 = vrcp.f32 (!%p1711_p10), %v1373_v46 }
 0x349   : > { %1334 = vst.msk [vmem:[#allocation4 + $0x18] sm:$0xff] %vm375_vm2, %v1318_v53  ;;  %v2099_v20 = vpop.eup (!%p1711_p10), %2098  ;;  %v1376_v53 = vld [vmem:[#allocation3 + $0x48] sm:$0xff] (!%p1711_p10) }
 0x34a   : > { %1333 = vst.msk [vmem:[#allocation4 + $0x10] sm:$0xff] %vm375_vm2, %v1317_v34  ;;  %v2101_v63 = vpop.eup (!%p1711_p10), %2100  ;;  %1427 = vperm.xlu1 (!%p1711_p10), %2097, %v2099_v20   ;;  %v1375_v34 = vld [vmem:[#allocation3 + $0x40] sm:$0xff] (!%p1711_p10)  ;;  %2114 = vrcp.f32 (!%p1711_p10), %v1376_v53 }
 0x34b   : > { %v2103_v2 = vpop.eup (!%p1711_p10), %2102  ;;  %1417 = vperm.xlu0 (!%p1711_p10), %2096, %v2101_v63   ;;  %2116 = vrcp.f32 (!%p1711_p10), %v1375_v34 }
 0x34c   : > { %v2105_v31 = vpop.eup (!%p1711_p10), %2104  ;;  %2118 = vrcp.f32 (!%p1711_p10), %v1378_v3 }
 0x34e   : > { %v1874_v60 = vpop.f32.mrb[4].mxu1  ;;  %1432 = vperm.xlu1 (!%p1711_p10), %2097, %v2103_v2  }
 0x34f   : > { %v1320_v4 = vadd.f32 %v1874_v60, %v1143_v12  ;;  %v1256_v25 = vpop.f32.mrb[5].mxu1  ;;  %v2107_v12 = vpop.eup (!%p1711_p10), %2106  ;;  %1422 = vperm.xlu0 (!%p1711_p10), %2096, %v2105_v31  }
 0x350   : > { %v1319_v51 = vadd.f32 %v1256_v25, %v1142_v8  ;;  %v1377_v8 = vld [vmem:[#allocation3 + $0x50] sm:$0xff] (!%p1711_p10)  ;;  %v2109_v60 = vpop.eup (!%p1711_p10), %2108 }
 0x351   : > { %1336 = vst.msk [vmem:[#allocation4 + $0x28] sm:$0xff] %vm375_vm2, %v1320_v4  ;;  %2120 = vrcp.f32 (!%p1711_p10), %v1377_v8  ;;  %v1380_v4 = vld [vmem:[#allocation3 + $0x68] sm:$0xff] (!%p1711_p10)  ;;  %v2111_v25 = vpop.eup (!%p1711_p10), %2110  ;;  %v1401_v26 = vld [vmem:[#allocation4 + $0x10] sm:$0xff] (!%p1711_p10) }
 0x352   : > { %1335 = vst.msk [vmem:[#allocation4 + $0x20] sm:$0xff] %vm375_vm2, %v1319_v51  ;;  %1442 = vperm.xlu1 (!%p1711_p10), %2097, %v2107_v12   ;;  %v1379_v51 = vld [vmem:[#allocation3 + $0x60] sm:$0xff] (!%p1711_p10)  ;;  %v2113_v41 = vpop.eup (!%p1711_p10), %2112  ;;  %2122 = vrcp.f32 (!%p1711_p10), %v1380_v4 }
 0x353   : > { %1437 = vperm.xlu0 (!%p1711_p10), %2096, %v2109_v60   ;;  %2124 = vrcp.f32 (!%p1711_p10), %v1379_v51 }
 0x354   : > { %2126 = vrcp.f32 (!%p1711_p10), %v1382_v33 }
 0x355   : > { %2128 = vrcp.f32 (!%p1711_p10), %v1381_v1 }
 0x356   : > { %v1877_v38 = vpop.f32.mrb[6].mxu1  ;;  %1452 = vperm.xlu1 (!%p1711_p10), %2097, %v2111_v25  }
 0x357   : > { %v1322_v40 = vadd.f32 %v1877_v38, %v1145_v7  ;;  %v1266_v19 = vpop.f32.mrb[7].mxu1  ;;  %v2115_v7 = vpop.eup (!%p1711_p10), %2114  ;;  %1447 = vperm.xlu0 (!%p1711_p10), %2096, %v2113_v41  }
 0x358   : > { %v1321_v45 = vadd.f32 %v1266_v19, %v1144_v14  ;;  %v2117_v14 = vpop.eup (!%p1711_p10), %2116 }
 0x359   : > { %1338 = vst.msk [vmem:[#allocation4 + $0x38] sm:$0xff] %vm375_vm2, %v1322_v40  ;;  %v2119_v38 = vpop.eup (!%p1711_p10), %2118 }
 0x35a   : > { %1337 = vst.msk [vmem:[#allocation4 + $0x30] sm:$0xff] %vm375_vm2, %v1321_v45  ;;  %v1880_v17 = vpop.f32.mrb[8].mxu1  ;;  %1462 = vperm.xlu1 (!%p1711_p10), %2097, %v2115_v7  }
 0x35b   : > { %v1324_v56 = vadd.f32 %v1880_v17, %v1147_v6  ;;  %v1276_v30 = vpop.f32.mrb[9].mxu1  ;;  %1457 = vperm.xlu0 (!%p1711_p10), %2096, %v2117_v14   ;;  %v2121_v10 = vpop.eup (!%p1711_p10), %2120 }
 0x35c   : > { %v1323_v42 = vadd.f32 %v1276_v30, %v1146_v22  ;;  %v2123_v40 = vpop.eup (!%p1711_p10), %2122  ;;  %v1399_v22 = vld [vmem:[#allocation4] sm:$0xff] (!%p1711_p10) }
 0x35d   : > { %1340 = vst.msk [vmem:[#allocation4 + $0x48] sm:$0xff] %vm375_vm2, %v1324_v56  ;;  %v2125_v19 = vpop.eup (!%p1711_p10), %2124 }
 0x35e   : > { %1339 = vst.msk [vmem:[#allocation4 + $0x40] sm:$0xff] %vm375_vm2, %v1323_v42  ;;  %v1883_v13 = vpop.f32.mrb[10].mxu1  ;;  %1472 = vperm.xlu1 (!%p1711_p10), %2097, %v2119_v38   ;;  %v2127_v45 = vpop.eup (!%p1711_p10), %2126  ;;  %v1402_v42 = vld [vmem:[#allocation4 + $0x18] sm:$0xff] (!%p1711_p10) }
 0x35f   : > { %v1326_v48 = vadd.f32 %v1883_v13, %v1149_v55  ;;  %v1286_v21 = vpop.f32.mrb[11].mxu1  ;;  %1467 = vperm.xlu0 (!%p1711_p10), %2096, %v2121_v10   ;;  %v2129_v6 = vpop.eup (!%p1711_p10), %2128  ;;  %v1400_v55 = vld [vmem:[#allocation4 + $0x8] sm:$0xff] (!%p1711_p10) }
 0x360   : > { %v1325_v24 = vadd.f32 %v1286_v21, %v1148_v36  ;;  %v1403_v21 = vld [vmem:[#allocation4 + $0x20] sm:$0xff] (!%p1711_p10)  ;;  %v1406_v58 = vld [vmem:[#allocation4 + $0x38] sm:$0xff] (!%p1711_p10) }
 0x361   : > { %1342 = vst.msk [vmem:[#allocation4 + $0x58] sm:$0xff] %vm375_vm2, %v1326_v48  ;;  %v1404_v48 = vld [vmem:[#allocation4 + $0x28] sm:$0xff] (!%p1711_p10) }
 0x362   : > { %1341 = vst.msk [vmem:[#allocation4 + $0x50] sm:$0xff] %vm375_vm2, %v1325_v24  ;;  %v1886_v28 = vpop.f32.mrb[12].mxu1  ;;  %1482 = vperm.xlu1 (!%p1711_p10), %2097, %v2123_v40  }
 0x363   : > { %v1328_v32 = vadd.f32 %v1886_v28, %v1151_v49  ;;  %v1296_v52 = vpop.f32.mrb[13].mxu1  ;;  %1477 = vperm.xlu0 (!%p1711_p10), %2096, %v2125_v19   ;;  %v1405_v28 = vld [vmem:[#allocation4 + $0x30] sm:$0xff] (!%p1711_p10) }
 0x364   : > { %v1327_v15 = vadd.f32 %v1296_v52, %v1150_v43  ;;  %1366 = sbr.rel (%p1711_p10) target bundleno = 1002 (0x3ea), region = 40 }
 0x365   : > { %1344 = vst.msk [vmem:[#allocation4 + $0x68] sm:$0xff] %vm375_vm2, %v1328_v32 }
 0x366   : > { %1343 = vst.msk [vmem:[#allocation4 + $0x60] sm:$0xff] %vm375_vm2, %v1327_v15  ;;  %v1889_v9 = vpop.f32.mrb[14].mxu1  ;;  %1492 = vperm.xlu1 (!%p1711_p10), %2097, %v2127_v45   ;;  %v1408_v15 = vld [vmem:[#allocation4 + $0x48] sm:$0xff] (!%p1711_p10) }
 0x367   : > { %v1330_v35 = vadd.f32 %v1889_v9, %v1153_v57  ;;  %v1306_v18 = vpop.f32.mrb[15].mxu1  ;;  %1487 = vperm.xlu0 (!%p1711_p10), %2096, %v2129_v6   ;;  %v1407_v57 = vld [vmem:[#allocation4 + $0x40] sm:$0xff] (!%p1711_p10) }
 0x368   : > { %v1329_v44 = vadd.f32 %v1306_v18, %v1152_v39 }
 0x369   : > { %1346 = vst.msk [vmem:[#allocation4 + $0x78] sm:$0xff] %vm375_vm2, %v1330_v35  ;;  %v1409_v59 = vld [vmem:[#allocation4 + $0x50] sm:$0xff] (!%p1711_p10) }
 0x36a   : > { %1345 = vst.msk [vmem:[#allocation4 + $0x70] sm:$0xff] %vm375_vm2, %v1329_v44  ;;  %v1410_v44 = vld [vmem:[#allocation4 + $0x58] sm:$0xff] (!%p1711_p10) }
 0x36c   : > { %v1412_v23 = vld [vmem:[#allocation4 + $0x68] sm:$0xff] }
 0x36d   : > { %v1411_v11 = vld [vmem:[#allocation4 + $0x60] sm:$0xff] }
 0x370   : > { %v1414_v53 = vld [vmem:[#allocation4 + $0x78] sm:$0xff] }
 0x371   : > { %v1413_v2 = vld [vmem:[#allocation4 + $0x70] sm:$0xff] }
 0x3c9   : > { %v1428_v17 = vpop.permute.xlu1 %1427 }
 0x3ca   : > { %v1497_v27 = vmul.f32 %v1428_v17, %v1401_v26  ;;  %v1418_v56 = vpop.permute.xlu0 %1417 }
 0x3cb   : > { %v1495_v30 = vmul.f32 %v1418_v56, %v1399_v22 }
 0x3cc   : > { %1513 = vst.msk [vmem:[%s2266_s5 + $0x10] sm:$0xff] %vm375_vm2, %v1497_v27 }
 0x3cd   : > { %1511 = vst.msk [vmem:[%s2266_s5] sm:$0xff] %vm375_vm2, %v1495_v30  ;;  %v1433_v16 = vpop.permute.xlu1 %1432 }
 0x3ce   : > { %v1498_v36 = vmul.f32 %v1433_v16, %v1402_v42  ;;  %v1423_v13 = vpop.permute.xlu0 %1422 }
 0x3cf   : > { %v1496_v37 = vmul.f32 %v1423_v13, %v1400_v55 }
 0x3d0   : > { %1514 = vst.msk [vmem:[%s2266_s5 + $0x18] sm:$0xff] %vm375_vm2, %v1498_v36 }
 0x3d1   : > { %1512 = vst.msk [vmem:[%s2266_s5 + $0x8] sm:$0xff] %vm375_vm2, %v1496_v37  ;;  %v1443_v24 = vpop.permute.xlu1 %1442 }
 0x3d2   : > { %v1500_v49 = vmul.f32 %v1443_v24, %v1404_v48  ;;  %v1438_v43 = vpop.permute.xlu0 %1437 }
 0x3d3   : > { %v1499_v29 = vmul.f32 %v1438_v43, %v1403_v21 }
 0x3d4   : > { %1516 = vst.msk [vmem:[%s2266_s5 + $0x28] sm:$0xff] %vm375_vm2, %v1500_v49 }
 0x3d5   : > { %1515 = vst.msk [vmem:[%s2266_s5 + $0x20] sm:$0xff] %vm375_vm2, %v1499_v29  ;;  %v1453_v54 = vpop.permute.xlu1 %1452 }
 0x3d6   : > { %v1502_v47 = vmul.f32 %v1453_v54, %v1406_v58  ;;  %v1448_v32 = vpop.permute.xlu0 %1447 }
 0x3d7   : > { %v1501_v52 = vmul.f32 %v1448_v32, %v1405_v28 }
 0x3d8   : > { %1518 = vst.msk [vmem:[%s2266_s5 + $0x38] sm:$0xff] %vm375_vm2, %v1502_v47 }
 0x3d9   : > { %1517 = vst.msk [vmem:[%s2266_s5 + $0x30] sm:$0xff] %vm375_vm2, %v1501_v52  ;;  %v1463_v39 = vpop.permute.xlu1 %1462 }
 0x3da   : > { %v1504_v9 = vmul.f32 %v1463_v39, %v1408_v15  ;;  %v1458_v35 = vpop.permute.xlu0 %1457 }
 0x3db   : > { %v1503_v18 = vmul.f32 %v1458_v35, %v1407_v57 }
 0x3dc   : > { %1520 = vst.msk [vmem:[%s2266_s5 + $0x48] sm:$0xff] %vm375_vm2, %v1504_v9 }
 0x3dd   : > { %1519 = vst.msk [vmem:[%s2266_s5 + $0x40] sm:$0xff] %vm375_vm2, %v1503_v18  ;;  %v1473_v50 = vpop.permute.xlu1 %1472 }
 0x3de   : > { %v1506_v61 = vmul.f32 %v1473_v50, %v1410_v44  ;;  %v1468_v62 = vpop.permute.xlu0 %1467 }
 0x3df   : > { %v1505_v5 = vmul.f32 %v1468_v62, %v1409_v59 }
 0x3e0   : > { %1522 = vst.msk [vmem:[%s2266_s5 + $0x58] sm:$0xff] %vm375_vm2, %v1506_v61 }
 0x3e1   : > { %1521 = vst.msk [vmem:[%s2266_s5 + $0x50] sm:$0xff] %vm375_vm2, %v1505_v5  ;;  %v1483_v0 = vpop.permute.xlu1 %1482 }
 0x3e2   : > { %v1508_v46 = vmul.f32 %v1483_v0, %v1412_v23  ;;  %v1478_v20 = vpop.permute.xlu0 %1477 }
 0x3e3   : > { %v1507_v63 = vmul.f32 %v1478_v20, %v1411_v11 }
 0x3e4   : > { %1524 = vst.msk [vmem:[%s2266_s5 + $0x68] sm:$0xff] %vm375_vm2, %v1508_v46 }
 0x3e5   : > { %1523 = vst.msk [vmem:[%s2266_s5 + $0x60] sm:$0xff] %vm375_vm2, %v1507_v63  ;;  %v1493_v34 = vpop.permute.xlu1 %1492 }
 0x3e6   : > { %v1510_v31 = vmul.f32 %v1493_v34, %v1414_v53  ;;  %v1488_v3 = vpop.permute.xlu0 %1487 }
 0x3e7   : > { %v1509_v12 = vmul.f32 %v1488_v3, %v1413_v2 }
 0x3e8   : > { %1526 = vst.msk [vmem:[%s2266_s5 + $0x78] sm:$0xff] %vm375_vm2, %v1510_v31 }
 0x3e9   : > { %1525 = vst.msk [vmem:[%s2266_s5 + $0x70] sm:$0xff] %vm375_vm2, %v1509_v12 }
 0x3ea PF: > { %s13_s18 = sadd.s32 1, %s2184_s18   ;;  %s2876_s12 = smov %s2172_s15 }
 0x3eb   : > { %p10_p11 = scmp.ge.s32.totalorder %s13_s18, 34   ;;  %s2877_s13 = smov %s2176_s16 }
 0x3ec   : > { %s2878_s14 = smov %s2180_s17  ;;  %s2879_s15 = smov %s2883_s19 }
 0x3ed   : > { %s2880_s16 = smov %s2887_s20  ;;  %s2881_s17 = smov %s2891_s21 }
 0x3ee   :  { %12 = sbr.rel (!%p10_p11) target bundleno = 4 (0x4), region = 76 }

// kernel: _lambda_.6
= control target key start
LH: loop header
LB: loop body
LE: loop exit
PB: predicated region body
PF: predicated region fallthrough
CT: control target
= control target key end

     0   :  { %s887_s12 = smov 0   ;;  %s889_s13 = smov 0   ;;  %s1225_s0 = inlined_call_operand.vmem [shape: f32[512,256], index: 0, kind: input, shape index: {}]   ;;  %s1226_s1 = inlined_call_operand.vmem [shape: f32[256,256], index: 1, kind: input, shape index: {}]   ;;  %s1227_s2 = inlined_call_operand.vmem [shape: f32[512,256], index: 2, kind: input, shape index: {}]   ;;  %s1228_s3 = inlined_call_operand.vmem [shape: f32[512,256], index: 3, kind: output, shape index: {}]  }
   0x1   :  { %s891_s14 = smov 0  }
   0x2 LB: > { %s25_s15 = sadd.s32 1, %s861_s13  ;;  %p708_p0 = scmp.ge.s32.totalorder %s865_s14, 1  ;;  %s865_s14 = sphi %s891_s14, %s13_s14   ;;  %s861_s13 = sphi %s889_s13, %s1230_s13   ;;  %s857_s12 = sphi %s887_s12, %s1229_s12  }
   0x3   : > { %p27_p1 = scmp.ge.s32.totalorder %s25_s15, 4  ;;  %p183_p2 = scmp.lt.s32.totalorder %s865_s14, 5 }
   0x5   : > { %s1232_s15 = smov (%p27_p1, %s25_s15), 0  ;;  %p184_p3 = pnand %p708_p0, %p183_p2 }
   0x6   : > { %v298_v0 = vld [vmem:[%s1226_s1 + $0x8] sm:$0xff] (!%p184_p3)  ;;  %v300_v1 = vld [vmem:[%s1226_s1 + $0x18] sm:$0xff] (!%p184_p3)  ;;  %v297_v2 = vld [vmem:[%s1226_s1] sm:$0xff] (!%p184_p3)  ;;  %s709_s9 = sshll.u32 (!%p184_p3), %s857_s12, 4 }
   0x7   : > { %187 = sbr.rel (%p184_p3) target bundleno = 317 (0x13d), region = 32  ;;  %v723_v3 = vpack.c.bf16 (!%p184_p3), %v300_v1, %v298_v0  ;;  %v299_v4 = vld [vmem:[%s1226_s1 + $0x10] sm:$0xff] (!%p184_p3)  ;;  %v302_v5 = vld [vmem:[%s1226_s1 + $0x28] sm:$0xff] (!%p184_p3)  ;;  %v304_v6 = vld [vmem:[%s1226_s1 + $0x38] sm:$0xff] (!%p184_p3)  ;;  %p229_p4 = scmp.lt.s32.totalorder (!%p184_p3), %s709_s9, 63 }
   0x8   : > { %v725_v7 = vpack.c.bf16 (!%p184_p3), %v299_v4, %v297_v2  ;;  %v727_v8 = vpack.c.bf16 (!%p184_p3), %v304_v6, %v302_v5  ;;  %v301_v9 = vld [vmem:[%s1226_s1 + $0x20] sm:$0xff] (!%p184_p3)  ;;  %v303_v10 = vld [vmem:[%s1226_s1 + $0x30] sm:$0xff] (!%p184_p3)  ;;  %v306_v11 = vld [vmem:[%s1226_s1 + $0x48] sm:$0xff] (!%p184_p3) }
   0x9   : > { %724 = vmatprep.subr.bf16.mxu0 (!%p184_p3), %v723_v3  ;;  %787 = vmatprep.subr.bf16.mxu1 (!%p184_p3), %v723_v3  ;;  %v308_v12 = vld [vmem:[%s1226_s1 + $0x58] sm:$0xff] (!%p184_p3)  ;;  %v729_v13 = vpack.c.bf16 (!%p184_p3), %v303_v10, %v301_v9  ;;  %v305_v15 = vld [vmem:[%s1226_s1 + $0x40] sm:$0xff] (!%p184_p3)  ;;  %v307_v16 = vld [vmem:[%s1226_s1 + $0x50] sm:$0xff] (!%p184_p3) }
   0xa   : > { %726 = vmatpush1.bf16.msra.mxu0 (!%p184_p3), %v725_v7  ;;  %803 = vmatpush1.bf16.msra.mxu1 (!%p184_p3), %v725_v7  ;;  %v731_v14 = vpack.c.bf16 (!%p184_p3), %v308_v12, %v306_v11  ;;  %v310_v17 = vld [vmem:[%s1226_s1 + $0x68] sm:$0xff] (!%p184_p3)  ;;  %v312_v18 = vld [vmem:[%s1226_s1 + $0x78] sm:$0xff] (!%p184_p3)  ;;  %v733_v19 = vpack.c.bf16 (!%p184_p3), %v307_v16, %v305_v15  ;;  %v309_v21 = vld [vmem:[%s1226_s1 + $0x60] sm:$0xff] (!%p184_p3) }
   0xb   : > { %728 = vmatprep.subr.bf16.mxu0 (!%p184_p3), %v727_v8  ;;  %788 = vmatprep.subr.bf16.mxu1 (!%p184_p3), %v727_v8  ;;  %v735_v20 = vpack.c.bf16 (!%p184_p3), %v312_v18, %v310_v17  ;;  %v311_v22 = vld [vmem:[%s1226_s1 + $0x70] sm:$0xff] (!%p184_p3)  ;;  %v314_v23 = vld [vmem:[%s1226_s1 + $0x88] sm:$0xff] (!%p184_p3)  ;;  %v316_v24 = vld [vmem:[%s1226_s1 + $0x98] sm:$0xff] (!%p184_p3) }
   0xc   : > { %v737_v25 = vpack.c.bf16 (!%p184_p3), %v311_v22, %v309_v21  ;;  %v739_v26 = vpack.c.bf16 (!%p184_p3), %v316_v24, %v314_v23  ;;  %v313_v27 = vld [vmem:[%s1226_s1 + $0x80] sm:$0xff] (!%p184_p3)  ;;  %v315_v28 = vld [vmem:[%s1226_s1 + $0x90] sm:$0xff] (!%p184_p3)  ;;  %v318_v29 = vld [vmem:[%s1226_s1 + $0xa8] sm:$0xff] (!%p184_p3) }
   0xd   : > { %v320_v30 = vld [vmem:[%s1226_s1 + $0xb8] sm:$0xff] (!%p184_p3)  ;;  %v741_v31 = vpack.c.bf16 (!%p184_p3), %v315_v28, %v313_v27  ;;  %v317_v33 = vld [vmem:[%s1226_s1 + $0xa0] sm:$0xff] (!%p184_p3)  ;;  %v319_v34 = vld [vmem:[%s1226_s1 + $0xb0] sm:$0xff] (!%p184_p3) }
   0xe   : > { %730 = vmatpush1.bf16.msra.mxu0 %v729_v13  ;;  %804 = vmatpush1.bf16.msra.mxu1 %v729_v13  ;;  %s1234_s9 = smov (!%p229_p4, %s709_s9), 63  ;;  %v743_v32 = vpack.c.bf16 %v320_v30, %v318_v29  ;;  %v322_v35 = vld [vmem:[%s1226_s1 + $0xc8] sm:$0xff]  ;;  %v324_v36 = vld [vmem:[%s1226_s1 + $0xd8] sm:$0xff]  ;;  %v745_v37 = vpack.c.bf16 %v319_v34, %v317_v33  ;;  %v321_v38 = vld [vmem:[%s1226_s1 + $0xc0] sm:$0xff] }
   0xf   : > { %732 = vmatprep.subr.bf16.mxu0 %v731_v14  ;;  %789 = vmatprep.subr.bf16.mxu1 %v731_v14  ;;  %s974_s11 = sshll.u32 %s1234_s9, 4  ;;  %v747_v39 = vpack.c.bf16 %v324_v36, %v322_v35  ;;  %v323_v40 = vld [vmem:[%s1226_s1 + $0xd0] sm:$0xff]  ;;  %v326_v43 = vld [vmem:[%s1226_s1 + $0xe8] sm:$0xff]  ;;  %v328_v44 = vld [vmem:[%s1226_s1 + $0xf8] sm:$0xff] }
  0x10   : > { %s992_s24 = scalar_lea.vmem %s1225_s0, %s974_s11  ;;  %v749_v45 = vpack.c.bf16 %v323_v40, %v321_v38  ;;  %v751_v46 = vpack.c.bf16 %v328_v44, %v326_v43  ;;  %v325_v47 = vld [vmem:[%s1226_s1 + $0xe0] sm:$0xff]  ;;  %v327_v48 = vld [vmem:[%s1226_s1 + $0xf0] sm:$0xff]  ;;  %v330_v49 = vld [vmem:[%s1226_s1 + $0x108] sm:$0xff]  ;;  %s1144_s16 = scalar_lea.vmem %s1227_s2, %s974_s11 }
  0x11   : > { %v266_v41 = vld [vmem:[%s992_s24 + $0x8] sm:$0xff]  ;;  %v332_v50 = vld [vmem:[%s1226_s1 + $0x118] sm:$0xff]  ;;  %v753_v51 = vpack.c.bf16 %v327_v48, %v325_v47  ;;  %v329_v53 = vld [vmem:[%s1226_s1 + $0x100] sm:$0xff]  ;;  %s1154_s18 = scalar_lea.vmem %s1228_s3, %s974_s11 }
  0x12   : > { %734 = vmatpush1.bf16.msra.mxu0 %v733_v19  ;;  %805 = vmatpush1.bf16.msra.mxu1 %v733_v19  ;;  %v282_v42 = vld [vmem:[%s992_s24 + $0x88] sm:$0xff]  ;;  %v755_v52 = vpack.c.bf16 %v332_v50, %v330_v49  ;;  %v331_v54 = vld [vmem:[%s1226_s1 + $0x110] sm:$0xff]  ;;  %v336_v56 = vld [vmem:[%s1226_s1 + $0x138] sm:$0xff] }
  0x13   : > { %736 = vmatprep.subr.bf16.mxu0 %v735_v20  ;;  %790 = vmatprep.subr.bf16.mxu1 %v735_v20  ;;  %v334_v55 = vld [vmem:[%s1226_s1 + $0x128] sm:$0xff]  ;;  %v757_v57 = vpack.c.bf16 %v331_v54, %v329_v53  ;;  %v333_v59 = vld [vmem:[%s1226_s1 + $0x120] sm:$0xff]  ;;  %v335_v60 = vld [vmem:[%s1226_s1 + $0x130] sm:$0xff] }
  0x14   : > { %457 = vmatprep.mubr.f32.mxu0 %v266_v41  ;;  %505 = vmatprep.mubr.f32.mxu1 %v282_v42  ;;  %v759_v58 = vpack.c.bf16 %v336_v56, %v334_v55  ;;  %v338_v61 = vld [vmem:[%s1226_s1 + $0x148] sm:$0xff]  ;;  %v340_v62 = vld [vmem:[%s1226_s1 + $0x158] sm:$0xff]  ;;  %v761_v63 = vpack.c.bf16 %v335_v60, %v333_v59  ;;  %v337_v1 = vld [vmem:[%s1226_s1 + $0x140] sm:$0xff] }
  0x15   : > { %v763_v0 = vpack.c.bf16 %v340_v62, %v338_v61  ;;  %v339_v2 = vld [vmem:[%s1226_s1 + $0x150] sm:$0xff]  ;;  %v342_v3 = vld [vmem:[%s1226_s1 + $0x168] sm:$0xff]  ;;  %v344_v4 = vld [vmem:[%s1226_s1 + $0x178] sm:$0xff] }
  0x16   : > { %738 = vmatpush1.bf16.msra.mxu0 %v737_v25  ;;  %806 = vmatpush1.bf16.msra.mxu1 %v737_v25  ;;  %v765_v5 = vpack.c.bf16 %v339_v2, %v337_v1  ;;  %v767_v6 = vpack.c.bf16 %v344_v4, %v342_v3  ;;  %v341_v7 = vld [vmem:[%s1226_s1 + $0x160] sm:$0xff]  ;;  %v343_v8 = vld [vmem:[%s1226_s1 + $0x170] sm:$0xff]  ;;  %v346_v9 = vld [vmem:[%s1226_s1 + $0x188] sm:$0xff] }
  0x17   : > { %740 = vmatprep.subr.bf16.mxu0 %v739_v26  ;;  %791 = vmatprep.subr.bf16.mxu1 %v739_v26  ;;  %v348_v10 = vld [vmem:[%s1226_s1 + $0x198] sm:$0xff]  ;;  %v769_v11 = vpack.c.bf16 %v343_v8, %v341_v7  ;;  %v345_v13 = vld [vmem:[%s1226_s1 + $0x180] sm:$0xff]  ;;  %v347_v14 = vld [vmem:[%s1226_s1 + $0x190] sm:$0xff] }
  0x18   : > { %v771_v12 = vpack.c.bf16 %v348_v10, %v346_v9  ;;  %v350_v15 = vld [vmem:[%s1226_s1 + $0x1a8] sm:$0xff]  ;;  %v352_v16 = vld [vmem:[%s1226_s1 + $0x1b8] sm:$0xff]  ;;  %v773_v17 = vpack.c.bf16 %v347_v14, %v345_v13  ;;  %v349_v19 = vld [vmem:[%s1226_s1 + $0x1a0] sm:$0xff] }
  0x19   : > { %v775_v18 = vpack.c.bf16 %v352_v16, %v350_v15  ;;  %v351_v20 = vld [vmem:[%s1226_s1 + $0x1b0] sm:$0xff]  ;;  %v354_v21 = vld [vmem:[%s1226_s1 + $0x1c8] sm:$0xff]  ;;  %v356_v22 = vld [vmem:[%s1226_s1 + $0x1d8] sm:$0xff] }
  0x1a   : > { %742 = vmatpush1.bf16.msra.mxu0 %v741_v31  ;;  %807 = vmatpush1.bf16.msra.mxu1 %v741_v31  ;;  %v777_v23 = vpack.c.bf16 %v351_v20, %v349_v19  ;;  %v779_v24 = vpack.c.bf16 %v356_v22, %v354_v21  ;;  %v353_v25 = vld [vmem:[%s1226_s1 + $0x1c0] sm:$0xff]  ;;  %v355_v26 = vld [vmem:[%s1226_s1 + $0x1d0] sm:$0xff]  ;;  %v358_v27 = vld [vmem:[%s1226_s1 + $0x1e8] sm:$0xff] }
  0x1b   : > { %744 = vmatprep.subr.bf16.mxu0 %v743_v32  ;;  %792 = vmatprep.subr.bf16.mxu1 %v743_v32  ;;  %v360_v28 = vld [vmem:[%s1226_s1 + $0x1f8] sm:$0xff]  ;;  %v781_v29 = vpack.c.bf16 %v355_v26, %v353_v25  ;;  %v357_v31 = vld [vmem:[%s1226_s1 + $0x1e0] sm:$0xff]  ;;  %v359_v32 = vld [vmem:[%s1226_s1 + $0x1f0] sm:$0xff] }
  0x1c   : > { %v783_v30 = vpack.c.bf16 %v360_v28, %v358_v27  ;;  %v785_v33 = vpack.c.bf16 %v359_v32, %v357_v31  ;;  %v265_v34 = vld [vmem:[%s992_s24] sm:$0xff]  ;;  %v268_v36 = vld [vmem:[%s992_s24 + $0x18] sm:$0xff]  ;;  %v267_v38 = vld [vmem:[%s992_s24 + $0x10] sm:$0xff] }
  0x1d   : > { %v281_v35 = vld [vmem:[%s992_s24 + $0x80] sm:$0xff]  ;;  %v270_v40 = vld [vmem:[%s992_s24 + $0x28] sm:$0xff]  ;;  %v272_v44 = vld [vmem:[%s992_s24 + $0x38] sm:$0xff] }
  0x1e   : > { %746 = vmatpush1.bf16.msra.mxu0 %v745_v37  ;;  %808 = vmatpush1.bf16.msra.mxu1 %v745_v37  ;;  %v284_v37 = vld [vmem:[%s992_s24 + $0x98] sm:$0xff]  ;;  %v286_v41 = vld [vmem:[%s992_s24 + $0xa8] sm:$0xff]  ;;  %v269_v42 = vld [vmem:[%s992_s24 + $0x20] sm:$0xff] }
  0x1f   : > { %748 = vmatprep.subr.bf16.mxu0 %v747_v39  ;;  %793 = vmatprep.subr.bf16.mxu1 %v747_v39  ;;  %v283_v39 = vld [vmem:[%s992_s24 + $0x90] sm:$0xff]  ;;  %v285_v43 = vld [vmem:[%s992_s24 + $0xa0] sm:$0xff]  ;;  %v274_v48 = vld [vmem:[%s992_s24 + $0x48] sm:$0xff] }
  0x20   : > { %v287_v47 = vld [vmem:[%s992_s24 + $0xb0] sm:$0xff]  ;;  %v290_v49 = vld [vmem:[%s992_s24 + $0xc8] sm:$0xff]  ;;  %v273_v50 = vld [vmem:[%s992_s24 + $0x40] sm:$0xff] }
  0x21   : > { %v292_v53 = vld [vmem:[%s992_s24 + $0xd8] sm:$0xff]  ;;  %v275_v54 = vld [vmem:[%s992_s24 + $0x50] sm:$0xff]  ;;  %v278_v56 = vld [vmem:[%s992_s24 + $0x68] sm:$0xff] }
  0x22   : > { %750 = vmatpush1.bf16.msra.mxu0 %v749_v45  ;;  %809 = vmatpush1.bf16.msra.mxu1 %v749_v45  ;;  %v288_v45 = vld [vmem:[%s992_s24 + $0xb8] sm:$0xff]  ;;  %v291_v55 = vld [vmem:[%s992_s24 + $0xd0] sm:$0xff]  ;;  %v293_v59 = vld [vmem:[%s992_s24 + $0xe0] sm:$0xff] }
  0x23   : > { %752 = vmatprep.subr.bf16.mxu0 %v751_v46  ;;  %794 = vmatprep.subr.bf16.mxu1 %v751_v46  ;;  %v271_v46 = vld [vmem:[%s992_s24 + $0x30] sm:$0xff]  ;;  %v280_v60 = vld [vmem:[%s992_s24 + $0x78] sm:$0xff]  ;;  %v377_v1 = vld [vmem:[%s1144_s16 + $0x80] sm:$0xff] }
  0x24   : > { %v296_v61 = vld [vmem:[%s992_s24 + $0xf8] sm:$0xff]  ;;  %v279_v62 = vld [vmem:[%s992_s24 + $0x70] sm:$0xff]  ;;  %v362_v2 = vld [vmem:[%s1144_s16 + $0x8] sm:$0xff] }
  0x25   : > { %v378_v3 = vld [vmem:[%s1144_s16 + $0x88] sm:$0xff]  ;;  %v379_v13 = vld [vmem:[%s1144_s16 + $0x90] sm:$0xff]  ;;  %v364_v14 = vld [vmem:[%s1144_s16 + $0x18] sm:$0xff] }
  0x26   : > { %754 = vmatpush1.bf16.msra.mxu0 %v753_v51  ;;  %810 = vmatpush1.bf16.msra.mxu1 %v753_v51  ;;  %v289_v51 = vld [vmem:[%s992_s24 + $0xc0] sm:$0xff]  ;;  %v380_v15 = vld [vmem:[%s1144_s16 + $0x98] sm:$0xff]  ;;  %v366_v26 = vld [vmem:[%s1144_s16 + $0x28] sm:$0xff] }
  0x27   : > { %756 = vmatprep.subr.bf16.mxu0 %v755_v52  ;;  %795 = vmatprep.subr.bf16.mxu1 %v755_v52  ;;  %v276_v52 = vld [vmem:[%s992_s24 + $0x58] sm:$0xff]  ;;  %v381_v25 = vld [vmem:[%s1144_s16 + $0xa0] sm:$0xff]  ;;  %v382_v27 = vld [vmem:[%s1144_s16 + $0xa8] sm:$0xff] }
  0x2a   : > { %758 = vmatpush1.bf16.msra.mxu0 %v757_v57  ;;  %811 = vmatpush1.bf16.msra.mxu1 %v757_v57  ;;  %v294_v57 = vld [vmem:[%s992_s24 + $0xe8] sm:$0xff] }
  0x2b   : > { %760 = vmatprep.subr.bf16.mxu0 %v759_v58  ;;  %796 = vmatprep.subr.bf16.mxu1 %v759_v58  ;;  %v277_v58 = vld [vmem:[%s992_s24 + $0x60] sm:$0xff] }
  0x2e   : > { %762 = vmatpush1.bf16.msra.mxu0 %v761_v63  ;;  %812 = vmatpush1.bf16.msra.mxu1 %v761_v63  ;;  %v295_v63 = vld [vmem:[%s992_s24 + $0xf0] sm:$0xff] }
  0x2f   : > { %764 = vmatprep.subr.bf16.mxu0 %v763_v0  ;;  %797 = vmatprep.subr.bf16.mxu1 %v763_v0  ;;  %v361_v0 = vld [vmem:[%s1144_s16] sm:$0xff] }
  0x32   : > { %766 = vmatpush1.bf16.msra.mxu0 %v765_v5  ;;  %813 = vmatpush1.bf16.msra.mxu1 %v765_v5 }
  0x33   : > { %768 = vmatprep.subr.bf16.mxu0 %v767_v6  ;;  %798 = vmatprep.subr.bf16.mxu1 %v767_v6 }
  0x36   : > { %770 = vmatpush1.bf16.msra.mxu0 %v769_v11  ;;  %814 = vmatpush1.bf16.msra.mxu1 %v769_v11 }
  0x37   : > { %772 = vmatprep.subr.bf16.mxu0 %v771_v12  ;;  %799 = vmatprep.subr.bf16.mxu1 %v771_v12  ;;  %v363_v12 = vld [vmem:[%s1144_s16 + $0x10] sm:$0xff] }
  0x3a   : > { %774 = vmatpush1.bf16.msra.mxu0 %v773_v17  ;;  %815 = vmatpush1.bf16.msra.mxu1 %v773_v17 }
  0x3b   : > { %776 = vmatprep.subr.bf16.mxu0 %v775_v18  ;;  %800 = vmatprep.subr.bf16.mxu1 %v775_v18 }
  0x3e   : > { %778 = vmatpush1.bf16.msra.mxu0 %v777_v23  ;;  %816 = vmatpush1.bf16.msra.mxu1 %v777_v23 }
  0x3f   : > { %780 = vmatprep.subr.bf16.mxu0 %v779_v24  ;;  %801 = vmatprep.subr.bf16.mxu1 %v779_v24  ;;  %v365_v24 = vld [vmem:[%s1144_s16 + $0x20] sm:$0xff] }
  0x42   : > { %782 = vmatpush1.bf16.msra.mxu0 %v781_v29  ;;  %817 = vmatpush1.bf16.msra.mxu1 %v781_v29 }
  0x43   : > { %784 = vmatprep.subr.bf16.mxu0 %v783_v30  ;;  %802 = vmatprep.subr.bf16.mxu1 %v783_v30 }
  0x46   : > { %786 = vmatpush1.bf16.msra.mxu0 %v785_v33  ;;  %818 = vmatpush1.bf16.msra.mxu1 %v785_v33 }
  0x49   : > { %458 = vmatmul.mubr.f32.vlgmr.msra.gmra.mrb[0].mxu0 %v265_v34  ;;  %506 = vmatmul.mubr.f32.vlgmr.msra.gmra.mrb[0].mxu1 %v281_v35 }
  0x4a   : > { %463 = vmatprep.mubr.f32.mxu0 %v268_v36  ;;  %511 = vmatprep.mubr.f32.mxu1 %v284_v37  ;;  %v367_v36 = vld [vmem:[%s1144_s16 + $0x30] sm:$0xff] }
  0x4b   : > { %v383_v37 = vld [vmem:[%s1144_s16 + $0xb0] sm:$0xff] }
  0x4d   : > { %464 = vmatmul.mubr.f32.gmra.mrb[2].mxu0 %v267_v38  ;;  %512 = vmatmul.mubr.f32.gmra.mrb[2].mxu1 %v283_v39  ;;  %v368_v38 = vld [vmem:[%s1144_s16 + $0x38] sm:$0xff] }
  0x4e   : > { %469 = vmatprep.mubr.f32.mxu0 %v270_v40  ;;  %517 = vmatprep.mubr.f32.mxu1 %v286_v41  ;;  %v384_v39 = vld [vmem:[%s1144_s16 + $0xb8] sm:$0xff] }
  0x51   : > { %470 = vmatmul.mubr.f32.gmra.mrb[4].mxu0 %v269_v42  ;;  %518 = vmatmul.mubr.f32.gmra.mrb[4].mxu1 %v285_v43 }
  0x52   : > { %475 = vmatprep.mubr.f32.mxu0 %v272_v44  ;;  %523 = vmatprep.mubr.f32.mxu1 %v288_v45 }
  0x55   : > { %476 = vmatmul.mubr.f32.gmra.mrb[6].mxu0 %v271_v46  ;;  %524 = vmatmul.mubr.f32.gmra.mrb[6].mxu1 %v287_v47 }
  0x56   : > { %481 = vmatprep.mubr.f32.mxu0 %v274_v48  ;;  %529 = vmatprep.mubr.f32.mxu1 %v290_v49  ;;  %v369_v48 = vld [vmem:[%s1144_s16 + $0x40] sm:$0xff] }
  0x57   : > { %v385_v49 = vld [vmem:[%s1144_s16 + $0xc0] sm:$0xff] }
  0x59   : > { %482 = vmatmul.mubr.f32.gmra.mrb[8].mxu0 %v273_v50  ;;  %530 = vmatmul.mubr.f32.gmra.mrb[8].mxu1 %v289_v51  ;;  %v370_v50 = vld [vmem:[%s1144_s16 + $0x48] sm:$0xff] }
  0x5a   : > { %487 = vmatprep.mubr.f32.mxu0 %v276_v52  ;;  %535 = vmatprep.mubr.f32.mxu1 %v292_v53  ;;  %v386_v51 = vld [vmem:[%s1144_s16 + $0xc8] sm:$0xff] }
  0x5d   : > { %488 = vmatmul.mubr.f32.gmra.mrb[10].mxu0 %v275_v54  ;;  %536 = vmatmul.mubr.f32.gmra.mrb[10].mxu1 %v291_v55 }
  0x5e   : > { %493 = vmatprep.mubr.f32.mxu0 %v278_v56  ;;  %541 = vmatprep.mubr.f32.mxu1 %v294_v57 }
  0x61   : > { %494 = vmatmul.mubr.f32.gmra.mrb[12].mxu0 %v277_v58  ;;  %542 = vmatmul.mubr.f32.gmra.mrb[12].mxu1 %v293_v59 }
  0x62   : > { %499 = vmatprep.mubr.f32.mxu0 %v280_v60  ;;  %547 = vmatprep.mubr.f32.mxu1 %v296_v61  ;;  %v371_v60 = vld [vmem:[%s1144_s16 + $0x50] sm:$0xff] }
  0x63   : > { %v387_v61 = vld [vmem:[%s1144_s16 + $0xd0] sm:$0xff] }
  0x65   : > { %500 = vmatmul.mubr.f32.gmra.mrb[14].mxu0 %v279_v62  ;;  %548 = vmatmul.mubr.f32.gmra.mrb[14].mxu1 %v295_v63  ;;  %v372_v62 = vld [vmem:[%s1144_s16 + $0x58] sm:$0xff] }
  0x66   : > { %v388_v63 = vld [vmem:[%s1144_s16 + $0xd8] sm:$0xff] }
 0x11c   : > { %v459_v4 = vpop.f32.mrb[0].mxu0  ;;  %v507_v5 = vpop.f32.mrb[0].mxu1 }
 0x11d   : > { %v460_v6 = vadd.f32 %v459_v4, %v361_v0  ;;  %v508_v7 = vadd.f32 %v507_v5, %v377_v1  ;;  %v461_v8 = vpop.f32.mrb[1].mxu0  ;;  %v509_v9 = vpop.f32.mrb[1].mxu1 }
 0x11e   : > { %v462_v10 = vadd.f32 %v461_v8, %v362_v2  ;;  %v510_v11 = vadd.f32 %v509_v9, %v378_v3  ;;  %v373_v8 = vld [vmem:[%s1144_s16 + $0x60] sm:$0xff] }
 0x11f   : > { %554 = vst [vmem:[%s1154_s18] sm:$0xff] %v460_v6  ;;  %570 = vst [vmem:[%s1154_s18 + $0x80] sm:$0xff] %v508_v7  ;;  %v389_v9 = vld [vmem:[%s1144_s16 + $0xe0] sm:$0xff] }
 0x120   : > { %555 = vst [vmem:[%s1154_s18 + $0x8] sm:$0xff] %v462_v10  ;;  %571 = vst [vmem:[%s1154_s18 + $0x88] sm:$0xff] %v510_v11  ;;  %v465_v16 = vpop.f32.mrb[2].mxu0  ;;  %v513_v17 = vpop.f32.mrb[2].mxu1  ;;  %v374_v10 = vld [vmem:[%s1144_s16 + $0x68] sm:$0xff] }
 0x121   : > { %v466_v18 = vadd.f32 %v465_v16, %v363_v12  ;;  %v514_v19 = vadd.f32 %v513_v17, %v379_v13  ;;  %v467_v20 = vpop.f32.mrb[3].mxu0  ;;  %v515_v21 = vpop.f32.mrb[3].mxu1  ;;  %v390_v11 = vld [vmem:[%s1144_s16 + $0xe8] sm:$0xff] }
 0x122   : > { %v468_v22 = vadd.f32 %v467_v20, %v364_v14  ;;  %v516_v23 = vadd.f32 %v515_v21, %v380_v15  ;;  %v375_v20 = vld [vmem:[%s1144_s16 + $0x70] sm:$0xff] }
 0x123   : > { %556 = vst [vmem:[%s1154_s18 + $0x10] sm:$0xff] %v466_v18  ;;  %572 = vst [vmem:[%s1154_s18 + $0x90] sm:$0xff] %v514_v19  ;;  %v391_v21 = vld [vmem:[%s1144_s16 + $0xf0] sm:$0xff] }
 0x124   : > { %557 = vst [vmem:[%s1154_s18 + $0x18] sm:$0xff] %v468_v22  ;;  %573 = vst [vmem:[%s1154_s18 + $0x98] sm:$0xff] %v516_v23  ;;  %v471_v28 = vpop.f32.mrb[4].mxu0  ;;  %v519_v29 = vpop.f32.mrb[4].mxu1  ;;  %v376_v22 = vld [vmem:[%s1144_s16 + $0x78] sm:$0xff] }
 0x125   : > { %v472_v30 = vadd.f32 %v471_v28, %v365_v24  ;;  %v520_v31 = vadd.f32 %v519_v29, %v381_v25  ;;  %v473_v32 = vpop.f32.mrb[5].mxu0  ;;  %v521_v33 = vpop.f32.mrb[5].mxu1  ;;  %v392_v23 = vld [vmem:[%s1144_s16 + $0xf8] sm:$0xff] }
 0x126   : > { %v474_v34 = vadd.f32 %v473_v32, %v366_v26  ;;  %v522_v35 = vadd.f32 %v521_v33, %v382_v27 }
 0x127   : > { %558 = vst [vmem:[%s1154_s18 + $0x20] sm:$0xff] %v472_v30  ;;  %574 = vst [vmem:[%s1154_s18 + $0xa0] sm:$0xff] %v520_v31 }
 0x128   : > { %559 = vst [vmem:[%s1154_s18 + $0x28] sm:$0xff] %v474_v34  ;;  %575 = vst [vmem:[%s1154_s18 + $0xa8] sm:$0xff] %v522_v35  ;;  %v477_v40 = vpop.f32.mrb[6].mxu0  ;;  %v525_v41 = vpop.f32.mrb[6].mxu1 }
 0x129   : > { %v478_v42 = vadd.f32 %v477_v40, %v367_v36  ;;  %v526_v43 = vadd.f32 %v525_v41, %v383_v37  ;;  %v479_v44 = vpop.f32.mrb[7].mxu0  ;;  %v527_v45 = vpop.f32.mrb[7].mxu1 }
 0x12a   : > { %v480_v46 = vadd.f32 %v479_v44, %v368_v38  ;;  %v528_v47 = vadd.f32 %v527_v45, %v384_v39 }
 0x12b   : > { %560 = vst [vmem:[%s1154_s18 + $0x30] sm:$0xff] %v478_v42  ;;  %576 = vst [vmem:[%s1154_s18 + $0xb0] sm:$0xff] %v526_v43 }
 0x12c   : > { %561 = vst [vmem:[%s1154_s18 + $0x38] sm:$0xff] %v480_v46  ;;  %577 = vst [vmem:[%s1154_s18 + $0xb8] sm:$0xff] %v528_v47  ;;  %v483_v52 = vpop.f32.mrb[8].mxu0  ;;  %v531_v53 = vpop.f32.mrb[8].mxu1 }
 0x12d   : > { %v484_v54 = vadd.f32 %v483_v52, %v369_v48  ;;  %v532_v55 = vadd.f32 %v531_v53, %v385_v49  ;;  %v485_v56 = vpop.f32.mrb[9].mxu0  ;;  %v533_v57 = vpop.f32.mrb[9].mxu1 }
 0x12e   : > { %v486_v58 = vadd.f32 %v485_v56, %v370_v50  ;;  %v534_v59 = vadd.f32 %v533_v57, %v386_v51 }
 0x12f   : > { %562 = vst [vmem:[%s1154_s18 + $0x40] sm:$0xff] %v484_v54  ;;  %578 = vst [vmem:[%s1154_s18 + $0xc0] sm:$0xff] %v532_v55 }
 0x130   : > { %563 = vst [vmem:[%s1154_s18 + $0x48] sm:$0xff] %v486_v58  ;;  %579 = vst [vmem:[%s1154_s18 + $0xc8] sm:$0xff] %v534_v59  ;;  %v489_v0 = vpop.f32.mrb[10].mxu0  ;;  %v537_v1 = vpop.f32.mrb[10].mxu1 }
 0x131   : > { %v490_v2 = vadd.f32 %v489_v0, %v371_v60  ;;  %v538_v3 = vadd.f32 %v537_v1, %v387_v61  ;;  %v491_v4 = vpop.f32.mrb[11].mxu0  ;;  %v539_v5 = vpop.f32.mrb[11].mxu1 }
 0x132   : > { %v492_v6 = vadd.f32 %v491_v4, %v372_v62  ;;  %v540_v7 = vadd.f32 %v539_v5, %v388_v63 }
 0x133   : > { %564 = vst [vmem:[%s1154_s18 + $0x50] sm:$0xff] %v490_v2  ;;  %580 = vst [vmem:[%s1154_s18 + $0xd0] sm:$0xff] %v538_v3 }
 0x134   : > { %565 = vst [vmem:[%s1154_s18 + $0x58] sm:$0xff] %v492_v6  ;;  %581 = vst [vmem:[%s1154_s18 + $0xd8] sm:$0xff] %v540_v7  ;;  %v495_v12 = vpop.f32.mrb[12].mxu0  ;;  %v543_v13 = vpop.f32.mrb[12].mxu1 }
 0x135   : > { %v496_v14 = vadd.f32 %v495_v12, %v373_v8  ;;  %v544_v15 = vadd.f32 %v543_v13, %v389_v9  ;;  %v497_v16 = vpop.f32.mrb[13].mxu0  ;;  %v545_v17 = vpop.f32.mrb[13].mxu1 }
 0x136   : > { %v498_v18 = vadd.f32 %v497_v16, %v374_v10  ;;  %v546_v19 = vadd.f32 %v545_v17, %v390_v11 }
 0x137   : > { %566 = vst [vmem:[%s1154_s18 + $0x60] sm:$0xff] %v496_v14  ;;  %582 = vst [vmem:[%s1154_s18 + $0xe0] sm:$0xff] %v544_v15 }
 0x138   : > { %567 = vst [vmem:[%s1154_s18 + $0x68] sm:$0xff] %v498_v18  ;;  %583 = vst [vmem:[%s1154_s18 + $0xe8] sm:$0xff] %v546_v19  ;;  %v501_v24 = vpop.f32.mrb[14].mxu0  ;;  %v549_v25 = vpop.f32.mrb[14].mxu1 }
 0x139   : > { %v502_v26 = vadd.f32 %v501_v24, %v375_v20  ;;  %v550_v27 = vadd.f32 %v549_v25, %v391_v21  ;;  %v503_v28 = vpop.f32.mrb[15].mxu0  ;;  %v551_v29 = vpop.f32.mrb[15].mxu1 }
 0x13a   : > { %v504_v30 = vadd.f32 %v503_v28, %v376_v22  ;;  %v552_v31 = vadd.f32 %v551_v29, %v392_v23 }
 0x13b   : > { %568 = vst [vmem:[%s1154_s18 + $0x70] sm:$0xff] %v502_v26  ;;  %584 = vst [vmem:[%s1154_s18 + $0xf0] sm:$0xff] %v550_v27 }
 0x13c   : > { %569 = vst [vmem:[%s1154_s18 + $0x78] sm:$0xff] %v504_v30  ;;  %585 = vst [vmem:[%s1154_s18 + $0xf8] sm:$0xff] %v552_v31 }
 0x13d PF: > { %s13_s14 = sadd.s32 1, %s865_s14   ;;  %s1229_s12 = smov %s861_s13 }
 0x13e   : > { %p10_p5 = scmp.ge.s32.totalorder %s13_s14, 6   ;;  %s1230_s13 = smov %s1232_s15 }
 0x140   :  { %12 = sbr.rel (!%p10_p5) target bundleno = 2 (0x2), region = 68 }

// kernel: _lambda_.7
= control target key start
LH: loop header
LB: loop body
LE: loop exit
PB: predicated region body
PF: predicated region fallthrough
CT: control target
= control target key end

     0   :  { %s4023_s0 = inlined_call_operand.vmem [shape: f32[512,256], index: 0, kind: input, shape index: {}]   ;;  %s4024_s1 = inlined_call_operand.vmem [shape: f32[1,256], index: 1, kind: input, shape index: {}]   ;;  %s4025_s2 = inlined_call_operand.vmem [shape: f32[256,768], index: 2, kind: input, shape index: {}]   ;;  %s4026_s3 = inlined_call_operand.vmem [shape: f32[256,768], index: 3, kind: input, shape index: {}]   ;;  %s4027_s4 = inlined_call_operand.vmem [shape: f32[768,256], index: 4, kind: input, shape index: {}]   ;;  %s4028_s5 = inlined_call_operand.hbm [shape: f32[512,256], index: 5, kind: output, shape index: {}]  }
   0x1   :  { %4033 = sst [smem:[#allocation12_spill]] %s4025_s2 }
   0x2   :  { %4034 = sst [smem:[#allocation13_spill]] %s4026_s3 }
   0x3   :  { %10 = vsyncpa [#allocation7], 0 }
   0x4   :  { %12 = vsyncpa [#allocation7 + $0x1], 0  ;;  %s2854_s18 = smov 0   ;;  %s2856_s19 = smov 0  }
   0x5   :  { %s2858_s20 = smov 0   ;;  %s2860_s21 = smov 0  }
   0x6   :  { %s2862_s22 = smov 0   ;;  %s2864_s23 = smov 0  }
   0x7   :  { %s2866_s24 = smov 0   ;;  %s2868_s25 = smov 0  }
   0x8   :  { %s2870_s26 = smov 0   ;;  %s2872_s27 = smov 0  }
   0x9 LB: > { %4035 = sst [smem:[#allocation9_spill]] %s2814_s26  ;;  %s2200_s28 = sadd.s32 4294967295, %s2818_s27   ;;  %s2818_s27 = sphi %s2872_s27, %s18_s27   ;;  %s2814_s26 = sphi %s2870_s26, %s4046_s26   ;;  %s2810_s25 = sphi %s2868_s25, %s4053_s25   ;;  %s2806_s24 = sphi %s2866_s24, %s4044_s24   ;;  %s2802_s23 = sphi %s2864_s23, %s4052_s23   ;;  %s2798_s22 = sphi %s2862_s22, %s4051_s22   ;;  %s2794_s21 = sphi %s2860_s21, %s4050_s21   ;;  %s2790_s20 = sphi %s2858_s20, %s4049_s20   ;;  %s2786_s19 = sphi %s2856_s19, %s4048_s19   ;;  %s2782_s18 = sphi %s2854_s18, %s4047_s18  }
   0xa   : > { %s2201_s29 = sadd.s32 4294967294, %s2818_s27   ;;  %s27_s30 = sadd.s32 1, %s2810_s25 }
   0xb   : > { %s30_s6 = sadd.s32 1, %s2814_s26  ;;  %p28_p0 = scmp.ge.s32.totalorder %s27_s30, 3 }
   0xc   : > { %s84_s7 = sadd.s32 1, %s2798_s22  ;;  %p91_p1 = scmp.ne.s32.totalorder %s2798_s22, %s2794_s21 }
   0xd   : > { %p92_p2 = scmp.eq.s32.totalorder %s2818_s27, 0  ;;  %s4055_s30 = smov (%p28_p0, %s27_s30), 0 }
   0xe   : > { %4036 = sst [smem:[#allocation10_spill]] %s4055_s30  ;;  %s4057_s6 = smov (!%p28_p0, %s30_s6), %s2814_s26 }
   0xf   : > { %s81_s8 = ssub.s32 %s2810_s25, %s4055_s30  ;;  %p2917_p3 = por %p92_p2, %p91_p1 }
  0x10   : > { %p32_p4 = scmp.ge.s32.totalorder %s4057_s6, 4  ;;  %p82_p5 = scmp.eq.s32.totalorder %s81_s8, 0 }
  0x11   : > { %s162_s10 = sadd.s32 1, %s2790_s20  ;;  %p172_p6 = scmp.ne.s32.totalorder %s2790_s20, %s2786_s19 }
  0x12   : > { %s4059_s6 = smov (%p32_p4, %s4057_s6), 0  ;;  %p173_p7 = scmp.eq.s32.totalorder %s2200_s28, 11 }
  0x13   : > { %4038 = sst [smem:[#allocation11_spill]] %s4059_s6  ;;  %s159_s12 = ssub.s32 %s2814_s26, %s4059_s6 }
  0x14   : > { %s2927_s11 = scalar_select %p82_p5, %s2798_s22, %s84_s7  }
  0x15   : > { %p160_p8 = scmp.eq.s32.totalorder %s159_s12, 0  ;;  %p178_p9 = scmp.ne.s32.totalorder %s2786_s19, %s2782_s18 }
  0x16   : > { %p2933_p10 = por %p173_p7, %p172_p6  ;;  %p179_p11 = scmp.eq.s32.totalorder %s2201_s29, 11 }
  0x17   : > { %s2938_s14 = scalar_select %p160_p8, %s2790_s20, %s162_s10  }
  0x18   : > { %p2940_p12 = por %p179_p11, %p178_p9  ;;  %p2203_p13 = scmp.ge.s32.totalorder %s2818_s27, 12 }
  0x1a   : > { %198 = sbr.rel (%p2203_p13) target bundleno = 117 (0x75), region = 20 }
  0x21   : > { %211 = sbr.rel (!%p2917_p3) target bundleno = 75 (0x4b), region = 28  ;;  %s213_s16 = sand.u32 (%p2917_p3), 1, %s2798_s22  }
  0x22   : > { %s2228_s17 = sshll.u32 (%p2917_p3), %s2810_s25, 4  ;;  %s2204_s28 = sshll.u32 (%p2917_p3), %s213_s16, 9 }
  0x23   : > { %s4041_s2 = sld [smem:[#allocation12_spill]] (%p2917_p3)  ;;  %s2957_s10 = scalar_lea.vmem (%p2917_p3), [#allocation4], %s2204_s28 }
  0x29   : > { %s2952_s29 = scalar_lea.vmem %s4041_s2, %s2228_s17 }
  0x2a   : > { %v231_v0 = vld [vmem:[%s2952_s29] sm:$0xff]  ;;  %v233_v1 = vld [vmem:[%s2952_s29 + $0x8] sm:$0xff]  ;;  %v235_v2 = vld [vmem:[%s2952_s29 + $0x30] sm:$0xff] }
  0x2b   : > { %232 = vst [vmem:[%s2957_s10] sm:$0xff] %v231_v0  ;;  %234 = vst [vmem:[%s2957_s10 + $0x8] sm:$0xff] %v233_v1  ;;  %v237_v3 = vld [vmem:[%s2952_s29 + $0x38] sm:$0xff]  ;;  %v239_v4 = vld [vmem:[%s2952_s29 + $0x60] sm:$0xff] }
  0x2c   : > { %236 = vst [vmem:[%s2957_s10 + $0x10] sm:$0xff] %v235_v2  ;;  %v241_v5 = vld [vmem:[%s2952_s29 + $0x68] sm:$0xff]  ;;  %238 = vst [vmem:[%s2957_s10 + $0x18] sm:$0xff] %v237_v3  ;;  %v243_v6 = vld [vmem:[%s2952_s29 + $0x90] sm:$0xff] }
  0x2d   : > { %240 = vst [vmem:[%s2957_s10 + $0x20] sm:$0xff] %v239_v4  ;;  %242 = vst [vmem:[%s2957_s10 + $0x28] sm:$0xff] %v241_v5  ;;  %v245_v7 = vld [vmem:[%s2952_s29 + $0x98] sm:$0xff]  ;;  %v247_v8 = vld [vmem:[%s2952_s29 + $0xc0] sm:$0xff] }
  0x2e   : > { %244 = vst [vmem:[%s2957_s10 + $0x30] sm:$0xff] %v243_v6  ;;  %246 = vst [vmem:[%s2957_s10 + $0x38] sm:$0xff] %v245_v7  ;;  %v249_v9 = vld [vmem:[%s2952_s29 + $0xc8] sm:$0xff]  ;;  %v251_v10 = vld [vmem:[%s2952_s29 + $0xf0] sm:$0xff] }
  0x2f   : > { %248 = vst [vmem:[%s2957_s10 + $0x40] sm:$0xff] %v247_v8  ;;  %v253_v11 = vld [vmem:[%s2952_s29 + $0xf8] sm:$0xff]  ;;  %250 = vst [vmem:[%s2957_s10 + $0x48] sm:$0xff] %v249_v9  ;;  %v255_v12 = vld [vmem:[%s2952_s29 + $0x120] sm:$0xff] }
  0x30   : > { %252 = vst [vmem:[%s2957_s10 + $0x50] sm:$0xff] %v251_v10  ;;  %254 = vst [vmem:[%s2957_s10 + $0x58] sm:$0xff] %v253_v11  ;;  %v257_v13 = vld [vmem:[%s2952_s29 + $0x128] sm:$0xff]  ;;  %v259_v14 = vld [vmem:[%s2952_s29 + $0x150] sm:$0xff] }
  0x31   : > { %256 = vst [vmem:[%s2957_s10 + $0x60] sm:$0xff] %v255_v12  ;;  %258 = vst [vmem:[%s2957_s10 + $0x68] sm:$0xff] %v257_v13  ;;  %v261_v15 = vld [vmem:[%s2952_s29 + $0x158] sm:$0xff]  ;;  %v263_v16 = vld [vmem:[%s2952_s29 + $0x180] sm:$0xff] }
  0x32   : > { %260 = vst [vmem:[%s2957_s10 + $0x70] sm:$0xff] %v259_v14  ;;  %v265_v17 = vld [vmem:[%s2952_s29 + $0x188] sm:$0xff]  ;;  %262 = vst [vmem:[%s2957_s10 + $0x78] sm:$0xff] %v261_v15  ;;  %v267_v18 = vld [vmem:[%s2952_s29 + $0x1b0] sm:$0xff] }
  0x33   : > { %264 = vst [vmem:[%s2957_s10 + $0x80] sm:$0xff] %v263_v16  ;;  %266 = vst [vmem:[%s2957_s10 + $0x88] sm:$0xff] %v265_v17  ;;  %v269_v19 = vld [vmem:[%s2952_s29 + $0x1b8] sm:$0xff]  ;;  %v271_v20 = vld [vmem:[%s2952_s29 + $0x1e0] sm:$0xff] }
  0x34   : > { %268 = vst [vmem:[%s2957_s10 + $0x90] sm:$0xff] %v267_v18  ;;  %270 = vst [vmem:[%s2957_s10 + $0x98] sm:$0xff] %v269_v19  ;;  %v273_v21 = vld [vmem:[%s2952_s29 + $0x1e8] sm:$0xff]  ;;  %v275_v22 = vld [vmem:[%s2952_s29 + $0x210] sm:$0xff] }
  0x35   : > { %272 = vst [vmem:[%s2957_s10 + $0xa0] sm:$0xff] %v271_v20  ;;  %v277_v23 = vld [vmem:[%s2952_s29 + $0x218] sm:$0xff]  ;;  %274 = vst [vmem:[%s2957_s10 + $0xa8] sm:$0xff] %v273_v21  ;;  %v279_v24 = vld [vmem:[%s2952_s29 + $0x240] sm:$0xff] }
  0x36   : > { %276 = vst [vmem:[%s2957_s10 + $0xb0] sm:$0xff] %v275_v22  ;;  %278 = vst [vmem:[%s2957_s10 + $0xb8] sm:$0xff] %v277_v23  ;;  %v281_v25 = vld [vmem:[%s2952_s29 + $0x248] sm:$0xff]  ;;  %v283_v26 = vld [vmem:[%s2952_s29 + $0x270] sm:$0xff] }
  0x37   : > { %280 = vst [vmem:[%s2957_s10 + $0xc0] sm:$0xff] %v279_v24  ;;  %282 = vst [vmem:[%s2957_s10 + $0xc8] sm:$0xff] %v281_v25  ;;  %v285_v27 = vld [vmem:[%s2952_s29 + $0x278] sm:$0xff]  ;;  %v287_v28 = vld [vmem:[%s2952_s29 + $0x2a0] sm:$0xff] }
  0x38   : > { %284 = vst [vmem:[%s2957_s10 + $0xd0] sm:$0xff] %v283_v26  ;;  %v289_v29 = vld [vmem:[%s2952_s29 + $0x2a8] sm:$0xff]  ;;  %286 = vst [vmem:[%s2957_s10 + $0xd8] sm:$0xff] %v285_v27  ;;  %v291_v30 = vld [vmem:[%s2952_s29 + $0x2d0] sm:$0xff] }
  0x39   : > { %288 = vst [vmem:[%s2957_s10 + $0xe0] sm:$0xff] %v287_v28  ;;  %290 = vst [vmem:[%s2957_s10 + $0xe8] sm:$0xff] %v289_v29  ;;  %v293_v31 = vld [vmem:[%s2952_s29 + $0x2d8] sm:$0xff]  ;;  %v295_v32 = vld [vmem:[%s2952_s29 + $0x300] sm:$0xff] }
  0x3a   : > { %292 = vst [vmem:[%s2957_s10 + $0xf0] sm:$0xff] %v291_v30  ;;  %294 = vst [vmem:[%s2957_s10 + $0xf8] sm:$0xff] %v293_v31  ;;  %v297_v33 = vld [vmem:[%s2952_s29 + $0x308] sm:$0xff]  ;;  %v299_v34 = vld [vmem:[%s2952_s29 + $0x330] sm:$0xff] }
  0x3b   : > { %296 = vst [vmem:[%s2957_s10 + $0x100] sm:$0xff] %v295_v32  ;;  %v301_v35 = vld [vmem:[%s2952_s29 + $0x338] sm:$0xff]  ;;  %298 = vst [vmem:[%s2957_s10 + $0x108] sm:$0xff] %v297_v33  ;;  %v303_v36 = vld [vmem:[%s2952_s29 + $0x360] sm:$0xff] }
  0x3c   : > { %300 = vst [vmem:[%s2957_s10 + $0x110] sm:$0xff] %v299_v34  ;;  %302 = vst [vmem:[%s2957_s10 + $0x118] sm:$0xff] %v301_v35  ;;  %v305_v37 = vld [vmem:[%s2952_s29 + $0x368] sm:$0xff]  ;;  %v307_v38 = vld [vmem:[%s2952_s29 + $0x390] sm:$0xff] }
  0x3d   : > { %304 = vst [vmem:[%s2957_s10 + $0x120] sm:$0xff] %v303_v36  ;;  %306 = vst [vmem:[%s2957_s10 + $0x128] sm:$0xff] %v305_v37  ;;  %v309_v39 = vld [vmem:[%s2952_s29 + $0x398] sm:$0xff]  ;;  %v311_v40 = vld [vmem:[%s2952_s29 + $0x3c0] sm:$0xff] }
  0x3e   : > { %308 = vst [vmem:[%s2957_s10 + $0x130] sm:$0xff] %v307_v38  ;;  %v313_v41 = vld [vmem:[%s2952_s29 + $0x3c8] sm:$0xff]  ;;  %310 = vst [vmem:[%s2957_s10 + $0x138] sm:$0xff] %v309_v39  ;;  %v315_v42 = vld [vmem:[%s2952_s29 + $0x3f0] sm:$0xff] }
  0x3f   : > { %312 = vst [vmem:[%s2957_s10 + $0x140] sm:$0xff] %v311_v40  ;;  %314 = vst [vmem:[%s2957_s10 + $0x148] sm:$0xff] %v313_v41  ;;  %v317_v43 = vld [vmem:[%s2952_s29 + $0x3f8] sm:$0xff]  ;;  %v319_v44 = vld [vmem:[%s2952_s29 + $0x420] sm:$0xff] }
  0x40   : > { %316 = vst [vmem:[%s2957_s10 + $0x150] sm:$0xff] %v315_v42  ;;  %318 = vst [vmem:[%s2957_s10 + $0x158] sm:$0xff] %v317_v43  ;;  %v321_v45 = vld [vmem:[%s2952_s29 + $0x428] sm:$0xff]  ;;  %v323_v46 = vld [vmem:[%s2952_s29 + $0x450] sm:$0xff] }
  0x41   : > { %320 = vst [vmem:[%s2957_s10 + $0x160] sm:$0xff] %v319_v44  ;;  %v325_v47 = vld [vmem:[%s2952_s29 + $0x458] sm:$0xff]  ;;  %322 = vst [vmem:[%s2957_s10 + $0x168] sm:$0xff] %v321_v45  ;;  %v327_v48 = vld [vmem:[%s2952_s29 + $0x480] sm:$0xff] }
  0x42   : > { %324 = vst [vmem:[%s2957_s10 + $0x170] sm:$0xff] %v323_v46  ;;  %326 = vst [vmem:[%s2957_s10 + $0x178] sm:$0xff] %v325_v47  ;;  %v329_v49 = vld [vmem:[%s2952_s29 + $0x488] sm:$0xff]  ;;  %v331_v50 = vld [vmem:[%s2952_s29 + $0x4b0] sm:$0xff] }
  0x43   : > { %328 = vst [vmem:[%s2957_s10 + $0x180] sm:$0xff] %v327_v48  ;;  %330 = vst [vmem:[%s2957_s10 + $0x188] sm:$0xff] %v329_v49  ;;  %v333_v51 = vld [vmem:[%s2952_s29 + $0x4b8] sm:$0xff]  ;;  %v335_v52 = vld [vmem:[%s2952_s29 + $0x4e0] sm:$0xff] }
  0x44   : > { %332 = vst [vmem:[%s2957_s10 + $0x190] sm:$0xff] %v331_v50  ;;  %v337_v53 = vld [vmem:[%s2952_s29 + $0x4e8] sm:$0xff]  ;;  %334 = vst [vmem:[%s2957_s10 + $0x198] sm:$0xff] %v333_v51  ;;  %v339_v54 = vld [vmem:[%s2952_s29 + $0x510] sm:$0xff] }
  0x45   : > { %336 = vst [vmem:[%s2957_s10 + $0x1a0] sm:$0xff] %v335_v52  ;;  %338 = vst [vmem:[%s2957_s10 + $0x1a8] sm:$0xff] %v337_v53  ;;  %v341_v55 = vld [vmem:[%s2952_s29 + $0x518] sm:$0xff]  ;;  %v343_v56 = vld [vmem:[%s2952_s29 + $0x540] sm:$0xff] }
  0x46   : > { %340 = vst [vmem:[%s2957_s10 + $0x1b0] sm:$0xff] %v339_v54  ;;  %342 = vst [vmem:[%s2957_s10 + $0x1b8] sm:$0xff] %v341_v55  ;;  %v345_v57 = vld [vmem:[%s2952_s29 + $0x548] sm:$0xff]  ;;  %v347_v58 = vld [vmem:[%s2952_s29 + $0x570] sm:$0xff] }
  0x47   : > { %344 = vst [vmem:[%s2957_s10 + $0x1c0] sm:$0xff] %v343_v56  ;;  %v349_v59 = vld [vmem:[%s2952_s29 + $0x578] sm:$0xff]  ;;  %346 = vst [vmem:[%s2957_s10 + $0x1c8] sm:$0xff] %v345_v57  ;;  %v351_v60 = vld [vmem:[%s2952_s29 + $0x5a0] sm:$0xff] }
  0x48   : > { %348 = vst [vmem:[%s2957_s10 + $0x1d0] sm:$0xff] %v347_v58  ;;  %350 = vst [vmem:[%s2957_s10 + $0x1d8] sm:$0xff] %v349_v59  ;;  %v353_v61 = vld [vmem:[%s2952_s29 + $0x5a8] sm:$0xff]  ;;  %v355_v62 = vld [vmem:[%s2952_s29 + $0x5d0] sm:$0xff] }
  0x49   : > { %352 = vst [vmem:[%s2957_s10 + $0x1e0] sm:$0xff] %v351_v60  ;;  %354 = vst [vmem:[%s2957_s10 + $0x1e8] sm:$0xff] %v353_v61  ;;  %v357_v63 = vld [vmem:[%s2952_s29 + $0x5d8] sm:$0xff] }
  0x4a   : > { %356 = vst [vmem:[%s2957_s10 + $0x1f0] sm:$0xff] %v355_v62  ;;  %358 = vst [vmem:[%s2957_s10 + $0x1f8] sm:$0xff] %v357_v63 }
  0x4b PF: > { %364 = sbr.rel (!%p2917_p3) target bundleno = 117 (0x75), region = 51  ;;  %s366_s12 = sand.u32 (%p2917_p3), 1, %s2798_s22  }
  0x4c   : > { %s2229_s16 = sshll.u32 (%p2917_p3), %s2810_s25, 4  ;;  %s2207_s17 = sshll.u32 (%p2917_p3), %s366_s12, 9 }
  0x4d   : > { %s4042_s3 = sld [smem:[#allocation13_spill]] (%p2917_p3)  ;;  %s3096_s9 = scalar_lea.vmem (%p2917_p3), [#allocation5], %s2207_s17 }
  0x53   : > { %s3091_s8 = scalar_lea.vmem %s4042_s3, %s2229_s16 }
  0x54   : > { %v384_v0 = vld [vmem:[%s3091_s8] sm:$0xff]  ;;  %v386_v1 = vld [vmem:[%s3091_s8 + $0x8] sm:$0xff]  ;;  %v388_v2 = vld [vmem:[%s3091_s8 + $0x30] sm:$0xff] }
  0x55   : > { %385 = vst [vmem:[%s3096_s9] sm:$0xff] %v384_v0  ;;  %387 = vst [vmem:[%s3096_s9 + $0x8] sm:$0xff] %v386_v1  ;;  %v390_v3 = vld [vmem:[%s3091_s8 + $0x38] sm:$0xff]  ;;  %v392_v4 = vld [vmem:[%s3091_s8 + $0x60] sm:$0xff] }
  0x56   : > { %389 = vst [vmem:[%s3096_s9 + $0x10] sm:$0xff] %v388_v2  ;;  %v394_v5 = vld [vmem:[%s3091_s8 + $0x68] sm:$0xff]  ;;  %391 = vst [vmem:[%s3096_s9 + $0x18] sm:$0xff] %v390_v3  ;;  %v396_v6 = vld [vmem:[%s3091_s8 + $0x90] sm:$0xff] }
  0x57   : > { %393 = vst [vmem:[%s3096_s9 + $0x20] sm:$0xff] %v392_v4  ;;  %395 = vst [vmem:[%s3096_s9 + $0x28] sm:$0xff] %v394_v5  ;;  %v398_v7 = vld [vmem:[%s3091_s8 + $0x98] sm:$0xff]  ;;  %v400_v8 = vld [vmem:[%s3091_s8 + $0xc0] sm:$0xff] }
  0x58   : > { %397 = vst [vmem:[%s3096_s9 + $0x30] sm:$0xff] %v396_v6  ;;  %399 = vst [vmem:[%s3096_s9 + $0x38] sm:$0xff] %v398_v7  ;;  %v402_v9 = vld [vmem:[%s3091_s8 + $0xc8] sm:$0xff]  ;;  %v404_v10 = vld [vmem:[%s3091_s8 + $0xf0] sm:$0xff] }
  0x59   : > { %401 = vst [vmem:[%s3096_s9 + $0x40] sm:$0xff] %v400_v8  ;;  %v406_v11 = vld [vmem:[%s3091_s8 + $0xf8] sm:$0xff]  ;;  %403 = vst [vmem:[%s3096_s9 + $0x48] sm:$0xff] %v402_v9  ;;  %v408_v12 = vld [vmem:[%s3091_s8 + $0x120] sm:$0xff] }
  0x5a   : > { %405 = vst [vmem:[%s3096_s9 + $0x50] sm:$0xff] %v404_v10  ;;  %407 = vst [vmem:[%s3096_s9 + $0x58] sm:$0xff] %v406_v11  ;;  %v410_v13 = vld [vmem:[%s3091_s8 + $0x128] sm:$0xff]  ;;  %v412_v14 = vld [vmem:[%s3091_s8 + $0x150] sm:$0xff] }
  0x5b   : > { %409 = vst [vmem:[%s3096_s9 + $0x60] sm:$0xff] %v408_v12  ;;  %411 = vst [vmem:[%s3096_s9 + $0x68] sm:$0xff] %v410_v13  ;;  %v414_v15 = vld [vmem:[%s3091_s8 + $0x158] sm:$0xff]  ;;  %v416_v16 = vld [vmem:[%s3091_s8 + $0x180] sm:$0xff] }
  0x5c   : > { %413 = vst [vmem:[%s3096_s9 + $0x70] sm:$0xff] %v412_v14  ;;  %v418_v17 = vld [vmem:[%s3091_s8 + $0x188] sm:$0xff]  ;;  %415 = vst [vmem:[%s3096_s9 + $0x78] sm:$0xff] %v414_v15  ;;  %v420_v18 = vld [vmem:[%s3091_s8 + $0x1b0] sm:$0xff] }
  0x5d   : > { %417 = vst [vmem:[%s3096_s9 + $0x80] sm:$0xff] %v416_v16  ;;  %419 = vst [vmem:[%s3096_s9 + $0x88] sm:$0xff] %v418_v17  ;;  %v422_v19 = vld [vmem:[%s3091_s8 + $0x1b8] sm:$0xff]  ;;  %v424_v20 = vld [vmem:[%s3091_s8 + $0x1e0] sm:$0xff] }
  0x5e   : > { %421 = vst [vmem:[%s3096_s9 + $0x90] sm:$0xff] %v420_v18  ;;  %423 = vst [vmem:[%s3096_s9 + $0x98] sm:$0xff] %v422_v19  ;;  %v426_v21 = vld [vmem:[%s3091_s8 + $0x1e8] sm:$0xff]  ;;  %v428_v22 = vld [vmem:[%s3091_s8 + $0x210] sm:$0xff] }
  0x5f   : > { %425 = vst [vmem:[%s3096_s9 + $0xa0] sm:$0xff] %v424_v20  ;;  %v430_v23 = vld [vmem:[%s3091_s8 + $0x218] sm:$0xff]  ;;  %427 = vst [vmem:[%s3096_s9 + $0xa8] sm:$0xff] %v426_v21  ;;  %v432_v24 = vld [vmem:[%s3091_s8 + $0x240] sm:$0xff] }
  0x60   : > { %429 = vst [vmem:[%s3096_s9 + $0xb0] sm:$0xff] %v428_v22  ;;  %431 = vst [vmem:[%s3096_s9 + $0xb8] sm:$0xff] %v430_v23  ;;  %v434_v25 = vld [vmem:[%s3091_s8 + $0x248] sm:$0xff]  ;;  %v436_v26 = vld [vmem:[%s3091_s8 + $0x270] sm:$0xff] }
  0x61   : > { %433 = vst [vmem:[%s3096_s9 + $0xc0] sm:$0xff] %v432_v24  ;;  %435 = vst [vmem:[%s3096_s9 + $0xc8] sm:$0xff] %v434_v25  ;;  %v438_v27 = vld [vmem:[%s3091_s8 + $0x278] sm:$0xff]  ;;  %v440_v28 = vld [vmem:[%s3091_s8 + $0x2a0] sm:$0xff] }
  0x62   : > { %437 = vst [vmem:[%s3096_s9 + $0xd0] sm:$0xff] %v436_v26  ;;  %v442_v29 = vld [vmem:[%s3091_s8 + $0x2a8] sm:$0xff]  ;;  %439 = vst [vmem:[%s3096_s9 + $0xd8] sm:$0xff] %v438_v27  ;;  %v444_v30 = vld [vmem:[%s3091_s8 + $0x2d0] sm:$0xff] }
  0x63   : > { %441 = vst [vmem:[%s3096_s9 + $0xe0] sm:$0xff] %v440_v28  ;;  %443 = vst [vmem:[%s3096_s9 + $0xe8] sm:$0xff] %v442_v29  ;;  %v446_v31 = vld [vmem:[%s3091_s8 + $0x2d8] sm:$0xff]  ;;  %v448_v32 = vld [vmem:[%s3091_s8 + $0x300] sm:$0xff] }
  0x64   : > { %445 = vst [vmem:[%s3096_s9 + $0xf0] sm:$0xff] %v444_v30  ;;  %447 = vst [vmem:[%s3096_s9 + $0xf8] sm:$0xff] %v446_v31  ;;  %v450_v33 = vld [vmem:[%s3091_s8 + $0x308] sm:$0xff]  ;;  %v452_v34 = vld [vmem:[%s3091_s8 + $0x330] sm:$0xff] }
  0x65   : > { %449 = vst [vmem:[%s3096_s9 + $0x100] sm:$0xff] %v448_v32  ;;  %v454_v35 = vld [vmem:[%s3091_s8 + $0x338] sm:$0xff]  ;;  %451 = vst [vmem:[%s3096_s9 + $0x108] sm:$0xff] %v450_v33  ;;  %v456_v36 = vld [vmem:[%s3091_s8 + $0x360] sm:$0xff] }
  0x66   : > { %453 = vst [vmem:[%s3096_s9 + $0x110] sm:$0xff] %v452_v34  ;;  %455 = vst [vmem:[%s3096_s9 + $0x118] sm:$0xff] %v454_v35  ;;  %v458_v37 = vld [vmem:[%s3091_s8 + $0x368] sm:$0xff]  ;;  %v460_v38 = vld [vmem:[%s3091_s8 + $0x390] sm:$0xff] }
  0x67   : > { %457 = vst [vmem:[%s3096_s9 + $0x120] sm:$0xff] %v456_v36  ;;  %459 = vst [vmem:[%s3096_s9 + $0x128] sm:$0xff] %v458_v37  ;;  %v462_v39 = vld [vmem:[%s3091_s8 + $0x398] sm:$0xff]  ;;  %v464_v40 = vld [vmem:[%s3091_s8 + $0x3c0] sm:$0xff] }
  0x68   : > { %461 = vst [vmem:[%s3096_s9 + $0x130] sm:$0xff] %v460_v38  ;;  %v466_v41 = vld [vmem:[%s3091_s8 + $0x3c8] sm:$0xff]  ;;  %463 = vst [vmem:[%s3096_s9 + $0x138] sm:$0xff] %v462_v39  ;;  %v468_v42 = vld [vmem:[%s3091_s8 + $0x3f0] sm:$0xff] }
  0x69   : > { %465 = vst [vmem:[%s3096_s9 + $0x140] sm:$0xff] %v464_v40  ;;  %467 = vst [vmem:[%s3096_s9 + $0x148] sm:$0xff] %v466_v41  ;;  %v470_v43 = vld [vmem:[%s3091_s8 + $0x3f8] sm:$0xff]  ;;  %v472_v44 = vld [vmem:[%s3091_s8 + $0x420] sm:$0xff] }
  0x6a   : > { %469 = vst [vmem:[%s3096_s9 + $0x150] sm:$0xff] %v468_v42  ;;  %471 = vst [vmem:[%s3096_s9 + $0x158] sm:$0xff] %v470_v43  ;;  %v474_v45 = vld [vmem:[%s3091_s8 + $0x428] sm:$0xff]  ;;  %v476_v46 = vld [vmem:[%s3091_s8 + $0x450] sm:$0xff] }
  0x6b   : > { %473 = vst [vmem:[%s3096_s9 + $0x160] sm:$0xff] %v472_v44  ;;  %v478_v47 = vld [vmem:[%s3091_s8 + $0x458] sm:$0xff]  ;;  %475 = vst [vmem:[%s3096_s9 + $0x168] sm:$0xff] %v474_v45  ;;  %v480_v48 = vld [vmem:[%s3091_s8 + $0x480] sm:$0xff] }
  0x6c   : > { %477 = vst [vmem:[%s3096_s9 + $0x170] sm:$0xff] %v476_v46  ;;  %479 = vst [vmem:[%s3096_s9 + $0x178] sm:$0xff] %v478_v47  ;;  %v482_v49 = vld [vmem:[%s3091_s8 + $0x488] sm:$0xff]  ;;  %v484_v50 = vld [vmem:[%s3091_s8 + $0x4b0] sm:$0xff] }
  0x6d   : > { %481 = vst [vmem:[%s3096_s9 + $0x180] sm:$0xff] %v480_v48  ;;  %483 = vst [vmem:[%s3096_s9 + $0x188] sm:$0xff] %v482_v49  ;;  %v486_v51 = vld [vmem:[%s3091_s8 + $0x4b8] sm:$0xff]  ;;  %v488_v52 = vld [vmem:[%s3091_s8 + $0x4e0] sm:$0xff] }
  0x6e   : > { %485 = vst [vmem:[%s3096_s9 + $0x190] sm:$0xff] %v484_v50  ;;  %v490_v53 = vld [vmem:[%s3091_s8 + $0x4e8] sm:$0xff]  ;;  %487 = vst [vmem:[%s3096_s9 + $0x198] sm:$0xff] %v486_v51  ;;  %v492_v54 = vld [vmem:[%s3091_s8 + $0x510] sm:$0xff] }
  0x6f   : > { %489 = vst [vmem:[%s3096_s9 + $0x1a0] sm:$0xff] %v488_v52  ;;  %491 = vst [vmem:[%s3096_s9 + $0x1a8] sm:$0xff] %v490_v53  ;;  %v494_v55 = vld [vmem:[%s3091_s8 + $0x518] sm:$0xff]  ;;  %v496_v56 = vld [vmem:[%s3091_s8 + $0x540] sm:$0xff] }
  0x70   : > { %493 = vst [vmem:[%s3096_s9 + $0x1b0] sm:$0xff] %v492_v54  ;;  %495 = vst [vmem:[%s3096_s9 + $0x1b8] sm:$0xff] %v494_v55  ;;  %v498_v57 = vld [vmem:[%s3091_s8 + $0x548] sm:$0xff]  ;;  %v500_v58 = vld [vmem:[%s3091_s8 + $0x570] sm:$0xff] }
  0x71   : > { %497 = vst [vmem:[%s3096_s9 + $0x1c0] sm:$0xff] %v496_v56  ;;  %v502_v59 = vld [vmem:[%s3091_s8 + $0x578] sm:$0xff]  ;;  %499 = vst [vmem:[%s3096_s9 + $0x1c8] sm:$0xff] %v498_v57  ;;  %v504_v60 = vld [vmem:[%s3091_s8 + $0x5a0] sm:$0xff] }
  0x72   : > { %501 = vst [vmem:[%s3096_s9 + $0x1d0] sm:$0xff] %v500_v58  ;;  %503 = vst [vmem:[%s3096_s9 + $0x1d8] sm:$0xff] %v502_v59  ;;  %v506_v61 = vld [vmem:[%s3091_s8 + $0x5a8] sm:$0xff]  ;;  %v508_v62 = vld [vmem:[%s3091_s8 + $0x5d0] sm:$0xff] }
  0x73   : > { %505 = vst [vmem:[%s3096_s9 + $0x1e0] sm:$0xff] %v504_v60  ;;  %507 = vst [vmem:[%s3096_s9 + $0x1e8] sm:$0xff] %v506_v61  ;;  %v510_v63 = vld [vmem:[%s3091_s8 + $0x5d8] sm:$0xff] }
  0x74   : > { %509 = vst [vmem:[%s3096_s9 + $0x1f0] sm:$0xff] %v508_v62  ;;  %511 = vst [vmem:[%s3096_s9 + $0x1f8] sm:$0xff] %v510_v63 }
  0x75 PF: > { %p2210_p0 = scmp.ge.s32.totalorder %s2818_s27, 1  ;;  %p526_p1 = scmp.lt.s32.totalorder %s2818_s27, 13 }
  0x77   : > { %p527_p2 = pnand %p2210_p0, %p526_p1 }
  0x78   : > { %s533_s29 = sand.u32 (!%p527_p2), 1, %s2794_s21   ;;  %s4031_s10 = sand.u32 (!%p527_p2), 1, %s2786_s19  }
  0x79   : > { %530 = sbr.rel (%p527_p2) target bundleno = 955 (0x3bb), region = 78  ;;  %s2211_s12 = sshll.u32 (!%p527_p2), %s533_s29, 9 }
  0x7a   : > { %s2213_s16 = sshll.u32 (!%p527_p2), %s4031_s10, 8  ;;  %s2214_s17 = sshll.u32 (!%p527_p2), %s2806_s24, 4 }
  0x7b   : > { %p584_p3 = scmp.lt.s32.totalorder (!%p527_p2), %s2214_s17, 63  ;;  %s2217_s28 = sshll.u32 (!%p527_p2), %s2802_s23, 5 }
  0x7c   : > { %p593_p4 = scmp.lt.s32.totalorder (!%p527_p2), %s2217_s28, 95  ;;  %s3241_s29 = scalar_lea.vmem (!%p527_p2), [#allocation4], %s2211_s12 }
  0x7d   : > { %s3243_s10 = scalar_lea.vmem (!%p527_p2), [#allocation5], %s2211_s12  ;;  %s3245_s26 = scalar_lea.vmem (!%p527_p2), [#allocation6], %s2213_s16 }
  0x7e   : > { %p2220_p5 = scmp.ne.s32.totalorder (!%p527_p2), %s2802_s23, 0 }
  0x80   : > { %s4061_s17 = smov (!%p584_p3, %s2214_s17), 63  ;;  %s4063_s28 = smov (!%p593_p4, %s2217_s28), 95 }
  0x81   : > { %s2230_s7 = sshll.u32 %s4061_s17, 4  ;;  %s2231_s3 = sshll.u32 %s4063_s28, 4 }
  0x82   : > { %s3234_s2 = scalar_lea.vmem %s4023_s0, %s2230_s7  ;;  %s3239_s21 = scalar_lea.vmem %s4027_s4, %s2231_s3 }
  0x83   : > { %603 = sbr.rel (%p2220_p5) target bundleno = 327 (0x147), region = 90  ;;  %v3249_v0 = vld [vmem:[%s3234_s2 + $0x20] sm:$0xff] (!%p2220_p5)  ;;  %v3252_v1 = vld [vmem:[%s3234_s2 + $0x28] sm:$0xff] (!%p2220_p5)  ;;  %v3267_v7 = vld [vmem:[%s3234_s2 + $0x30] sm:$0xff] (!%p2220_p5) }
  0x84   : > { %v3255_v2 = vld [vmem:[%s3234_s2] sm:$0xff] (!%p2220_p5)  ;;  %v640_v3 = vmul.f32 (!%p2220_p5), %v3249_v0, %v3249_v0  ;;  %v641_v4 = vmul.f32 (!%p2220_p5), %v3252_v1, %v3252_v1  ;;  %v3262_v5 = vld [vmem:[%s3234_s2 + $0x8] sm:$0xff] (!%p2220_p5)  ;;  %v3270_v8 = vld [vmem:[%s3234_s2 + $0x38] sm:$0xff] (!%p2220_p5)  ;;  %v642_v10 = vmul.f32 (!%p2220_p5), %v3267_v7, %v3267_v7 }
  0x85   : > { %v636_v6 = vmul.f32 (!%p2220_p5), %v3255_v2, %v3255_v2  ;;  %v637_v9 = vmul.f32 (!%p2220_p5), %v3262_v5, %v3262_v5  ;;  %v643_v11 = vmul.f32 (!%p2220_p5), %v3270_v8, %v3270_v8  ;;  %v3279_v12 = vld [vmem:[%s3234_s2 + $0x10] sm:$0xff] (!%p2220_p5)  ;;  %v3282_v13 = vld [vmem:[%s3234_s2 + $0x18] sm:$0xff] (!%p2220_p5)  ;;  %v3295_v19 = vld [vmem:[%s3234_s2 + $0x40] sm:$0xff] (!%p2220_p5) }
  0x86   : > { %v3285_v14 = vld [vmem:[%s3234_s2 + $0x50] sm:$0xff] (!%p2220_p5)  ;;  %v674_v15 = vadd.f32 (!%p2220_p5), %v641_v4, %v640_v3  ;;  %v638_v16 = vmul.f32 (!%p2220_p5), %v3279_v12, %v3279_v12  ;;  %v639_v17 = vmul.f32 (!%p2220_p5), %v3282_v13, %v3282_v13  ;;  %v3292_v18 = vld [vmem:[%s3234_s2 + $0x58] sm:$0xff] (!%p2220_p5)  ;;  %v3298_v20 = vld [vmem:[%s3234_s2 + $0x48] sm:$0xff] (!%p2220_p5)  ;;  %v644_v26 = vmul.f32 (!%p2220_p5), %v3295_v19, %v3295_v19 }
  0x87   : > { %v668_v21 = vadd.f32 (!%p2220_p5), %v637_v9, %v636_v6  ;;  %v677_v22 = vadd.f32 (!%p2220_p5), %v643_v11, %v642_v10  ;;  %v646_v23 = vmul.f32 (!%p2220_p5), %v3285_v14, %v3285_v14  ;;  %v647_v24 = vmul.f32 (!%p2220_p5), %v3292_v18, %v3292_v18  ;;  %v3309_v28 = vld [vmem:[%s3234_s2 + $0x70] sm:$0xff] (!%p2220_p5)  ;;  %v3312_v29 = vld [vmem:[%s3234_s2 + $0x78] sm:$0xff] (!%p2220_p5)  ;;  %v3315_v30 = vld [vmem:[%s3234_s2 + $0x60] sm:$0xff] (!%p2220_p5) }
  0x88   : > { %675 = vadd.xlane.f32.xlu1 (!%p2220_p5), %v674_v15  ;;  %v671_v25 = vadd.f32 (!%p2220_p5), %v639_v17, %v638_v16  ;;  %v645_v27 = vmul.f32 (!%p2220_p5), %v3298_v20, %v3298_v20  ;;  %v3318_v31 = vld [vmem:[%s3234_s2 + $0x68] sm:$0xff] (!%p2220_p5)  ;;  %v650_v33 = vmul.f32 (!%p2220_p5), %v3309_v28, %v3309_v28  ;;  %v651_v34 = vmul.f32 (!%p2220_p5), %v3312_v29, %v3312_v29  ;;  %v3329_v38 = vld [vmem:[%s3234_s2 + $0x90] sm:$0xff] (!%p2220_p5)  ;;  %v3332_v39 = vld [vmem:[%s3234_s2 + $0x98] sm:$0xff] (!%p2220_p5) }
  0x89   : > { %669 = vadd.xlane.f32.xlu0 (!%p2220_p5), %v668_v21  ;;  %v683_v32 = vadd.f32 (!%p2220_p5), %v647_v24, %v646_v23  ;;  %v648_v36 = vmul.f32 (!%p2220_p5), %v3315_v30, %v3315_v30  ;;  %v649_v37 = vmul.f32 (!%p2220_p5), %v3318_v31, %v3318_v31  ;;  %v3335_v40 = vld [vmem:[%s3234_s2 + $0x80] sm:$0xff] (!%p2220_p5)  ;;  %v3338_v41 = vld [vmem:[%s3234_s2 + $0x88] sm:$0xff] (!%p2220_p5)  ;;  %v654_v43 = vmul.f32 (!%p2220_p5), %v3329_v38, %v3329_v38  ;;  %v3349_v48 = vld [vmem:[%s3234_s2 + $0xb0] sm:$0xff] (!%p2220_p5) }
  0x8a   : > { %v680_v35 = vadd.f32 %v645_v27, %v644_v26  ;;  %v689_v42 = vadd.f32 %v651_v34, %v650_v33  ;;  %v655_v44 = vmul.f32 %v3332_v39, %v3332_v39  ;;  %v652_v46 = vmul.f32 %v3335_v40, %v3335_v40  ;;  %v3352_v49 = vld [vmem:[%s3234_s2 + $0xb8] sm:$0xff]  ;;  %v3355_v50 = vld [vmem:[%s3234_s2 + $0xa0] sm:$0xff]  ;;  %v3358_v51 = vld [vmem:[%s3234_s2 + $0xa8] sm:$0xff] }
  0x8b   : > { %v686_v45 = vadd.f32 %v649_v37, %v648_v36  ;;  %v653_v47 = vmul.f32 %v3338_v41, %v3338_v41  ;;  %v658_v53 = vmul.f32 %v3349_v48, %v3349_v48  ;;  %v659_v54 = vmul.f32 %v3352_v49, %v3352_v49  ;;  %v3369_v58 = vld [vmem:[%s3234_s2 + $0xd0] sm:$0xff]  ;;  %v3372_v59 = vld [vmem:[%s3234_s2 + $0xd8] sm:$0xff]  ;;  %v3375_v60 = vld [vmem:[%s3234_s2 + $0xc0] sm:$0xff] }
  0x8c   : > { %678 = vadd.xlane.f32.xlu1 %v677_v22  ;;  %v695_v52 = vadd.f32 %v655_v44, %v654_v43  ;;  %v656_v56 = vmul.f32 %v3355_v50, %v3355_v50  ;;  %v657_v57 = vmul.f32 %v3358_v51, %v3358_v51  ;;  %v3378_v61 = vld [vmem:[%s3234_s2 + $0xc8] sm:$0xff]  ;;  %v662_v63 = vmul.f32 %v3369_v58, %v3369_v58  ;;  %v3389_v10 = vld [vmem:[%s3234_s2 + $0xf0] sm:$0xff]  ;;  %v3392_v11 = vld [vmem:[%s3234_s2 + $0xf8] sm:$0xff] }
  0x8d   : > { %672 = vadd.xlane.f32.xlu0 %v671_v25  ;;  %v692_v55 = vadd.f32 %v653_v47, %v652_v46  ;;  %v701_v62 = vadd.f32 %v659_v54, %v658_v53  ;;  %v663_v3 = vmul.f32 %v3372_v59, %v3372_v59  ;;  %v660_v6 = vmul.f32 %v3375_v60, %v3375_v60  ;;  %v3395_v15 = vld [vmem:[%s3234_s2 + $0xe0] sm:$0xff]  ;;  %v3398_v16 = vld [vmem:[%s3234_s2 + $0xe8] sm:$0xff] }
  0x8e   : > { %v698_v4 = vadd.f32 %v657_v57, %v656_v56  ;;  %v661_v9 = vmul.f32 %v3378_v61, %v3378_v61  ;;  %v666_v21 = vmul.f32 %v3389_v10, %v3389_v10  ;;  %v667_v22 = vmul.f32 %v3392_v11, %v3392_v11 }
  0x8f   : > { %v707_v17 = vadd.f32 %v663_v3, %v662_v63  ;;  %v664_v24 = vmul.f32 %v3395_v15, %v3395_v15  ;;  %v665_v25 = vmul.f32 %v3398_v16, %v3398_v16  ;;  %v799_v36 = vlaneseq }
  0x90   : > { %684 = vadd.xlane.f32.xlu1 %v683_v32  ;;  %v704_v23 = vadd.f32 %v661_v9, %v660_v6  ;;  %v713_v26 = vadd.f32 %v667_v22, %v666_v21  ;;  %v2820_v32 = vmov 0.0  }
  0x91   : > { %681 = vadd.xlane.f32.xlu0 %v680_v35  ;;  %v710_v27 = vadd.f32 %v665_v25, %v664_v24  ;;  %873 = vst [vmem:[#allocation3] sm:$0xff] %v2820_v32  ;;  %874 = vst [vmem:[#allocation3 + $0x8] sm:$0xff] %v2820_v32  ;;  %v800_v47 = vshrl.u32 %v799_v36, 7 }
  0x92   : > { %875 = vst [vmem:[#allocation3 + $0x10] sm:$0xff] %v2820_v32  ;;  %876 = vst [vmem:[#allocation3 + $0x18] sm:$0xff] %v2820_v32 }
  0x93   : > { %877 = vst [vmem:[#allocation3 + $0x20] sm:$0xff] %v2820_v32  ;;  %878 = vst [vmem:[#allocation3 + $0x28] sm:$0xff] %v2820_v32  ;;  %v805_v63 = vsub.s32 1, %v800_v47 }
  0x94   : > { %690 = vadd.xlane.f32.xlu1 %v689_v42  ;;  %879 = vst [vmem:[#allocation3 + $0x30] sm:$0xff] %v2820_v32  ;;  %880 = vst [vmem:[#allocation3 + $0x38] sm:$0xff] %v2820_v32 }
  0x95   : > { %687 = vadd.xlane.f32.xlu0 %v686_v45  ;;  %881 = vst [vmem:[#allocation3 + $0x40] sm:$0xff] %v2820_v32  ;;  %882 = vst [vmem:[#allocation3 + $0x48] sm:$0xff] %v2820_v32 }
  0x96   : > { %883 = vst [vmem:[#allocation3 + $0x50] sm:$0xff] %v2820_v32  ;;  %884 = vst [vmem:[#allocation3 + $0x58] sm:$0xff] %v2820_v32 }
  0x97   : > { %885 = vst [vmem:[#allocation3 + $0x60] sm:$0xff] %v2820_v32  ;;  %886 = vst [vmem:[#allocation3 + $0x68] sm:$0xff] %v2820_v32 }
  0x98   : > { %696 = vadd.xlane.f32.xlu1 %v695_v52  ;;  %887 = vst [vmem:[#allocation3 + $0x70] sm:$0xff] %v2820_v32  ;;  %888 = vst [vmem:[#allocation3 + $0x78] sm:$0xff] %v2820_v32 }
  0x99   : > { %693 = vadd.xlane.f32.xlu0 %v692_v55  ;;  %889 = vst [vmem:[#allocation3 + $0x80] sm:$0xff] %v2820_v32  ;;  %890 = vst [vmem:[#allocation3 + $0x88] sm:$0xff] %v2820_v32 }
  0x9a   : > { %891 = vst [vmem:[#allocation3 + $0x90] sm:$0xff] %v2820_v32  ;;  %892 = vst [vmem:[#allocation3 + $0x98] sm:$0xff] %v2820_v32 }
  0x9b   : > { %893 = vst [vmem:[#allocation3 + $0xa0] sm:$0xff] %v2820_v32  ;;  %894 = vst [vmem:[#allocation3 + $0xa8] sm:$0xff] %v2820_v32 }
  0x9c   : > { %702 = vadd.xlane.f32.xlu1 %v701_v62  ;;  %895 = vst [vmem:[#allocation3 + $0xb0] sm:$0xff] %v2820_v32  ;;  %896 = vst [vmem:[#allocation3 + $0xb8] sm:$0xff] %v2820_v32  ;;  %v801_v62 = vsub.s32 0, %v800_v47 }
  0x9d   : > { %699 = vadd.xlane.f32.xlu0 %v698_v4  ;;  %897 = vst [vmem:[#allocation3 + $0xc0] sm:$0xff] %v2820_v32  ;;  %898 = vst [vmem:[#allocation3 + $0xc8] sm:$0xff] %v2820_v32  ;;  %v797_v4 = vld [vmem:[%s4024_s1] sm:$0x3] }
  0x9e   : > { %899 = vst [vmem:[#allocation3 + $0xd0] sm:$0xff] %v2820_v32  ;;  %900 = vst [vmem:[#allocation3 + $0xd8] sm:$0xff] %v2820_v32  ;;  %v3413_v24 = vrot.slane %v797_v4, %v805_v63 }
  0x9f   : > { %901 = vst [vmem:[#allocation3 + $0xe0] sm:$0xff] %v2820_v32  ;;  %902 = vst [vmem:[#allocation3 + $0xe8] sm:$0xff] %v2820_v32 }
  0xa0   : > { %708 = vadd.xlane.f32.xlu1 %v707_v17  ;;  %903 = vst [vmem:[#allocation3 + $0xf0] sm:$0xff] %v2820_v32  ;;  %904 = vst [vmem:[#allocation3 + $0xf8] sm:$0xff] %v2820_v32 }
  0xa1   : > { %705 = vadd.xlane.f32.xlu0 %v704_v23  ;;  %v3411_v23 = vrot.slane %v797_v4, %v801_v62 }
  0xa4   : > { %714 = vadd.xlane.f32.xlu1 %v713_v26 }
  0xa5   : > { %711 = vadd.xlane.f32.xlu0 %v710_v27 }
 0x115   : > { %v676_v33 = vpop.xlane.xlu1 %675 }
 0x116   : > { %v719_v34 = vmul.f32 0.00390625, %v676_v33  ;;  %v670_v35 = vpop.xlane.xlu0 %669 }
 0x117   : > { %v717_v37 = vmul.f32 0.00390625, %v670_v35 }
 0x118   : > { %v735_v42 = vadd.f32 1e-05, %v719_v34 }
 0x119   : > { %v733_v43 = vadd.f32 1e-05, %v717_v37  ;;  %v679_v44 = vpop.xlane.xlu1 %678 }
 0x11a   : > { %2548 = vrsqrt.f32 %v735_v42  ;;  %v720_v45 = vmul.f32 0.00390625, %v679_v44  ;;  %v673_v46 = vpop.xlane.xlu0 %672 }
 0x11b   : > { %2550 = vrsqrt.f32 %v733_v43  ;;  %v718_v52 = vmul.f32 0.00390625, %v673_v46 }
 0x11c   : > { %v736_v53 = vadd.f32 1e-05, %v720_v45 }
 0x11d   : > { %v734_v54 = vadd.f32 1e-05, %v718_v52  ;;  %v685_v55 = vpop.xlane.xlu1 %684 }
 0x11e   : > { %2552 = vrsqrt.f32 %v736_v53  ;;  %v722_v56 = vmul.f32 0.00390625, %v685_v55  ;;  %v682_v57 = vpop.xlane.xlu0 %681 }
 0x11f   : > { %2554 = vrsqrt.f32 %v734_v54  ;;  %v721_v3 = vmul.f32 0.00390625, %v682_v57 }
 0x120   : > { %v738_v6 = vadd.f32 1e-05, %v722_v56 }
 0x121   : > { %v737_v9 = vadd.f32 1e-05, %v721_v3  ;;  %v691_v17 = vpop.xlane.xlu1 %690 }
 0x122   : > { %2556 = vrsqrt.f32 %v738_v6  ;;  %v724_v21 = vmul.f32 0.00390625, %v691_v17  ;;  %v688_v22 = vpop.xlane.xlu0 %687 }
 0x123   : > { %2558 = vrsqrt.f32 %v737_v9  ;;  %v723_v25 = vmul.f32 0.00390625, %v688_v22 }
 0x124   : > { %v2549_v26 = vpop.eup %2548  ;;  %v740_v27 = vadd.f32 1e-05, %v724_v21 }
 0x125   : > { %v2551_v32 = vpop.eup %2550  ;;  %v769_v33 = vmul.f32 %v2549_v26, %v3249_v0  ;;  %v770_v34 = vmul.f32 %v2549_v26, %v3252_v1  ;;  %v739_v35 = vadd.f32 1e-05, %v723_v25  ;;  %v697_v36 = vpop.xlane.xlu1 %696 }
 0x126   : > { %v765_v37 = vmul.f32 %v2551_v32, %v3255_v2  ;;  %v766_v42 = vmul.f32 %v2551_v32, %v3262_v5  ;;  %2560 = vrsqrt.f32 %v740_v27  ;;  %v726_v43 = vmul.f32 0.00390625, %v697_v36  ;;  %v694_v44 = vpop.xlane.xlu0 %693 }
 0x127   : > { %v813_v45 = vmul.f32 %v3411_v23, %v769_v33  ;;  %v814_v46 = vmul.f32 %v3413_v24, %v770_v34  ;;  %2562 = vrsqrt.f32 %v739_v35  ;;  %v725_v47 = vmul.f32 0.00390625, %v694_v44 }
 0x128   : > { %v2553_v52 = vpop.eup %2552  ;;  %v809_v0 = vmul.f32 %v3411_v23, %v765_v37  ;;  %v810_v1 = vmul.f32 %v3413_v24, %v766_v42  ;;  %v742_v53 = vadd.f32 1e-05, %v726_v43 }
 0x129   : > { %v2555_v54 = vpop.eup %2554  ;;  %845 = vst [vmem:[#allocation2 + $0x20] sm:$0xff] %v813_v45  ;;  %846 = vst [vmem:[#allocation2 + $0x28] sm:$0xff] %v814_v46  ;;  %v771_v2 = vmul.f32 %v2553_v52, %v3267_v7  ;;  %v772_v5 = vmul.f32 %v2553_v52, %v3270_v8  ;;  %v741_v55 = vadd.f32 1e-05, %v725_v47  ;;  %v703_v56 = vpop.xlane.xlu1 %702 }
 0x12a   : > { %841 = vst [vmem:[#allocation2] sm:$0xff] %v809_v0  ;;  %842 = vst [vmem:[#allocation2 + $0x8] sm:$0xff] %v810_v1  ;;  %v767_v57 = vmul.f32 %v2555_v54, %v3279_v12  ;;  %v768_v62 = vmul.f32 %v2555_v54, %v3282_v13  ;;  %2564 = vrsqrt.f32 %v742_v53  ;;  %v728_v63 = vmul.f32 0.00390625, %v703_v56  ;;  %v700_v3 = vpop.xlane.xlu0 %699 }
 0x12b   : > { %v815_v4 = vmul.f32 %v3411_v23, %v771_v2  ;;  %v816_v6 = vmul.f32 %v3413_v24, %v772_v5  ;;  %2566 = vrsqrt.f32 %v741_v55  ;;  %v727_v9 = vmul.f32 0.00390625, %v700_v3 }
 0x12c   : > { %v2557_v7 = vpop.eup %2556  ;;  %v811_v8 = vmul.f32 %v3411_v23, %v767_v57  ;;  %v812_v17 = vmul.f32 %v3413_v24, %v768_v62  ;;  %v744_v21 = vadd.f32 1e-05, %v728_v63 }
 0x12d   : > { %v2559_v22 = vpop.eup %2558  ;;  %847 = vst [vmem:[#allocation2 + $0x30] sm:$0xff] %v815_v4  ;;  %848 = vst [vmem:[#allocation2 + $0x38] sm:$0xff] %v816_v6  ;;  %v775_v12 = vmul.f32 %v2557_v7, %v3285_v14  ;;  %v776_v13 = vmul.f32 %v2557_v7, %v3292_v18  ;;  %v743_v25 = vadd.f32 1e-05, %v727_v9  ;;  %v709_v26 = vpop.xlane.xlu1 %708 }
 0x12e   : > { %843 = vst [vmem:[#allocation2 + $0x10] sm:$0xff] %v811_v8  ;;  %844 = vst [vmem:[#allocation2 + $0x18] sm:$0xff] %v812_v17  ;;  %v773_v27 = vmul.f32 %v2559_v22, %v3295_v19  ;;  %v774_v32 = vmul.f32 %v2559_v22, %v3298_v20  ;;  %2568 = vrsqrt.f32 %v744_v21  ;;  %v730_v33 = vmul.f32 0.00390625, %v709_v26  ;;  %v706_v34 = vpop.xlane.xlu0 %705 }
 0x12f   : > { %v819_v35 = vmul.f32 %v3411_v23, %v775_v12  ;;  %v820_v36 = vmul.f32 %v3413_v24, %v776_v13  ;;  %2570 = vrsqrt.f32 %v743_v25  ;;  %v729_v37 = vmul.f32 0.00390625, %v706_v34 }
 0x130   : > { %v2561_v14 = vpop.eup %2560  ;;  %v817_v18 = vmul.f32 %v3411_v23, %v773_v27  ;;  %v818_v42 = vmul.f32 %v3413_v24, %v774_v32  ;;  %v746_v43 = vadd.f32 1e-05, %v730_v33 }
 0x131   : > { %v2563_v44 = vpop.eup %2562  ;;  %851 = vst [vmem:[#allocation2 + $0x50] sm:$0xff] %v819_v35  ;;  %852 = vst [vmem:[#allocation2 + $0x58] sm:$0xff] %v820_v36  ;;  %v779_v19 = vmul.f32 %v2561_v14, %v3309_v28  ;;  %v780_v20 = vmul.f32 %v2561_v14, %v3312_v29  ;;  %v745_v45 = vadd.f32 1e-05, %v729_v37  ;;  %v715_v46 = vpop.xlane.xlu1 %714 }
 0x132   : > { %849 = vst [vmem:[#allocation2 + $0x40] sm:$0xff] %v817_v18  ;;  %850 = vst [vmem:[#allocation2 + $0x48] sm:$0xff] %v818_v42  ;;  %v777_v47 = vmul.f32 %v2563_v44, %v3315_v30  ;;  %v778_v52 = vmul.f32 %v2563_v44, %v3318_v31  ;;  %2572 = vrsqrt.f32 %v746_v43  ;;  %v732_v0 = vmul.f32 0.00390625, %v715_v46  ;;  %v712_v1 = vpop.xlane.xlu0 %711 }
 0x133   : > { %v823_v53 = vmul.f32 %v3411_v23, %v779_v19  ;;  %v824_v54 = vmul.f32 %v3413_v24, %v780_v20  ;;  %2574 = vrsqrt.f32 %v745_v45  ;;  %v731_v2 = vmul.f32 0.00390625, %v712_v1 }
 0x134   : > { %v2565_v28 = vpop.eup %2564  ;;  %v821_v29 = vmul.f32 %v3411_v23, %v777_v47  ;;  %v822_v5 = vmul.f32 %v3413_v24, %v778_v52  ;;  %v748_v55 = vadd.f32 1e-05, %v732_v0 }
 0x135   : > { %v2567_v56 = vpop.eup %2566  ;;  %855 = vst [vmem:[#allocation2 + $0x70] sm:$0xff] %v823_v53  ;;  %856 = vst [vmem:[#allocation2 + $0x78] sm:$0xff] %v824_v54  ;;  %v783_v30 = vmul.f32 %v2565_v28, %v3329_v38  ;;  %v784_v31 = vmul.f32 %v2565_v28, %v3332_v39  ;;  %v747_v57 = vadd.f32 1e-05, %v731_v2 }
 0x136   : > { %853 = vst [vmem:[#allocation2 + $0x60] sm:$0xff] %v821_v29  ;;  %854 = vst [vmem:[#allocation2 + $0x68] sm:$0xff] %v822_v5  ;;  %v781_v62 = vmul.f32 %v2567_v56, %v3335_v40  ;;  %v782_v63 = vmul.f32 %v2567_v56, %v3338_v41  ;;  %2576 = vrsqrt.f32 %v748_v55 }
 0x137   : > { %v827_v3 = vmul.f32 %v3411_v23, %v783_v30  ;;  %v828_v4 = vmul.f32 %v3413_v24, %v784_v31  ;;  %2578 = vrsqrt.f32 %v747_v57 }
 0x138   : > { %v2569_v6 = vpop.eup %2568  ;;  %v825_v9 = vmul.f32 %v3411_v23, %v781_v62  ;;  %v826_v38 = vmul.f32 %v3413_v24, %v782_v63 }
 0x139   : > { %v2571_v7 = vpop.eup %2570  ;;  %859 = vst [vmem:[#allocation2 + $0x90] sm:$0xff] %v827_v3  ;;  %860 = vst [vmem:[#allocation2 + $0x98] sm:$0xff] %v828_v4  ;;  %v787_v39 = vmul.f32 %v2569_v6, %v3349_v48  ;;  %v788_v40 = vmul.f32 %v2569_v6, %v3352_v49 }
 0x13a   : > { %857 = vst [vmem:[#allocation2 + $0x80] sm:$0xff] %v825_v9  ;;  %858 = vst [vmem:[#allocation2 + $0x88] sm:$0xff] %v826_v38  ;;  %v785_v41 = vmul.f32 %v2571_v7, %v3355_v50  ;;  %v786_v8 = vmul.f32 %v2571_v7, %v3358_v51 }
 0x13b   : > { %v831_v17 = vmul.f32 %v3411_v23, %v787_v39  ;;  %v832_v21 = vmul.f32 %v3413_v24, %v788_v40 }
 0x13c   : > { %v2573_v22 = vpop.eup %2572  ;;  %v829_v12 = vmul.f32 %v3411_v23, %v785_v41  ;;  %v830_v13 = vmul.f32 %v3413_v24, %v786_v8 }
 0x13d   : > { %v2575_v25 = vpop.eup %2574  ;;  %863 = vst [vmem:[#allocation2 + $0xb0] sm:$0xff] %v831_v17  ;;  %864 = vst [vmem:[#allocation2 + $0xb8] sm:$0xff] %v832_v21  ;;  %v791_v48 = vmul.f32 %v2573_v22, %v3369_v58  ;;  %v792_v49 = vmul.f32 %v2573_v22, %v3372_v59 }
 0x13e   : > { %861 = vst [vmem:[#allocation2 + $0xa0] sm:$0xff] %v829_v12  ;;  %862 = vst [vmem:[#allocation2 + $0xa8] sm:$0xff] %v830_v13  ;;  %v789_v50 = vmul.f32 %v2575_v25, %v3375_v60  ;;  %v790_v51 = vmul.f32 %v2575_v25, %v3378_v61 }
 0x13f   : > { %v835_v26 = vmul.f32 %v3411_v23, %v791_v48  ;;  %v836_v27 = vmul.f32 %v3413_v24, %v792_v49 }
 0x140   : > { %v2577_v32 = vpop.eup %2576  ;;  %v833_v33 = vmul.f32 %v3411_v23, %v789_v50  ;;  %v834_v34 = vmul.f32 %v3413_v24, %v790_v51 }
 0x141   : > { %v2579_v35 = vpop.eup %2578  ;;  %867 = vst [vmem:[#allocation2 + $0xd0] sm:$0xff] %v835_v26  ;;  %868 = vst [vmem:[#allocation2 + $0xd8] sm:$0xff] %v836_v27  ;;  %v795_v58 = vmul.f32 %v2577_v32, %v3389_v10  ;;  %v796_v59 = vmul.f32 %v2577_v32, %v3392_v11 }
 0x142   : > { %865 = vst [vmem:[#allocation2 + $0xc0] sm:$0xff] %v833_v33  ;;  %866 = vst [vmem:[#allocation2 + $0xc8] sm:$0xff] %v834_v34  ;;  %v793_v60 = vmul.f32 %v2579_v35, %v3395_v15  ;;  %v794_v61 = vmul.f32 %v2579_v35, %v3398_v16 }
 0x143   : > { %v839_v36 = vmul.f32 %v3411_v23, %v795_v58  ;;  %v840_v37 = vmul.f32 %v3413_v24, %v796_v59 }
 0x144   : > { %v837_v14 = vmul.f32 %v3411_v23, %v793_v60  ;;  %v838_v18 = vmul.f32 %v3413_v24, %v794_v61 }
 0x145   : > { %871 = vst [vmem:[#allocation2 + $0xf0] sm:$0xff] %v839_v36  ;;  %872 = vst [vmem:[#allocation2 + $0xf8] sm:$0xff] %v840_v37 }
 0x146   : > { %869 = vst [vmem:[#allocation2 + $0xe0] sm:$0xff] %v837_v14  ;;  %870 = vst [vmem:[#allocation2 + $0xe8] sm:$0xff] %v838_v18 }
 0x147 PF: > { %v938_v10 = vld [vmem:[%s3241_s29 + $0x8] sm:$0xff]  ;;  %v940_v11 = vld [vmem:[%s3241_s29 + $0x18] sm:$0xff]  ;;  %v937_v15 = vld [vmem:[%s3241_s29] sm:$0xff]  ;;  %p2221_p6 = scmp.ne.s32.totalorder %s2802_s23, 2 }
 0x148   : > { %v2234_v16 = vpack.c.bf16 %v940_v11, %v938_v10  ;;  %v939_v23 = vld [vmem:[%s3241_s29 + $0x10] sm:$0xff]  ;;  %v942_v24 = vld [vmem:[%s3241_s29 + $0x28] sm:$0xff]  ;;  %v944_v42 = vld [vmem:[%s3241_s29 + $0x38] sm:$0xff] }
 0x149   : > { %v2236_v43 = vpack.c.bf16 %v939_v23, %v937_v15  ;;  %v2238_v44 = vpack.c.bf16 %v944_v42, %v942_v24  ;;  %v941_v19 = vld [vmem:[%s3241_s29 + $0x20] sm:$0xff]  ;;  %v943_v20 = vld [vmem:[%s3241_s29 + $0x30] sm:$0xff]  ;;  %v946_v45 = vld [vmem:[%s3241_s29 + $0x48] sm:$0xff] }
 0x14a   : > { %2235 = vmatprep.subr.bf16.mxu0 %v2234_v16  ;;  %v948_v46 = vld [vmem:[%s3241_s29 + $0x58] sm:$0xff]  ;;  %v2240_v47 = vpack.c.bf16 %v943_v20, %v941_v19  ;;  %v945_v0 = vld [vmem:[%s3241_s29 + $0x40] sm:$0xff]  ;;  %v947_v1 = vld [vmem:[%s3241_s29 + $0x50] sm:$0xff] }
 0x14b   : > { %2237 = vmatpush1.bf16.msra.mxu0 %v2236_v43  ;;  %v2242_v52 = vpack.c.bf16 %v948_v46, %v946_v45  ;;  %v950_v53 = vld [vmem:[%s3241_s29 + $0x68] sm:$0xff]  ;;  %v952_v54 = vld [vmem:[%s3241_s29 + $0x78] sm:$0xff]  ;;  %v2244_v2 = vpack.c.bf16 %v947_v1, %v945_v0  ;;  %v949_v29 = vld [vmem:[%s3241_s29 + $0x60] sm:$0xff] }
 0x14c   : > { %2239 = vmatprep.subr.bf16.mxu0 %v2238_v44  ;;  %v2246_v28 = vpack.c.bf16 %v952_v54, %v950_v53  ;;  %v951_v5 = vld [vmem:[%s3241_s29 + $0x70] sm:$0xff]  ;;  %v954_v55 = vld [vmem:[%s3241_s29 + $0x88] sm:$0xff]  ;;  %v956_v56 = vld [vmem:[%s3241_s29 + $0x98] sm:$0xff] }
 0x14d   : > { %v1163_v30 = vld [vmem:[%s3243_s10 + $0x8] sm:$0xff]  ;;  %v1165_v31 = vld [vmem:[%s3243_s10 + $0x18] sm:$0xff]  ;;  %v1162_v57 = vld [vmem:[%s3243_s10] sm:$0xff]  ;;  %v2248_v63 = vpack.c.bf16 %v951_v5, %v949_v29  ;;  %v2250_v38 = vpack.c.bf16 %v956_v56, %v954_v55 }
 0x14e   : > { %v1164_v62 = vld [vmem:[%s3243_s10 + $0x10] sm:$0xff]  ;;  %v953_v3 = vld [vmem:[%s3241_s29 + $0x80] sm:$0xff]  ;;  %v2298_v6 = vpack.c.bf16 %v1165_v31, %v1163_v30  ;;  %v958_v7 = vld [vmem:[%s3241_s29 + $0xa8] sm:$0xff] }
 0x14f   : > { %2241 = vmatpush1.bf16.msra.mxu0 %v2240_v47  ;;  %v955_v4 = vld [vmem:[%s3241_s29 + $0x90] sm:$0xff]  ;;  %v2300_v9 = vpack.c.bf16 %v1164_v62, %v1162_v57  ;;  %v1167_v39 = vld [vmem:[%s3243_s10 + $0x28] sm:$0xff]  ;;  %v1169_v40 = vld [vmem:[%s3243_s10 + $0x38] sm:$0xff] }
 0x150   : > { %2243 = vmatprep.subr.bf16.mxu0 %v2242_v52  ;;  %v960_v41 = vld [vmem:[%s3241_s29 + $0xb8] sm:$0xff]  ;;  %2299 = vmatprep.subr.bf16.mxu1 %v2298_v6  ;;  %v2302_v8 = vpack.c.bf16 %v1169_v40, %v1167_v39  ;;  %v1166_v17 = vld [vmem:[%s3243_s10 + $0x20] sm:$0xff]  ;;  %v1168_v21 = vld [vmem:[%s3243_s10 + $0x30] sm:$0xff]  ;;  %v2252_v12 = vpack.c.bf16 %v955_v4, %v953_v3 }
 0x151   : > { %2301 = vmatpush1.bf16.msra.mxu1 %v2300_v9  ;;  %v2304_v22 = vpack.c.bf16 %v1168_v21, %v1166_v17  ;;  %v1171_v13 = vld [vmem:[%s3243_s10 + $0x48] sm:$0xff]  ;;  %v1173_v25 = vld [vmem:[%s3243_s10 + $0x58] sm:$0xff]  ;;  %v1170_v48 = vld [vmem:[%s3243_s10 + $0x40] sm:$0xff]  ;;  %v2254_v49 = vpack.c.bf16 %v960_v41, %v958_v7 }
 0x152   : > { %2303 = vmatprep.subr.bf16.mxu1 %v2302_v8  ;;  %v957_v50 = vld [vmem:[%s3241_s29 + $0xa0] sm:$0xff]  ;;  %v959_v51 = vld [vmem:[%s3241_s29 + $0xb0] sm:$0xff]  ;;  %v2306_v26 = vpack.c.bf16 %v1173_v25, %v1171_v13  ;;  %v962_v32 = vld [vmem:[%s3241_s29 + $0xc8] sm:$0xff] }
 0x153   : > { %2245 = vmatpush1.bf16.msra.mxu0 %v2244_v2  ;;  %v1172_v27 = vld [vmem:[%s3243_s10 + $0x50] sm:$0xff]  ;;  %v964_v33 = vld [vmem:[%s3241_s29 + $0xd8] sm:$0xff]  ;;  %v1175_v34 = vld [vmem:[%s3243_s10 + $0x68] sm:$0xff]  ;;  %v2256_v59 = vpack.c.bf16 %v959_v51, %v957_v50 }
 0x154   : > { %2247 = vmatprep.subr.bf16.mxu0 %v2246_v28  ;;  %v2308_v35 = vpack.c.bf16 %v1172_v27, %v1170_v48  ;;  %v1177_v58 = vld [vmem:[%s3243_s10 + $0x78] sm:$0xff]  ;;  %v961_v60 = vld [vmem:[%s3241_s29 + $0xc0] sm:$0xff]  ;;  %v1176_v37 = vld [vmem:[%s3243_s10 + $0x70] sm:$0xff]  ;;  %v2258_v14 = vpack.c.bf16 %v964_v33, %v962_v32 }
 0x155   : > { %2305 = vmatpush1.bf16.msra.mxu1 %v2304_v22  ;;  %v2310_v61 = vpack.c.bf16 %v1177_v58, %v1175_v34  ;;  %v1174_v36 = vld [vmem:[%s3243_s10 + $0x60] sm:$0xff]  ;;  %v963_v18 = vld [vmem:[%s3241_s29 + $0xd0] sm:$0xff]  ;;  %v1179_v10 = vld [vmem:[%s3243_s10 + $0x88] sm:$0xff] }
 0x156   : > { %2307 = vmatprep.subr.bf16.mxu1 %v2306_v26  ;;  %v1181_v11 = vld [vmem:[%s3243_s10 + $0x98] sm:$0xff]  ;;  %v966_v15 = vld [vmem:[%s3241_s29 + $0xe8] sm:$0xff]  ;;  %v2312_v23 = vpack.c.bf16 %v1176_v37, %v1174_v36  ;;  %v2260_v24 = vpack.c.bf16 %v963_v18, %v961_v60  ;;  %v965_v42 = vld [vmem:[%s3241_s29 + $0xe0] sm:$0xff] }
 0x157   : > { %2249 = vmatpush1.bf16.msra.mxu0 %v2248_v63  ;;  %v968_v16 = vld [vmem:[%s3241_s29 + $0xf8] sm:$0xff]  ;;  %v2314_v43 = vpack.c.bf16 %v1181_v11, %v1179_v10  ;;  %v1178_v44 = vld [vmem:[%s3243_s10 + $0x80] sm:$0xff]  ;;  %v1180_v19 = vld [vmem:[%s3243_s10 + $0x90] sm:$0xff] }
 0x158   : > { %2251 = vmatprep.subr.bf16.mxu0 %v2250_v38  ;;  %v2262_v20 = vpack.c.bf16 %v968_v16, %v966_v15  ;;  %v967_v45 = vld [vmem:[%s3241_s29 + $0xf0] sm:$0xff]  ;;  %v1183_v46 = vld [vmem:[%s3243_s10 + $0xa8] sm:$0xff]  ;;  %v1185_v47 = vld [vmem:[%s3243_s10 + $0xb8] sm:$0xff]  ;;  %v2316_v1 = vpack.c.bf16 %v1180_v19, %v1178_v44 }
 0x159   : > { %2309 = vmatpush1.bf16.msra.mxu1 %v2308_v35  ;;  %v970_v52 = vld [vmem:[%s3241_s29 + $0x108] sm:$0xff]  ;;  %v972_v0 = vld [vmem:[%s3241_s29 + $0x118] sm:$0xff]  ;;  %v2264_v53 = vpack.c.bf16 %v967_v45, %v965_v42  ;;  %v969_v54 = vld [vmem:[%s3241_s29 + $0x100] sm:$0xff]  ;;  %v2318_v2 = vpack.c.bf16 %v1185_v47, %v1183_v46 }
 0x15a   : > { %2311 = vmatprep.subr.bf16.mxu1 %v2310_v61  ;;  %v1182_v28 = vld [vmem:[%s3243_s10 + $0xa0] sm:$0xff]  ;;  %v1184_v29 = vld [vmem:[%s3243_s10 + $0xb0] sm:$0xff]  ;;  %v2266_v5 = vpack.c.bf16 %v972_v0, %v970_v52  ;;  %v1187_v56 = vld [vmem:[%s3243_s10 + $0xc8] sm:$0xff] }
 0x15b   : > { %2253 = vmatpush1.bf16.msra.mxu0 %v2252_v12  ;;  %v971_v55 = vld [vmem:[%s3241_s29 + $0x110] sm:$0xff]  ;;  %v1189_v30 = vld [vmem:[%s3243_s10 + $0xd8] sm:$0xff]  ;;  %v974_v31 = vld [vmem:[%s3241_s29 + $0x128] sm:$0xff]  ;;  %v2320_v63 = vpack.c.bf16 %v1184_v29, %v1182_v28 }
 0x15c   : > { %2255 = vmatprep.subr.bf16.mxu0 %v2254_v49  ;;  %v976_v57 = vld [vmem:[%s3241_s29 + $0x138] sm:$0xff]  ;;  %v973_v62 = vld [vmem:[%s3241_s29 + $0x120] sm:$0xff]  ;;  %v2268_v3 = vpack.c.bf16 %v971_v55, %v969_v54  ;;  %v975_v4 = vld [vmem:[%s3241_s29 + $0x130] sm:$0xff]  ;;  %v2322_v6 = vpack.c.bf16 %v1189_v30, %v1187_v56 }
 0x15d   : > { %2313 = vmatpush1.bf16.msra.mxu1 %v2312_v23  ;;  %v1186_v9 = vld [vmem:[%s3243_s10 + $0xc0] sm:$0xff]  ;;  %v1188_v38 = vld [vmem:[%s3243_s10 + $0xd0] sm:$0xff]  ;;  %v2270_v7 = vpack.c.bf16 %v976_v57, %v974_v31  ;;  %v1191_v39 = vld [vmem:[%s3243_s10 + $0xe8] sm:$0xff]  ;;  %v2272_v22 = vpack.c.bf16 %v975_v4, %v973_v62 }
 0x15e   : > { %2315 = vmatprep.subr.bf16.mxu1 %v2314_v43  ;;  %v1193_v40 = vld [vmem:[%s3243_s10 + $0xf8] sm:$0xff]  ;;  %v906_v41 = vld [vmem:[#allocation2 + $0x8] sm:$0xff]  ;;  %v2324_v21 = vpack.c.bf16 %v1188_v38, %v1186_v9  ;;  %v977_v12 = vld [vmem:[%s3241_s29 + $0x140] sm:$0xff] }
 0x15f   : > { %2257 = vmatpush1.bf16.msra.mxu0 %v2256_v59  ;;  %v978_v8 = vld [vmem:[%s3241_s29 + $0x148] sm:$0xff]  ;;  %v980_v17 = vld [vmem:[%s3241_s29 + $0x158] sm:$0xff]  ;;  %1065 = vmatprep.mubr.f32.mxu0 %v906_v41  ;;  %v2326_v13 = vpack.c.bf16 %v1193_v40, %v1191_v39  ;;  %v1190_v25 = vld [vmem:[%s3243_s10 + $0xe0] sm:$0xff] }
 0x160   : > { %2259 = vmatprep.subr.bf16.mxu0 %v2258_v14  ;;  %1290 = vmatprep.mubr.f32.mxu1 %v906_v41  ;;  %v1192_v48 = vld [vmem:[%s3243_s10 + $0xf0] sm:$0xff]  ;;  %v2274_v49 = vpack.c.bf16 %v980_v17, %v978_v8  ;;  %v1195_v51 = vld [vmem:[%s3243_s10 + $0x108] sm:$0xff]  ;;  %v1197_v26 = vld [vmem:[%s3243_s10 + $0x118] sm:$0xff] }
 0x161   : > { %2317 = vmatpush1.bf16.msra.mxu1 %v2316_v1  ;;  %v979_v50 = vld [vmem:[%s3241_s29 + $0x150] sm:$0xff]  ;;  %v982_v27 = vld [vmem:[%s3241_s29 + $0x168] sm:$0xff]  ;;  %v984_v32 = vld [vmem:[%s3241_s29 + $0x178] sm:$0xff]  ;;  %v2328_v33 = vpack.c.bf16 %v1192_v48, %v1190_v25  ;;  %v2330_v58 = vpack.c.bf16 %v1197_v26, %v1195_v51 }
 0x162   : > { %2319 = vmatprep.subr.bf16.mxu1 %v2318_v2  ;;  %v2276_v34 = vpack.c.bf16 %v979_v50, %v977_v12  ;;  %v981_v35 = vld [vmem:[%s3241_s29 + $0x160] sm:$0xff]  ;;  %v1196_v60 = vld [vmem:[%s3243_s10 + $0x110] sm:$0xff]  ;;  %v2278_v61 = vpack.c.bf16 %v984_v32, %v982_v27  ;;  %v1199_v37 = vld [vmem:[%s3243_s10 + $0x128] sm:$0xff] }
 0x163   : > { %2261 = vmatpush1.bf16.msra.mxu0 %v2260_v24  ;;  %v1194_v59 = vld [vmem:[%s3243_s10 + $0x100] sm:$0xff]  ;;  %v983_v36 = vld [vmem:[%s3241_s29 + $0x170] sm:$0xff]  ;;  %v1201_v14 = vld [vmem:[%s3243_s10 + $0x138] sm:$0xff] }
 0x164   : > { %2263 = vmatprep.subr.bf16.mxu0 %v2262_v20  ;;  %v986_v18 = vld [vmem:[%s3241_s29 + $0x188] sm:$0xff]  ;;  %v988_v10 = vld [vmem:[%s3241_s29 + $0x198] sm:$0xff]  ;;  %v2332_v11 = vpack.c.bf16 %v1196_v60, %v1194_v59  ;;  %v2280_v15 = vpack.c.bf16 %v983_v36, %v981_v35  ;;  %v985_v16 = vld [vmem:[%s3241_s29 + $0x180] sm:$0xff]  ;;  %v2334_v23 = vpack.c.bf16 %v1201_v14, %v1199_v37 }
 0x165   : > { %2321 = vmatpush1.bf16.msra.mxu1 %v2320_v63  ;;  %v1198_v24 = vld [vmem:[%s3243_s10 + $0x120] sm:$0xff]  ;;  %v1200_v42 = vld [vmem:[%s3243_s10 + $0x130] sm:$0xff]  ;;  %v2282_v43 = vpack.c.bf16 %v988_v10, %v986_v18  ;;  %v1203_v19 = vld [vmem:[%s3243_s10 + $0x148] sm:$0xff] }
 0x166   : > { %2323 = vmatprep.subr.bf16.mxu1 %v2322_v6  ;;  %v987_v44 = vld [vmem:[%s3241_s29 + $0x190] sm:$0xff]  ;;  %v1205_v20 = vld [vmem:[%s3243_s10 + $0x158] sm:$0xff]  ;;  %v990_v45 = vld [vmem:[%s3241_s29 + $0x1a8] sm:$0xff]  ;;  %v2336_v47 = vpack.c.bf16 %v1200_v42, %v1198_v24 }
 0x167   : > { %2265 = vmatpush1.bf16.msra.mxu0 %v2264_v53  ;;  %v992_v46 = vld [vmem:[%s3241_s29 + $0x1b8] sm:$0xff]  ;;  %v2284_v52 = vpack.c.bf16 %v987_v44, %v985_v16  ;;  %v989_v0 = vld [vmem:[%s3241_s29 + $0x1a0] sm:$0xff]  ;;  %v2338_v1 = vpack.c.bf16 %v1205_v20, %v1203_v19  ;;  %v1204_v54 = vld [vmem:[%s3243_s10 + $0x150] sm:$0xff] }
 0x168   : > { %2267 = vmatprep.subr.bf16.mxu0 %v2266_v5  ;;  %v1202_v53 = vld [vmem:[%s3243_s10 + $0x140] sm:$0xff]  ;;  %v2286_v2 = vpack.c.bf16 %v992_v46, %v990_v45  ;;  %v991_v28 = vld [vmem:[%s3241_s29 + $0x1b0] sm:$0xff]  ;;  %v1207_v29 = vld [vmem:[%s3243_s10 + $0x168] sm:$0xff] }
 0x169   : > { %2325 = vmatpush1.bf16.msra.mxu1 %v2324_v21  ;;  %v1209_v5 = vld [vmem:[%s3243_s10 + $0x178] sm:$0xff]  ;;  %v994_v55 = vld [vmem:[%s3241_s29 + $0x1c8] sm:$0xff]  ;;  %v2340_v30 = vpack.c.bf16 %v1204_v54, %v1202_v53  ;;  %v2288_v31 = vpack.c.bf16 %v991_v28, %v989_v0  ;;  %v993_v57 = vld [vmem:[%s3241_s29 + $0x1c0] sm:$0xff] }
 0x16a   : > { %2327 = vmatprep.subr.bf16.mxu1 %v2326_v13  ;;  %v996_v56 = vld [vmem:[%s3241_s29 + $0x1d8] sm:$0xff]  ;;  %v2342_v62 = vpack.c.bf16 %v1209_v5, %v1207_v29  ;;  %v1206_v63 = vld [vmem:[%s3243_s10 + $0x160] sm:$0xff]  ;;  %v995_v6 = vld [vmem:[%s3241_s29 + $0x1d0] sm:$0xff] }
 0x16b   : > { %2269 = vmatpush1.bf16.msra.mxu0 %v2268_v3  ;;  %v1208_v3 = vld [vmem:[%s3243_s10 + $0x170] sm:$0xff]  ;;  %v2290_v4 = vpack.c.bf16 %v996_v56, %v994_v55  ;;  %v1211_v9 = vld [vmem:[%s3243_s10 + $0x188] sm:$0xff]  ;;  %v1213_v38 = vld [vmem:[%s3243_s10 + $0x198] sm:$0xff]  ;;  %v2292_v41 = vpack.c.bf16 %v995_v6, %v993_v57 }
 0x16c   : > { %2271 = vmatprep.subr.bf16.mxu0 %v2270_v7  ;;  %v998_v7 = vld [vmem:[%s3241_s29 + $0x1e8] sm:$0xff]  ;;  %v1000_v39 = vld [vmem:[%s3241_s29 + $0x1f8] sm:$0xff]  ;;  %v2344_v40 = vpack.c.bf16 %v1208_v3, %v1206_v63  ;;  %v997_v8 = vld [vmem:[%s3241_s29 + $0x1e0] sm:$0xff]  ;;  %v2346_v17 = vpack.c.bf16 %v1213_v38, %v1211_v9 }
 0x16d   : > { %2329 = vmatpush1.bf16.msra.mxu1 %v2328_v33  ;;  %v1210_v21 = vld [vmem:[%s3243_s10 + $0x180] sm:$0xff]  ;;  %v2294_v12 = vpack.c.bf16 %v1000_v39, %v998_v7  ;;  %v999_v13 = vld [vmem:[%s3241_s29 + $0x1f0] sm:$0xff]  ;;  %v1215_v25 = vld [vmem:[%s3243_s10 + $0x1a8] sm:$0xff] }
 0x16e   : > { %2331 = vmatprep.subr.bf16.mxu1 %v2330_v58  ;;  %v1217_v48 = vld [vmem:[%s3243_s10 + $0x1b8] sm:$0xff]  ;;  %v2296_v26 = vpack.c.bf16 %v999_v13, %v997_v8  ;;  %v1214_v32 = vld [vmem:[%s3243_s10 + $0x1a0] sm:$0xff]  ;;  %v1216_v33 = vld [vmem:[%s3243_s10 + $0x1b0] sm:$0xff] }
 0x16f   : > { %2273 = vmatpush1.bf16.msra.mxu0 %v2272_v22  ;;  %v1212_v22 = vld [vmem:[%s3243_s10 + $0x190] sm:$0xff]  ;;  %v1646_v50 = vld [vmem:[%s3239_s21 + $0x18] sm:$0xff]  ;;  %v2350_v27 = vpack.c.bf16 %v1217_v48, %v1215_v25  ;;  %v1643_v59 = vld [vmem:[%s3239_s21] sm:$0xff] }
 0x170   : > { %2275 = vmatprep.subr.bf16.mxu0 %v2274_v49  ;;  %v1644_v49 = vld [vmem:[%s3239_s21 + $0x8] sm:$0xff]  ;;  %v2348_v51 = vpack.c.bf16 %v1212_v22, %v1210_v21  ;;  %v1221_v35 = vld [vmem:[%s3243_s10 + $0x1d8] sm:$0xff]  ;;  %v1645_v60 = vld [vmem:[%s3239_s21 + $0x10] sm:$0xff] }
 0x171   : > { %2333 = vmatpush1.bf16.msra.mxu1 %v2332_v11  ;;  %v2362_v58 = vpack.c.bf16 %v1646_v50, %v1644_v49  ;;  %v1648_v36 = vld [vmem:[%s3239_s21 + $0x28] sm:$0xff]  ;;  %v1650_v37 = vld [vmem:[%s3239_s21 + $0x38] sm:$0xff]  ;;  %v905_v14 = vld [vmem:[#allocation2] sm:$0xff]  ;;  %v2364_v24 = vpack.c.bf16 %v1645_v60, %v1643_v59 }
 0x172   : > { %2335 = vmatprep.subr.bf16.mxu1 %v2334_v23  ;;  %v1218_v10 = vld [vmem:[%s3243_s10 + $0x1c0] sm:$0xff]  ;;  %v1220_v11 = vld [vmem:[%s3243_s10 + $0x1d0] sm:$0xff]  ;;  %v1223_v16 = vld [vmem:[%s3243_s10 + $0x1e8] sm:$0xff]  ;;  %v2366_v42 = vpack.c.bf16 %v1650_v37, %v1648_v36 }
 0x173   : > { %2277 = vmatpush1.bf16.msra.mxu0 %v2276_v34  ;;  %v1219_v34 = vld [vmem:[%s3243_s10 + $0x1c8] sm:$0xff]  ;;  %v1225_v23 = vld [vmem:[%s3243_s10 + $0x1f8] sm:$0xff]  ;;  %v1649_v44 = vld [vmem:[%s3239_s21 + $0x30] sm:$0xff]  ;;  %v2356_v19 = vpack.c.bf16 %v1220_v11, %v1218_v10 }
 0x174   : > { %2279 = vmatprep.subr.bf16.mxu0 %v2278_v61  ;;  %v2352_v61 = vpack.c.bf16 %v1216_v33, %v1214_v32  ;;  %v2354_v18 = vpack.c.bf16 %v1221_v35, %v1219_v34  ;;  %v1652_v20 = vld [vmem:[%s3239_s21 + $0x48] sm:$0xff]  ;;  %v1654_v45 = vld [vmem:[%s3239_s21 + $0x58] sm:$0xff]  ;;  %v907_v46 = vld [vmem:[#allocation2 + $0x10] sm:$0xff] }
 0x175   : > { %2337 = vmatpush1.bf16.msra.mxu1 %v2336_v47  ;;  %v2358_v47 = vpack.c.bf16 %v1225_v23, %v1223_v16  ;;  %v1224_v0 = vld [vmem:[%s3243_s10 + $0x1f0] sm:$0xff]  ;;  %v2370_v54 = vpack.c.bf16 %v1654_v45, %v1652_v20  ;;  %v1656_v5 = vld [vmem:[%s3239_s21 + $0x68] sm:$0xff]  ;;  %v1658_v55 = vld [vmem:[%s3239_s21 + $0x78] sm:$0xff] }
 0x176   : > { %2339 = vmatprep.subr.bf16.mxu1 %v2338_v1  ;;  %v910_v1 = vld [vmem:[#allocation2 + $0x28] sm:$0xff]  ;;  %v1653_v28 = vld [vmem:[%s3239_s21 + $0x50] sm:$0xff]  ;;  %v909_v56 = vld [vmem:[#allocation2 + $0x20] sm:$0xff]  ;;  %v2374_v57 = vpack.c.bf16 %v1658_v55, %v1656_v5 }
 0x177   : > { %2281 = vmatpush1.bf16.msra.mxu0 %v2280_v15  ;;  %v908_v15 = vld [vmem:[#allocation2 + $0x18] sm:$0xff]  ;;  %v1657_v63 = vld [vmem:[%s3239_s21 + $0x70] sm:$0xff]  ;;  %v1660_v3 = vld [vmem:[%s3239_s21 + $0x88] sm:$0xff] }
 0x178   : > { %2283 = vmatprep.subr.bf16.mxu0 %v2282_v43  ;;  %v1647_v43 = vld [vmem:[%s3239_s21 + $0x20] sm:$0xff]  ;;  %v911_v6 = vld [vmem:[#allocation2 + $0x30] sm:$0xff]  ;;  %v914_v9 = vld [vmem:[#allocation2 + $0x48] sm:$0xff] }
 0x179   : > { %2341 = vmatpush1.bf16.msra.mxu1 %v2340_v30  ;;  %v2368_v53 = vpack.c.bf16 %v1649_v44, %v1647_v43  ;;  %v912_v30 = vld [vmem:[#allocation2 + $0x38] sm:$0xff]  ;;  %v1659_v39 = vld [vmem:[%s3239_s21 + $0x80] sm:$0xff]  ;;  %v1665_v25 = vld [vmem:[%s3239_s21 + $0xb0] sm:$0xff] }
 0x17a   : > { %2343 = vmatprep.subr.bf16.mxu1 %v2342_v62  ;;  %v1655_v62 = vld [vmem:[%s3239_s21 + $0x60] sm:$0xff]  ;;  %v1666_v8 = vld [vmem:[%s3239_s21 + $0xb8] sm:$0xff]  ;;  %v1668_v48 = vld [vmem:[%s3239_s21 + $0xc8] sm:$0xff] }
 0x17b   : > { %2285 = vmatpush1.bf16.msra.mxu0 %v2284_v52  ;;  %v1222_v52 = vld [vmem:[%s3243_s10 + $0x1e0] sm:$0xff]  ;;  %v2376_v38 = vpack.c.bf16 %v1657_v63, %v1655_v62  ;;  %v916_v21 = vld [vmem:[#allocation2 + $0x58] sm:$0xff]  ;;  %v915_v50 = vld [vmem:[#allocation2 + $0x50] sm:$0xff] }
 0x17c   : > { %2287 = vmatprep.subr.bf16.mxu0 %v2286_v2  ;;  %v1651_v2 = vld [vmem:[%s3239_s21 + $0x40] sm:$0xff]  ;;  %v2360_v29 = vpack.c.bf16 %v1224_v0, %v1222_v52  ;;  %v1670_v49 = vld [vmem:[%s3239_s21 + $0xd8] sm:$0xff]  ;;  %v1669_v33 = vld [vmem:[%s3239_s21 + $0xd0] sm:$0xff] }
 0x17d   : > { %2345 = vmatpush1.bf16.msra.mxu1 %v2344_v40  ;;  %v1661_v40 = vld [vmem:[%s3239_s21 + $0x90] sm:$0xff]  ;;  %v1663_v13 = vld [vmem:[%s3239_s21 + $0xa0] sm:$0xff]  ;;  %v1672_v34 = vld [vmem:[%s3239_s21 + $0xe8] sm:$0xff] }
 0x17e   : > { %2347 = vmatprep.subr.bf16.mxu1 %v2346_v17  ;;  %v913_v17 = vld [vmem:[#allocation2 + $0x40] sm:$0xff]  ;;  %v2380_v22 = vpack.c.bf16 %v1661_v40, %v1659_v39  ;;  %v1674_v35 = vld [vmem:[%s3239_s21 + $0xf8] sm:$0xff]  ;;  %v919_v36 = vld [vmem:[#allocation2 + $0x70] sm:$0xff] }
 0x17f   : > { %2289 = vmatpush1.bf16.msra.mxu0 %v2288_v31  ;;  %v2372_v31 = vpack.c.bf16 %v1653_v28, %v1651_v2  ;;  %v1667_v32 = vld [vmem:[%s3239_s21 + $0xc0] sm:$0xff]  ;;  %v920_v59 = vld [vmem:[#allocation2 + $0x78] sm:$0xff]  ;;  %v922_v37 = vld [vmem:[#allocation2 + $0x88] sm:$0xff] }
 0x180   : > { %2291 = vmatprep.subr.bf16.mxu0 %v2290_v4  ;;  %v1662_v4 = vld [vmem:[%s3239_s21 + $0x98] sm:$0xff]  ;;  %v2388_v60 = vpack.c.bf16 %v1669_v33, %v1667_v32  ;;  %v923_v10 = vld [vmem:[#allocation2 + $0x90] sm:$0xff]  ;;  %v926_v11 = vld [vmem:[#allocation2 + $0xa8] sm:$0xff] }
 0x181   : > { %2349 = vmatpush1.bf16.msra.mxu1 %v2348_v51  ;;  %v2378_v7 = vpack.c.bf16 %v1662_v4, %v1660_v3  ;;  %v918_v51 = vld [vmem:[#allocation2 + $0x68] sm:$0xff]  ;;  %v928_v16 = vld [vmem:[#allocation2 + $0xb8] sm:$0xff]  ;;  %v927_v23 = vld [vmem:[#allocation2 + $0xb0] sm:$0xff] }
 0x182   : > { %2351 = vmatprep.subr.bf16.mxu1 %v2350_v27  ;;  %v2386_v27 = vpack.c.bf16 %v1670_v49, %v1668_v48  ;;  %v932_v43 = vld [vmem:[#allocation2 + $0xd8] sm:$0xff]  ;;  %v931_v44 = vld [vmem:[#allocation2 + $0xd0] sm:$0xff]  ;;  %v933_v20 = vld [vmem:[#allocation2 + $0xe0] sm:$0xff] }
 0x183   : > { %2293 = vmatpush1.bf16.msra.mxu0 %v2292_v41  ;;  %v1664_v41 = vld [vmem:[%s3239_s21 + $0xa8] sm:$0xff]  ;;  %v936_v45 = vld [vmem:[#allocation2 + $0xf8] sm:$0xff]  ;;  %v1673_v52 = vld [vmem:[%s3239_s21 + $0xf0] sm:$0xff] }
 0x184   : > { %2295 = vmatprep.subr.bf16.mxu0 %v2294_v12  ;;  %v2382_v12 = vpack.c.bf16 %v1666_v8, %v1664_v41  ;;  %v1675_v2 = vld [vmem:[%s3239_s21 + $0x100] sm:$0xff]  ;;  %v1677_v28 = vld [vmem:[%s3239_s21 + $0x110] sm:$0xff]  ;;  %v1680_v5 = vld [vmem:[%s3239_s21 + $0x128] sm:$0xff] }
 0x185   : > { %2353 = vmatpush1.bf16.msra.mxu1 %v2352_v61  ;;  %v2390_v61 = vpack.c.bf16 %v1674_v35, %v1672_v34  ;;  %v1682_v55 = vld [vmem:[%s3239_s21 + $0x138] sm:$0xff]  ;;  %v1684_v62 = vld [vmem:[%s3239_s21 + $0x148] sm:$0xff]  ;;  %v1683_v4 = vld [vmem:[%s3239_s21 + $0x140] sm:$0xff] }
 0x186   : > { %2355 = vmatprep.subr.bf16.mxu1 %v2354_v18  ;;  %v924_v18 = vld [vmem:[#allocation2 + $0x98] sm:$0xff]  ;;  %v1687_v40 = vld [vmem:[%s3239_s21 + $0x160] sm:$0xff]  ;;  %v1689_v41 = vld [vmem:[%s3239_s21 + $0x170] sm:$0xff] }
 0x187   : > { %2297 = vmatpush1.bf16.msra.mxu0 %v2296_v26  ;;  %v2384_v26 = vpack.c.bf16 %v1665_v25, %v1663_v13  ;;  %v1686_v63 = vld [vmem:[%s3239_s21 + $0x158] sm:$0xff]  ;;  %v2408_v8 = vpack.c.bf16 %v1689_v41, %v1687_v40  ;;  %v1693_v13 = vld [vmem:[%s3239_s21 + $0x190] sm:$0xff]  ;;  %v1696_v48 = vld [vmem:[%s3239_s21 + $0x1a8] sm:$0xff] }
 0x188   : > { %2363 = vmatprep.subr.bf16.mxu0 %v2362_v58  ;;  %v2402_v3 = vpack.c.bf16 %v1686_v63, %v1684_v62  ;;  %v1698_v49 = vld [vmem:[%s3239_s21 + $0x1b8] sm:$0xff]  ;;  %v1700_v32 = vld [vmem:[%s3239_s21 + $0x1c8] sm:$0xff]  ;;  %v1699_v35 = vld [vmem:[%s3239_s21 + $0x1c0] sm:$0xff] }
 0x189   : > { %2357 = vmatpush1.bf16.msra.mxu1 %v2356_v19  ;;  %v934_v19 = vld [vmem:[#allocation2 + $0xe8] sm:$0xff]  ;;  %v1702_v33 = vld [vmem:[%s3239_s21 + $0x1d8] sm:$0xff] }
 0x18a   : > { %1066 = vmatmul.mubr.f32.vlgmr.msra.gmra.mrb[0].mxu0 %v905_v14  ;;  %2359 = vmatprep.subr.bf16.mxu1 %v2358_v47  ;;  %v1671_v47 = vld [vmem:[%s3239_s21 + $0xe0] sm:$0xff]  ;;  %v2418_v34 = vpack.c.bf16 %v1702_v33, %v1700_v32 }
 0x18b   : > { %1071 = vmatprep.mubr.f32.mxu0 %v908_v15  ;;  %2365 = vmatpush1.bf16.msra.mxu0 %v2364_v24  ;;  %v2392_v0 = vpack.c.bf16 %v1673_v52, %v1671_v47 }
 0x18c   : > { %2367 = vmatprep.subr.bf16.mxu0 %v2366_v42 }
 0x18d   : > { %2361 = vmatpush1.bf16.msra.mxu1 %v2360_v29  ;;  %v2396_v29 = vpack.c.bf16 %v1677_v28, %v1675_v2 }
 0x18e   : > { %1072 = vmatmul.mubr.f32.gmra.mrb[2].mxu0 %v907_v46  ;;  %2426 = vmatprep.subr.bf16.mxu1 %v2362_v58  ;;  %v917_v58 = vld [vmem:[#allocation2 + $0x60] sm:$0xff] }
 0x18f   : > { %1077 = vmatprep.mubr.f32.mxu0 %v910_v1  ;;  %2369 = vmatpush1.bf16.msra.mxu0 %v2368_v53 }
 0x190   : > { %2371 = vmatprep.subr.bf16.mxu0 %v2370_v54  ;;  %1291 = vmatmul.mubr.f32.vlgmr.msra.gmra.mrb[0].mxu1 %v905_v14  ;;  %v921_v14 = vld [vmem:[#allocation2 + $0x80] sm:$0xff] }
 0x191   : > { %1296 = vmatprep.mubr.f32.mxu1 %v908_v15  ;;  %2442 = vmatpush1.bf16.msra.mxu1 %v2364_v24  ;;  %v925_v15 = vld [vmem:[#allocation2 + $0xa0] sm:$0xff]  ;;  %v930_v24 = vld [vmem:[#allocation2 + $0xc8] sm:$0xff] }
 0x192   : > { %1078 = vmatmul.mubr.f32.gmra.mrb[4].mxu0 %v909_v56  ;;  %2427 = vmatprep.subr.bf16.mxu1 %v2366_v42  ;;  %v929_v42 = vld [vmem:[#allocation2 + $0xc0] sm:$0xff] }
 0x193   : > { %1083 = vmatprep.mubr.f32.mxu0 %v912_v30  ;;  %2373 = vmatpush1.bf16.msra.mxu0 %v2372_v31 }
 0x194   : > { %2375 = vmatprep.subr.bf16.mxu0 %v2374_v57  ;;  %1297 = vmatmul.mubr.f32.gmra.mrb[2].mxu1 %v907_v46  ;;  %v935_v46 = vld [vmem:[#allocation2 + $0xf0] sm:$0xff] }
 0x195   : > { %1302 = vmatprep.mubr.f32.mxu1 %v910_v1  ;;  %2443 = vmatpush1.bf16.msra.mxu1 %v2368_v53  ;;  %v1676_v1 = vld [vmem:[%s3239_s21 + $0x108] sm:$0xff]  ;;  %v1678_v53 = vld [vmem:[%s3239_s21 + $0x118] sm:$0xff] }
 0x196   : > { %1084 = vmatmul.mubr.f32.gmra.mrb[6].mxu0 %v911_v6  ;;  %2428 = vmatprep.subr.bf16.mxu1 %v2370_v54  ;;  %v2394_v54 = vpack.c.bf16 %v1678_v53, %v1676_v1 }
 0x197   : > { %1089 = vmatprep.mubr.f32.mxu0 %v914_v9  ;;  %2377 = vmatpush1.bf16.msra.mxu0 %v2376_v38 }
 0x198   : > { %2379 = vmatprep.subr.bf16.mxu0 %v2378_v7  ;;  %1303 = vmatmul.mubr.f32.gmra.mrb[4].mxu1 %v909_v56  ;;  %v2398_v56 = vpack.c.bf16 %v1682_v55, %v1680_v5 }
 0x199   : > { %1308 = vmatprep.mubr.f32.mxu1 %v912_v30  ;;  %2444 = vmatpush1.bf16.msra.mxu1 %v2372_v31  ;;  %v1679_v30 = vld [vmem:[%s3239_s21 + $0x120] sm:$0xff]  ;;  %v1681_v31 = vld [vmem:[%s3239_s21 + $0x130] sm:$0xff] }
 0x19a   : > { %1090 = vmatmul.mubr.f32.gmra.mrb[8].mxu0 %v913_v17  ;;  %2429 = vmatprep.subr.bf16.mxu1 %v2374_v57  ;;  %v2400_v57 = vpack.c.bf16 %v1681_v31, %v1679_v30 }
 0x19b   : > { %1095 = vmatprep.mubr.f32.mxu0 %v916_v21  ;;  %2381 = vmatpush1.bf16.msra.mxu0 %v2380_v22 }
 0x19c   : > { %2383 = vmatprep.subr.bf16.mxu0 %v2382_v12  ;;  %1309 = vmatmul.mubr.f32.gmra.mrb[6].mxu1 %v911_v6  ;;  %v1685_v6 = vld [vmem:[%s3239_s21 + $0x150] sm:$0xff] }
 0x19d   : > { %1314 = vmatprep.mubr.f32.mxu1 %v914_v9  ;;  %2445 = vmatpush1.bf16.msra.mxu1 %v2376_v38  ;;  %v2404_v9 = vpack.c.bf16 %v1685_v6, %v1683_v4  ;;  %v1688_v38 = vld [vmem:[%s3239_s21 + $0x168] sm:$0xff] }
 0x19e   : > { %1096 = vmatmul.mubr.f32.gmra.mrb[10].mxu0 %v915_v50  ;;  %2430 = vmatprep.subr.bf16.mxu1 %v2378_v7  ;;  %v1690_v7 = vld [vmem:[%s3239_s21 + $0x178] sm:$0xff] }
 0x19f   : > { %1101 = vmatprep.mubr.f32.mxu0 %v918_v51  ;;  %2385 = vmatpush1.bf16.msra.mxu0 %v2384_v26  ;;  %v2406_v39 = vpack.c.bf16 %v1690_v7, %v1688_v38 }
 0x1a0   : > { %2387 = vmatprep.subr.bf16.mxu0 %v2386_v27  ;;  %1315 = vmatmul.mubr.f32.gmra.mrb[8].mxu1 %v913_v17  ;;  %v1692_v17 = vld [vmem:[%s3239_s21 + $0x188] sm:$0xff] }
 0x1a1   : > { %1320 = vmatprep.mubr.f32.mxu1 %v916_v21  ;;  %2446 = vmatpush1.bf16.msra.mxu1 %v2380_v22  ;;  %v1694_v21 = vld [vmem:[%s3239_s21 + $0x198] sm:$0xff] }
 0x1a2   : > { %1102 = vmatmul.mubr.f32.gmra.mrb[12].mxu0 %v917_v58  ;;  %2431 = vmatprep.subr.bf16.mxu1 %v2382_v12  ;;  %v2410_v22 = vpack.c.bf16 %v1694_v21, %v1692_v17  ;;  %v1691_v12 = vld [vmem:[%s3239_s21 + $0x180] sm:$0xff] }
 0x1a3   : > { %1107 = vmatprep.mubr.f32.mxu0 %v920_v59  ;;  %2389 = vmatpush1.bf16.msra.mxu0 %v2388_v60  ;;  %v2412_v25 = vpack.c.bf16 %v1693_v13, %v1691_v12 }
 0x1a4   : > { %2391 = vmatprep.subr.bf16.mxu0 %v2390_v61  ;;  %1321 = vmatmul.mubr.f32.gmra.mrb[10].mxu1 %v915_v50  ;;  %v2414_v50 = vpack.c.bf16 %v1698_v49, %v1696_v48 }
 0x1a5   : > { %1326 = vmatprep.mubr.f32.mxu1 %v918_v51  ;;  %2447 = vmatpush1.bf16.msra.mxu1 %v2384_v26  ;;  %v1695_v51 = vld [vmem:[%s3239_s21 + $0x1a0] sm:$0xff]  ;;  %v1697_v26 = vld [vmem:[%s3239_s21 + $0x1b0] sm:$0xff] }
 0x1a6   : > { %1108 = vmatmul.mubr.f32.gmra.mrb[14].mxu0 %v919_v36  ;;  %2432 = vmatprep.subr.bf16.mxu1 %v2386_v27  ;;  %v2416_v27 = vpack.c.bf16 %v1697_v26, %v1695_v51 }
 0x1a7   : > { %1113 = vmatprep.mubr.f32.mxu0 %v922_v37  ;;  %2393 = vmatpush1.bf16.msra.mxu0 %v2392_v0 }
 0x1a8   : > { %1327 = vmatmul.mubr.f32.gmra.mrb[12].mxu1 %v917_v58  ;;  %2395 = vmatprep.subr.bf16.mxu0 %v2394_v54  ;;  %v1701_v58 = vld [vmem:[%s3239_s21 + $0x1d0] sm:$0xff] }
 0x1a9   : > { %1332 = vmatprep.mubr.f32.mxu1 %v920_v59  ;;  %2448 = vmatpush1.bf16.msra.mxu1 %v2388_v60  ;;  %v2420_v59 = vpack.c.bf16 %v1701_v58, %v1699_v35  ;;  %v1704_v60 = vld [vmem:[%s3239_s21 + $0x1e8] sm:$0xff] }
 0x1aa   : > { %1114 = vmatmul.mubr.f32.gmra.mrb[16].mxu0 %v921_v14  ;;  %2433 = vmatprep.subr.bf16.mxu1 %v2390_v61  ;;  %v1706_v61 = vld [vmem:[%s3239_s21 + $0x1f8] sm:$0xff] }
 0x1ab   : > { %1119 = vmatprep.mubr.f32.mxu0 %v924_v18  ;;  %2397 = vmatpush1.bf16.msra.mxu0 %v2396_v29 }
 0x1ac   : > { %1333 = vmatmul.mubr.f32.gmra.mrb[14].mxu1 %v919_v36  ;;  %2399 = vmatprep.subr.bf16.mxu0 %v2398_v56  ;;  %v2422_v36 = vpack.c.bf16 %v1706_v61, %v1704_v60 }
 0x1ad   : > { %1338 = vmatprep.mubr.f32.mxu1 %v922_v37  ;;  %2449 = vmatpush1.bf16.msra.mxu1 %v2392_v0  ;;  %v1703_v37 = vld [vmem:[%s3239_s21 + $0x1e0] sm:$0xff] }
 0x1ae   : > { %1120 = vmatmul.mubr.f32.gmra.mrb[18].mxu0 %v923_v10  ;;  %2434 = vmatprep.subr.bf16.mxu1 %v2394_v54 }
 0x1af   : > { %1125 = vmatprep.mubr.f32.mxu0 %v926_v11  ;;  %2401 = vmatpush1.bf16.msra.mxu0 %v2400_v57 }
 0x1b0   : > { %1339 = vmatmul.mubr.f32.gmra.mrb[16].mxu1 %v921_v14  ;;  %2403 = vmatprep.subr.bf16.mxu0 %v2402_v3  ;;  %v1705_v14 = vld [vmem:[%s3239_s21 + $0x1f0] sm:$0xff] }
 0x1b1   : > { %1344 = vmatprep.mubr.f32.mxu1 %v924_v18  ;;  %2450 = vmatpush1.bf16.msra.mxu1 %v2396_v29  ;;  %v2424_v18 = vpack.c.bf16 %v1705_v14, %v1703_v37 }
 0x1b2   : > { %1126 = vmatmul.mubr.f32.gmra.mrb[20].mxu0 %v925_v15  ;;  %2435 = vmatprep.subr.bf16.mxu1 %v2398_v56 }
 0x1b3   : > { %1131 = vmatprep.mubr.f32.mxu0 %v928_v16  ;;  %2405 = vmatpush1.bf16.msra.mxu0 %v2404_v9 }
 0x1b4   : > { %1345 = vmatmul.mubr.f32.gmra.mrb[18].mxu1 %v923_v10  ;;  %2407 = vmatprep.subr.bf16.mxu0 %v2406_v39 }
 0x1b5   : > { %1350 = vmatprep.mubr.f32.mxu1 %v926_v11  ;;  %2451 = vmatpush1.bf16.msra.mxu1 %v2400_v57 }
 0x1b6   : > { %1132 = vmatmul.mubr.f32.gmra.mrb[22].mxu0 %v927_v23  ;;  %2436 = vmatprep.subr.bf16.mxu1 %v2402_v3 }
 0x1b7   : > { %1137 = vmatprep.mubr.f32.mxu0 %v930_v24  ;;  %2409 = vmatpush1.bf16.msra.mxu0 %v2408_v8 }
 0x1b8   : > { %1351 = vmatmul.mubr.f32.gmra.mrb[20].mxu1 %v925_v15  ;;  %2411 = vmatprep.subr.bf16.mxu0 %v2410_v22 }
 0x1b9   : > { %1356 = vmatprep.mubr.f32.mxu1 %v928_v16  ;;  %2452 = vmatpush1.bf16.msra.mxu1 %v2404_v9 }
 0x1ba   : > { %1138 = vmatmul.mubr.f32.gmra.mrb[24].mxu0 %v929_v42  ;;  %2437 = vmatprep.subr.bf16.mxu1 %v2406_v39 }
 0x1bb   : > { %1143 = vmatprep.mubr.f32.mxu0 %v932_v43  ;;  %2413 = vmatpush1.bf16.msra.mxu0 %v2412_v25 }
 0x1bc   : > { %1357 = vmatmul.mubr.f32.gmra.mrb[22].mxu1 %v927_v23  ;;  %2415 = vmatprep.subr.bf16.mxu0 %v2414_v50 }
 0x1bd   : > { %1362 = vmatprep.mubr.f32.mxu1 %v930_v24  ;;  %2453 = vmatpush1.bf16.msra.mxu1 %v2408_v8 }
 0x1be   : > { %1144 = vmatmul.mubr.f32.gmra.mrb[26].mxu0 %v931_v44  ;;  %2438 = vmatprep.subr.bf16.mxu1 %v2410_v22 }
 0x1bf   : > { %1149 = vmatprep.mubr.f32.mxu0 %v934_v19  ;;  %2417 = vmatpush1.bf16.msra.mxu0 %v2416_v27 }
 0x1c0   : > { %1363 = vmatmul.mubr.f32.gmra.mrb[24].mxu1 %v929_v42  ;;  %2419 = vmatprep.subr.bf16.mxu0 %v2418_v34 }
 0x1c1   : > { %1368 = vmatprep.mubr.f32.mxu1 %v932_v43  ;;  %2454 = vmatpush1.bf16.msra.mxu1 %v2412_v25 }
 0x1c2   : > { %1150 = vmatmul.mubr.f32.gmra.mrb[28].mxu0 %v933_v20  ;;  %2439 = vmatprep.subr.bf16.mxu1 %v2414_v50 }
 0x1c3   : > { %1155 = vmatprep.mubr.f32.mxu0 %v936_v45  ;;  %2421 = vmatpush1.bf16.msra.mxu0 %v2420_v59 }
 0x1c4   : > { %1369 = vmatmul.mubr.f32.gmra.mrb[26].mxu1 %v931_v44  ;;  %2423 = vmatprep.subr.bf16.mxu0 %v2422_v36 }
 0x1c5   : > { %1374 = vmatprep.mubr.f32.mxu1 %v934_v19  ;;  %2455 = vmatpush1.bf16.msra.mxu1 %v2416_v27 }
 0x1c6   : > { %1156 = vmatmul.mubr.f32.gmra.mrb[30].mxu0 %v935_v46  ;;  %2440 = vmatprep.subr.bf16.mxu1 %v2418_v34 }
 0x1c7   : > { %2425 = vmatpush1.bf16.msra.mxu0 %v2424_v18 }
 0x1c8   : > { %1375 = vmatmul.mubr.f32.gmra.mrb[28].mxu1 %v933_v20 }
 0x1c9   : > { %1380 = vmatprep.mubr.f32.mxu1 %v936_v45  ;;  %2456 = vmatpush1.bf16.msra.mxu1 %v2420_v59 }
 0x1ca   : > { %2441 = vmatprep.subr.bf16.mxu1 %v2422_v36 }
 0x1cc   : > { %1381 = vmatmul.mubr.f32.gmra.mrb[30].mxu1 %v935_v46 }
 0x1cd   : > { %2457 = vmatpush1.bf16.msra.mxu1 %v2424_v18 }
 0x25d   : > { %v3671_v10 = vpop.f32.mrb[0].mxu0 }
 0x25e   : > { %v1387_v11 = vsub.f32 0.0, %v3671_v10  ;;  %v3674_v15 = vpop.f32.mrb[1].mxu0 }
 0x25f   : > { %v1388_v16 = vsub.f32 0.0, %v3674_v15 }
 0x260   : > { %v1419_v23 = vmul.f32 1.442695, %v1387_v11 }
 0x261   : > { %v1421_v24 = vmul.f32 1.442695, %v1388_v16  ;;  %v3677_v42 = vpop.f32.mrb[2].mxu0 }
 0x262   : > { %2580 = vpow2.f32 %v1419_v23  ;;  %v1389_v43 = vsub.f32 0.0, %v3677_v42  ;;  %v3680_v44 = vpop.f32.mrb[3].mxu0 }
 0x263   : > { %2582 = vpow2.f32 %v1421_v24  ;;  %v1390_v19 = vsub.f32 0.0, %v3680_v44  ;;  %v3689_v53 = vpop.f32.mrb[0].mxu1 }
 0x264   : > { %v1423_v20 = vmul.f32 1.442695, %v1389_v43  ;;  %v3693_v28 = vpop.f32.mrb[1].mxu1 }
 0x265   : > { %v1425_v45 = vmul.f32 1.442695, %v1390_v19  ;;  %v3683_v46 = vpop.f32.mrb[4].mxu0 }
 0x266   : > { %2584 = vpow2.f32 %v1423_v20  ;;  %v1391_v47 = vsub.f32 0.0, %v3683_v46  ;;  %v3686_v52 = vpop.f32.mrb[5].mxu0 }
 0x267   : > { %2586 = vpow2.f32 %v1425_v45  ;;  %v1392_v0 = vsub.f32 0.0, %v3686_v52  ;;  %v3699_v31 = vpop.f32.mrb[2].mxu1 }
 0x268   : > { %v1427_v1 = vmul.f32 1.442695, %v1391_v47  ;;  %v3703_v4 = vpop.f32.mrb[3].mxu1 }
 0x269   : > { %v1429_v54 = vmul.f32 1.442695, %v1392_v0  ;;  %v3691_v2 = vpop.f32.mrb[6].mxu0 }
 0x26a   : > { %2588 = vpow2.f32 %v1427_v1  ;;  %v1393_v29 = vsub.f32 0.0, %v3691_v2  ;;  %v3696_v5 = vpop.f32.mrb[7].mxu0 }
 0x26b   : > { %2590 = vpow2.f32 %v1429_v54  ;;  %v1394_v55 = vsub.f32 0.0, %v3696_v5  ;;  %v3709_v41 = vpop.f32.mrb[4].mxu1 }
 0x26c   : > { %v2581_v56 = vpop.eup %2580  ;;  %v1431_v30 = vmul.f32 1.442695, %v1393_v29  ;;  %v3713_v12 = vpop.f32.mrb[5].mxu1 }
 0x26d   : > { %v2583_v57 = vpop.eup %2582  ;;  %v1483_v62 = vadd.f32 1.0, %v2581_v56  ;;  %v1433_v63 = vmul.f32 1.442695, %v1394_v55  ;;  %v3701_v3 = vpop.f32.mrb[8].mxu0 }
 0x26e   : > { %v1484_v6 = vadd.f32 1.0, %v2583_v57  ;;  %2592 = vpow2.f32 %v1431_v30  ;;  %v1395_v9 = vsub.f32 0.0, %v3701_v3  ;;  %v3706_v38 = vpop.f32.mrb[9].mxu0 }
 0x26f   : > { %2594 = vrcp.f32 %v1483_v62  ;;  %v1396_v7 = vsub.f32 0.0, %v3706_v38  ;;  %v3719_v26 = vpop.f32.mrb[6].mxu1 }
 0x270   : > { %v2585_v39 = vpop.eup %2584  ;;  %2596 = vrcp.f32 %v1484_v6  ;;  %v1435_v40 = vmul.f32 1.442695, %v1395_v9  ;;  %v3723_v35 = vpop.f32.mrb[7].mxu1 }
 0x271   : > { %v2587_v8 = vpop.eup %2586  ;;  %v1485_v17 = vadd.f32 1.0, %v2585_v39  ;;  %2598 = vpow2.f32 %v1433_v63  ;;  %v1437_v21 = vmul.f32 1.442695, %v1396_v7  ;;  %v3711_v22 = vpop.f32.mrb[10].mxu0 }
 0x272   : > { %v1486_v13 = vadd.f32 1.0, %v2587_v8  ;;  %2600 = vpow2.f32 %v1435_v40  ;;  %v1397_v25 = vsub.f32 0.0, %v3711_v22  ;;  %v3716_v48 = vpop.f32.mrb[11].mxu0 }
 0x273   : > { %2602 = vrcp.f32 %v1485_v17  ;;  %v1398_v49 = vsub.f32 0.0, %v3716_v48  ;;  %v3729_v14 = vpop.f32.mrb[8].mxu1 }
 0x274   : > { %v2589_v50 = vpop.eup %2588  ;;  %2604 = vrcp.f32 %v1486_v13  ;;  %v1439_v51 = vmul.f32 1.442695, %v1397_v25  ;;  %v3733_v24 = vpop.f32.mrb[9].mxu1 }
 0x275   : > { %v2591_v27 = vpop.eup %2590  ;;  %v1487_v32 = vadd.f32 1.0, %v2589_v50  ;;  %2606 = vpow2.f32 %v1437_v21  ;;  %v1441_v33 = vmul.f32 1.442695, %v1398_v49  ;;  %v3721_v34 = vpop.f32.mrb[12].mxu0 }
 0x276   : > { %v1488_v58 = vadd.f32 1.0, %v2591_v27  ;;  %2608 = vpow2.f32 %v1439_v51  ;;  %v1399_v59 = vsub.f32 0.0, %v3721_v34  ;;  %v3726_v60 = vpop.f32.mrb[13].mxu0 }
 0x277   : > { %2610 = vrcp.f32 %v1487_v32  ;;  %v1400_v61 = vsub.f32 0.0, %v3726_v60  ;;  %v3742_v30 = vpop.f32.mrb[10].mxu1 }
 0x278   : > { %v2593_v36 = vpop.eup %2592  ;;  %2612 = vrcp.f32 %v1488_v58  ;;  %v1443_v37 = vmul.f32 1.442695, %v1399_v59  ;;  %v3747_v9 = vpop.f32.mrb[11].mxu1 }
 0x279   : > { %v2595_v18 = vpop.eup %2594  ;;  %v1489_v11 = vadd.f32 1.0, %v2593_v36  ;;  %2614 = vpow2.f32 %v1441_v33  ;;  %v1445_v16 = vmul.f32 1.442695, %v1400_v61  ;;  %v3731_v23 = vpop.f32.mrb[14].mxu0 }
 0x27a   : > { %v2597_v43 = vpop.eup %2596  ;;  %v1516_v19 = vmul.f32 %v2595_v18, %v3671_v10  ;;  %2616 = vpow2.f32 %v1443_v37  ;;  %v1401_v20 = vsub.f32 0.0, %v3731_v23  ;;  %v3737_v45 = vpop.f32.mrb[15].mxu0 }
 0x27b   : > { %v2599_v47 = vpop.eup %2598  ;;  %v1518_v0 = vmul.f32 %v2597_v43, %v3674_v15  ;;  %2618 = vrcp.f32 %v1489_v11  ;;  %v1402_v1 = vsub.f32 0.0, %v3737_v45 }
 0x27c   : > { %v2601_v54 = vpop.eup %2600  ;;  %v1490_v29 = vadd.f32 1.0, %v2599_v47  ;;  %2620 = vpow2.f32 %v1445_v16  ;;  %v1447_v55 = vmul.f32 1.442695, %v1401_v20  ;;  %v1579_v56 = vmul.f32 %v1516_v19, %v3689_v53 }
 0x27d   : > { %v2603_v10 = vpop.eup %2602  ;;  %v1491_v57 = vadd.f32 1.0, %v2601_v54  ;;  %v1449_v62 = vmul.f32 1.442695, %v1402_v1  ;;  %v1580_v63 = vmul.f32 %v1518_v0, %v3693_v28  ;;  %v3745_v6 = vpop.f32.mrb[16].mxu0 }
 0x27e   : > { %v2605_v15 = vpop.eup %2604  ;;  %v1520_v7 = vmul.f32 %v2603_v10, %v3677_v42  ;;  %2622 = vrcp.f32 %v1490_v29  ;;  %v1403_v39 = vsub.f32 0.0, %v3745_v6  ;;  %v3751_v40 = vpop.f32.mrb[17].mxu0 }
 0x27f   : > { %v2607_v53 = vpop.eup %2606  ;;  %v1522_v8 = vmul.f32 %v2605_v15, %v3680_v44  ;;  %2624 = vrcp.f32 %v1491_v57  ;;  %v1404_v17 = vsub.f32 0.0, %v3751_v40  ;;  %1771 = vmatprep.mubr.f32.mxu0 %v1580_v63  ;;  %v3756_v42 = vpop.f32.mrb[12].mxu1 }
 0x280   : > { %v2609_v28 = vpop.eup %2608  ;;  %v1492_v21 = vadd.f32 1.0, %v2607_v53  ;;  %2626 = vpow2.f32 %v1447_v55  ;;  %v1451_v13 = vmul.f32 1.442695, %v1403_v39  ;;  %v1581_v25 = vmul.f32 %v1520_v7, %v3699_v31  ;;  %1772 = vmatmul.mubr.f32.vlgmr.msra.gmra.mrb[32].mxu0 %v1579_v56  ;;  %v3761_v32 = vpop.f32.mrb[13].mxu1 }
 0x281   : > { %v2611_v49 = vpop.eup %2610  ;;  %v1493_v50 = vadd.f32 1.0, %v2609_v28  ;;  %2628 = vpow2.f32 %v1449_v62  ;;  %v1453_v51 = vmul.f32 1.442695, %v1404_v17  ;;  %v1582_v27 = vmul.f32 %v1522_v8, %v3703_v4  ;;  %v3759_v44 = vpop.f32.mrb[18].mxu0 }
 0x282   : > { %v2613_v33 = vpop.eup %2612  ;;  %v1524_v58 = vmul.f32 %v2611_v49, %v3683_v46  ;;  %2630 = vrcp.f32 %v1492_v21  ;;  %v1405_v59 = vsub.f32 0.0, %v3759_v44  ;;  %v3765_v31 = vpop.f32.mrb[19].mxu0 }
 0x283   : > { %v2615_v61 = vpop.eup %2614  ;;  %v1526_v36 = vmul.f32 %v2613_v33, %v3686_v52  ;;  %2632 = vrcp.f32 %v1493_v50  ;;  %v1406_v37 = vsub.f32 0.0, %v3765_v31  ;;  %1777 = vmatprep.mubr.f32.mxu0 %v1582_v27  ;;  %v3770_v46 = vpop.f32.mrb[14].mxu1 }
 0x284   : > { %v2617_v4 = vpop.eup %2616  ;;  %v1494_v18 = vadd.f32 1.0, %v2615_v61  ;;  %2634 = vpow2.f32 %v1451_v13  ;;  %v1455_v11 = vmul.f32 1.442695, %v1405_v59  ;;  %v1583_v16 = vmul.f32 %v1524_v58, %v3709_v41  ;;  %1778 = vmatmul.mubr.f32.gmra.mrb[34].mxu0 %v1581_v25  ;;  %v3775_v52 = vpop.f32.mrb[15].mxu1 }
 0x285   : > { %v2619_v43 = vpop.eup %2618  ;;  %v1495_v19 = vadd.f32 1.0, %v2617_v4  ;;  %2636 = vpow2.f32 %v1453_v51  ;;  %v1584_v20 = vmul.f32 %v1526_v36, %v3713_v12  ;;  %v3773_v47 = vpop.f32.mrb[20].mxu0  ;;  %v1457_v54 = vmul.f32 1.442695, %v1406_v37 }
 0x286   : > { %v2621_v0 = vpop.eup %2620  ;;  %v1528_v1 = vmul.f32 %v2619_v43, %v3691_v2  ;;  %2638 = vrcp.f32 %v1494_v18  ;;  %v1407_v29 = vsub.f32 0.0, %v3773_v47  ;;  %v3779_v41 = vpop.f32.mrb[21].mxu0 }
 0x287   : > { %2640 = vrcp.f32 %v1495_v19  ;;  %v1496_v55 = vadd.f32 1.0, %v2621_v0  ;;  %v1408_v56 = vsub.f32 0.0, %v3779_v41  ;;  %1783 = vmatprep.mubr.f32.mxu0 %v1584_v20  ;;  %v3783_v62 = vpop.f32.mrb[16].mxu1 }
 0x288   : > { %v2623_v10 = vpop.eup %2622  ;;  %2642 = vpow2.f32 %v1455_v11  ;;  %v1459_v12 = vmul.f32 1.442695, %v1407_v29  ;;  %v1585_v57 = vmul.f32 %v1528_v1, %v3719_v26  ;;  %1784 = vmatmul.mubr.f32.gmra.mrb[36].mxu0 %v1583_v16  ;;  %v3788_v39 = vpop.f32.mrb[17].mxu1 }
 0x289   : > { %v2625_v2 = vpop.eup %2624  ;;  %v1530_v63 = vmul.f32 %v2623_v10, %v3696_v5  ;;  %2644 = vrcp.f32 %v1496_v55  ;;  %v1461_v15 = vmul.f32 1.442695, %v1408_v56  ;;  %v3786_v7 = vpop.f32.mrb[22].mxu0 }
 0x28a   : > { %v2627_v53 = vpop.eup %2626  ;;  %v1532_v8 = vmul.f32 %v2625_v2, %v3701_v3  ;;  %2646 = vpow2.f32 %v1457_v54  ;;  %v1409_v17 = vsub.f32 0.0, %v3786_v7  ;;  %v3792_v28 = vpop.f32.mrb[23].mxu0 }
 0x28b   : > { %v2629_v26 = vpop.eup %2628  ;;  %v1497_v21 = vadd.f32 1.0, %v2627_v53  ;;  %2648 = vpow2.f32 %v1459_v12  ;;  %v1586_v13 = vmul.f32 %v1530_v63, %v3723_v35  ;;  %v1410_v5 = vsub.f32 0.0, %v3792_v28  ;;  %v3797_v27 = vpop.f32.mrb[18].mxu1 }
 0x28c   : > { %v2631_v25 = vpop.eup %2630  ;;  %v1498_v49 = vadd.f32 1.0, %v2629_v26  ;;  %2650 = vpow2.f32 %v1461_v15  ;;  %v1463_v50 = vmul.f32 1.442695, %v1409_v17  ;;  %v1587_v51 = vmul.f32 %v1532_v8, %v3729_v14  ;;  %v3802_v61 = vpop.f32.mrb[19].mxu1 }
 0x28d   : > { %v2633_v3 = vpop.eup %2632  ;;  %v1534_v33 = vmul.f32 %v2631_v25, %v3706_v38  ;;  %2652 = vrcp.f32 %v1497_v21  ;;  %v1465_v58 = vmul.f32 1.442695, %v1410_v5  ;;  %1789 = vmatprep.mubr.f32.mxu0 %v1586_v13  ;;  %v3800_v59 = vpop.f32.mrb[24].mxu0 }
 0x28e   : > { %v2635_v35 = vpop.eup %2634  ;;  %v1536_v36 = vmul.f32 %v2633_v3, %v3711_v22  ;;  %2654 = vrcp.f32 %v1498_v49  ;;  %1790 = vmatmul.mubr.f32.gmra.mrb[38].mxu0 %v1585_v57  ;;  %v1411_v37 = vsub.f32 0.0, %v3800_v59  ;;  %v3806_v14 = vpop.f32.mrb[25].mxu0 }
 0x28f   : > { %v2637_v4 = vpop.eup %2636  ;;  %v1499_v18 = vadd.f32 1.0, %v2635_v35  ;;  %2656 = vpow2.f32 %v1463_v50  ;;  %v1588_v38 = vmul.f32 %v1534_v33, %v3733_v24  ;;  %v1412_v11 = vsub.f32 0.0, %v3806_v14  ;;  %v3811_v22 = vpop.f32.mrb[20].mxu1 }
 0x290   : > { %v2639_v16 = vpop.eup %2638  ;;  %v1500_v43 = vadd.f32 1.0, %v2637_v4  ;;  %2658 = vpow2.f32 %v1465_v58  ;;  %v1467_v19 = vmul.f32 1.442695, %v1411_v37  ;;  %v1589_v20 = vmul.f32 %v1536_v36, %v3742_v30  ;;  %v3816_v55 = vpop.f32.mrb[21].mxu1 }
 0x291   : > { %v2641_v0 = vpop.eup %2640  ;;  %v1538_v1 = vmul.f32 %v2639_v16, %v3716_v48  ;;  %2660 = vrcp.f32 %v1499_v18  ;;  %v1469_v54 = vmul.f32 1.442695, %v1412_v11  ;;  %1795 = vmatprep.mubr.f32.mxu0 %v1588_v38  ;;  %v3814_v29 = vpop.f32.mrb[26].mxu0 }
 0x292   : > { %v2643_v24 = vpop.eup %2642  ;;  %v1540_v56 = vmul.f32 %v2641_v0, %v3721_v34  ;;  %2662 = vrcp.f32 %v1500_v43  ;;  %1796 = vmatmul.mubr.f32.gmra.mrb[40].mxu0 %v1587_v51  ;;  %v1413_v10 = vsub.f32 0.0, %v3814_v29  ;;  %v3820_v30 = vpop.f32.mrb[27].mxu0 }
 0x293   : > { %v2645_v12 = vpop.eup %2644  ;;  %v1501_v57 = vadd.f32 1.0, %v2643_v24  ;;  %2664 = vpow2.f32 %v1467_v19  ;;  %v1590_v48 = vmul.f32 %v1538_v1, %v3747_v9  ;;  %v1414_v2 = vsub.f32 0.0, %v3820_v30  ;;  %v3826_v8 = vpop.f32.mrb[22].mxu1 }
 0x294   : > { %v2647_v63 = vpop.eup %2646  ;;  %v1542_v15 = vmul.f32 %v2645_v12, %v3726_v60  ;;  %2666 = vpow2.f32 %v1469_v54  ;;  %v1471_v53 = vmul.f32 1.442695, %v1413_v10  ;;  %v1591_v34 = vmul.f32 %v1540_v56, %v3756_v42  ;;  %v3830_v5 = vpop.f32.mrb[23].mxu1 }
 0x295   : > { %v2649_v17 = vpop.eup %2648  ;;  %2668 = vrcp.f32 %v1501_v57  ;;  %v1502_v26 = vadd.f32 1.0, %v2647_v63  ;;  %v1473_v21 = vmul.f32 1.442695, %v1414_v2  ;;  %1801 = vmatprep.mubr.f32.mxu0 %v1590_v48  ;;  %v3828_v13 = vpop.f32.mrb[28].mxu0 }
 0x296   : > { %v2651_v9 = vpop.eup %2650  ;;  %v1503_v25 = vadd.f32 1.0, %v2649_v17  ;;  %2670 = vpow2.f32 %v1471_v53  ;;  %v1592_v60 = vmul.f32 %v1542_v15, %v3761_v32  ;;  %1802 = vmatmul.mubr.f32.gmra.mrb[42].mxu0 %v1589_v20  ;;  %v1415_v49 = vsub.f32 0.0, %v3828_v13  ;;  %v3834_v42 = vpop.f32.mrb[29].mxu0 }
 0x297   : > { %v2653_v50 = vpop.eup %2652  ;;  %2672 = vrcp.f32 %v1502_v26  ;;  %v1504_v51 = vadd.f32 1.0, %v2651_v9  ;;  %v1416_v3 = vsub.f32 0.0, %v3834_v42  ;;  %v3838_v36 = vpop.f32.mrb[24].mxu1 }
 0x298   : > { %v2655_v33 = vpop.eup %2654  ;;  %v1544_v58 = vmul.f32 %v2653_v50, %v3731_v23  ;;  %2674 = vrcp.f32 %v1503_v25  ;;  %v1475_v35 = vmul.f32 1.442695, %v1415_v49  ;;  %1807 = vmatprep.mubr.f32.mxu0 %v1592_v60  ;;  %v3843_v38 = vpop.f32.mrb[25].mxu1 }
 0x299   : > { %v2657_v37 = vpop.eup %2656  ;;  %v1546_v32 = vmul.f32 %v2655_v33, %v3737_v45  ;;  %2676 = vrcp.f32 %v1504_v51  ;;  %v1477_v4 = vmul.f32 1.442695, %v1416_v3  ;;  %v3841_v18 = vpop.f32.mrb[30].mxu0 }
 0x29a   : > { %v2659_v11 = vpop.eup %2658  ;;  %v1505_v16 = vadd.f32 1.0, %v2657_v37  ;;  %2678 = vpow2.f32 %v1473_v21  ;;  %v1593_v43 = vmul.f32 %v1544_v58, %v3770_v46  ;;  %1808 = vmatmul.mubr.f32.gmra.mrb[44].mxu0 %v1591_v34  ;;  %v1417_v23 = vsub.f32 0.0, %v3841_v18  ;;  %v3847_v19 = vpop.f32.mrb[31].mxu0 }
 0x29b   : > { %v2661_v20 = vpop.eup %2660  ;;  %v1506_v0 = vadd.f32 1.0, %v2659_v11  ;;  %2680 = vpow2.f32 %v1475_v35  ;;  %v1594_v45 = vmul.f32 %v1546_v32, %v3775_v52  ;;  %v1418_v1 = vsub.f32 0.0, %v3847_v19  ;;  %v3852_v10 = vpop.f32.mrb[26].mxu1 }
 0x29c   : > { %v2663_v54 = vpop.eup %2662  ;;  %v1548_v24 = vmul.f32 %v2661_v20, %v3745_v6  ;;  %2682 = vrcp.f32 %v1505_v16  ;;  %v1479_v56 = vmul.f32 1.442695, %v1417_v23  ;;  %v3855_v57 = vpop.f32.mrb[27].mxu1 }
 0x29d   : > { %v2665_v46 = vpop.eup %2664  ;;  %v1550_v12 = vmul.f32 %v2663_v54, %v3751_v40  ;;  %2684 = vrcp.f32 %v1506_v0  ;;  %1813 = vmatprep.mubr.f32.mxu0 %v1594_v45  ;;  %v1481_v52 = vmul.f32 1.442695, %v1418_v1  ;;  %v3860_v40 = vpop.f32.mrb[28].mxu1 }
 0x29e   : > { %v2667_v48 = vpop.eup %2666  ;;  %v1507_v2 = vadd.f32 1.0, %v2665_v46  ;;  %2686 = vpow2.f32 %v1477_v4  ;;  %v1595_v63 = vmul.f32 %v1548_v24, %v3783_v62  ;;  %1814 = vmatmul.mubr.f32.gmra.mrb[46].mxu0 %v1593_v43  ;;  %v3862_v9 = vpop.f32.mrb[29].mxu1 }
 0x29f   : > { %v2669_v15 = vpop.eup %2668  ;;  %v1508_v6 = vadd.f32 1.0, %v2667_v48  ;;  %2688 = vpow2.f32 %v1479_v56  ;;  %v1596_v53 = vmul.f32 %v1550_v12, %v3788_v39  ;;  %v1382_v3 = vpop.f32.mrb[30].mxu1 }
 0x2a0   : > { %v2671_v34 = vpop.eup %2670  ;;  %v1552_v17 = vmul.f32 %v2669_v15, %v3759_v44  ;;  %2690 = vrcp.f32 %v1507_v2  ;;  %v1384_v37 = vpop.f32.mrb[31].mxu1  ;;  %v1612_v15 = vld [vmem:[#allocation3 + $0x8] sm:$0xff] }
 0x2a1   : > { %v2673_v26 = vpop.eup %2672  ;;  %2692 = vrcp.f32 %v1508_v6  ;;  %v1509_v21 = vadd.f32 1.0, %v2671_v34  ;;  %1819 = vmatprep.mubr.f32.mxu1 %v1596_v53 }
 0x2a2   : > { %v2675_v25 = vpop.eup %2674  ;;  %v1554_v62 = vmul.f32 %v2673_v26, %v3765_v31  ;;  %2694 = vpow2.f32 %v1481_v52  ;;  %v1597_v60 = vmul.f32 %v1552_v17, %v3797_v27  ;;  %1820 = vmatmul.mubr.f32.vlgmr.msra.gmra.mrb[32].mxu1 %v1595_v63  ;;  %v1613_v17 = vld [vmem:[#allocation3 + $0x10] sm:$0xff] }
 0x2a3   : > { %v2677_v39 = vpop.eup %2676  ;;  %v1556_v49 = vmul.f32 %v2675_v25, %v3773_v47  ;;  %2696 = vrcp.f32 %v1509_v21  ;;  %v1616_v25 = vld [vmem:[#allocation3 + $0x28] sm:$0xff] }
 0x2a4   : > { %v2679_v44 = vpop.eup %2678  ;;  %v1558_v50 = vmul.f32 %v2677_v39, %v3779_v41  ;;  %v1598_v51 = vmul.f32 %v1554_v62, %v3802_v61 }
 0x2a5   : > { %v2681_v33 = vpop.eup %2680  ;;  %v1510_v58 = vadd.f32 1.0, %v2679_v44  ;;  %v1599_v35 = vmul.f32 %v1556_v49, %v3811_v22  ;;  %v1617_v44 = vld [vmem:[#allocation3 + $0x30] sm:$0xff] }
 0x2a6   : > { %v2683_v31 = vpop.eup %2682  ;;  %v1511_v32 = vadd.f32 1.0, %v2681_v33  ;;  %v1600_v27 = vmul.f32 %v1558_v50, %v3816_v55  ;;  %1825 = vmatprep.mubr.f32.mxu1 %v1598_v51  ;;  %v1618_v50 = vld [vmem:[#allocation3 + $0x38] sm:$0xff] }
 0x2a7   : > { %v2685_v4 = vpop.eup %2684  ;;  %v1560_v47 = vmul.f32 %v2683_v31, %v3786_v7  ;;  %2698 = vrcp.f32 %v1510_v58  ;;  %1826 = vmatmul.mubr.f32.gmra.mrb[34].mxu1 %v1597_v60 }
 0x2a8   : > { %v2687_v11 = vpop.eup %2686  ;;  %v1562_v41 = vmul.f32 %v2685_v4, %v3792_v28  ;;  %2700 = vrcp.f32 %v1511_v32  ;;  %1831 = vmatprep.mubr.f32.mxu1 %v1600_v27 }
 0x2a9   : > { %v2689_v61 = vpop.eup %2688  ;;  %v1512_v16 = vadd.f32 1.0, %v2687_v11  ;;  %v1601_v22 = vmul.f32 %v1560_v47, %v3826_v8  ;;  %v1621_v47 = vld [vmem:[#allocation3 + $0x50] sm:$0xff]  ;;  %v1622_v11 = vld [vmem:[#allocation3 + $0x58] sm:$0xff] }
 0x2aa   : > { %v2691_v43 = vpop.eup %2690  ;;  %v1513_v23 = vadd.f32 1.0, %v2689_v61  ;;  %v1602_v20 = vmul.f32 %v1562_v41, %v3830_v5 }
 0x2ab   : > { %v2693_v55 = vpop.eup %2692  ;;  %v1564_v0 = vmul.f32 %v2691_v43, %v3800_v59  ;;  %2702 = vrcp.f32 %v1512_v16  ;;  %1832 = vmatmul.mubr.f32.gmra.mrb[36].mxu1 %v1599_v35  ;;  %v1619_v35 = vld [vmem:[#allocation3 + $0x40] sm:$0xff] }
 0x2ac   : > { %v2695_v7 = vpop.eup %2694  ;;  %v1566_v45 = vmul.f32 %v2693_v55, %v3806_v14  ;;  %2704 = vrcp.f32 %v1513_v23  ;;  %1837 = vmatprep.mubr.f32.mxu1 %v1602_v20  ;;  %v1623_v43 = vld [vmem:[#allocation3 + $0x60] sm:$0xff]  ;;  %v1624_v23 = vld [vmem:[#allocation3 + $0x68] sm:$0xff] }
 0x2ad   : > { %v2697_v28 = vpop.eup %2696  ;;  %v1514_v1 = vadd.f32 1.0, %v2695_v7  ;;  %v1603_v54 = vmul.f32 %v1564_v0, %v3838_v36 }
 0x2ae   : > { %v1568_v8 = vmul.f32 %v2697_v28, %v3814_v29  ;;  %v1604_v24 = vmul.f32 %v1566_v45, %v3843_v38  ;;  %v1625_v45 = vld [vmem:[#allocation3 + $0x70] sm:$0xff]  ;;  %v1626_v28 = vld [vmem:[#allocation3 + $0x78] sm:$0xff] }
 0x2af   : > { %2706 = vrcp.f32 %v1514_v1  ;;  %1838 = vmatmul.mubr.f32.gmra.mrb[38].mxu1 %v1601_v22 }
 0x2b0   : > { %v1605_v5 = vmul.f32 %v1568_v8, %v3852_v10  ;;  %1843 = vmatprep.mubr.f32.mxu1 %v1604_v24 }
 0x2b1   : > { %v2699_v59 = vpop.eup %2698 }
 0x2b2   : > { %v2701_v56 = vpop.eup %2700  ;;  %v1570_v46 = vmul.f32 %v2699_v59, %v3820_v30  ;;  %v1628_v59 = vld [vmem:[#allocation3 + $0x88] sm:$0xff] }
 0x2b3   : > { %v1572_v14 = vmul.f32 %v2701_v56, %v3828_v13  ;;  %1844 = vmatmul.mubr.f32.gmra.mrb[40].mxu1 %v1603_v54 }
 0x2b4   : > { %v1606_v12 = vmul.f32 %v1570_v46, %v3855_v57  ;;  %v1611_v57 = vld [vmem:[#allocation3] sm:$0xff] }
 0x2b5   : > { %v2703_v48 = vpop.eup %2702  ;;  %v1607_v36 = vmul.f32 %v1572_v14, %v3860_v40 }
 0x2b6   : > { %v2705_v29 = vpop.eup %2704  ;;  %v1574_v38 = vmul.f32 %v2703_v48, %v3834_v42  ;;  %1849 = vmatprep.mubr.f32.mxu1 %v1606_v12  ;;  %v1629_v48 = vld [vmem:[#allocation3 + $0x90] sm:$0xff] }
 0x2b7   : > { %v1576_v2 = vmul.f32 %v2705_v29, %v3841_v18  ;;  %1850 = vmatmul.mubr.f32.gmra.mrb[42].mxu1 %v1605_v5  ;;  %v1614_v18 = vld [vmem:[#allocation3 + $0x18] sm:$0xff]  ;;  %v1627_v5 = vld [vmem:[#allocation3 + $0x80] sm:$0xff] }
 0x2b8   : > { %v1608_v10 = vmul.f32 %v1574_v38, %v3862_v9 }
 0x2b9   : > { %v2707_v52 = vpop.eup %2706  ;;  %v1609_v63 = vmul.f32 %v1576_v2, %v1382_v3 }
 0x2ba   : > { %v1578_v30 = vmul.f32 %v2707_v52, %v3847_v19  ;;  %1855 = vmatprep.mubr.f32.mxu1 %v1608_v10  ;;  %v1615_v19 = vld [vmem:[#allocation3 + $0x20] sm:$0xff] }
 0x2bb   : > { %1856 = vmatmul.mubr.f32.gmra.mrb[44].mxu1 %v1607_v36  ;;  %v1630_v36 = vld [vmem:[#allocation3 + $0x98] sm:$0xff]  ;;  %v1631_v52 = vld [vmem:[#allocation3 + $0xa0] sm:$0xff] }
 0x2bc   : > { %v1610_v13 = vmul.f32 %v1578_v30, %v1384_v37  ;;  %v1620_v37 = vld [vmem:[#allocation3 + $0x48] sm:$0xff] }
 0x2be   : > { %1861 = vmatprep.mubr.f32.mxu1 %v1610_v13 }
 0x2bf   : > { %1862 = vmatmul.mubr.f32.gmra.mrb[46].mxu1 %v1609_v63  ;;  %v1632_v63 = vld [vmem:[#allocation3 + $0xa8] sm:$0xff] }
 0x353   : > { %v1773_v6 = vpop.f32.mrb[32].mxu0 }
 0x354   : > { %v1868_v53 = vadd.f32 %v1773_v6, %v1611_v57  ;;  %v1775_v42 = vpop.f32.mrb[33].mxu0  ;;  %v1633_v6 = vld [vmem:[#allocation3 + $0xb0] sm:$0xff] }
 0x355   : > { %v1869_v34 = vadd.f32 %v1775_v42, %v1612_v15 }
 0x356   : > { %1900 = vst [vmem:[#allocation3] sm:$0xff] %v1868_v53  ;;  %v1634_v53 = vld [vmem:[#allocation3 + $0xb8] sm:$0xff] }
 0x357   : > { %1901 = vst [vmem:[#allocation3 + $0x8] sm:$0xff] %v1869_v34  ;;  %v1779_v40 = vpop.f32.mrb[34].mxu0 }
 0x358   : > { %v1870_v26 = vadd.f32 %v1779_v40, %v1613_v17  ;;  %v1781_v21 = vpop.f32.mrb[35].mxu0  ;;  %v1635_v40 = vld [vmem:[#allocation3 + $0xc0] sm:$0xff] }
 0x359   : > { %v1871_v9 = vadd.f32 %v1781_v21, %v1614_v18 }
 0x35a   : > { %1902 = vst [vmem:[#allocation3 + $0x10] sm:$0xff] %v1870_v26  ;;  %v1636_v26 = vld [vmem:[#allocation3 + $0xc8] sm:$0xff] }
 0x35b   : > { %1903 = vst [vmem:[#allocation3 + $0x18] sm:$0xff] %v1871_v9  ;;  %v1785_v62 = vpop.f32.mrb[36].mxu0 }
 0x35c   : > { %v1872_v60 = vadd.f32 %v1785_v62, %v1615_v19  ;;  %v1787_v39 = vpop.f32.mrb[37].mxu0  ;;  %v1637_v62 = vld [vmem:[#allocation3 + $0xd0] sm:$0xff] }
 0x35d   : > { %v1873_v49 = vadd.f32 %v1787_v39, %v1616_v25 }
 0x35e   : > { %1904 = vst [vmem:[#allocation3 + $0x20] sm:$0xff] %v1872_v60  ;;  %v1638_v60 = vld [vmem:[#allocation3 + $0xd8] sm:$0xff] }
 0x35f   : > { %1905 = vst [vmem:[#allocation3 + $0x28] sm:$0xff] %v1873_v49 }
 0x361   : > { %v1791_v51 = vpop.f32.mrb[38].mxu0 }
 0x362   : > { %v1874_v3 = vadd.f32 %v1791_v51, %v1617_v44  ;;  %v1793_v33 = vpop.f32.mrb[39].mxu0  ;;  %v1639_v51 = vld [vmem:[#allocation3 + $0xe0] sm:$0xff] }
 0x363   : > { %v1875_v58 = vadd.f32 %v1793_v33, %v1618_v50 }
 0x364   : > { %1906 = vst [vmem:[#allocation3 + $0x30] sm:$0xff] %v1874_v3  ;;  %v1640_v3 = vld [vmem:[#allocation3 + $0xe8] sm:$0xff] }
 0x365   : > { %1907 = vst [vmem:[#allocation3 + $0x38] sm:$0xff] %v1875_v58  ;;  %v1797_v31 = vpop.f32.mrb[40].mxu0 }
 0x366   : > { %v1876_v32 = vadd.f32 %v1797_v31, %v1619_v35  ;;  %v1799_v27 = vpop.f32.mrb[41].mxu0  ;;  %v1641_v31 = vld [vmem:[#allocation3 + $0xf0] sm:$0xff] }
 0x367   : > { %v1877_v4 = vadd.f32 %v1799_v27, %v1620_v37 }
 0x368   : > { %1908 = vst [vmem:[#allocation3 + $0x40] sm:$0xff] %v1876_v32  ;;  %v1642_v32 = vld [vmem:[#allocation3 + $0xf8] sm:$0xff] }
 0x369   : > { %1909 = vst [vmem:[#allocation3 + $0x48] sm:$0xff] %v1877_v4  ;;  %v1803_v41 = vpop.f32.mrb[42].mxu0 }
 0x36a   : > { %v1878_v61 = vadd.f32 %v1803_v41, %v1621_v47  ;;  %v1805_v16 = vpop.f32.mrb[43].mxu0  ;;  %v1936_v41 = vld [vmem:[#allocation3] sm:$0xff] (!%p2221_p6) }
 0x36b   : > { %v1879_v22 = vadd.f32 %v1805_v16, %v1622_v11  ;;  %v1937_v16 = vld [vmem:[#allocation3 + $0x8] sm:$0xff] (!%p2221_p6) }
 0x36c   : > { %1910 = vst [vmem:[#allocation3 + $0x50] sm:$0xff] %v1878_v61  ;;  %v1968_v61 = vld [vmem:[%s3234_s2] sm:$0xff] (!%p2221_p6) }
 0x36d   : > { %1911 = vst [vmem:[#allocation3 + $0x58] sm:$0xff] %v1879_v22  ;;  %v1809_v20 = vpop.f32.mrb[44].mxu0  ;;  %v2000_v22 = vadd.f32 (!%p2221_p6), %v1968_v61, %v1936_v41  ;;  %v1989_v41 = vld [vmem:[%s3234_s2 + $0xa8] sm:$0xff] (!%p2221_p6) }
 0x36e   : > { %v1880_v55 = vadd.f32 %v1809_v20, %v1623_v43  ;;  %v1811_v0 = vpop.f32.mrb[45].mxu0  ;;  %v1969_v43 = vld [vmem:[%s3234_s2 + $0x8] sm:$0xff] (!%p2221_p6)  ;;  %v1970_v20 = vld [vmem:[%s3234_s2 + $0x10] sm:$0xff] (!%p2221_p6) }
 0x36f   : > { %v1881_v7 = vadd.f32 %v1811_v0, %v1624_v23  ;;  %v1938_v23 = vld [vmem:[#allocation3 + $0x10] sm:$0xff] (!%p2221_p6)  ;;  %2032 = vst [vmem:[%s3245_s26] sm:$0xff] (!%p2221_p6), %v2000_v22 }
 0x370   : > { %1912 = vst [vmem:[#allocation3 + $0x60] sm:$0xff] %v1880_v55  ;;  %v2001_v55 = vadd.f32 (!%p2221_p6), %v1969_v43, %v1937_v16  ;;  %v2002_v0 = vadd.f32 (!%p2221_p6), %v1970_v20, %v1938_v23  ;;  %v1990_v22 = vld [vmem:[%s3234_s2 + $0xb0] sm:$0xff] (!%p2221_p6)  ;;  %v1991_v23 = vld [vmem:[%s3234_s2 + $0xb8] sm:$0xff] (!%p2221_p6) }
 0x371   : > { %1913 = vst [vmem:[#allocation3 + $0x68] sm:$0xff] %v1881_v7  ;;  %v1815_v1 = vpop.f32.mrb[46].mxu0  ;;  %v1939_v7 = vld [vmem:[#allocation3 + $0x18] sm:$0xff] (!%p2221_p6) }
 0x372   : > { %v1882_v54 = vadd.f32 %v1815_v1, %v1625_v45  ;;  %v1817_v8 = vpop.f32.mrb[47].mxu0  ;;  %v1971_v45 = vld [vmem:[%s3234_s2 + $0x18] sm:$0xff] (!%p2221_p6)  ;;  %2033 = vst [vmem:[%s3245_s26 + $0x8] sm:$0xff] (!%p2221_p6), %v2001_v55  ;;  %2034 = vst [vmem:[%s3245_s26 + $0x10] sm:$0xff] (!%p2221_p6), %v2002_v0 }
 0x373   : > { %v1883_v24 = vadd.f32 %v1817_v8, %v1626_v28  ;;  %v1940_v28 = vld [vmem:[#allocation3 + $0x20] sm:$0xff] (!%p2221_p6)  ;;  %v2003_v1 = vadd.f32 (!%p2221_p6), %v1971_v45, %v1939_v7  ;;  %v1941_v8 = vld [vmem:[#allocation3 + $0x28] sm:$0xff] (!%p2221_p6) }
 0x374   : > { %1914 = vst [vmem:[#allocation3 + $0x70] sm:$0xff] %v1882_v54  ;;  %v1972_v54 = vld [vmem:[%s3234_s2 + $0x20] sm:$0xff] (!%p2221_p6) }
 0x375   : > { %1915 = vst [vmem:[#allocation3 + $0x78] sm:$0xff] %v1883_v24  ;;  %v1821_v56 = vpop.f32.mrb[32].mxu1  ;;  %v1973_v24 = vld [vmem:[%s3234_s2 + $0x28] sm:$0xff] (!%p2221_p6)  ;;  %2035 = vst [vmem:[%s3245_s26 + $0x18] sm:$0xff] (!%p2221_p6), %v2003_v1  ;;  %v1992_v7 = vld [vmem:[%s3234_s2 + $0xc0] sm:$0xff] (!%p2221_p6) }
 0x376   : > { %v1884_v46 = vadd.f32 %v1821_v56, %v1627_v5  ;;  %v1823_v14 = vpop.f32.mrb[33].mxu1  ;;  %v2004_v5 = vadd.f32 (!%p2221_p6), %v1972_v54, %v1940_v28  ;;  %v1942_v56 = vld [vmem:[#allocation3 + $0x30] sm:$0xff] (!%p2221_p6)  ;;  %v1993_v1 = vld [vmem:[%s3234_s2 + $0xc8] sm:$0xff] (!%p2221_p6) }
 0x377   : > { %v1885_v12 = vadd.f32 %v1823_v14, %v1628_v59  ;;  %v2005_v59 = vadd.f32 (!%p2221_p6), %v1973_v24, %v1941_v8  ;;  %v1943_v14 = vld [vmem:[#allocation3 + $0x38] sm:$0xff] (!%p2221_p6)  ;;  %v1994_v8 = vld [vmem:[%s3234_s2 + $0xd0] sm:$0xff] (!%p2221_p6) }
 0x378   : > { %1916 = vst [vmem:[#allocation3 + $0x80] sm:$0xff] %v1884_v46  ;;  %v1974_v46 = vld [vmem:[%s3234_s2 + $0x30] sm:$0xff] (!%p2221_p6)  ;;  %2036 = vst [vmem:[%s3245_s26 + $0x20] sm:$0xff] (!%p2221_p6), %v2004_v5 }
 0x379   : > { %1917 = vst [vmem:[#allocation3 + $0x88] sm:$0xff] %v1885_v12  ;;  %v2006_v12 = vadd.f32 (!%p2221_p6), %v1974_v46, %v1942_v56  ;;  %2037 = vst [vmem:[%s3245_s26 + $0x28] sm:$0xff] (!%p2221_p6), %v2005_v59  ;;  %v1995_v56 = vld [vmem:[%s3234_s2 + $0xd8] sm:$0xff] (!%p2221_p6) }
 0x37a   : > { %v1827_v29 = vpop.f32.mrb[34].mxu1 }
 0x37b   : > { %v1886_v38 = vadd.f32 %v1827_v29, %v1629_v48  ;;  %v1829_v2 = vpop.f32.mrb[35].mxu1  ;;  %v1975_v48 = vld [vmem:[%s3234_s2 + $0x38] sm:$0xff] (!%p2221_p6)  ;;  %v1976_v29 = vld [vmem:[%s3234_s2 + $0x40] sm:$0xff] (!%p2221_p6)  ;;  %2038 = vst [vmem:[%s3245_s26 + $0x30] sm:$0xff] (!%p2221_p6), %v2006_v12 }
 0x37c   : > { %v1887_v10 = vadd.f32 %v1829_v2, %v1630_v36  ;;  %v1944_v36 = vld [vmem:[#allocation3 + $0x40] sm:$0xff] (!%p2221_p6) }
 0x37d   : > { %1918 = vst [vmem:[#allocation3 + $0x90] sm:$0xff] %v1886_v38  ;;  %v2007_v38 = vadd.f32 (!%p2221_p6), %v1975_v48, %v1943_v14  ;;  %v2008_v2 = vadd.f32 (!%p2221_p6), %v1976_v29, %v1944_v36  ;;  %v1996_v12 = vld [vmem:[%s3234_s2 + $0xe0] sm:$0xff] (!%p2221_p6)  ;;  %v1997_v36 = vld [vmem:[%s3234_s2 + $0xe8] sm:$0xff] (!%p2221_p6) }
 0x37e   : > { %1919 = vst [vmem:[#allocation3 + $0x98] sm:$0xff] %v1887_v10  ;;  %v1833_v30 = vpop.f32.mrb[36].mxu1  ;;  %v1945_v10 = vld [vmem:[#allocation3 + $0x48] sm:$0xff] (!%p2221_p6) }
 0x37f   : > { %v1888_v13 = vadd.f32 %v1833_v30, %v1631_v52  ;;  %v1835_v57 = vpop.f32.mrb[37].mxu1  ;;  %v1977_v52 = vld [vmem:[%s3234_s2 + $0x48] sm:$0xff] (!%p2221_p6)  ;;  %2039 = vst [vmem:[%s3245_s26 + $0x38] sm:$0xff] (!%p2221_p6), %v2007_v38  ;;  %2040 = vst [vmem:[%s3245_s26 + $0x40] sm:$0xff] (!%p2221_p6), %v2008_v2 }
 0x380   : > { %v1889_v15 = vadd.f32 %v1835_v57, %v1632_v63  ;;  %v1946_v63 = vld [vmem:[#allocation3 + $0x50] sm:$0xff] (!%p2221_p6)  ;;  %v2009_v30 = vadd.f32 (!%p2221_p6), %v1977_v52, %v1945_v10  ;;  %v1947_v57 = vld [vmem:[#allocation3 + $0x58] sm:$0xff] (!%p2221_p6) }
 0x381   : > { %1920 = vst [vmem:[#allocation3 + $0xa0] sm:$0xff] %v1888_v13  ;;  %v1978_v13 = vld [vmem:[%s3234_s2 + $0x50] sm:$0xff] (!%p2221_p6) }
 0x382   : > { %1921 = vst [vmem:[#allocation3 + $0xa8] sm:$0xff] %v1889_v15  ;;  %v1839_v42 = vpop.f32.mrb[38].mxu1  ;;  %v1979_v15 = vld [vmem:[%s3234_s2 + $0x58] sm:$0xff] (!%p2221_p6)  ;;  %2041 = vst [vmem:[%s3245_s26 + $0x48] sm:$0xff] (!%p2221_p6), %v2009_v30  ;;  %v1998_v10 = vld [vmem:[%s3234_s2 + $0xf0] sm:$0xff] (!%p2221_p6) }
 0x383   : > { %v1890_v34 = vadd.f32 %v1839_v42, %v1633_v6  ;;  %v1841_v17 = vpop.f32.mrb[39].mxu1  ;;  %v2010_v6 = vadd.f32 (!%p2221_p6), %v1978_v13, %v1946_v63  ;;  %v1948_v42 = vld [vmem:[#allocation3 + $0x60] sm:$0xff] (!%p2221_p6)  ;;  %v1999_v30 = vld [vmem:[%s3234_s2 + $0xf8] sm:$0xff] (!%p2221_p6) }
 0x384   : > { %v1891_v18 = vadd.f32 %v1841_v17, %v1634_v53  ;;  %v2011_v53 = vadd.f32 (!%p2221_p6), %v1979_v15, %v1947_v57  ;;  %v1949_v17 = vld [vmem:[#allocation3 + $0x68] sm:$0xff] (!%p2221_p6) }
 0x385   : > { %1922 = vst [vmem:[#allocation3 + $0xb0] sm:$0xff] %v1890_v34  ;;  %v1980_v34 = vld [vmem:[%s3234_s2 + $0x60] sm:$0xff] (!%p2221_p6)  ;;  %2042 = vst [vmem:[%s3245_s26 + $0x50] sm:$0xff] (!%p2221_p6), %v2010_v6 }
 0x386   : > { %1923 = vst [vmem:[#allocation3 + $0xb8] sm:$0xff] %v1891_v18  ;;  %v1845_v21 = vpop.f32.mrb[40].mxu1  ;;  %v2012_v18 = vadd.f32 (!%p2221_p6), %v1980_v34, %v1948_v42  ;;  %2043 = vst [vmem:[%s3245_s26 + $0x58] sm:$0xff] (!%p2221_p6), %v2011_v53 }
 0x387   : > { %v1892_v9 = vadd.f32 %v1845_v21, %v1635_v40  ;;  %v1847_v19 = vpop.f32.mrb[41].mxu1  ;;  %v1981_v40 = vld [vmem:[%s3234_s2 + $0x68] sm:$0xff] (!%p2221_p6)  ;;  %v1982_v21 = vld [vmem:[%s3234_s2 + $0x70] sm:$0xff] (!%p2221_p6) }
 0x388   : > { %v1893_v25 = vadd.f32 %v1847_v19, %v1636_v26  ;;  %v1950_v26 = vld [vmem:[#allocation3 + $0x70] sm:$0xff] (!%p2221_p6)  ;;  %2044 = vst [vmem:[%s3245_s26 + $0x60] sm:$0xff] (!%p2221_p6), %v2012_v18 }
 0x389   : > { %1924 = vst [vmem:[#allocation3 + $0xc0] sm:$0xff] %v1892_v9  ;;  %v2013_v9 = vadd.f32 (!%p2221_p6), %v1981_v40, %v1949_v17  ;;  %v2014_v19 = vadd.f32 (!%p2221_p6), %v1982_v21, %v1950_v26 }
 0x38a   : > { %1925 = vst [vmem:[#allocation3 + $0xc8] sm:$0xff] %v1893_v25  ;;  %v1851_v39 = vpop.f32.mrb[42].mxu1  ;;  %v1951_v25 = vld [vmem:[#allocation3 + $0x78] sm:$0xff] (!%p2221_p6) }
 0x38b   : > { %v1894_v49 = vadd.f32 %v1851_v39, %v1637_v62  ;;  %v1853_v44 = vpop.f32.mrb[43].mxu1  ;;  %v1983_v62 = vld [vmem:[%s3234_s2 + $0x78] sm:$0xff] (!%p2221_p6)  ;;  %2045 = vst [vmem:[%s3245_s26 + $0x68] sm:$0xff] (!%p2221_p6), %v2013_v9  ;;  %2046 = vst [vmem:[%s3245_s26 + $0x70] sm:$0xff] (!%p2221_p6), %v2014_v19 }
 0x38c   : > { %v1895_v50 = vadd.f32 %v1853_v44, %v1638_v60  ;;  %v1952_v60 = vld [vmem:[#allocation3 + $0x80] sm:$0xff] (!%p2221_p6)  ;;  %v2015_v39 = vadd.f32 (!%p2221_p6), %v1983_v62, %v1951_v25  ;;  %v1953_v44 = vld [vmem:[#allocation3 + $0x88] sm:$0xff] (!%p2221_p6)  ;;  %v1958_v61 = vld [vmem:[#allocation3 + $0xb0] sm:$0xff] (!%p2221_p6) }
 0x38d   : > { %1926 = vst [vmem:[#allocation3 + $0xd0] sm:$0xff] %v1894_v49  ;;  %v1984_v49 = vld [vmem:[%s3234_s2 + $0x80] sm:$0xff] (!%p2221_p6)  ;;  %v1959_v43 = vld [vmem:[#allocation3 + $0xb8] sm:$0xff] (!%p2221_p6)  ;;  %v2022_v20 = vadd.f32 (!%p2221_p6), %v1990_v22, %v1958_v61 }
 0x38e   : > { %1927 = vst [vmem:[#allocation3 + $0xd8] sm:$0xff] %v1895_v50  ;;  %v1857_v33 = vpop.f32.mrb[44].mxu1  ;;  %v1985_v50 = vld [vmem:[%s3234_s2 + $0x88] sm:$0xff] (!%p2221_p6)  ;;  %2047 = vst [vmem:[%s3245_s26 + $0x78] sm:$0xff] (!%p2221_p6), %v2015_v39  ;;  %v2023_v55 = vadd.f32 (!%p2221_p6), %v1991_v23, %v1959_v43 }
 0x38f   : > { %v1896_v58 = vadd.f32 %v1857_v33, %v1639_v51  ;;  %v1859_v35 = vpop.f32.mrb[45].mxu1  ;;  %v2016_v51 = vadd.f32 (!%p2221_p6), %v1984_v49, %v1952_v60  ;;  %v1954_v33 = vld [vmem:[#allocation3 + $0x90] sm:$0xff] (!%p2221_p6)  ;;  %2054 = vst [vmem:[%s3245_s26 + $0xb0] sm:$0xff] (!%p2221_p6), %v2022_v20 }
 0x390   : > { %v1897_v37 = vadd.f32 %v1859_v35, %v1640_v3  ;;  %1935 = sbr.rel (%p2221_p6) target bundleno = 929 (0x3a1), region = 94  ;;  %v2017_v3 = vadd.f32 (!%p2221_p6), %v1985_v50, %v1953_v44  ;;  %v1955_v35 = vld [vmem:[#allocation3 + $0x98] sm:$0xff] (!%p2221_p6)  ;;  %v1960_v0 = vld [vmem:[#allocation3 + $0xc0] sm:$0xff] (!%p2221_p6)  ;;  %2055 = vst [vmem:[%s3245_s26 + $0xb8] sm:$0xff] (!%p2221_p6), %v2023_v55 }
 0x391   : > { %1928 = vst [vmem:[#allocation3 + $0xe0] sm:$0xff] %v1896_v58  ;;  %v1986_v58 = vld [vmem:[%s3234_s2 + $0x90] sm:$0xff] (!%p2221_p6)  ;;  %2048 = vst [vmem:[%s3245_s26 + $0x80] sm:$0xff] (!%p2221_p6), %v2016_v51  ;;  %v1961_v45 = vld [vmem:[#allocation3 + $0xc8] sm:$0xff] (!%p2221_p6)  ;;  %v2024_v28 = vadd.f32 (!%p2221_p6), %v1992_v7, %v1960_v0 }
 0x392   : > { %1929 = vst [vmem:[#allocation3 + $0xe8] sm:$0xff] %v1897_v37  ;;  %v1863_v27 = vpop.f32.mrb[46].mxu1  ;;  %v2018_v37 = vadd.f32 (!%p2221_p6), %v1986_v58, %v1954_v33  ;;  %2049 = vst [vmem:[%s3245_s26 + $0x88] sm:$0xff] (!%p2221_p6), %v2017_v3  ;;  %v2025_v24 = vadd.f32 (!%p2221_p6), %v1993_v1, %v1961_v45 }
 0x393   : > { %v1898_v4 = vadd.f32 %v1863_v27, %v1641_v31  ;;  %v1865_v47 = vpop.f32.mrb[47].mxu1  ;;  %v1987_v31 = vld [vmem:[%s3234_s2 + $0x98] sm:$0xff] (!%p2221_p6)  ;;  %v1988_v27 = vld [vmem:[%s3234_s2 + $0xa0] sm:$0xff] (!%p2221_p6)  ;;  %2056 = vst [vmem:[%s3245_s26 + $0xc0] sm:$0xff] (!%p2221_p6), %v2024_v28 }
 0x394   : > { %v1899_v11 = vadd.f32 %v1865_v47, %v1642_v32  ;;  %v1956_v32 = vld [vmem:[#allocation3 + $0xa0] sm:$0xff] (!%p2221_p6)  ;;  %2050 = vst [vmem:[%s3245_s26 + $0x90] sm:$0xff] (!%p2221_p6), %v2018_v37  ;;  %v1962_v54 = vld [vmem:[#allocation3 + $0xd0] sm:$0xff] (!%p2221_p6)  ;;  %2057 = vst [vmem:[%s3245_s26 + $0xc8] sm:$0xff] (!%p2221_p6), %v2025_v24 }
 0x395   : > { %1930 = vst [vmem:[#allocation3 + $0xf0] sm:$0xff] %v1898_v4  ;;  %v2019_v4 = vadd.f32 (!%p2221_p6), %v1987_v31, %v1955_v35  ;;  %v2020_v47 = vadd.f32 (!%p2221_p6), %v1988_v27, %v1956_v32  ;;  %v2026_v5 = vadd.f32 (!%p2221_p6), %v1994_v8, %v1962_v54  ;;  %v1963_v59 = vld [vmem:[#allocation3 + $0xd8] sm:$0xff] (!%p2221_p6) }
 0x396   : > { %1931 = vst [vmem:[#allocation3 + $0xf8] sm:$0xff] %v1899_v11  ;;  %v1957_v11 = vld [vmem:[#allocation3 + $0xa8] sm:$0xff] (!%p2221_p6)  ;;  %v2027_v14 = vadd.f32 (!%p2221_p6), %v1995_v56, %v1963_v59 }
 0x397   : > { %v2021_v16 = vadd.f32 %v1989_v41, %v1957_v11  ;;  %2051 = vst [vmem:[%s3245_s26 + $0x98] sm:$0xff] %v2019_v4  ;;  %2052 = vst [vmem:[%s3245_s26 + $0xa0] sm:$0xff] %v2020_v47 }
 0x398   : > { %v1964_v46 = vld [vmem:[#allocation3 + $0xe0] sm:$0xff]  ;;  %2058 = vst [vmem:[%s3245_s26 + $0xd0] sm:$0xff] %v2026_v5  ;;  %2059 = vst [vmem:[%s3245_s26 + $0xd8] sm:$0xff] %v2027_v14 }
 0x399   : > { %2053 = vst [vmem:[%s3245_s26 + $0xa8] sm:$0xff] %v2021_v16  ;;  %v1965_v48 = vld [vmem:[#allocation3 + $0xe8] sm:$0xff]  ;;  %v2028_v29 = vadd.f32 %v1996_v12, %v1964_v46 }
 0x39a   : > { %v2029_v38 = vadd.f32 %v1997_v36, %v1965_v48 }
 0x39b   : > { %2060 = vst [vmem:[%s3245_s26 + $0xe0] sm:$0xff] %v2028_v29 }
 0x39c   : > { %v1966_v2 = vld [vmem:[#allocation3 + $0xf0] sm:$0xff]  ;;  %2061 = vst [vmem:[%s3245_s26 + $0xe8] sm:$0xff] %v2029_v38 }
 0x39d   : > { %v1967_v52 = vld [vmem:[#allocation3 + $0xf8] sm:$0xff]  ;;  %v2030_v63 = vadd.f32 %v1998_v10, %v1966_v2 }
 0x39e   : > { %v2031_v13 = vadd.f32 %v1999_v30, %v1967_v52 }
 0x39f   : > { %2062 = vst [vmem:[%s3245_s26 + $0xf0] sm:$0xff] %v2030_v63 }
 0x3a0   : > { %2063 = vst [vmem:[%s3245_s26 + $0xf8] sm:$0xff] %v2031_v13 }
 0x3a1 PF: > { %s2233_s23 = sshll.u32 %s2806_s24, 12  ;;  %s2079_s16 = sshll.u32 %s3245_s26, 4  ;;  %s3961_s16 = int_to_ptr.vmem [resolvable:$true] %s2079_s16 }
 0x3a2   : > { %s3958_s12 = scalar_lea.hbm %s4028_s5, %s2233_s23  ;;  %s4043_s2 = sand.u32 1, %s2786_s19  }
 0x3a3   : > { %s3965_s17 = scalar_lea.sflag [#allocation7], %s4043_s2  ;;  %s2708_s28 = scalar_lea.vmem %s3961_s16, 4096 }
 0x3a4   : > { %p2709_p7 = scmp.ne.s32.totalorder %s3961_s16, %s2708_s28  ;;  %s2821_s24 = smov [#allocation6]  }
 0x3a5   : > { %s2712_s7 = sshll.u32 %s2821_s24, 4  ;;  %s2713_s7 = int_to_ptr.vmem [resolvable:$false] %s2712_s7 }
 0x3a6   : > { %p2710_p8 = pnand %p2709_p7, %p2933_p10  ;;  %s2714_s8 = scalar_lea.vmem %s2713_s7, 8192 }
 0x3a7   : > { %p2715_p11 = scmp.lt.s32.totalorder %s3961_s16, %s2713_s7  ;;  %p2716_p13 = scmp.lt.s32.totalorder %s2714_s8, %s2708_s28 }
 0x3a8   : > { %p2711_p9 = pneg %p2710_p8 }
 0x3a9   : > { %p2717_p0 = por %p2716_p13, %p2715_p11 }
 0x3ab   : > { %p2718_p1 = pnand %p2717_p0, %p2711_p9 }
 0x3ad   : > { %2721 = shalt.err (!%p2718_p1)
}
 0x3ae   : > { %s2722_s26 = scalar_lea.hbm %s3958_s12, 4096  ;;  %s2726_s29 = scalar_lea.hbm %s4028_s5, 16384 }
 0x3af   : > { %p2723_p2 = scmp.ne.s32.totalorder %s3958_s12, %s2722_s26  ;;  %p2727_p5 = scmp.lt.u32.totalorder %s3958_s12, %s4028_s5 }
 0x3b0   : > { %p2728_p6 = scmp.lt.u32.totalorder %s2726_s29, %s2722_s26  ;;  %p2730_p8 = scmp.lt.u32.totalorder %s2722_s26, %s3958_s12 }
 0x3b1   : > { %p2724_p3 = pnand %p2723_p2, %p2933_p10 }
 0x3b2   : > { %p2729_p7 = por %p2728_p6, %p2727_p5 }
 0x3b3   : > { %p2725_p4 = pneg %p2724_p3 }
 0x3b4   : > { %p2731_p9 = por %p2730_p8, %p2729_p7 }
 0x3b6   : > { %p2732_p11 = pnand %p2731_p9, %p2725_p4 }
 0x3b8   : > { %2735 = shalt.err (!%p2732_p11)
}
 0x3b9   : > { %s2822_s23 = smov 256   ;;  %s2823_s6 = smov 16  }
 0x3ba   : > { %2458 = dma.vmem_to_hbm [thread:$0]  (%p2933_p10), %s3961_s16, 4096, %s3958_s12, %s3965_s17, %s2822_s23, %s2822_s23, %s2823_s6  }
 0x3bb PF: > { %p2464_p13 = scmp.ge.s32.totalorder %s2818_s27, 2  ;;  %s2094_s10 = sand.u32 1, %s2782_s18  }
 0x3bc   : > { %s2095_s2 = scalar_lea.sflag [#allocation7], %s2094_s10 }
 0x3bd   : > { %p2461_p0 = pnand %p2464_p13, %p2940_p12 }
 0x3bf   : > { %2777 = dma.done.wait (!%p2461_p0), %s2095_s2, 4096  }
 0x3c0   : > { %2779 = vsyncadd (!%p2461_p0), %s2095_s2, 4294963200  ;;  %s18_s27 = sadd.s32 1, %s2818_s27   ;;  %s4044_s24 = sld [smem:[#allocation9_spill]] }
 0x3c1   : > { %p15_p1 = scmp.ge.s32.totalorder %s18_s27, 14   ;;  %s4045_s13 = sld [smem:[#allocation10_spill]] }
 0x3c2   : > { %s4046_s26 = sld [smem:[#allocation11_spill]]  ;;  %s4047_s18 = smov %s2786_s19 }
 0x3c3   : > { %s4048_s19 = smov %s2790_s20  ;;  %s4049_s20 = smov %s2938_s14 }
 0x3c4   : > { %s4050_s21 = smov %s2798_s22  ;;  %s4051_s22 = smov %s2927_s11 }
 0x3c5   : > { %s4052_s23 = smov %s2810_s25  ;;  %17 = sbr.rel (!%p15_p1) target bundleno = 9 (0x9), region = 148 }
 0x3c7   : > { %s4053_s25 = smov %s4045_s13 }
 0x3cc   :  { %2100 = vsyncpa [#allocation7], 1 }
 0x3cd   :  { %2102 = vsyncpa [#allocation7 + $0x1], 1 }

</bundles_post_ra>
